<compile_context>
chip_gen: v7x
topology: tpu7x:2x2x1
jax: 0.10.0
libtpu: 0.0.40
codegen_flags: <defaults>
</compile_context>

<pallas_src>
import functools

import jax
import jax.numpy as jnp
from jax.experimental import pallas as pl
from jax.experimental.pallas import tpu as pltpu

# ----------------------------- model hyper-params (small) --------------------
B = 2            # batch
VOCAB = 40       # text vocab size
LS = 8           # max_src_len (power of two)
H = 32           # encoder_hidden == decoder_hidden == generator num_mels
N_HEADS = 2
HD = H // N_HEADS
FFN_HID = 64     # FFT-block conv filter size
FFN_K = 3        # TODO(synk): FastSpeech2 uses kernel sizes (9, 1); 3 used here
VP_HID = 32      # variance-predictor filter size
VP_K = 3
N_SPEAKER = 4
GEN_C0, GEN_C1, GEN_C2 = 32, 16, 8   # generator channel schedule (2x upsample x2)
D_MAX = 8                            # per-token duration cap (static mel length)
MAX_MEL = LS * D_MAX                 # 64, power of two


# ----------------------------- shared in-kernel helpers ----------------------
def _lrelu(x):
    return jnp.where(x > 0, x, 0.1 * x)


def _add_ln_mask(x, res, g, b, pmask, eps):
    """(residual add) + LayerNorm over channels + zero padded frames."""
    y = x + res
    mu = jnp.mean(y, axis=-1, keepdims=True)
    var = jnp.mean((y - mu) ** 2, axis=-1, keepdims=True)
    y = (y - mu) * jax.lax.rsqrt(var + eps)
    return (y * g + b) * (1.0 - pmask)


def _group_ln(y, g, b, gw, eps):
    """LayerNorm applied independently to each gw-wide channel group."""
    C = y.shape[-1]
    parts = []
    for s in range(0, C, gw):
        seg = y[:, s:s + gw]
        mu = jnp.mean(seg, axis=-1, keepdims=True)
        var = jnp.mean((seg - mu) ** 2, axis=-1, keepdims=True)
        parts.append((seg - mu) * jax.lax.rsqrt(var + eps))
    return jnp.concatenate(parts, axis=-1) * g + b


def _conv_rows(x, w_ref, b_ref, T, K):
    """'same' 1-D conv over time for row-flattened (B*T, Cin) channels-last data.

    Cross-batch leakage at the seams of the flattened row axis is killed with a
    per-tap validity mask (T must be a power of two)."""
    BT, Cin = x.shape
    Cout = w_ref.shape[2]
    pad = (K - 1) // 2
    row = jax.lax.broadcasted_iota(jnp.int32, (BT, 1), 0)
    pos = jnp.bitwise_and(row, T - 1)                      # row mod T
    zp = jnp.zeros((pad, Cin), jnp.float32)
    xp = jnp.concatenate([zp, x, zp], axis=0)              # (BT + K - 1, Cin)
    acc = jnp.zeros((BT, Cout), jnp.float32) + b_ref[...]
    for kk in range(K):                                    # static unroll
        off = kk - pad
        tap = xp[kk:kk + BT, :]
        if off != 0:
            ok = jnp.logical_and(pos + off >= 0, pos + off < T)
            tap = tap * jnp.where(ok, 1.0, 0.0)
        acc = acc + jnp.dot(tap.astype(jnp.bfloat16), w_ref[kk],
                            preferred_element_type=jnp.float32)
    return acc


def _convT(x, w_ref, b_ref, K, pre_lrelu=False):
    """'same' 1-D conv with channels in sublanes, time in lanes.
    x: (Cin, T) f32; w_ref: (K, Cout, Cin) bf16; b_ref: (Cout, 1) f32."""
    Cin, T = x.shape
    Cout = w_ref.shape[1]
    if pre_lrelu:
        x = _lrelu(x)
    pad = (K - 1) // 2
    zp = jnp.zeros((Cin, pad), jnp.float32)
    xp = jnp.concatenate([zp, x, zp], axis=1).astype(jnp.bfloat16)
    acc = jnp.zeros((Cout, T), jnp.float32) + b_ref[...]
    for kk in range(K):                                    # static unroll
        acc = acc + jnp.dot(w_ref[kk], xp[:, kk:kk + T],
                            preferred_element_type=jnp.float32)
    return acc


# ----------------------------- fused FFT block kernel ------------------------
def _fft_block_kernel(x_ref, amask_ref, pmask_ref,
                      wqkv_ref, bqkv_ref, wo_ref, bo_ref,
                      ln1g_ref, ln1b_ref,
                      c1w_ref, c1b_ref, c2w_ref, c2b_ref,
                      ln2g_ref, ln2b_ref,
                      o_ref, *, T, n_heads, hd, K, eps):
    x = x_ref[...]                                         # (BT, H) f32
    BT, Hc = x.shape
    amask = amask_ref[...]                                 # (BT, BT), 1.0 = disallowed
    pmask = pmask_ref[...]                                 # (BT, 1),  1.0 = padded

    # fused QKV projection: one MXU push of (BT, H) x (H, 3H)
    qkv = jnp.dot(x.astype(jnp.bfloat16), wqkv_ref[...],
                  preferred_element_type=jnp.float32) + bqkv_ref[...]

    # per-head attention over lane slices; block-diagonal mask keeps batches apart
    scale = 1.0 / (hd ** 0.5)
    heads = []
    for h in range(n_heads):                               # static unroll
        qh = qkv[:, h * hd:(h + 1) * hd].astype(jnp.bfloat16)
        kh = qkv[:, Hc + h * hd:Hc + (h + 1) * hd].astype(jnp.bfloat16)
        vh = qkv[:, 2 * Hc + h * hd:2 * Hc + (h + 1) * hd].astype(jnp.bfloat16)
        s = jax.lax.dot_general(qh, kh, (((1,), (1,)), ((), ())),
                                preferred_element_type=jnp.float32) * scale
        s = jnp.where(amask > 0.5, -1e9, s)
        s = s - jnp.max(s, axis=-1, keepdims=True)
        p = jnp.exp(s)
        p = p * pl.reciprocal(jnp.sum(p, axis=-1, keepdims=True), approx=True)
        heads.append(jnp.dot(p.astype(jnp.bfloat16), vh,
                             preferred_element_type=jnp.float32))
    attn = jnp.concatenate(heads, axis=-1)                 # (BT, H)
    attn = jnp.dot(attn.astype(jnp.bfloat16), wo_ref[...],
                   preferred_element_type=jnp.float32) + bo_ref[...]

    x1 = _add_ln_mask(attn, x, ln1g_ref[...], ln1b_ref[...], pmask, eps)

    # conv FFN (tap matmuls), residual + LN, all still resident in VMEM/vregs
    h1 = jnp.maximum(_conv_rows(x1, c1w_ref, c1b_ref, T, K), 0.0)
    h2 = _conv_rows(h1, c2w_ref, c2b_ref, T, K)
    o_ref[...] = _add_ln_mask(h2, x1, ln2g_ref[...], ln2b_ref[...], pmask, eps)


# ----------------------------- fused variance predictors ---------------------
def _var_pred_kernel(x_ref, pmask_ref,
                     c1w_ref, c1b_ref, ln1g_ref, ln1b_ref,
                     c2w_ref, c2b_ref, ln2g_ref, ln2b_ref,
                     lw_ref, lb_ref, o_ref, *, T, K, gw, eps):
    x = x_ref[...]                                         # (BT, H)
    pmask = pmask_ref[...]                                 # (BT, 1)
    h = jnp.maximum(_conv_rows(x, c1w_ref, c1b_ref, T, K), 0.0)
    h = _group_ln(h, ln1g_ref[...], ln1b_ref[...], gw, eps)
    h = jnp.maximum(_conv_rows(h, c2w_ref, c2b_ref, T, K), 0.0)
    h = _group_ln(h, ln2g_ref[...], ln2b_ref[...], gw, eps)
    out = jnp.dot(h.astype(jnp.bfloat16), lw_ref[...],
                  preferred_element_type=jnp.float32) + lb_ref[...]
    o_ref[...] = out * (1.0 - pmask)                       # (BT, 3): [log_d, p, e]


# ----------------------------- fused generator (vocoder) ---------------------
def _generator_kernel(mel_ref, gT_ref, u1_ref, u2_ref,
                      prew, preb, condw, condb,
                      up1w, up1b, r1aw, r1ab, r1bw, r1bb,
                      up2w, up2b, r2aw, r2ab, r2bw, r2bb,
                      postw, postb, wav_ref, *, B, K):
    # speaker conditioning, shared across the (static) batch loop
    condT = jnp.dot(condw[...], gT_ref[...].astype(jnp.bfloat16),
                    preferred_element_type=jnp.float32) + condb[...]   # (C0, B)
    rows = []
    for b in range(B):                                     # static unroll, B = 2
        x = mel_ref[b]                                     # (H, T0)
        h = _convT(x, prew, preb, K)                       # (C0, T0)
        h = h + condT[:, b:b + 1]
        # TODO(synk): ConvTranspose1d upsampling replaced by nearest-repeat,
        # fused here as a matmul with a 0/1 expansion matrix (no HBM round trip).
        h = jnp.dot(_lrelu(h).astype(jnp.bfloat16), u1_ref[...],
                    preferred_element_type=jnp.float32)    # (C0, 2*T0)
        h = _convT(h, up1w, up1b, K)                       # (C1, 2*T0)
        r = _convT(h, r1aw, r1ab, K, pre_lrelu=True)
        r = _convT(r, r1bw, r1bb, K, pre_lrelu=True)
        h = h + r
        h = jnp.dot(_lrelu(h).astype(jnp.bfloat16), u2_ref[...],
                    preferred_element_type=jnp.float32)    # (C1, 4*T0)
        h = _convT(h, up2w, up2b, K)                       # (C2, 4*T0)
        r = _convT(h, r2aw, r2ab, K, pre_lrelu=True)
        r = _convT(r, r2bw, r2bb, K, pre_lrelu=True)
        h = h + r
        w = _convT(h, postw, postb, K, pre_lrelu=True)     # (1, 4*T0)
        rows.append(jnp.tanh(w))
    wav_ref[...] = jnp.concatenate(rows, axis=0)           # (B, T_wav), lane-dense


# ----------------------------- pallas_call wrappers ---------------------------
def _vmem_specs(n):
    return [pl.BlockSpec(memory_space=pltpu.MemorySpace.VMEM) for _ in range(n)]


def fft_block(xf, amask, pmask, lp, T):
    assert T & (T - 1) == 0, "per-sequence length must be a power of two"
    BT, Hc = xf.shape
    kernel = functools.partial(_fft_block_kernel, T=T, n_heads=N_HEADS, hd=HD,
                               K=FFN_K, eps=1e-5)
    args = (xf, amask, pmask,
            lp["wqkv"], lp["bqkv"], lp["wo"], lp["bo"],
            lp["ln1_g"], lp["ln1_b"],
            lp["c1_w"], lp["c1_b"], lp["c2_w"], lp["c2_b"],
            lp["ln2_g"], lp["ln2_b"])
    return pl.pallas_call(
        kernel,
        out_shape=jax.ShapeDtypeStruct((BT, Hc), jnp.float32),
        in_specs=_vmem_specs(len(args)),
        out_specs=pl.BlockSpec(memory_space=pltpu.MemorySpace.VMEM),
    )(*args)


def variance_predictors(xf, pmask, va, T):
    assert T & (T - 1) == 0
    BT = xf.shape[0]
    kernel = functools.partial(_var_pred_kernel, T=T, K=VP_K, gw=VP_HID, eps=1e-5)
    args = (xf, pmask, va["c1_w"], va["c1_b"], va["ln1_g"], va["ln1_b"],
            va["c2_w"], va["c2_b"], va["ln2_g"], va["ln2_b"],
            va["lin_w"], va["lin_b"])
    return pl.pallas_call(
        kernel,
        out_shape=jax.ShapeDtypeStruct((BT, 3), jnp.float32),
        in_specs=_vmem_specs(len(args)),
        out_specs=pl.BlockSpec(memory_space=pltpu.MemorySpace.VMEM),
    )(*args)


def _upsample_matrix(T):
    # U[m, j] = 1 iff j // 2 == m  (x2 nearest-neighbour upsample as a matmul)
    return (jnp.arange(T)[:, None] == (jnp.arange(2 * T)[None, :] // 2)
            ).astype(jnp.bfloat16)


def generator(mel_btc, g, gp):
    Bn, Tm, _ = mel_btc.shape
    melT = jnp.transpose(mel_btc, (0, 2, 1))               # (B, H, Tm) NCW-style
    gT = g.T                                               # (H, B)
    u1 = _upsample_matrix(Tm)
    u2 = _upsample_matrix(2 * Tm)
    kernel = functools.partial(_generator_kernel, B=Bn, K=3)
    args = (melT, gT, u1, u2,
            gp["pre_w"], gp["pre_b"], gp["cond_w"], gp["cond_b"],
            gp["up1_w"], gp["up1_b"], gp["rb1a_w"], gp["rb1a_b"],
            gp["rb1b_w"], gp["rb1b_b"],
            gp["up2_w"], gp["up2_b"], gp["rb2a_w"], gp["rb2a_b"],
            gp["rb2b_w"], gp["rb2b_b"],
            gp["post_w"], gp["post_b"])
    wav = pl.pallas_call(
        kernel,
        out_shape=jax.ShapeDtypeStruct((Bn, 4 * Tm), jnp.float32),
        in_specs=_vmem_specs(len(args)),
        out_specs=pl.BlockSpec(memory_space=pltpu.MemorySpace.VMEM),
    )(*args)
    return wav                                             # (B, T_wav)


# ----------------------------- plain-JAX glue ---------------------------------
def sinusoid_table(T, d):
    pos = jnp.arange(T)[:, None].astype(jnp.float32)
    i = jnp.arange(d)[None, :]
    angle = pos / jnp.power(10000.0, (2 * (i // 2)).astype(jnp.float32) / d)
    return jnp.where(i % 2 == 0, jnp.sin(angle), jnp.cos(angle)).astype(jnp.float32)


def get_mask_from_lengths(lengths, max_len):
    ids = jnp.arange(max_len)[None, :]
    return ids >= lengths[:, None]                         # True = padded


def make_attn_mask(pad_bt):
    """Block-diagonal (same batch) AND key-not-padded mask, flattened to (BT, BT)."""
    Bn, T = pad_bt.shape
    kp = pad_bt.reshape(-1)
    bid = jnp.repeat(jnp.arange(Bn), T)
    disallowed = (bid[:, None] != bid[None, :]) | kp[None, :]
    return disallowed.astype(jnp.float32)


# ----------------------------- full forward ----------------------------------
def jets_forward(params, speakers, texts, src_lens, max_src_len,
                 p_control=1.0, e_control=1.0, d_control=1.0, gen=True):
    Bn, Ls = texts.shape
    src_masks = get_mask_from_lengths(src_lens, max_src_len)       # (B, Ls)

    # ----- encoder (batch folded into sublanes: (B*Ls, H)) -----
    x = jnp.take(params["word_emb"], texts, axis=0) + sinusoid_table(Ls, H)[None]
    enc_amask = make_attn_mask(src_masks)
    enc_pmask = src_masks.reshape(-1, 1).astype(jnp.float32)
    xf = x.reshape(Bn * Ls, H)
    for lp in params["encoder"]["layers"]:
        xf = fft_block(xf, enc_amask, enc_pmask, lp, T=Ls)

    # speaker embedding
    g = jnp.take(params["speaker_emb"], speakers, axis=0)          # (B, H)
    xf = xf + jnp.repeat(g, Ls, axis=0)

    # ----- variance adaptor (duration | pitch | energy in one fused kernel) -----
    vp = variance_predictors(xf, enc_pmask, params["va"], T=Ls).reshape(Bn, Ls, 3)
    log_d, p_pred, e_pred = vp[..., 0], vp[..., 1], vp[..., 2]

    # TODO(synk): bucketised pitch/energy embeddings replaced by 1x1 projections
    va = params["va"]
    pitch_emb = (p_pred * p_control)[..., None] * va["pitch_emb_w"] + va["pitch_emb_b"]
    energy_emb = (e_pred * e_control)[..., None] * va["energy_emb_w"] + va["energy_emb_b"]
    x3 = xf.reshape(Bn, Ls, H) + pitch_emb + energy_emb

    # length regulator with a STATIC mel-length bound (no host sync, fully jittable)
    # TODO(synk): per-token duration capped at D_MAX to keep output shapes static.
    d_rounded = jnp.clip(jnp.round((jnp.exp(log_d) - 1.0) * d_control), 0.0,
                         float(D_MAX))
    d_rounded = jnp.where(src_masks, 0.0, d_rounded).astype(jnp.int32)
    mel_lens = jnp.sum(d_rounded, axis=1)
    cum = jnp.cumsum(d_rounded, axis=1)
    t_idx = jnp.arange(MAX_MEL)
    src_idx = jnp.sum(t_idx[None, :, None] >= cum[:, None, :], axis=-1)
    src_idx = jnp.clip(src_idx, 0, Ls - 1)
    expanded = jnp.take_along_axis(x3, src_idx[..., None], axis=1)  # (B, MAX_MEL, H)
    mel_masks = t_idx[None, :] >= mel_lens[:, None]
    expanded = jnp.where(mel_masks[..., None], 0.0, expanded)

    # ----- decoder -----
    y = expanded + sinusoid_table(MAX_MEL, H)[None]
    dec_amask = make_attn_mask(mel_masks)
    dec_pmask = mel_masks.reshape(-1, 1).astype(jnp.float32)
    yf = y.reshape(Bn * MAX_MEL, H)
    for lp in params["decoder"]["layers"]:
        yf = fft_block(yf, dec_amask, dec_pmask, lp, T=MAX_MEL)
    mel = yf.reshape(Bn, MAX_MEL, H)

    # ----- generator (entire vocoder fused, lane-dense waveform) -----
    wav2d = generator(mel, g, params["generator"])                  # (B, T_wav)
    wav = wav2d[:, None, :]                                         # (B, 1, T_wav)

    # TODO(synk): training-path alignment module (attn_h/attn_s/attn_logprob) and
    # random segment slicing are not run for gen=True / mels=None.
    attn_h = attn_s = attn_logprob = None
    indices = [None, None]
    return (wav, p_pred, e_pred, log_d, d_rounded, src_masks, mel_masks,
            indices, src_lens, mel_lens, attn_h, attn_s, attn_logprob)


# ----------------------------- parameter init --------------------------------
def init_params(key):
    keys = iter(jax.random.split(key, 128))

    def nrm(shape, scale=0.05, dtype=jnp.float32):
        return (scale * jax.random.normal(next(keys), shape)).astype(dtype)

    def bf(shape, scale=0.05):
        return nrm(shape, scale, jnp.bfloat16)

    def z(shape):
        return jnp.zeros(shape, jnp.float32)

    def o(shape):
        return jnp.ones(shape, jnp.float32)

    def fft_layer():
        return dict(
            wqkv=bf((H, 3 * H)), bqkv=z((1, 3 * H)),
            wo=bf((H, H)), bo=z((1, H)),
            ln1_g=o((1, H)), ln1_b=z((1, H)),
            c1_w=bf((FFN_K, H, FFN_HID)), c1_b=z((1, FFN_HID)),
            c2_w=bf((FFN_K, FFN_HID, H)), c2_b=z((1, H)),
            ln2_g=o((1, H)), ln2_b=z((1, H)))

    # three variance predictors stacked: channel groups [duration | pitch | energy];
    # block-diagonal c2/lin weights keep the predictors exactly independent.
    VPC = 3 * VP_HID
    c2 = jnp.zeros((VP_K, VPC, VPC), jnp.float32)
    for i in range(3):
        c2 = c2.at[:, i * VP_HID:(i + 1) * VP_HID,
                   i * VP_HID:(i + 1) * VP_HID].set(nrm((VP_K, VP_HID, VP_HID)))
    lw = jnp.zeros((VPC, 3), jnp.float32)
    for i in range(3):
        lw = lw.at[i * VP_HID:(i + 1) * VP_HID, i].set(nrm((VP_HID,)))
    va = dict(
        c1_w=bf((VP_K, H, VPC)), c1_b=z((1, VPC)),
        ln1_g=o((1, VPC)), ln1_b=z((1, VPC)),
        c2_w=c2.astype(jnp.bfloat16), c2_b=z((1, VPC)),
        ln2_g=o((1, VPC)), ln2_b=z((1, VPC)),
        lin_w=lw.astype(jnp.bfloat16),
        lin_b=jnp.array([[1.0, 0.0, 0.0]], jnp.float32),  # duration bias
        pitch_emb_w=nrm((1, H)), pitch_emb_b=z((1, H)),
        energy_emb_w=nrm((1, H)), energy_emb_b=z((1, H)))

    def convT(k, cout, cin):
        return bf((k, cout, cin))

    gen = dict(
        pre_w=convT(3, GEN_C0, H), pre_b=z((GEN_C0, 1)),
        cond_w=bf((GEN_C0, H)), cond_b=z((GEN_C0, 1)),
        up1_w=convT(3, GEN_C1, GEN_C0), up1_b=z((GEN_C1, 1)),
        rb1a_w=convT(3, GEN_C1, GEN_C1), rb1a_b=z((GEN_C1, 1)),
        rb1b_w=convT(3, GEN_C1, GEN_C1), rb1b_b=z((GEN_C1, 1)),
        up2_w=convT(3, GEN_C2, GEN_C1), up2_b=z((GEN_C2, 1)),
        rb2a_w=convT(3, GEN_C2, GEN_C2), rb2a_b=z((GEN_C2, 1)),
        rb2b_w=convT(3, GEN_C2, GEN_C2), rb2b_b=z((GEN_C2, 1)),
        post_w=convT(3, 1, GEN_C2), post_b=z((1, 1)))

    return dict(
        word_emb=nrm((VOCAB, H), 0.1),
        speaker_emb=nrm((N_SPEAKER, H), 0.1),
        encoder=dict(layers=[fft_layer()]),
        decoder=dict(layers=[fft_layer()]),
        va=va,
        generator=gen)


# ----------------------------- main -------------------------------------------
if __name__ == "__main__":
    key = jax.random.PRNGKey(0)
    pkey, tkey = jax.random.split(key)
    params = init_params(pkey)

    texts = jax.random.randint(tkey, (B, LS), 1, VOCAB, dtype=jnp.int32)
    speakers = jnp.array([0, 2], dtype=jnp.int32)
    src_lens = jnp.array([LS, LS - 3], dtype=jnp.int32)

    fwd = jax.jit(jets_forward, static_argnames=("max_src_len", "gen"))
    outs = fwd(params, speakers, texts, src_lens, max_src_len=LS, gen=True)

    for leaf in jax.tree_util.tree_leaves(outs):
        if isinstance(leaf, jax.Array):
            jax.block_until_ready(leaf)

    wav = outs[0]
    assert wav.ndim == 3 and wav.shape[0] == B and wav.shape[1] == 1
    print("KERNEL_OK")
</pallas_src>

<mosaic_0001>
module attributes {stable_mosaic.version = 11 : i64} {
  func.func @_fft_block_kernel(%arg0: memref<16x32xf32, #tpu.memory_space<vmem>>, %arg1: memref<16x16xf32, #tpu.memory_space<vmem>>, %arg2: memref<16x1xf32, #tpu.memory_space<vmem>>, %arg3: memref<32x96xbf16, #tpu.memory_space<vmem>>, %arg4: memref<1x96xf32, #tpu.memory_space<vmem>>, %arg5: memref<32x32xbf16, #tpu.memory_space<vmem>>, %arg6: memref<1x32xf32, #tpu.memory_space<vmem>>, %arg7: memref<1x32xf32, #tpu.memory_space<vmem>>, %arg8: memref<1x32xf32, #tpu.memory_space<vmem>>, %arg9: memref<3x32x64xbf16, #tpu.memory_space<vmem>>, %arg10: memref<1x64xf32, #tpu.memory_space<vmem>>, %arg11: memref<3x64x32xbf16, #tpu.memory_space<vmem>>, %arg12: memref<1x32xf32, #tpu.memory_space<vmem>>, %arg13: memref<1x32xf32, #tpu.memory_space<vmem>>, %arg14: memref<1x32xf32, #tpu.memory_space<vmem>>, %arg15: memref<16x32xf32, #tpu.memory_space<vmem>>) attributes {dimension_semantics = [], scalar_prefetch = 0 : i64, scratch_operands = 0 : i64, tpu.core_type = #tpu.core_type<tc>} {
    %c0 = arith.constant 0 : index
    %c0_0 = arith.constant 0 : index
    %0 = vector.load %arg0[%c0, %c0_0] : memref<16x32xf32, #tpu.memory_space<vmem>>, vector<16x32xf32>
    %c0_1 = arith.constant 0 : index
    %c0_2 = arith.constant 0 : index
    %1 = vector.load %arg1[%c0_1, %c0_2] : memref<16x16xf32, #tpu.memory_space<vmem>>, vector<16x16xf32>
    %c0_3 = arith.constant 0 : index
    %c0_4 = arith.constant 0 : index
    %2 = vector.load %arg2[%c0_3, %c0_4] : memref<16x1xf32, #tpu.memory_space<vmem>>, vector<16x1xf32>
    %3 = arith.truncf %0 : vector<16x32xf32> to vector<16x32xbf16>
    %c0_5 = arith.constant 0 : index
    %c0_6 = arith.constant 0 : index
    %4 = vector.load %arg3[%c0_5, %c0_6] : memref<32x96xbf16, #tpu.memory_space<vmem>>, vector<32x96xbf16>
    %cst = arith.constant dense<0.000000e+00> : vector<16x96xf32>
    %5 = tpu.matmul %3, %4, %cst {dimension_numbers = #tpu.dot_dimension_numbers<[1], [0], [0], [1], [0, 0, 1, 1], [], []>} : vector<16x32xbf16>, vector<32x96xbf16>, vector<16x96xf32> -> vector<16x96xf32>
    %c0_7 = arith.constant 0 : index
    %c0_8 = arith.constant 0 : index
    %6 = vector.load %arg4[%c0_7, %c0_8] : memref<1x96xf32, #tpu.memory_space<vmem>>, vector<1x96xf32>
    %7 = vector.broadcast %6 : vector<1x96xf32> to vector<16x96xf32>
    %8 = arith.addf %5, %7 : vector<16x96xf32>
    %9 = vector.extract_strided_slice %8 {offsets = [0, 0], sizes = [16, 16], strides = [1, 1]} : vector<16x96xf32> to vector<16x16xf32>
    %10 = arith.truncf %9 : vector<16x16xf32> to vector<16x16xbf16>
    %11 = vector.extract_strided_slice %8 {offsets = [0, 32], sizes = [16, 16], strides = [1, 1]} : vector<16x96xf32> to vector<16x16xf32>
    %12 = arith.truncf %11 : vector<16x16xf32> to vector<16x16xbf16>
    %13 = vector.extract_strided_slice %8 {offsets = [0, 64], sizes = [16, 16], strides = [1, 1]} : vector<16x96xf32> to vector<16x16xf32>
    %14 = arith.truncf %13 : vector<16x16xf32> to vector<16x16xbf16>
    %cst_9 = arith.constant dense<0.000000e+00> : vector<16x16xf32>
    %15 = tpu.matmul %10, %12, %cst_9 {dimension_numbers = #tpu.dot_dimension_numbers<[1], [1], [0], [0], [0, 0, 1, 0], [], []>} : vector<16x16xbf16>, vector<16x16xbf16>, vector<16x16xf32> -> vector<16x16xf32>
    %cst_10 = arith.constant 2.500000e-01 : f32
    %16 = vector.broadcast %cst_10 : f32 to vector<16x16xf32>
    %17 = arith.mulf %15, %16 : vector<16x16xf32>
    %cst_11 = arith.constant 5.000000e-01 : f32
    %18 = vector.broadcast %cst_11 : f32 to vector<16x16xf32>
    %19 = arith.cmpf ogt, %1, %18 : vector<16x16xf32>
    %cst_12 = arith.constant -1.000000e+09 : f32
    %20 = vector.broadcast %cst_12 : f32 to vector<16x16xf32>
    %21 = arith.select %19, %20, %17 : vector<16x16xi1>, vector<16x16xf32>
    %cst_13 = arith.constant dense<0xFF800000> : vector<16xf32>
    %22 = vector.multi_reduction <maximumf>, %21, %cst_13 [1] : vector<16x16xf32> to vector<16xf32>
    %23 = vector.shape_cast %22 : vector<16xf32> to vector<16x1xf32>
    %24 = vector.broadcast %23 : vector<16x1xf32> to vector<16x16xf32>
    %25 = arith.subf %21, %24 : vector<16x16xf32>
    %26 = math.exp %25 : vector<16x16xf32>
    %cst_14 = arith.constant dense<0.000000e+00> : vector<16xf32>
    %27 = vector.multi_reduction <add>, %26, %cst_14 [1] : vector<16x16xf32> to vector<16xf32>
    %28 = vector.shape_cast %27 : vector<16xf32> to vector<16x1xf32>
    %29 = tpu.reciprocal %28 {approx = true} : vector<16x1xf32> -> vector<16x1xf32>
    %30 = vector.broadcast %29 : vector<16x1xf32> to vector<16x16xf32>
    %31 = arith.mulf %26, %30 : vector<16x16xf32>
    %32 = arith.truncf %31 : vector<16x16xf32> to vector<16x16xbf16>
    %cst_15 = arith.constant dense<0.000000e+00> : vector<16x16xf32>
    %33 = tpu.matmul %32, %14, %cst_15 {dimension_numbers = #tpu.dot_dimension_numbers<[1], [0], [0], [1], [0, 0, 1, 1], [], []>} : vector<16x16xbf16>, vector<16x16xbf16>, vector<16x16xf32> -> vector<16x16xf32>
    %34 = vector.extract_strided_slice %8 {offsets = [0, 16], sizes = [16, 16], strides = [1, 1]} : vector<16x96xf32> to vector<16x16xf32>
    %35 = arith.truncf %34 : vector<16x16xf32> to vector<16x16xbf16>
    %36 = vector.extract_strided_slice %8 {offsets = [0, 48], sizes = [16, 16], strides = [1, 1]} : vector<16x96xf32> to vector<16x16xf32>
    %37 = arith.truncf %36 : vector<16x16xf32> to vector<16x16xbf16>
    %38 = vector.extract_strided_slice %8 {offsets = [0, 80], sizes = [16, 16], strides = [1, 1]} : vector<16x96xf32> to vector<16x16xf32>
    %39 = arith.truncf %38 : vector<16x16xf32> to vector<16x16xbf16>
    %cst_16 = arith.constant dense<0.000000e+00> : vector<16x16xf32>
    %40 = tpu.matmul %35, %37, %cst_16 {dimension_numbers = #tpu.dot_dimension_numbers<[1], [1], [0], [0], [0, 0, 1, 0], [], []>} : vector<16x16xbf16>, vector<16x16xbf16>, vector<16x16xf32> -> vector<16x16xf32>
    %cst_17 = arith.constant 2.500000e-01 : f32
    %41 = vector.broadcast %cst_17 : f32 to vector<16x16xf32>
    %42 = arith.mulf %40, %41 : vector<16x16xf32>
    %cst_18 = arith.constant 5.000000e-01 : f32
    %43 = vector.broadcast %cst_18 : f32 to vector<16x16xf32>
    %44 = arith.cmpf ogt, %1, %43 : vector<16x16xf32>
    %cst_19 = arith.constant -1.000000e+09 : f32
    %45 = vector.broadcast %cst_19 : f32 to vector<16x16xf32>
    %46 = arith.select %44, %45, %42 : vector<16x16xi1>, vector<16x16xf32>
    %cst_20 = arith.constant dense<0xFF800000> : vector<16xf32>
    %47 = vector.multi_reduction <maximumf>, %46, %cst_20 [1] : vector<16x16xf32> to vector<16xf32>
    %48 = vector.shape_cast %47 : vector<16xf32> to vector<16x1xf32>
    %49 = vector.broadcast %48 : vector<16x1xf32> to vector<16x16xf32>
    %50 = arith.subf %46, %49 : vector<16x16xf32>
    %51 = math.exp %50 : vector<16x16xf32>
    %cst_21 = arith.constant dense<0.000000e+00> : vector<16xf32>
    %52 = vector.multi_reduction <add>, %51, %cst_21 [1] : vector<16x16xf32> to vector<16xf32>
    %53 = vector.shape_cast %52 : vector<16xf32> to vector<16x1xf32>
    %54 = tpu.reciprocal %53 {approx = true} : vector<16x1xf32> -> vector<16x1xf32>
    %55 = vector.broadcast %54 : vector<16x1xf32> to vector<16x16xf32>
    %56 = arith.mulf %51, %55 : vector<16x16xf32>
    %57 = arith.truncf %56 : vector<16x16xf32> to vector<16x16xbf16>
    %cst_22 = arith.constant dense<0.000000e+00> : vector<16x16xf32>
    %58 = tpu.matmul %57, %39, %cst_22 {dimension_numbers = #tpu.dot_dimension_numbers<[1], [0], [0], [1], [0, 0, 1, 1], [], []>} : vector<16x16xbf16>, vector<16x16xbf16>, vector<16x16xf32> -> vector<16x16xf32>
    %59 = tpu.concatenate %33, %58 in 1 : vector<16x16xf32>, vector<16x16xf32> -> vector<16x32xf32>
    %60 = arith.truncf %59 : vector<16x32xf32> to vector<16x32xbf16>
    %c0_23 = arith.constant 0 : index
    %c0_24 = arith.constant 0 : index
    %61 = vector.load %arg5[%c0_23, %c0_24] : memref<32x32xbf16, #tpu.memory_space<vmem>>, vector<32x32xbf16>
    %cst_25 = arith.constant dense<0.000000e+00> : vector<16x32xf32>
    %62 = tpu.matmul %60, %61, %cst_25 {dimension_numbers = #tpu.dot_dimension_numbers<[1], [0], [0], [1], [0, 0, 1, 1], [], []>} : vector<16x32xbf16>, vector<32x32xbf16>, vector<16x32xf32> -> vector<16x32xf32>
    %c0_26 = arith.constant 0 : index
    %c0_27 = arith.constant 0 : index
    %63 = vector.load %arg6[%c0_26, %c0_27] : memref<1x32xf32, #tpu.memory_space<vmem>>, vector<1x32xf32>
    %64 = vector.broadcast %63 : vector<1x32xf32> to vector<16x32xf32>
    %65 = arith.addf %62, %64 : vector<16x32xf32>
    %c0_28 = arith.constant 0 : index
    %c0_29 = arith.constant 0 : index
    %66 = vector.load %arg7[%c0_28, %c0_29] : memref<1x32xf32, #tpu.memory_space<vmem>>, vector<1x32xf32>
    %c0_30 = arith.constant 0 : index
    %c0_31 = arith.constant 0 : index
    %67 = vector.load %arg8[%c0_30, %c0_31] : memref<1x32xf32, #tpu.memory_space<vmem>>, vector<1x32xf32>
    %68 = arith.addf %65, %0 : vector<16x32xf32>
    %cst_32 = arith.constant dense<0.000000e+00> : vector<16xf32>
    %69 = vector.multi_reduction <add>, %68, %cst_32 [1] : vector<16x32xf32> to vector<16xf32>
    %70 = vector.shape_cast %69 : vector<16xf32> to vector<16x1xf32>
    %cst_33 = arith.constant 3.200000e+01 : f32
    %71 = vector.broadcast %cst_33 : f32 to vector<16x1xf32>
    %72 = arith.divf %70, %71 : vector<16x1xf32>
    %73 = vector.broadcast %72 : vector<16x1xf32> to vector<16x32xf32>
    %74 = arith.subf %68, %73 : vector<16x32xf32>
    %75 = arith.mulf %74, %74 : vector<16x32xf32>
    %cst_34 = arith.constant dense<0.000000e+00> : vector<16xf32>
    %76 = vector.multi_reduction <add>, %75, %cst_34 [1] : vector<16x32xf32> to vector<16xf32>
    %77 = vector.shape_cast %76 : vector<16xf32> to vector<16x1xf32>
    %cst_35 = arith.constant 3.200000e+01 : f32
    %78 = vector.broadcast %cst_35 : f32 to vector<16x1xf32>
    %79 = arith.divf %77, %78 : vector<16x1xf32>
    %80 = vector.broadcast %72 : vector<16x1xf32> to vector<16x32xf32>
    %81 = arith.subf %68, %80 : vector<16x32xf32>
    %cst_36 = arith.constant 9.99999974E-6 : f32
    %82 = vector.broadcast %cst_36 : f32 to vector<16x1xf32>
    %83 = arith.addf %79, %82 : vector<16x1xf32>
    %84 = math.rsqrt %83 : vector<16x1xf32>
    %85 = vector.broadcast %84 : vector<16x1xf32> to vector<16x32xf32>
    %86 = arith.mulf %81, %85 : vector<16x32xf32>
    %87 = vector.broadcast %66 : vector<1x32xf32> to vector<16x32xf32>
    %88 = arith.mulf %86, %87 : vector<16x32xf32>
    %89 = vector.broadcast %67 : vector<1x32xf32> to vector<16x32xf32>
    %90 = arith.addf %88, %89 : vector<16x32xf32>
    %cst_37 = arith.constant 1.000000e+00 : f32
    %91 = vector.broadcast %cst_37 : f32 to vector<16x1xf32>
    %92 = arith.subf %91, %2 : vector<16x1xf32>
    %93 = vector.broadcast %92 : vector<16x1xf32> to vector<16x32xf32>
    %94 = arith.mulf %90, %93 : vector<16x32xf32>
    %95 = tpu.iota {dimensions = array<i32: 0>} : vector<16x1xi32>
    %c7_i32 = arith.constant 7 : i32
    %96 = vector.broadcast %c7_i32 : i32 to vector<16x1xi32>
    %97 = arith.andi %95, %96 : vector<16x1xi32>
    %cst_38 = arith.constant 0.000000e+00 : f32
    %98 = vector.broadcast %cst_38 : f32 to vector<1x32xf32>
    %99 = tpu.concatenate %98, %94, %98 in 0 : vector<1x32xf32>, vector<16x32xf32>, vector<1x32xf32> -> vector<18x32xf32>
    %cst_39 = arith.constant 0.000000e+00 : f32
    %100 = vector.broadcast %cst_39 : f32 to vector<16x64xf32>
    %c0_40 = arith.constant 0 : index
    %c0_41 = arith.constant 0 : index
    %101 = vector.load %arg10[%c0_40, %c0_41] : memref<1x64xf32, #tpu.memory_space<vmem>>, vector<1x64xf32>
    %102 = vector.broadcast %101 : vector<1x64xf32> to vector<16x64xf32>
    %103 = arith.addf %100, %102 : vector<16x64xf32>
    %104 = vector.extract_strided_slice %99 {offsets = [0, 0], sizes = [16, 32], strides = [1, 1]} : vector<18x32xf32> to vector<16x32xf32>
    %c-1_i32 = arith.constant -1 : i32
    %105 = vector.broadcast %c-1_i32 : i32 to vector<16x1xi32>
    %106 = arith.addi %97, %105 : vector<16x1xi32>
    %c0_i32 = arith.constant 0 : i32
    %107 = vector.broadcast %c0_i32 : i32 to vector<16x1xi32>
    %108 = arith.cmpi sge, %106, %107 : vector<16x1xi32>
    %c-1_i32_42 = arith.constant -1 : i32
    %109 = vector.broadcast %c-1_i32_42 : i32 to vector<16x1xi32>
    %110 = arith.addi %97, %109 : vector<16x1xi32>
    %c8_i32 = arith.constant 8 : i32
    %111 = vector.broadcast %c8_i32 : i32 to vector<16x1xi32>
    %112 = arith.cmpi slt, %110, %111 : vector<16x1xi32>
    %113 = arith.andi %108, %112 : vector<16x1xi1>
    %cst_43 = arith.constant 1.000000e+00 : f32
    %cst_44 = arith.constant 0.000000e+00 : f32
    %114 = vector.broadcast %cst_43 : f32 to vector<16x1xf32>
    %115 = vector.broadcast %cst_44 : f32 to vector<16x1xf32>
    %116 = arith.select %113, %114, %115 : vector<16x1xi1>, vector<16x1xf32>
    %117 = vector.broadcast %116 : vector<16x1xf32> to vector<16x32xf32>
    %118 = arith.mulf %104, %117 : vector<16x32xf32>
    %119 = arith.truncf %118 : vector<16x32xf32> to vector<16x32xbf16>
    %c0_45 = arith.constant 0 : index
    %c0_46 = arith.constant 0 : index
    %c0_47 = arith.constant 0 : index
    %120 = vector.load %arg9[%c0_45, %c0_46, %c0_47] : memref<3x32x64xbf16, #tpu.memory_space<vmem>>, vector<1x32x64xbf16>
    %121 = vector.shape_cast %120 : vector<1x32x64xbf16> to vector<32x64xbf16>
    %cst_48 = arith.constant dense<0.000000e+00> : vector<16x64xf32>
    %122 = tpu.matmul %119, %121, %cst_48 {dimension_numbers = #tpu.dot_dimension_numbers<[1], [0], [0], [1], [0, 0, 1, 1], [], []>} : vector<16x32xbf16>, vector<32x64xbf16>, vector<16x64xf32> -> vector<16x64xf32>
    %123 = arith.addf %103, %122 : vector<16x64xf32>
    %124 = vector.extract_strided_slice %99 {offsets = [1, 0], sizes = [16, 32], strides = [1, 1]} : vector<18x32xf32> to vector<16x32xf32>
    %125 = arith.truncf %124 : vector<16x32xf32> to vector<16x32xbf16>
    %c1 = arith.constant 1 : index
    %c0_49 = arith.constant 0 : index
    %c0_50 = arith.constant 0 : index
    %126 = vector.load %arg9[%c1, %c0_49, %c0_50] : memref<3x32x64xbf16, #tpu.memory_space<vmem>>, vector<1x32x64xbf16>
    %127 = vector.shape_cast %126 : vector<1x32x64xbf16> to vector<32x64xbf16>
    %cst_51 = arith.constant dense<0.000000e+00> : vector<16x64xf32>
    %128 = tpu.matmul %125, %127, %cst_51 {dimension_numbers = #tpu.dot_dimension_numbers<[1], [0], [0], [1], [0, 0, 1, 1], [], []>} : vector<16x32xbf16>, vector<32x64xbf16>, vector<16x64xf32> -> vector<16x64xf32>
    %129 = arith.addf %123, %128 : vector<16x64xf32>
    %130 = vector.extract_strided_slice %99 {offsets = [2, 0], sizes = [16, 32], strides = [1, 1]} : vector<18x32xf32> to vector<16x32xf32>
    %c1_i32 = arith.constant 1 : i32
    %131 = vector.broadcast %c1_i32 : i32 to vector<16x1xi32>
    %132 = arith.addi %97, %131 : vector<16x1xi32>
    %c0_i32_52 = arith.constant 0 : i32
    %133 = vector.broadcast %c0_i32_52 : i32 to vector<16x1xi32>
    %134 = arith.cmpi sge, %132, %133 : vector<16x1xi32>
    %c1_i32_53 = arith.constant 1 : i32
    %135 = vector.broadcast %c1_i32_53 : i32 to vector<16x1xi32>
    %136 = arith.addi %97, %135 : vector<16x1xi32>
    %c8_i32_54 = arith.constant 8 : i32
    %137 = vector.broadcast %c8_i32_54 : i32 to vector<16x1xi32>
    %138 = arith.cmpi slt, %136, %137 : vector<16x1xi32>
    %139 = arith.andi %134, %138 : vector<16x1xi1>
    %cst_55 = arith.constant 1.000000e+00 : f32
    %cst_56 = arith.constant 0.000000e+00 : f32
    %140 = vector.broadcast %cst_55 : f32 to vector<16x1xf32>
    %141 = vector.broadcast %cst_56 : f32 to vector<16x1xf32>
    %142 = arith.select %139, %140, %141 : vector<16x1xi1>, vector<16x1xf32>
    %143 = vector.broadcast %142 : vector<16x1xf32> to vector<16x32xf32>
    %144 = arith.mulf %130, %143 : vector<16x32xf32>
    %145 = arith.truncf %144 : vector<16x32xf32> to vector<16x32xbf16>
    %c2 = arith.constant 2 : index
    %c0_57 = arith.constant 0 : index
    %c0_58 = arith.constant 0 : index
    %146 = vector.load %arg9[%c2, %c0_57, %c0_58] : memref<3x32x64xbf16, #tpu.memory_space<vmem>>, vector<1x32x64xbf16>
    %147 = vector.shape_cast %146 : vector<1x32x64xbf16> to vector<32x64xbf16>
    %cst_59 = arith.constant dense<0.000000e+00> : vector<16x64xf32>
    %148 = tpu.matmul %145, %147, %cst_59 {dimension_numbers = #tpu.dot_dimension_numbers<[1], [0], [0], [1], [0, 0, 1, 1], [], []>} : vector<16x32xbf16>, vector<32x64xbf16>, vector<16x64xf32> -> vector<16x64xf32>
    %149 = arith.addf %129, %148 : vector<16x64xf32>
    %cst_60 = arith.constant 0.000000e+00 : f32
    %150 = vector.broadcast %cst_60 : f32 to vector<16x64xf32>
    %151 = arith.maximumf %149, %150 : vector<16x64xf32>
    %152 = tpu.iota {dimensions = array<i32: 0>} : vector<16x1xi32>
    %c7_i32_61 = arith.constant 7 : i32
    %153 = vector.broadcast %c7_i32_61 : i32 to vector<16x1xi32>
    %154 = arith.andi %152, %153 : vector<16x1xi32>
    %cst_62 = arith.constant 0.000000e+00 : f32
    %155 = vector.broadcast %cst_62 : f32 to vector<1x64xf32>
    %156 = tpu.concatenate %155, %151, %155 in 0 : vector<1x64xf32>, vector<16x64xf32>, vector<1x64xf32> -> vector<18x64xf32>
    %cst_63 = arith.constant 0.000000e+00 : f32
    %157 = vector.broadcast %cst_63 : f32 to vector<16x32xf32>
    %c0_64 = arith.constant 0 : index
    %c0_65 = arith.constant 0 : index
    %158 = vector.load %arg12[%c0_64, %c0_65] : memref<1x32xf32, #tpu.memory_space<vmem>>, vector<1x32xf32>
    %159 = vector.broadcast %158 : vector<1x32xf32> to vector<16x32xf32>
    %160 = arith.addf %157, %159 : vector<16x32xf32>
    %161 = vector.extract_strided_slice %156 {offsets = [0, 0], sizes = [16, 64], strides = [1, 1]} : vector<18x64xf32> to vector<16x64xf32>
    %c-1_i32_66 = arith.constant -1 : i32
    %162 = vector.broadcast %c-1_i32_66 : i32 to vector<16x1xi32>
    %163 = arith.addi %154, %162 : vector<16x1xi32>
    %c0_i32_67 = arith.constant 0 : i32
    %164 = vector.broadcast %c0_i32_67 : i32 to vector<16x1xi32>
    %165 = arith.cmpi sge, %163, %164 : vector<16x1xi32>
    %c-1_i32_68 = arith.constant -1 : i32
    %166 = vector.broadcast %c-1_i32_68 : i32 to vector<16x1xi32>
    %167 = arith.addi %154, %166 : vector<16x1xi32>
    %c8_i32_69 = arith.constant 8 : i32
    %168 = vector.broadcast %c8_i32_69 : i32 to vector<16x1xi32>
    %169 = arith.cmpi slt, %167, %168 : vector<16x1xi32>
    %170 = arith.andi %165, %169 : vector<16x1xi1>
    %cst_70 = arith.constant 1.000000e+00 : f32
    %cst_71 = arith.constant 0.000000e+00 : f32
    %171 = vector.broadcast %cst_70 : f32 to vector<16x1xf32>
    %172 = vector.broadcast %cst_71 : f32 to vector<16x1xf32>
    %173 = arith.select %170, %171, %172 : vector<16x1xi1>, vector<16x1xf32>
    %174 = vector.broadcast %173 : vector<16x1xf32> to vector<16x64xf32>
    %175 = arith.mulf %161, %174 : vector<16x64xf32>
    %176 = arith.truncf %175 : vector<16x64xf32> to vector<16x64xbf16>
    %c0_72 = arith.constant 0 : index
    %c0_73 = arith.constant 0 : index
    %c0_74 = arith.constant 0 : index
    %177 = vector.load %arg11[%c0_72, %c0_73, %c0_74] : memref<3x64x32xbf16, #tpu.memory_space<vmem>>, vector<1x64x32xbf16>
    %178 = vector.shape_cast %177 : vector<1x64x32xbf16> to vector<64x32xbf16>
    %cst_75 = arith.constant dense<0.000000e+00> : vector<16x32xf32>
    %179 = tpu.matmul %176, %178, %cst_75 {dimension_numbers = #tpu.dot_dimension_numbers<[1], [0], [0], [1], [0, 0, 1, 1], [], []>} : vector<16x64xbf16>, vector<64x32xbf16>, vector<16x32xf32> -> vector<16x32xf32>
    %180 = arith.addf %160, %179 : vector<16x32xf32>
    %181 = vector.extract_strided_slice %156 {offsets = [1, 0], sizes = [16, 64], strides = [1, 1]} : vector<18x64xf32> to vector<16x64xf32>
    %182 = arith.truncf %181 : vector<16x64xf32> to vector<16x64xbf16>
    %c1_76 = arith.constant 1 : index
    %c0_77 = arith.constant 0 : index
    %c0_78 = arith.constant 0 : index
    %183 = vector.load %arg11[%c1_76, %c0_77, %c0_78] : memref<3x64x32xbf16, #tpu.memory_space<vmem>>, vector<1x64x32xbf16>
    %184 = vector.shape_cast %183 : vector<1x64x32xbf16> to vector<64x32xbf16>
    %cst_79 = arith.constant dense<0.000000e+00> : vector<16x32xf32>
    %185 = tpu.matmul %182, %184, %cst_79 {dimension_numbers = #tpu.dot_dimension_numbers<[1], [0], [0], [1], [0, 0, 1, 1], [], []>} : vector<16x64xbf16>, vector<64x32xbf16>, vector<16x32xf32> -> vector<16x32xf32>
    %186 = arith.addf %180, %185 : vector<16x32xf32>
    %187 = vector.extract_strided_slice %156 {offsets = [2, 0], sizes = [16, 64], strides = [1, 1]} : vector<18x64xf32> to vector<16x64xf32>
    %c1_i32_80 = arith.constant 1 : i32
    %188 = vector.broadcast %c1_i32_80 : i32 to vector<16x1xi32>
    %189 = arith.addi %154, %188 : vector<16x1xi32>
    %c0_i32_81 = arith.constant 0 : i32
    %190 = vector.broadcast %c0_i32_81 : i32 to vector<16x1xi32>
    %191 = arith.cmpi sge, %189, %190 : vector<16x1xi32>
    %c1_i32_82 = arith.constant 1 : i32
    %192 = vector.broadcast %c1_i32_82 : i32 to vector<16x1xi32>
    %193 = arith.addi %154, %192 : vector<16x1xi32>
    %c8_i32_83 = arith.constant 8 : i32
    %194 = vector.broadcast %c8_i32_83 : i32 to vector<16x1xi32>
    %195 = arith.cmpi slt, %193, %194 : vector<16x1xi32>
    %196 = arith.andi %191, %195 : vector<16x1xi1>
    %cst_84 = arith.constant 1.000000e+00 : f32
    %cst_85 = arith.constant 0.000000e+00 : f32
    %197 = vector.broadcast %cst_84 : f32 to vector<16x1xf32>
    %198 = vector.broadcast %cst_85 : f32 to vector<16x1xf32>
    %199 = arith.select %196, %197, %198 : vector<16x1xi1>, vector<16x1xf32>
    %200 = vector.broadcast %199 : vector<16x1xf32> to vector<16x64xf32>
    %201 = arith.mulf %187, %200 : vector<16x64xf32>
    %202 = arith.truncf %201 : vector<16x64xf32> to vector<16x64xbf16>
    %c2_86 = arith.constant 2 : index
    %c0_87 = arith.constant 0 : index
    %c0_88 = arith.constant 0 : index
    %203 = vector.load %arg11[%c2_86, %c0_87, %c0_88] : memref<3x64x32xbf16, #tpu.memory_space<vmem>>, vector<1x64x32xbf16>
    %204 = vector.shape_cast %203 : vector<1x64x32xbf16> to vector<64x32xbf16>
    %cst_89 = arith.constant dense<0.000000e+00> : vector<16x32xf32>
    %205 = tpu.matmul %202, %204, %cst_89 {dimension_numbers = #tpu.dot_dimension_numbers<[1], [0], [0], [1], [0, 0, 1, 1], [], []>} : vector<16x64xbf16>, vector<64x32xbf16>, vector<16x32xf32> -> vector<16x32xf32>
    %206 = arith.addf %186, %205 : vector<16x32xf32>
    %c0_90 = arith.constant 0 : index
    %c0_91 = arith.constant 0 : index
    %207 = vector.load %arg13[%c0_90, %c0_91] : memref<1x32xf32, #tpu.memory_space<vmem>>, vector<1x32xf32>
    %c0_92 = arith.constant 0 : index
    %c0_93 = arith.constant 0 : index
    %208 = vector.load %arg14[%c0_92, %c0_93] : memref<1x32xf32, #tpu.memory_space<vmem>>, vector<1x32xf32>
    %209 = arith.addf %206, %94 : vector<16x32xf32>
    %cst_94 = arith.constant dense<0.000000e+00> : vector<16xf32>
    %210 = vector.multi_reduction <add>, %209, %cst_94 [1] : vector<16x32xf32> to vector<16xf32>
    %211 = vector.shape_cast %210 : vector<16xf32> to vector<16x1xf32>
    %cst_95 = arith.constant 3.200000e+01 : f32
    %212 = vector.broadcast %cst_95 : f32 to vector<16x1xf32>
    %213 = arith.divf %211, %212 : vector<16x1xf32>
    %214 = vector.broadcast %213 : vector<16x1xf32> to vector<16x32xf32>
    %215 = arith.subf %209, %214 : vector<16x32xf32>
    %216 = arith.mulf %215, %215 : vector<16x32xf32>
    %cst_96 = arith.constant dense<0.000000e+00> : vector<16xf32>
    %217 = vector.multi_reduction <add>, %216, %cst_96 [1] : vector<16x32xf32> to vector<16xf32>
    %218 = vector.shape_cast %217 : vector<16xf32> to vector<16x1xf32>
    %cst_97 = arith.constant 3.200000e+01 : f32
    %219 = vector.broadcast %cst_97 : f32 to vector<16x1xf32>
    %220 = arith.divf %218, %219 : vector<16x1xf32>
    %221 = vector.broadcast %213 : vector<16x1xf32> to vector<16x32xf32>
    %222 = arith.subf %209, %221 : vector<16x32xf32>
    %cst_98 = arith.constant 9.99999974E-6 : f32
    %223 = vector.broadcast %cst_98 : f32 to vector<16x1xf32>
    %224 = arith.addf %220, %223 : vector<16x1xf32>
    %225 = math.rsqrt %224 : vector<16x1xf32>
    %226 = vector.broadcast %225 : vector<16x1xf32> to vector<16x32xf32>
    %227 = arith.mulf %222, %226 : vector<16x32xf32>
    %228 = vector.broadcast %207 : vector<1x32xf32> to vector<16x32xf32>
    %229 = arith.mulf %227, %228 : vector<16x32xf32>
    %230 = vector.broadcast %208 : vector<1x32xf32> to vector<16x32xf32>
    %231 = arith.addf %229, %230 : vector<16x32xf32>
    %cst_99 = arith.constant 1.000000e+00 : f32
    %232 = vector.broadcast %cst_99 : f32 to vector<16x1xf32>
    %233 = arith.subf %232, %2 : vector<16x1xf32>
    %234 = vector.broadcast %233 : vector<16x1xf32> to vector<16x32xf32>
    %235 = arith.mulf %231, %234 : vector<16x32xf32>
    %c0_100 = arith.constant 0 : index
    %c0_101 = arith.constant 0 : index
    %236 = vector.load %arg15[%c0_100, %c0_101] : memref<16x32xf32, #tpu.memory_space<vmem>>, vector<16x32xf32>
    tpu.vector_store %arg15[%c0_100, %c0_101], %235 {strides = array<i32>} : memref<16x32xf32, #tpu.memory_space<vmem>>, vector<16x32xf32>,
    return
  }
}

module attributes {stable_mosaic.version = 11 : i64} {
  func.func @_var_pred_kernel(%arg0: memref<16x32xf32, #tpu.memory_space<vmem>>, %arg1: memref<16x1xf32, #tpu.memory_space<vmem>>, %arg2: memref<3x32x96xbf16, #tpu.memory_space<vmem>>, %arg3: memref<1x96xf32, #tpu.memory_space<vmem>>, %arg4: memref<1x96xf32, #tpu.memory_space<vmem>>, %arg5: memref<1x96xf32, #tpu.memory_space<vmem>>, %arg6: memref<3x96x96xbf16, #tpu.memory_space<vmem>>, %arg7: memref<1x96xf32, #tpu.memory_space<vmem>>, %arg8: memref<1x96xf32, #tpu.memory_space<vmem>>, %arg9: memref<1x96xf32, #tpu.memory_space<vmem>>, %arg10: memref<96x3xbf16, #tpu.memory_space<vmem>>, %arg11: memref<1x3xf32, #tpu.memory_space<vmem>>, %arg12: memref<16x3xf32, #tpu.memory_space<vmem>>) attributes {dimension_semantics = [], scalar_prefetch = 0 : i64, scratch_operands = 0 : i64, tpu.core_type = #tpu.core_type<tc>} {
    %c0 = arith.constant 0 : index
    %c0_0 = arith.constant 0 : index
    %0 = vector.load %arg0[%c0, %c0_0] : memref<16x32xf32, #tpu.memory_space<vmem>>, vector<16x32xf32>
    %c0_1 = arith.constant 0 : index
    %c0_2 = arith.constant 0 : index
    %1 = vector.load %arg1[%c0_1, %c0_2] : memref<16x1xf32, #tpu.memory_space<vmem>>, vector<16x1xf32>
    %2 = tpu.iota {dimensions = array<i32: 0>} : vector<16x1xi32>
    %c7_i32 = arith.constant 7 : i32
    %3 = vector.broadcast %c7_i32 : i32 to vector<16x1xi32>
    %4 = arith.andi %2, %3 : vector<16x1xi32>
    %cst = arith.constant 0.000000e+00 : f32
    %5 = vector.broadcast %cst : f32 to vector<1x32xf32>
    %6 = tpu.concatenate %5, %0, %5 in 0 : vector<1x32xf32>, vector<16x32xf32>, vector<1x32xf32> -> vector<18x32xf32>
    %cst_3 = arith.constant 0.000000e+00 : f32
    %7 = vector.broadcast %cst_3 : f32 to vector<16x96xf32>
    %c0_4 = arith.constant 0 : index
    %c0_5 = arith.constant 0 : index
    %8 = vector.load %arg3[%c0_4, %c0_5] : memref<1x96xf32, #tpu.memory_space<vmem>>, vector<1x96xf32>
    %9 = vector.broadcast %8 : vector<1x96xf32> to vector<16x96xf32>
    %10 = arith.addf %7, %9 : vector<16x96xf32>
    %11 = vector.extract_strided_slice %6 {offsets = [0, 0], sizes = [16, 32], strides = [1, 1]} : vector<18x32xf32> to vector<16x32xf32>
    %c-1_i32 = arith.constant -1 : i32
    %12 = vector.broadcast %c-1_i32 : i32 to vector<16x1xi32>
    %13 = arith.addi %4, %12 : vector<16x1xi32>
    %c0_i32 = arith.constant 0 : i32
    %14 = vector.broadcast %c0_i32 : i32 to vector<16x1xi32>
    %15 = arith.cmpi sge, %13, %14 : vector<16x1xi32>
    %c-1_i32_6 = arith.constant -1 : i32
    %16 = vector.broadcast %c-1_i32_6 : i32 to vector<16x1xi32>
    %17 = arith.addi %4, %16 : vector<16x1xi32>
    %c8_i32 = arith.constant 8 : i32
    %18 = vector.broadcast %c8_i32 : i32 to vector<16x1xi32>
    %19 = arith.cmpi slt, %17, %18 : vector<16x1xi32>
    %20 = arith.andi %15, %19 : vector<16x1xi1>
    %cst_7 = arith.constant 1.000000e+00 : f32
    %cst_8 = arith.constant 0.000000e+00 : f32
    %21 = vector.broadcast %cst_7 : f32 to vector<16x1xf32>
    %22 = vector.broadcast %cst_8 : f32 to vector<16x1xf32>
    %23 = arith.select %20, %21, %22 : vector<16x1xi1>, vector<16x1xf32>
    %24 = vector.broadcast %23 : vector<16x1xf32> to vector<16x32xf32>
    %25 = arith.mulf %11, %24 : vector<16x32xf32>
    %26 = arith.truncf %25 : vector<16x32xf32> to vector<16x32xbf16>
    %c0_9 = arith.constant 0 : index
    %c0_10 = arith.constant 0 : index
    %c0_11 = arith.constant 0 : index
    %27 = vector.load %arg2[%c0_9, %c0_10, %c0_11] : memref<3x32x96xbf16, #tpu.memory_space<vmem>>, vector<1x32x96xbf16>
    %28 = vector.shape_cast %27 : vector<1x32x96xbf16> to vector<32x96xbf16>
    %cst_12 = arith.constant dense<0.000000e+00> : vector<16x96xf32>
    %29 = tpu.matmul %26, %28, %cst_12 {dimension_numbers = #tpu.dot_dimension_numbers<[1], [0], [0], [1], [0, 0, 1, 1], [], []>} : vector<16x32xbf16>, vector<32x96xbf16>, vector<16x96xf32> -> vector<16x96xf32>
    %30 = arith.addf %10, %29 : vector<16x96xf32>
    %31 = vector.extract_strided_slice %6 {offsets = [1, 0], sizes = [16, 32], strides = [1, 1]} : vector<18x32xf32> to vector<16x32xf32>
    %32 = arith.truncf %31 : vector<16x32xf32> to vector<16x32xbf16>
    %c1 = arith.constant 1 : index
    %c0_13 = arith.constant 0 : index
    %c0_14 = arith.constant 0 : index
    %33 = vector.load %arg2[%c1, %c0_13, %c0_14] : memref<3x32x96xbf16, #tpu.memory_space<vmem>>, vector<1x32x96xbf16>
    %34 = vector.shape_cast %33 : vector<1x32x96xbf16> to vector<32x96xbf16>
    %cst_15 = arith.constant dense<0.000000e+00> : vector<16x96xf32>
    %35 = tpu.matmul %32, %34, %cst_15 {dimension_numbers = #tpu.dot_dimension_numbers<[1], [0], [0], [1], [0, 0, 1, 1], [], []>} : vector<16x32xbf16>, vector<32x96xbf16>, vector<16x96xf32> -> vector<16x96xf32>
    %36 = arith.addf %30, %35 : vector<16x96xf32>
    %37 = vector.extract_strided_slice %6 {offsets = [2, 0], sizes = [16, 32], strides = [1, 1]} : vector<18x32xf32> to vector<16x32xf32>
    %c1_i32 = arith.constant 1 : i32
    %38 = vector.broadcast %c1_i32 : i32 to vector<16x1xi32>
    %39 = arith.addi %4, %38 : vector<16x1xi32>
    %c0_i32_16 = arith.constant 0 : i32
    %40 = vector.broadcast %c0_i32_16 : i32 to vector<16x1xi32>
    %41 = arith.cmpi sge, %39, %40 : vector<16x1xi32>
    %c1_i32_17 = arith.constant 1 : i32
    %42 = vector.broadcast %c1_i32_17 : i32 to vector<16x1xi32>
    %43 = arith.addi %4, %42 : vector<16x1xi32>
    %c8_i32_18 = arith.constant 8 : i32
    %44 = vector.broadcast %c8_i32_18 : i32 to vector<16x1xi32>
    %45 = arith.cmpi slt, %43, %44 : vector<16x1xi32>
    %46 = arith.andi %41, %45 : vector<16x1xi1>
    %cst_19 = arith.constant 1.000000e+00 : f32
    %cst_20 = arith.constant 0.000000e+00 : f32
    %47 = vector.broadcast %cst_19 : f32 to vector<16x1xf32>
    %48 = vector.broadcast %cst_20 : f32 to vector<16x1xf32>
    %49 = arith.select %46, %47, %48 : vector<16x1xi1>, vector<16x1xf32>
    %50 = vector.broadcast %49 : vector<16x1xf32> to vector<16x32xf32>
    %51 = arith.mulf %37, %50 : vector<16x32xf32>
    %52 = arith.truncf %51 : vector<16x32xf32> to vector<16x32xbf16>
    %c2 = arith.constant 2 : index
    %c0_21 = arith.constant 0 : index
    %c0_22 = arith.constant 0 : index
    %53 = vector.load %arg2[%c2, %c0_21, %c0_22] : memref<3x32x96xbf16, #tpu.memory_space<vmem>>, vector<1x32x96xbf16>
    %54 = vector.shape_cast %53 : vector<1x32x96xbf16> to vector<32x96xbf16>
    %cst_23 = arith.constant dense<0.000000e+00> : vector<16x96xf32>
    %55 = tpu.matmul %52, %54, %cst_23 {dimension_numbers = #tpu.dot_dimension_numbers<[1], [0], [0], [1], [0, 0, 1, 1], [], []>} : vector<16x32xbf16>, vector<32x96xbf16>, vector<16x96xf32> -> vector<16x96xf32>
    %56 = arith.addf %36, %55 : vector<16x96xf32>
    %cst_24 = arith.constant 0.000000e+00 : f32
    %57 = vector.broadcast %cst_24 : f32 to vector<16x96xf32>
    %58 = arith.maximumf %56, %57 : vector<16x96xf32>
    %c0_25 = arith.constant 0 : index
    %c0_26 = arith.constant 0 : index
    %59 = vector.load %arg4[%c0_25, %c0_26] : memref<1x96xf32, #tpu.memory_space<vmem>>, vector<1x96xf32>
    %c0_27 = arith.constant 0 : index
    %c0_28 = arith.constant 0 : index
    %60 = vector.load %arg5[%c0_27, %c0_28] : memref<1x96xf32, #tpu.memory_space<vmem>>, vector<1x96xf32>
    %61 = vector.extract_strided_slice %58 {offsets = [0, 0], sizes = [16, 32], strides = [1, 1]} : vector<16x96xf32> to vector<16x32xf32>
    %cst_29 = arith.constant dense<0.000000e+00> : vector<16xf32>
    %62 = vector.multi_reduction <add>, %61, %cst_29 [1] : vector<16x32xf32> to vector<16xf32>
    %63 = vector.shape_cast %62 : vector<16xf32> to vector<16x1xf32>
    %cst_30 = arith.constant 3.200000e+01 : f32
    %64 = vector.broadcast %cst_30 : f32 to vector<16x1xf32>
    %65 = arith.divf %63, %64 : vector<16x1xf32>
    %66 = vector.broadcast %65 : vector<16x1xf32> to vector<16x32xf32>
    %67 = arith.subf %61, %66 : vector<16x32xf32>
    %68 = arith.mulf %67, %67 : vector<16x32xf32>
    %cst_31 = arith.constant dense<0.000000e+00> : vector<16xf32>
    %69 = vector.multi_reduction <add>, %68, %cst_31 [1] : vector<16x32xf32> to vector<16xf32>
    %70 = vector.shape_cast %69 : vector<16xf32> to vector<16x1xf32>
    %cst_32 = arith.constant 3.200000e+01 : f32
    %71 = vector.broadcast %cst_32 : f32 to vector<16x1xf32>
    %72 = arith.divf %70, %71 : vector<16x1xf32>
    %73 = vector.broadcast %65 : vector<16x1xf32> to vector<16x32xf32>
    %74 = arith.subf %61, %73 : vector<16x32xf32>
    %cst_33 = arith.constant 9.99999974E-6 : f32
    %75 = vector.broadcast %cst_33 : f32 to vector<16x1xf32>
    %76 = arith.addf %72, %75 : vector<16x1xf32>
    %77 = math.rsqrt %76 : vector<16x1xf32>
    %78 = vector.broadcast %77 : vector<16x1xf32> to vector<16x32xf32>
    %79 = arith.mulf %74, %78 : vector<16x32xf32>
    %80 = vector.extract_strided_slice %58 {offsets = [0, 32], sizes = [16, 32], strides = [1, 1]} : vector<16x96xf32> to vector<16x32xf32>
    %cst_34 = arith.constant dense<0.000000e+00> : vector<16xf32>
    %81 = vector.multi_reduction <add>, %80, %cst_34 [1] : vector<16x32xf32> to vector<16xf32>
    %82 = vector.shape_cast %81 : vector<16xf32> to vector<16x1xf32>
    %cst_35 = arith.constant 3.200000e+01 : f32
    %83 = vector.broadcast %cst_35 : f32 to vector<16x1xf32>
    %84 = arith.divf %82, %83 : vector<16x1xf32>
    %85 = vector.broadcast %84 : vector<16x1xf32> to vector<16x32xf32>
    %86 = arith.subf %80, %85 : vector<16x32xf32>
    %87 = arith.mulf %86, %86 : vector<16x32xf32>
    %cst_36 = arith.constant dense<0.000000e+00> : vector<16xf32>
    %88 = vector.multi_reduction <add>, %87, %cst_36 [1] : vector<16x32xf32> to vector<16xf32>
    %89 = vector.shape_cast %88 : vector<16xf32> to vector<16x1xf32>
    %cst_37 = arith.constant 3.200000e+01 : f32
    %90 = vector.broadcast %cst_37 : f32 to vector<16x1xf32>
    %91 = arith.divf %89, %90 : vector<16x1xf32>
    %92 = vector.broadcast %84 : vector<16x1xf32> to vector<16x32xf32>
    %93 = arith.subf %80, %92 : vector<16x32xf32>
    %cst_38 = arith.constant 9.99999974E-6 : f32
    %94 = vector.broadcast %cst_38 : f32 to vector<16x1xf32>
    %95 = arith.addf %91, %94 : vector<16x1xf32>
    %96 = math.rsqrt %95 : vector<16x1xf32>
    %97 = vector.broadcast %96 : vector<16x1xf32> to vector<16x32xf32>
    %98 = arith.mulf %93, %97 : vector<16x32xf32>
    %99 = vector.extract_strided_slice %58 {offsets = [0, 64], sizes = [16, 32], strides = [1, 1]} : vector<16x96xf32> to vector<16x32xf32>
    %cst_39 = arith.constant dense<0.000000e+00> : vector<16xf32>
    %100 = vector.multi_reduction <add>, %99, %cst_39 [1] : vector<16x32xf32> to vector<16xf32>
    %101 = vector.shape_cast %100 : vector<16xf32> to vector<16x1xf32>
    %cst_40 = arith.constant 3.200000e+01 : f32
    %102 = vector.broadcast %cst_40 : f32 to vector<16x1xf32>
    %103 = arith.divf %101, %102 : vector<16x1xf32>
    %104 = vector.broadcast %103 : vector<16x1xf32> to vector<16x32xf32>
    %105 = arith.subf %99, %104 : vector<16x32xf32>
    %106 = arith.mulf %105, %105 : vector<16x32xf32>
    %cst_41 = arith.constant dense<0.000000e+00> : vector<16xf32>
    %107 = vector.multi_reduction <add>, %106, %cst_41 [1] : vector<16x32xf32> to vector<16xf32>
    %108 = vector.shape_cast %107 : vector<16xf32> to vector<16x1xf32>
    %cst_42 = arith.constant 3.200000e+01 : f32
    %109 = vector.broadcast %cst_42 : f32 to vector<16x1xf32>
    %110 = arith.divf %108, %109 : vector<16x1xf32>
    %111 = vector.broadcast %103 : vector<16x1xf32> to vector<16x32xf32>
    %112 = arith.subf %99, %111 : vector<16x32xf32>
    %cst_43 = arith.constant 9.99999974E-6 : f32
    %113 = vector.broadcast %cst_43 : f32 to vector<16x1xf32>
    %114 = arith.addf %110, %113 : vector<16x1xf32>
    %115 = math.rsqrt %114 : vector<16x1xf32>
    %116 = vector.broadcast %115 : vector<16x1xf32> to vector<16x32xf32>
    %117 = arith.mulf %112, %116 : vector<16x32xf32>
    %118 = tpu.concatenate %79, %98, %117 in 1 : vector<16x32xf32>, vector<16x32xf32>, vector<16x32xf32> -> vector<16x96xf32>
    %119 = vector.broadcast %59 : vector<1x96xf32> to vector<16x96xf32>
    %120 = arith.mulf %118, %119 : vector<16x96xf32>
    %121 = vector.broadcast %60 : vector<1x96xf32> to vector<16x96xf32>
    %122 = arith.addf %120, %121 : vector<16x96xf32>
    %123 = tpu.iota {dimensions = array<i32: 0>} : vector<16x1xi32>
    %c7_i32_44 = arith.constant 7 : i32
    %124 = vector.broadcast %c7_i32_44 : i32 to vector<16x1xi32>
    %125 = arith.andi %123, %124 : vector<16x1xi32>
    %cst_45 = arith.constant 0.000000e+00 : f32
    %126 = vector.broadcast %cst_45 : f32 to vector<1x96xf32>
    %127 = tpu.concatenate %126, %122, %126 in 0 : vector<1x96xf32>, vector<16x96xf32>, vector<1x96xf32> -> vector<18x96xf32>
    %cst_46 = arith.constant 0.000000e+00 : f32
    %128 = vector.broadcast %cst_46 : f32 to vector<16x96xf32>
    %c0_47 = arith.constant 0 : index
    %c0_48 = arith.constant 0 : index
    %129 = vector.load %arg7[%c0_47, %c0_48] : memref<1x96xf32, #tpu.memory_space<vmem>>, vector<1x96xf32>
    %130 = vector.broadcast %129 : vector<1x96xf32> to vector<16x96xf32>
    %131 = arith.addf %128, %130 : vector<16x96xf32>
    %132 = vector.extract_strided_slice %127 {offsets = [0, 0], sizes = [16, 96], strides = [1, 1]} : vector<18x96xf32> to vector<16x96xf32>
    %c-1_i32_49 = arith.constant -1 : i32
    %133 = vector.broadcast %c-1_i32_49 : i32 to vector<16x1xi32>
    %134 = arith.addi %125, %133 : vector<16x1xi32>
    %c0_i32_50 = arith.constant 0 : i32
    %135 = vector.broadcast %c0_i32_50 : i32 to vector<16x1xi32>
    %136 = arith.cmpi sge, %134, %135 : vector<16x1xi32>
    %c-1_i32_51 = arith.constant -1 : i32
    %137 = vector.broadcast %c-1_i32_51 : i32 to vector<16x1xi32>
    %138 = arith.addi %125, %137 : vector<16x1xi32>
    %c8_i32_52 = arith.constant 8 : i32
    %139 = vector.broadcast %c8_i32_52 : i32 to vector<16x1xi32>
    %140 = arith.cmpi slt, %138, %139 : vector<16x1xi32>
    %141 = arith.andi %136, %140 : vector<16x1xi1>
    %cst_53 = arith.constant 1.000000e+00 : f32
    %cst_54 = arith.constant 0.000000e+00 : f32
    %142 = vector.broadcast %cst_53 : f32 to vector<16x1xf32>
    %143 = vector.broadcast %cst_54 : f32 to vector<16x1xf32>
    %144 = arith.select %141, %142, %143 : vector<16x1xi1>, vector<16x1xf32>
    %145 = vector.broadcast %144 : vector<16x1xf32> to vector<16x96xf32>
    %146 = arith.mulf %132, %145 : vector<16x96xf32>
    %147 = arith.truncf %146 : vector<16x96xf32> to vector<16x96xbf16>
    %c0_55 = arith.constant 0 : index
    %c0_56 = arith.constant 0 : index
    %c0_57 = arith.constant 0 : index
    %148 = vector.load %arg6[%c0_55, %c0_56, %c0_57] : memref<3x96x96xbf16, #tpu.memory_space<vmem>>, vector<1x96x96xbf16>
    %149 = vector.shape_cast %148 : vector<1x96x96xbf16> to vector<96x96xbf16>
    %cst_58 = arith.constant dense<0.000000e+00> : vector<16x96xf32>
    %150 = tpu.matmul %147, %149, %cst_58 {dimension_numbers = #tpu.dot_dimension_numbers<[1], [0], [0], [1], [0, 0, 1, 1], [], []>} : vector<16x96xbf16>, vector<96x96xbf16>, vector<16x96xf32> -> vector<16x96xf32>
    %151 = arith.addf %131, %150 : vector<16x96xf32>
    %152 = vector.extract_strided_slice %127 {offsets = [1, 0], sizes = [16, 96], strides = [1, 1]} : vector<18x96xf32> to vector<16x96xf32>
    %153 = arith.truncf %152 : vector<16x96xf32> to vector<16x96xbf16>
    %c1_59 = arith.constant 1 : index
    %c0_60 = arith.constant 0 : index
    %c0_61 = arith.constant 0 : index
    %154 = vector.load %arg6[%c1_59, %c0_60, %c0_61] : memref<3x96x96xbf16, #tpu.memory_space<vmem>>, vector<1x96x96xbf16>
    %155 = vector.shape_cast %154 : vector<1x96x96xbf16> to vector<96x96xbf16>
    %cst_62 = arith.constant dense<0.000000e+00> : vector<16x96xf32>
    %156 = tpu.matmul %153, %155, %cst_62 {dimension_numbers = #tpu.dot_dimension_numbers<[1], [0], [0], [1], [0, 0, 1, 1], [], []>} : vector<16x96xbf16>, vector<96x96xbf16>, vector<16x96xf32> -> vector<16x96xf32>
    %157 = arith.addf %151, %156 : vector<16x96xf32>
    %158 = vector.extract_strided_slice %127 {offsets = [2, 0], sizes = [16, 96], strides = [1, 1]} : vector<18x96xf32> to vector<16x96xf32>
    %c1_i32_63 = arith.constant 1 : i32
    %159 = vector.broadcast %c1_i32_63 : i32 to vector<16x1xi32>
    %160 = arith.addi %125, %159 : vector<16x1xi32>
    %c0_i32_64 = arith.constant 0 : i32
    %161 = vector.broadcast %c0_i32_64 : i32 to vector<16x1xi32>
    %162 = arith.cmpi sge, %160, %161 : vector<16x1xi32>
    %c1_i32_65 = arith.constant 1 : i32
    %163 = vector.broadcast %c1_i32_65 : i32 to vector<16x1xi32>
    %164 = arith.addi %125, %163 : vector<16x1xi32>
    %c8_i32_66 = arith.constant 8 : i32
    %165 = vector.broadcast %c8_i32_66 : i32 to vector<16x1xi32>
    %166 = arith.cmpi slt, %164, %165 : vector<16x1xi32>
    %167 = arith.andi %162, %166 : vector<16x1xi1>
    %cst_67 = arith.constant 1.000000e+00 : f32
    %cst_68 = arith.constant 0.000000e+00 : f32
    %168 = vector.broadcast %cst_67 : f32 to vector<16x1xf32>
    %169 = vector.broadcast %cst_68 : f32 to vector<16x1xf32>
    %170 = arith.select %167, %168, %169 : vector<16x1xi1>, vector<16x1xf32>
    %171 = vector.broadcast %170 : vector<16x1xf32> to vector<16x96xf32>
    %172 = arith.mulf %158, %171 : vector<16x96xf32>
    %173 = arith.truncf %172 : vector<16x96xf32> to vector<16x96xbf16>
    %c2_69 = arith.constant 2 : index
    %c0_70 = arith.constant 0 : index
    %c0_71 = arith.constant 0 : index
    %174 = vector.load %arg6[%c2_69, %c0_70, %c0_71] : memref<3x96x96xbf16, #tpu.memory_space<vmem>>, vector<1x96x96xbf16>
    %175 = vector.shape_cast %174 : vector<1x96x96xbf16> to vector<96x96xbf16>
    %cst_72 = arith.constant dense<0.000000e+00> : vector<16x96xf32>
    %176 = tpu.matmul %173, %175, %cst_72 {dimension_numbers = #tpu.dot_dimension_numbers<[1], [0], [0], [1], [0, 0, 1, 1], [], []>} : vector<16x96xbf16>, vector<96x96xbf16>, vector<16x96xf32> -> vector<16x96xf32>
    %177 = arith.addf %157, %176 : vector<16x96xf32>
    %cst_73 = arith.constant 0.000000e+00 : f32
    %178 = vector.broadcast %cst_73 : f32 to vector<16x96xf32>
    %179 = arith.maximumf %177, %178 : vector<16x96xf32>
    %c0_74 = arith.constant 0 : index
    %c0_75 = arith.constant 0 : index
    %180 = vector.load %arg8[%c0_74, %c0_75] : memref<1x96xf32, #tpu.memory_space<vmem>>, vector<1x96xf32>
    %c0_76 = arith.constant 0 : index
    %c0_77 = arith.constant 0 : index
    %181 = vector.load %arg9[%c0_76, %c0_77] : memref<1x96xf32, #tpu.memory_space<vmem>>, vector<1x96xf32>
    %182 = vector.extract_strided_slice %179 {offsets = [0, 0], sizes = [16, 32], strides = [1, 1]} : vector<16x96xf32> to vector<16x32xf32>
    %cst_78 = arith.constant dense<0.000000e+00> : vector<16xf32>
    %183 = vector.multi_reduction <add>, %182, %cst_78 [1] : vector<16x32xf32> to vector<16xf32>
    %184 = vector.shape_cast %183 : vector<16xf32> to vector<16x1xf32>
    %cst_79 = arith.constant 3.200000e+01 : f32
    %185 = vector.broadcast %cst_79 : f32 to vector<16x1xf32>
    %186 = arith.divf %184, %185 : vector<16x1xf32>
    %187 = vector.broadcast %186 : vector<16x1xf32> to vector<16x32xf32>
    %188 = arith.subf %182, %187 : vector<16x32xf32>
    %189 = arith.mulf %188, %188 : vector<16x32xf32>
    %cst_80 = arith.constant dense<0.000000e+00> : vector<16xf32>
    %190 = vector.multi_reduction <add>, %189, %cst_80 [1] : vector<16x32xf32> to vector<16xf32>
    %191 = vector.shape_cast %190 : vector<16xf32> to vector<16x1xf32>
    %cst_81 = arith.constant 3.200000e+01 : f32
    %192 = vector.broadcast %cst_81 : f32 to vector<16x1xf32>
    %193 = arith.divf %191, %192 : vector<16x1xf32>
    %194 = vector.broadcast %186 : vector<16x1xf32> to vector<16x32xf32>
    %195 = arith.subf %182, %194 : vector<16x32xf32>
    %cst_82 = arith.constant 9.99999974E-6 : f32
    %196 = vector.broadcast %cst_82 : f32 to vector<16x1xf32>
    %197 = arith.addf %193, %196 : vector<16x1xf32>
    %198 = math.rsqrt %197 : vector<16x1xf32>
    %199 = vector.broadcast %198 : vector<16x1xf32> to vector<16x32xf32>
    %200 = arith.mulf %195, %199 : vector<16x32xf32>
    %201 = vector.extract_strided_slice %179 {offsets = [0, 32], sizes = [16, 32], strides = [1, 1]} : vector<16x96xf32> to vector<16x32xf32>
    %cst_83 = arith.constant dense<0.000000e+00> : vector<16xf32>
    %202 = vector.multi_reduction <add>, %201, %cst_83 [1] : vector<16x32xf32> to vector<16xf32>
    %203 = vector.shape_cast %202 : vector<16xf32> to vector<16x1xf32>
    %cst_84 = arith.constant 3.200000e+01 : f32
    %204 = vector.broadcast %cst_84 : f32 to vector<16x1xf32>
    %205 = arith.divf %203, %204 : vector<16x1xf32>
    %206 = vector.broadcast %205 : vector<16x1xf32> to vector<16x32xf32>
    %207 = arith.subf %201, %206 : vector<16x32xf32>
    %208 = arith.mulf %207, %207 : vector<16x32xf32>
    %cst_85 = arith.constant dense<0.000000e+00> : vector<16xf32>
    %209 = vector.multi_reduction <add>, %208, %cst_85 [1] : vector<16x32xf32> to vector<16xf32>
    %210 = vector.shape_cast %209 : vector<16xf32> to vector<16x1xf32>
    %cst_86 = arith.constant 3.200000e+01 : f32
    %211 = vector.broadcast %cst_86 : f32 to vector<16x1xf32>
    %212 = arith.divf %210, %211 : vector<16x1xf32>
    %213 = vector.broadcast %205 : vector<16x1xf32> to vector<16x32xf32>
    %214 = arith.subf %201, %213 : vector<16x32xf32>
    %cst_87 = arith.constant 9.99999974E-6 : f32
    %215 = vector.broadcast %cst_87 : f32 to vector<16x1xf32>
    %216 = arith.addf %212, %215 : vector<16x1xf32>
    %217 = math.rsqrt %216 : vector<16x1xf32>
    %218 = vector.broadcast %217 : vector<16x1xf32> to vector<16x32xf32>
    %219 = arith.mulf %214, %218 : vector<16x32xf32>
    %220 = vector.extract_strided_slice %179 {offsets = [0, 64], sizes = [16, 32], strides = [1, 1]} : vector<16x96xf32> to vector<16x32xf32>
    %cst_88 = arith.constant dense<0.000000e+00> : vector<16xf32>
    %221 = vector.multi_reduction <add>, %220, %cst_88 [1] : vector<16x32xf32> to vector<16xf32>
    %222 = vector.shape_cast %221 : vector<16xf32> to vector<16x1xf32>
    %cst_89 = arith.constant 3.200000e+01 : f32
    %223 = vector.broadcast %cst_89 : f32 to vector<16x1xf32>
    %224 = arith.divf %222, %223 : vector<16x1xf32>
    %225 = vector.broadcast %224 : vector<16x1xf32> to vector<16x32xf32>
    %226 = arith.subf %220, %225 : vector<16x32xf32>
    %227 = arith.mulf %226, %226 : vector<16x32xf32>
    %cst_90 = arith.constant dense<0.000000e+00> : vector<16xf32>
    %228 = vector.multi_reduction <add>, %227, %cst_90 [1] : vector<16x32xf32> to vector<16xf32>
    %229 = vector.shape_cast %228 : vector<16xf32> to vector<16x1xf32>
    %cst_91 = arith.constant 3.200000e+01 : f32
    %230 = vector.broadcast %cst_91 : f32 to vector<16x1xf32>
    %231 = arith.divf %229, %230 : vector<16x1xf32>
    %232 = vector.broadcast %224 : vector<16x1xf32> to vector<16x32xf32>
    %233 = arith.subf %220, %232 : vector<16x32xf32>
    %cst_92 = arith.constant 9.99999974E-6 : f32
    %234 = vector.broadcast %cst_92 : f32 to vector<16x1xf32>
    %235 = arith.addf %231, %234 : vector<16x1xf32>
    %236 = math.rsqrt %235 : vector<16x1xf32>
    %237 = vector.broadcast %236 : vector<16x1xf32> to vector<16x32xf32>
    %238 = arith.mulf %233, %237 : vector<16x32xf32>
    %239 = tpu.concatenate %200, %219, %238 in 1 : vector<16x32xf32>, vector<16x32xf32>, vector<16x32xf32> -> vector<16x96xf32>
    %240 = vector.broadcast %180 : vector<1x96xf32> to vector<16x96xf32>
    %241 = arith.mulf %239, %240 : vector<16x96xf32>
    %242 = vector.broadcast %181 : vector<1x96xf32> to vector<16x96xf32>
    %243 = arith.addf %241, %242 : vector<16x96xf32>
    %244 = arith.truncf %243 : vector<16x96xf32> to vector<16x96xbf16>
    %c0_93 = arith.constant 0 : index
    %c0_94 = arith.constant 0 : index
    %245 = vector.load %arg10[%c0_93, %c0_94] : memref<96x3xbf16, #tpu.memory_space<vmem>>, vector<96x3xbf16>
    %cst_95 = arith.constant dense<0.000000e+00> : vector<16x3xf32>
    %246 = tpu.matmul %244, %245, %cst_95 {dimension_numbers = #tpu.dot_dimension_numbers<[1], [0], [0], [1], [0, 0, 1, 1], [], []>} : vector<16x96xbf16>, vector<96x3xbf16>, vector<16x3xf32> -> vector<16x3xf32>
    %c0_96 = arith.constant 0 : index
    %c0_97 = arith.constant 0 : index
    %247 = vector.load %arg11[%c0_96, %c0_97] : memref<1x3xf32, #tpu.memory_space<vmem>>, vector<1x3xf32>
    %248 = vector.broadcast %247 : vector<1x3xf32> to vector<16x3xf32>
    %249 = arith.addf %246, %248 : vector<16x3xf32>
    %cst_98 = arith.constant 1.000000e+00 : f32
    %250 = vector.broadcast %cst_98 : f32 to vector<16x1xf32>
    %251 = arith.subf %250, %1 : vector<16x1xf32>
    %252 = vector.broadcast %251 : vector<16x1xf32> to vector<16x3xf32>
    %253 = arith.mulf %249, %252 : vector<16x3xf32>
    %c0_99 = arith.constant 0 : index
    %c0_100 = arith.constant 0 : index
    %254 = vector.load %arg12[%c0_99, %c0_100] : memref<16x3xf32, #tpu.memory_space<vmem>>, vector<16x3xf32>
    tpu.vector_store %arg12[%c0_99, %c0_100], %253 {strides = array<i32>} : memref<16x3xf32, #tpu.memory_space<vmem>>, vector<16x3xf32>,
    return
  }
}

module attributes {stable_mosaic.version = 11 : i64} {
  func.func @_fft_block_kernel(%arg0: memref<128x32xf32, #tpu.memory_space<vmem>>, %arg1: memref<128x128xf32, #tpu.memory_space<vmem>>, %arg2: memref<128x1xf32, #tpu.memory_space<vmem>>, %arg3: memref<32x96xbf16, #tpu.memory_space<vmem>>, %arg4: memref<1x96xf32, #tpu.memory_space<vmem>>, %arg5: memref<32x32xbf16, #tpu.memory_space<vmem>>, %arg6: memref<1x32xf32, #tpu.memory_space<vmem>>, %arg7: memref<1x32xf32, #tpu.memory_space<vmem>>, %arg8: memref<1x32xf32, #tpu.memory_space<vmem>>, %arg9: memref<3x32x64xbf16, #tpu.memory_space<vmem>>, %arg10: memref<1x64xf32, #tpu.memory_space<vmem>>, %arg11: memref<3x64x32xbf16, #tpu.memory_space<vmem>>, %arg12: memref<1x32xf32, #tpu.memory_space<vmem>>, %arg13: memref<1x32xf32, #tpu.memory_space<vmem>>, %arg14: memref<1x32xf32, #tpu.memory_space<vmem>>, %arg15: memref<128x32xf32, #tpu.memory_space<vmem>>) attributes {dimension_semantics = [], scalar_prefetch = 0 : i64, scratch_operands = 0 : i64, tpu.core_type = #tpu.core_type<tc>} {
    %c0 = arith.constant 0 : index
    %c0_0 = arith.constant 0 : index
    %0 = vector.load %arg0[%c0, %c0_0] : memref<128x32xf32, #tpu.memory_space<vmem>>, vector<128x32xf32>
    %c0_1 = arith.constant 0 : index
    %c0_2 = arith.constant 0 : index
    %1 = vector.load %arg1[%c0_1, %c0_2] : memref<128x128xf32, #tpu.memory_space<vmem>>, vector<128x128xf32>
    %c0_3 = arith.constant 0 : index
    %c0_4 = arith.constant 0 : index
    %2 = vector.load %arg2[%c0_3, %c0_4] : memref<128x1xf32, #tpu.memory_space<vmem>>, vector<128x1xf32>
    %3 = arith.truncf %0 : vector<128x32xf32> to vector<128x32xbf16>
    %c0_5 = arith.constant 0 : index
    %c0_6 = arith.constant 0 : index
    %4 = vector.load %arg3[%c0_5, %c0_6] : memref<32x96xbf16, #tpu.memory_space<vmem>>, vector<32x96xbf16>
    %cst = arith.constant dense<0.000000e+00> : vector<128x96xf32>
    %5 = tpu.matmul %3, %4, %cst {dimension_numbers = #tpu.dot_dimension_numbers<[1], [0], [0], [1], [0, 0, 1, 1], [], []>} : vector<128x32xbf16>, vector<32x96xbf16>, vector<128x96xf32> -> vector<128x96xf32>
    %c0_7 = arith.constant 0 : index
    %c0_8 = arith.constant 0 : index
    %6 = vector.load %arg4[%c0_7, %c0_8] : memref<1x96xf32, #tpu.memory_space<vmem>>, vector<1x96xf32>
    %7 = vector.broadcast %6 : vector<1x96xf32> to vector<128x96xf32>
    %8 = arith.addf %5, %7 : vector<128x96xf32>
    %9 = vector.extract_strided_slice %8 {offsets = [0, 0], sizes = [128, 16], strides = [1, 1]} : vector<128x96xf32> to vector<128x16xf32>
    %10 = arith.truncf %9 : vector<128x16xf32> to vector<128x16xbf16>
    %11 = vector.extract_strided_slice %8 {offsets = [0, 32], sizes = [128, 16], strides = [1, 1]} : vector<128x96xf32> to vector<128x16xf32>
    %12 = arith.truncf %11 : vector<128x16xf32> to vector<128x16xbf16>
    %13 = vector.extract_strided_slice %8 {offsets = [0, 64], sizes = [128, 16], strides = [1, 1]} : vector<128x96xf32> to vector<128x16xf32>
    %14 = arith.truncf %13 : vector<128x16xf32> to vector<128x16xbf16>
    %cst_9 = arith.constant dense<0.000000e+00> : vector<128x128xf32>
    %15 = tpu.matmul %10, %12, %cst_9 {dimension_numbers = #tpu.dot_dimension_numbers<[1], [1], [0], [0], [0, 0, 1, 0], [], []>} : vector<128x16xbf16>, vector<128x16xbf16>, vector<128x128xf32> -> vector<128x128xf32>
    %cst_10 = arith.constant 2.500000e-01 : f32
    %16 = vector.broadcast %cst_10 : f32 to vector<128x128xf32>
    %17 = arith.mulf %15, %16 : vector<128x128xf32>
    %cst_11 = arith.constant 5.000000e-01 : f32
    %18 = vector.broadcast %cst_11 : f32 to vector<128x128xf32>
    %19 = arith.cmpf ogt, %1, %18 : vector<128x128xf32>
    %cst_12 = arith.constant -1.000000e+09 : f32
    %20 = vector.broadcast %cst_12 : f32 to vector<128x128xf32>
    %21 = arith.select %19, %20, %17 : vector<128x128xi1>, vector<128x128xf32>
    %cst_13 = arith.constant dense<0xFF800000> : vector<128xf32>
    %22 = vector.multi_reduction <maximumf>, %21, %cst_13 [1] : vector<128x128xf32> to vector<128xf32>
    %23 = vector.shape_cast %22 : vector<128xf32> to vector<128x1xf32>
    %24 = vector.broadcast %23 : vector<128x1xf32> to vector<128x128xf32>
    %25 = arith.subf %21, %24 : vector<128x128xf32>
    %26 = math.exp %25 : vector<128x128xf32>
    %cst_14 = arith.constant dense<0.000000e+00> : vector<128xf32>
    %27 = vector.multi_reduction <add>, %26, %cst_14 [1] : vector<128x128xf32> to vector<128xf32>
    %28 = vector.shape_cast %27 : vector<128xf32> to vector<128x1xf32>
    %29 = tpu.reciprocal %28 {approx = true} : vector<128x1xf32> -> vector<128x1xf32>
    %30 = vector.broadcast %29 : vector<128x1xf32> to vector<128x128xf32>
    %31 = arith.mulf %26, %30 : vector<128x128xf32>
    %32 = arith.truncf %31 : vector<128x128xf32> to vector<128x128xbf16>
    %cst_15 = arith.constant dense<0.000000e+00> : vector<128x16xf32>
    %33 = tpu.matmul %32, %14, %cst_15 {dimension_numbers = #tpu.dot_dimension_numbers<[1], [0], [0], [1], [0, 0, 1, 1], [], []>} : vector<128x128xbf16>, vector<128x16xbf16>, vector<128x16xf32> -> vector<128x16xf32>
    %34 = vector.extract_strided_slice %8 {offsets = [0, 16], sizes = [128, 16], strides = [1, 1]} : vector<128x96xf32> to vector<128x16xf32>
    %35 = arith.truncf %34 : vector<128x16xf32> to vector<128x16xbf16>
    %36 = vector.extract_strided_slice %8 {offsets = [0, 48], sizes = [128, 16], strides = [1, 1]} : vector<128x96xf32> to vector<128x16xf32>
    %37 = arith.truncf %36 : vector<128x16xf32> to vector<128x16xbf16>
    %38 = vector.extract_strided_slice %8 {offsets = [0, 80], sizes = [128, 16], strides = [1, 1]} : vector<128x96xf32> to vector<128x16xf32>
    %39 = arith.truncf %38 : vector<128x16xf32> to vector<128x16xbf16>
    %cst_16 = arith.constant dense<0.000000e+00> : vector<128x128xf32>
    %40 = tpu.matmul %35, %37, %cst_16 {dimension_numbers = #tpu.dot_dimension_numbers<[1], [1], [0], [0], [0, 0, 1, 0], [], []>} : vector<128x16xbf16>, vector<128x16xbf16>, vector<128x128xf32> -> vector<128x128xf32>
    %cst_17 = arith.constant 2.500000e-01 : f32
    %41 = vector.broadcast %cst_17 : f32 to vector<128x128xf32>
    %42 = arith.mulf %40, %41 : vector<128x128xf32>
    %cst_18 = arith.constant 5.000000e-01 : f32
    %43 = vector.broadcast %cst_18 : f32 to vector<128x128xf32>
    %44 = arith.cmpf ogt, %1, %43 : vector<128x128xf32>
    %cst_19 = arith.constant -1.000000e+09 : f32
    %45 = vector.broadcast %cst_19 : f32 to vector<128x128xf32>
    %46 = arith.select %44, %45, %42 : vector<128x128xi1>, vector<128x128xf32>
    %cst_20 = arith.constant dense<0xFF800000> : vector<128xf32>
    %47 = vector.multi_reduction <maximumf>, %46, %cst_20 [1] : vector<128x128xf32> to vector<128xf32>
    %48 = vector.shape_cast %47 : vector<128xf32> to vector<128x1xf32>
    %49 = vector.broadcast %48 : vector<128x1xf32> to vector<128x128xf32>
    %50 = arith.subf %46, %49 : vector<128x128xf32>
    %51 = math.exp %50 : vector<128x128xf32>
    %cst_21 = arith.constant dense<0.000000e+00> : vector<128xf32>
    %52 = vector.multi_reduction <add>, %51, %cst_21 [1] : vector<128x128xf32> to vector<128xf32>
    %53 = vector.shape_cast %52 : vector<128xf32> to vector<128x1xf32>
    %54 = tpu.reciprocal %53 {approx = true} : vector<128x1xf32> -> vector<128x1xf32>
    %55 = vector.broadcast %54 : vector<128x1xf32> to vector<128x128xf32>
    %56 = arith.mulf %51, %55 : vector<128x128xf32>
    %57 = arith.truncf %56 : vector<128x128xf32> to vector<128x128xbf16>
    %cst_22 = arith.constant dense<0.000000e+00> : vector<128x16xf32>
    %58 = tpu.matmul %57, %39, %cst_22 {dimension_numbers = #tpu.dot_dimension_numbers<[1], [0], [0], [1], [0, 0, 1, 1], [], []>} : vector<128x128xbf16>, vector<128x16xbf16>, vector<128x16xf32> -> vector<128x16xf32>
    %59 = tpu.concatenate %33, %58 in 1 : vector<128x16xf32>, vector<128x16xf32> -> vector<128x32xf32>
    %60 = arith.truncf %59 : vector<128x32xf32> to vector<128x32xbf16>
    %c0_23 = arith.constant 0 : index
    %c0_24 = arith.constant 0 : index
    %61 = vector.load %arg5[%c0_23, %c0_24] : memref<32x32xbf16, #tpu.memory_space<vmem>>, vector<32x32xbf16>
    %cst_25 = arith.constant dense<0.000000e+00> : vector<128x32xf32>
    %62 = tpu.matmul %60, %61, %cst_25 {dimension_numbers = #tpu.dot_dimension_numbers<[1], [0], [0], [1], [0, 0, 1, 1], [], []>} : vector<128x32xbf16>, vector<32x32xbf16>, vector<128x32xf32> -> vector<128x32xf32>
    %c0_26 = arith.constant 0 : index
    %c0_27 = arith.constant 0 : index
    %63 = vector.load %arg6[%c0_26, %c0_27] : memref<1x32xf32, #tpu.memory_space<vmem>>, vector<1x32xf32>
    %64 = vector.broadcast %63 : vector<1x32xf32> to vector<128x32xf32>
    %65 = arith.addf %62, %64 : vector<128x32xf32>
    %c0_28 = arith.constant 0 : index
    %c0_29 = arith.constant 0 : index
    %66 = vector.load %arg7[%c0_28, %c0_29] : memref<1x32xf32, #tpu.memory_space<vmem>>, vector<1x32xf32>
    %c0_30 = arith.constant 0 : index
    %c0_31 = arith.constant 0 : index
    %67 = vector.load %arg8[%c0_30, %c0_31] : memref<1x32xf32, #tpu.memory_space<vmem>>, vector<1x32xf32>
    %68 = arith.addf %65, %0 : vector<128x32xf32>
    %cst_32 = arith.constant dense<0.000000e+00> : vector<128xf32>
    %69 = vector.multi_reduction <add>, %68, %cst_32 [1] : vector<128x32xf32> to vector<128xf32>
    %70 = vector.shape_cast %69 : vector<128xf32> to vector<128x1xf32>
    %cst_33 = arith.constant 3.200000e+01 : f32
    %71 = vector.broadcast %cst_33 : f32 to vector<128x1xf32>
    %72 = arith.divf %70, %71 : vector<128x1xf32>
    %73 = vector.broadcast %72 : vector<128x1xf32> to vector<128x32xf32>
    %74 = arith.subf %68, %73 : vector<128x32xf32>
    %75 = arith.mulf %74, %74 : vector<128x32xf32>
    %cst_34 = arith.constant dense<0.000000e+00> : vector<128xf32>
    %76 = vector.multi_reduction <add>, %75, %cst_34 [1] : vector<128x32xf32> to vector<128xf32>
    %77 = vector.shape_cast %76 : vector<128xf32> to vector<128x1xf32>
    %cst_35 = arith.constant 3.200000e+01 : f32
    %78 = vector.broadcast %cst_35 : f32 to vector<128x1xf32>
    %79 = arith.divf %77, %78 : vector<128x1xf32>
    %80 = vector.broadcast %72 : vector<128x1xf32> to vector<128x32xf32>
    %81 = arith.subf %68, %80 : vector<128x32xf32>
    %cst_36 = arith.constant 9.99999974E-6 : f32
    %82 = vector.broadcast %cst_36 : f32 to vector<128x1xf32>
    %83 = arith.addf %79, %82 : vector<128x1xf32>
    %84 = math.rsqrt %83 : vector<128x1xf32>
    %85 = vector.broadcast %84 : vector<128x1xf32> to vector<128x32xf32>
    %86 = arith.mulf %81, %85 : vector<128x32xf32>
    %87 = vector.broadcast %66 : vector<1x32xf32> to vector<128x32xf32>
    %88 = arith.mulf %86, %87 : vector<128x32xf32>
    %89 = vector.broadcast %67 : vector<1x32xf32> to vector<128x32xf32>
    %90 = arith.addf %88, %89 : vector<128x32xf32>
    %cst_37 = arith.constant 1.000000e+00 : f32
    %91 = vector.broadcast %cst_37 : f32 to vector<128x1xf32>
    %92 = arith.subf %91, %2 : vector<128x1xf32>
    %93 = vector.broadcast %92 : vector<128x1xf32> to vector<128x32xf32>
    %94 = arith.mulf %90, %93 : vector<128x32xf32>
    %95 = tpu.iota {dimensions = array<i32: 0>} : vector<128x1xi32>
    %c63_i32 = arith.constant 63 : i32
    %96 = vector.broadcast %c63_i32 : i32 to vector<128x1xi32>
    %97 = arith.andi %95, %96 : vector<128x1xi32>
    %cst_38 = arith.constant 0.000000e+00 : f32
    %98 = vector.broadcast %cst_38 : f32 to vector<1x32xf32>
    %99 = tpu.concatenate %98, %94, %98 in 0 : vector<1x32xf32>, vector<128x32xf32>, vector<1x32xf32> -> vector<130x32xf32>
    %cst_39 = arith.constant 0.000000e+00 : f32
    %100 = vector.broadcast %cst_39 : f32 to vector<128x64xf32>
    %c0_40 = arith.constant 0 : index
    %c0_41 = arith.constant 0 : index
    %101 = vector.load %arg10[%c0_40, %c0_41] : memref<1x64xf32, #tpu.memory_space<vmem>>, vector<1x64xf32>
    %102 = vector.broadcast %101 : vector<1x64xf32> to vector<128x64xf32>
    %103 = arith.addf %100, %102 : vector<128x64xf32>
    %104 = vector.extract_strided_slice %99 {offsets = [0, 0], sizes = [128, 32], strides = [1, 1]} : vector<130x32xf32> to vector<128x32xf32>
    %c-1_i32 = arith.constant -1 : i32
    %105 = vector.broadcast %c-1_i32 : i32 to vector<128x1xi32>
    %106 = arith.addi %97, %105 : vector<128x1xi32>
    %c0_i32 = arith.constant 0 : i32
    %107 = vector.broadcast %c0_i32 : i32 to vector<128x1xi32>
    %108 = arith.cmpi sge, %106, %107 : vector<128x1xi32>
    %c-1_i32_42 = arith.constant -1 : i32
    %109 = vector.broadcast %c-1_i32_42 : i32 to vector<128x1xi32>
    %110 = arith.addi %97, %109 : vector<128x1xi32>
    %c64_i32 = arith.constant 64 : i32
    %111 = vector.broadcast %c64_i32 : i32 to vector<128x1xi32>
    %112 = arith.cmpi slt, %110, %111 : vector<128x1xi32>
    %113 = arith.andi %108, %112 : vector<128x1xi1>
    %cst_43 = arith.constant 1.000000e+00 : f32
    %cst_44 = arith.constant 0.000000e+00 : f32
    %114 = vector.broadcast %cst_43 : f32 to vector<128x1xf32>
    %115 = vector.broadcast %cst_44 : f32 to vector<128x1xf32>
    %116 = arith.select %113, %114, %115 : vector<128x1xi1>, vector<128x1xf32>
    %117 = vector.broadcast %116 : vector<128x1xf32> to vector<128x32xf32>
    %118 = arith.mulf %104, %117 : vector<128x32xf32>
    %119 = arith.truncf %118 : vector<128x32xf32> to vector<128x32xbf16>
    %c0_45 = arith.constant 0 : index
    %c0_46 = arith.constant 0 : index
    %c0_47 = arith.constant 0 : index
    %120 = vector.load %arg9[%c0_45, %c0_46, %c0_47] : memref<3x32x64xbf16, #tpu.memory_space<vmem>>, vector<1x32x64xbf16>
    %121 = vector.shape_cast %120 : vector<1x32x64xbf16> to vector<32x64xbf16>
    %cst_48 = arith.constant dense<0.000000e+00> : vector<128x64xf32>
    %122 = tpu.matmul %119, %121, %cst_48 {dimension_numbers = #tpu.dot_dimension_numbers<[1], [0], [0], [1], [0, 0, 1, 1], [], []>} : vector<128x32xbf16>, vector<32x64xbf16>, vector<128x64xf32> -> vector<128x64xf32>
    %123 = arith.addf %103, %122 : vector<128x64xf32>
    %124 = vector.extract_strided_slice %99 {offsets = [1, 0], sizes = [128, 32], strides = [1, 1]} : vector<130x32xf32> to vector<128x32xf32>
    %125 = arith.truncf %124 : vector<128x32xf32> to vector<128x32xbf16>
    %c1 = arith.constant 1 : index
    %c0_49 = arith.constant 0 : index
    %c0_50 = arith.constant 0 : index
    %126 = vector.load %arg9[%c1, %c0_49, %c0_50] : memref<3x32x64xbf16, #tpu.memory_space<vmem>>, vector<1x32x64xbf16>
    %127 = vector.shape_cast %126 : vector<1x32x64xbf16> to vector<32x64xbf16>
    %cst_51 = arith.constant dense<0.000000e+00> : vector<128x64xf32>
    %128 = tpu.matmul %125, %127, %cst_51 {dimension_numbers = #tpu.dot_dimension_numbers<[1], [0], [0], [1], [0, 0, 1, 1], [], []>} : vector<128x32xbf16>, vector<32x64xbf16>, vector<128x64xf32> -> vector<128x64xf32>
    %129 = arith.addf %123, %128 : vector<128x64xf32>
    %130 = vector.extract_strided_slice %99 {offsets = [2, 0], sizes = [128, 32], strides = [1, 1]} : vector<130x32xf32> to vector<128x32xf32>
    %c1_i32 = arith.constant 1 : i32
    %131 = vector.broadcast %c1_i32 : i32 to vector<128x1xi32>
    %132 = arith.addi %97, %131 : vector<128x1xi32>
    %c0_i32_52 = arith.constant 0 : i32
    %133 = vector.broadcast %c0_i32_52 : i32 to vector<128x1xi32>
    %134 = arith.cmpi sge, %132, %133 : vector<128x1xi32>
    %c1_i32_53 = arith.constant 1 : i32
    %135 = vector.broadcast %c1_i32_53 : i32 to vector<128x1xi32>
    %136 = arith.addi %97, %135 : vector<128x1xi32>
    %c64_i32_54 = arith.constant 64 : i32
    %137 = vector.broadcast %c64_i32_54 : i32 to vector<128x1xi32>
    %138 = arith.cmpi slt, %136, %137 : vector<128x1xi32>
    %139 = arith.andi %134, %138 : vector<128x1xi1>
    %cst_55 = arith.constant 1.000000e+00 : f32
    %cst_56 = arith.constant 0.000000e+00 : f32
    %140 = vector.broadcast %cst_55 : f32 to vector<128x1xf32>
    %141 = vector.broadcast %cst_56 : f32 to vector<128x1xf32>
    %142 = arith.select %139, %140, %141 : vector<128x1xi1>, vector<128x1xf32>
    %143 = vector.broadcast %142 : vector<128x1xf32> to vector<128x32xf32>
    %144 = arith.mulf %130, %143 : vector<128x32xf32>
    %145 = arith.truncf %144 : vector<128x32xf32> to vector<128x32xbf16>
    %c2 = arith.constant 2 : index
    %c0_57 = arith.constant 0 : index
    %c0_58 = arith.constant 0 : index
    %146 = vector.load %arg9[%c2, %c0_57, %c0_58] : memref<3x32x64xbf16, #tpu.memory_space<vmem>>, vector<1x32x64xbf16>
    %147 = vector.shape_cast %146 : vector<1x32x64xbf16> to vector<32x64xbf16>
    %cst_59 = arith.constant dense<0.000000e+00> : vector<128x64xf32>
    %148 = tpu.matmul %145, %147, %cst_59 {dimension_numbers = #tpu.dot_dimension_numbers<[1], [0], [0], [1], [0, 0, 1, 1], [], []>} : vector<128x32xbf16>, vector<32x64xbf16>, vector<128x64xf32> -> vector<128x64xf32>
    %149 = arith.addf %129, %148 : vector<128x64xf32>
    %cst_60 = arith.constant 0.000000e+00 : f32
    %150 = vector.broadcast %cst_60 : f32 to vector<128x64xf32>
    %151 = arith.maximumf %149, %150 : vector<128x64xf32>
    %152 = tpu.iota {dimensions = array<i32: 0>} : vector<128x1xi32>
    %c63_i32_61 = arith.constant 63 : i32
    %153 = vector.broadcast %c63_i32_61 : i32 to vector<128x1xi32>
    %154 = arith.andi %152, %153 : vector<128x1xi32>
    %cst_62 = arith.constant 0.000000e+00 : f32
    %155 = vector.broadcast %cst_62 : f32 to vector<1x64xf32>
    %156 = tpu.concatenate %155, %151, %155 in 0 : vector<1x64xf32>, vector<128x64xf32>, vector<1x64xf32> -> vector<130x64xf32>
    %cst_63 = arith.constant 0.000000e+00 : f32
    %157 = vector.broadcast %cst_63 : f32 to vector<128x32xf32>
    %c0_64 = arith.constant 0 : index
    %c0_65 = arith.constant 0 : index
    %158 = vector.load %arg12[%c0_64, %c0_65] : memref<1x32xf32, #tpu.memory_space<vmem>>, vector<1x32xf32>
    %159 = vector.broadcast %158 : vector<1x32xf32> to vector<128x32xf32>
    %160 = arith.addf %157, %159 : vector<128x32xf32>
    %161 = vector.extract_strided_slice %156 {offsets = [0, 0], sizes = [128, 64], strides = [1, 1]} : vector<130x64xf32> to vector<128x64xf32>
    %c-1_i32_66 = arith.constant -1 : i32
    %162 = vector.broadcast %c-1_i32_66 : i32 to vector<128x1xi32>
    %163 = arith.addi %154, %162 : vector<128x1xi32>
    %c0_i32_67 = arith.constant 0 : i32
    %164 = vector.broadcast %c0_i32_67 : i32 to vector<128x1xi32>
    %165 = arith.cmpi sge, %163, %164 : vector<128x1xi32>
    %c-1_i32_68 = arith.constant -1 : i32
    %166 = vector.broadcast %c-1_i32_68 : i32 to vector<128x1xi32>
    %167 = arith.addi %154, %166 : vector<128x1xi32>
    %c64_i32_69 = arith.constant 64 : i32
    %168 = vector.broadcast %c64_i32_69 : i32 to vector<128x1xi32>
    %169 = arith.cmpi slt, %167, %168 : vector<128x1xi32>
    %170 = arith.andi %165, %169 : vector<128x1xi1>
    %cst_70 = arith.constant 1.000000e+00 : f32
    %cst_71 = arith.constant 0.000000e+00 : f32
    %171 = vector.broadcast %cst_70 : f32 to vector<128x1xf32>
    %172 = vector.broadcast %cst_71 : f32 to vector<128x1xf32>
    %173 = arith.select %170, %171, %172 : vector<128x1xi1>, vector<128x1xf32>
    %174 = vector.broadcast %173 : vector<128x1xf32> to vector<128x64xf32>
    %175 = arith.mulf %161, %174 : vector<128x64xf32>
    %176 = arith.truncf %175 : vector<128x64xf32> to vector<128x64xbf16>
    %c0_72 = arith.constant 0 : index
    %c0_73 = arith.constant 0 : index
    %c0_74 = arith.constant 0 : index
    %177 = vector.load %arg11[%c0_72, %c0_73, %c0_74] : memref<3x64x32xbf16, #tpu.memory_space<vmem>>, vector<1x64x32xbf16>
    %178 = vector.shape_cast %177 : vector<1x64x32xbf16> to vector<64x32xbf16>
    %cst_75 = arith.constant dense<0.000000e+00> : vector<128x32xf32>
    %179 = tpu.matmul %176, %178, %cst_75 {dimension_numbers = #tpu.dot_dimension_numbers<[1], [0], [0], [1], [0, 0, 1, 1], [], []>} : vector<128x64xbf16>, vector<64x32xbf16>, vector<128x32xf32> -> vector<128x32xf32>
    %180 = arith.addf %160, %179 : vector<128x32xf32>
    %181 = vector.extract_strided_slice %156 {offsets = [1, 0], sizes = [128, 64], strides = [1, 1]} : vector<130x64xf32> to vector<128x64xf32>
    %182 = arith.truncf %181 : vector<128x64xf32> to vector<128x64xbf16>
    %c1_76 = arith.constant 1 : index
    %c0_77 = arith.constant 0 : index
    %c0_78 = arith.constant 0 : index
    %183 = vector.load %arg11[%c1_76, %c0_77, %c0_78] : memref<3x64x32xbf16, #tpu.memory_space<vmem>>, vector<1x64x32xbf16>
    %184 = vector.shape_cast %183 : vector<1x64x32xbf16> to vector<64x32xbf16>
    %cst_79 = arith.constant dense<0.000000e+00> : vector<128x32xf32>
    %185 = tpu.matmul %182, %184, %cst_79 {dimension_numbers = #tpu.dot_dimension_numbers<[1], [0], [0], [1], [0, 0, 1, 1], [], []>} : vector<128x64xbf16>, vector<64x32xbf16>, vector<128x32xf32> -> vector<128x32xf32>
    %186 = arith.addf %180, %185 : vector<128x32xf32>
    %187 = vector.extract_strided_slice %156 {offsets = [2, 0], sizes = [128, 64], strides = [1, 1]} : vector<130x64xf32> to vector<128x64xf32>
    %c1_i32_80 = arith.constant 1 : i32
    %188 = vector.broadcast %c1_i32_80 : i32 to vector<128x1xi32>
    %189 = arith.addi %154, %188 : vector<128x1xi32>
    %c0_i32_81 = arith.constant 0 : i32
    %190 = vector.broadcast %c0_i32_81 : i32 to vector<128x1xi32>
    %191 = arith.cmpi sge, %189, %190 : vector<128x1xi32>
    %c1_i32_82 = arith.constant 1 : i32
    %192 = vector.broadcast %c1_i32_82 : i32 to vector<128x1xi32>
    %193 = arith.addi %154, %192 : vector<128x1xi32>
    %c64_i32_83 = arith.constant 64 : i32
    %194 = vector.broadcast %c64_i32_83 : i32 to vector<128x1xi32>
    %195 = arith.cmpi slt, %193, %194 : vector<128x1xi32>
    %196 = arith.andi %191, %195 : vector<128x1xi1>
    %cst_84 = arith.constant 1.000000e+00 : f32
    %cst_85 = arith.constant 0.000000e+00 : f32
    %197 = vector.broadcast %cst_84 : f32 to vector<128x1xf32>
    %198 = vector.broadcast %cst_85 : f32 to vector<128x1xf32>
    %199 = arith.select %196, %197, %198 : vector<128x1xi1>, vector<128x1xf32>
    %200 = vector.broadcast %199 : vector<128x1xf32> to vector<128x64xf32>
    %201 = arith.mulf %187, %200 : vector<128x64xf32>
    %202 = arith.truncf %201 : vector<128x64xf32> to vector<128x64xbf16>
    %c2_86 = arith.constant 2 : index
    %c0_87 = arith.constant 0 : index
    %c0_88 = arith.constant 0 : index
    %203 = vector.load %arg11[%c2_86, %c0_87, %c0_88] : memref<3x64x32xbf16, #tpu.memory_space<vmem>>, vector<1x64x32xbf16>
    %204 = vector.shape_cast %203 : vector<1x64x32xbf16> to vector<64x32xbf16>
    %cst_89 = arith.constant dense<0.000000e+00> : vector<128x32xf32>
    %205 = tpu.matmul %202, %204, %cst_89 {dimension_numbers = #tpu.dot_dimension_numbers<[1], [0], [0], [1], [0, 0, 1, 1], [], []>} : vector<128x64xbf16>, vector<64x32xbf16>, vector<128x32xf32> -> vector<128x32xf32>
    %206 = arith.addf %186, %205 : vector<128x32xf32>
    %c0_90 = arith.constant 0 : index
    %c0_91 = arith.constant 0 : index
    %207 = vector.load %arg13[%c0_90, %c0_91] : memref<1x32xf32, #tpu.memory_space<vmem>>, vector<1x32xf32>
    %c0_92 = arith.constant 0 : index
    %c0_93 = arith.constant 0 : index
    %208 = vector.load %arg14[%c0_92, %c0_93] : memref<1x32xf32, #tpu.memory_space<vmem>>, vector<1x32xf32>
    %209 = arith.addf %206, %94 : vector<128x32xf32>
    %cst_94 = arith.constant dense<0.000000e+00> : vector<128xf32>
    %210 = vector.multi_reduction <add>, %209, %cst_94 [1] : vector<128x32xf32> to vector<128xf32>
    %211 = vector.shape_cast %210 : vector<128xf32> to vector<128x1xf32>
    %cst_95 = arith.constant 3.200000e+01 : f32
    %212 = vector.broadcast %cst_95 : f32 to vector<128x1xf32>
    %213 = arith.divf %211, %212 : vector<128x1xf32>
    %214 = vector.broadcast %213 : vector<128x1xf32> to vector<128x32xf32>
    %215 = arith.subf %209, %214 : vector<128x32xf32>
    %216 = arith.mulf %215, %215 : vector<128x32xf32>
    %cst_96 = arith.constant dense<0.000000e+00> : vector<128xf32>
    %217 = vector.multi_reduction <add>, %216, %cst_96 [1] : vector<128x32xf32> to vector<128xf32>
    %218 = vector.shape_cast %217 : vector<128xf32> to vector<128x1xf32>
    %cst_97 = arith.constant 3.200000e+01 : f32
    %219 = vector.broadcast %cst_97 : f32 to vector<128x1xf32>
    %220 = arith.divf %218, %219 : vector<128x1xf32>
    %221 = vector.broadcast %213 : vector<128x1xf32> to vector<128x32xf32>
    %222 = arith.subf %209, %221 : vector<128x32xf32>
    %cst_98 = arith.constant 9.99999974E-6 : f32
    %223 = vector.broadcast %cst_98 : f32 to vector<128x1xf32>
    %224 = arith.addf %220, %223 : vector<128x1xf32>
    %225 = math.rsqrt %224 : vector<128x1xf32>
    %226 = vector.broadcast %225 : vector<128x1xf32> to vector<128x32xf32>
    %227 = arith.mulf %222, %226 : vector<128x32xf32>
    %228 = vector.broadcast %207 : vector<1x32xf32> to vector<128x32xf32>
    %229 = arith.mulf %227, %228 : vector<128x32xf32>
    %230 = vector.broadcast %208 : vector<1x32xf32> to vector<128x32xf32>
    %231 = arith.addf %229, %230 : vector<128x32xf32>
    %cst_99 = arith.constant 1.000000e+00 : f32
    %232 = vector.broadcast %cst_99 : f32 to vector<128x1xf32>
    %233 = arith.subf %232, %2 : vector<128x1xf32>
    %234 = vector.broadcast %233 : vector<128x1xf32> to vector<128x32xf32>
    %235 = arith.mulf %231, %234 : vector<128x32xf32>
    %c0_100 = arith.constant 0 : index
    %c0_101 = arith.constant 0 : index
    %236 = vector.load %arg15[%c0_100, %c0_101] : memref<128x32xf32, #tpu.memory_space<vmem>>, vector<128x32xf32>
    tpu.vector_store %arg15[%c0_100, %c0_101], %235 {strides = array<i32>} : memref<128x32xf32, #tpu.memory_space<vmem>>, vector<128x32xf32>,
    return
  }
}

module attributes {stable_mosaic.version = 11 : i64} {
  func.func @_generator_kernel(%arg0: memref<2x32x64xf32, #tpu.memory_space<vmem>>, %arg1: memref<32x2xf32, #tpu.memory_space<vmem>>, %arg2: memref<64x128xbf16, #tpu.memory_space<vmem>>, %arg3: memref<128x256xbf16, #tpu.memory_space<vmem>>, %arg4: memref<3x32x32xbf16, #tpu.memory_space<vmem>>, %arg5: memref<32x1xf32, #tpu.memory_space<vmem>>, %arg6: memref<32x32xbf16, #tpu.memory_space<vmem>>, %arg7: memref<32x1xf32, #tpu.memory_space<vmem>>, %arg8: memref<3x16x32xbf16, #tpu.memory_space<vmem>>, %arg9: memref<16x1xf32, #tpu.memory_space<vmem>>, %arg10: memref<3x16x16xbf16, #tpu.memory_space<vmem>>, %arg11: memref<16x1xf32, #tpu.memory_space<vmem>>, %arg12: memref<3x16x16xbf16, #tpu.memory_space<vmem>>, %arg13: memref<16x1xf32, #tpu.memory_space<vmem>>, %arg14: memref<3x8x16xbf16, #tpu.memory_space<vmem>>, %arg15: memref<8x1xf32, #tpu.memory_space<vmem>>, %arg16: memref<3x8x8xbf16, #tpu.memory_space<vmem>>, %arg17: memref<8x1xf32, #tpu.memory_space<vmem>>, %arg18: memref<3x8x8xbf16, #tpu.memory_space<vmem>>, %arg19: memref<8x1xf32, #tpu.memory_space<vmem>>, %arg20: memref<3x1x8xbf16, #tpu.memory_space<vmem>>, %arg21: memref<1x1xf32, #tpu.memory_space<vmem>>, %arg22: memref<2x256xf32, #tpu.memory_space<vmem>>) attributes {dimension_semantics = [], scalar_prefetch = 0 : i64, scratch_operands = 0 : i64, tpu.core_type = #tpu.core_type<tc>} {
    %c0 = arith.constant 0 : index
    %c0_0 = arith.constant 0 : index
    %0 = vector.load %arg6[%c0, %c0_0] : memref<32x32xbf16, #tpu.memory_space<vmem>>, vector<32x32xbf16>
    %c0_1 = arith.constant 0 : index
    %c0_2 = arith.constant 0 : index
    %1 = vector.load %arg1[%c0_1, %c0_2] : memref<32x2xf32, #tpu.memory_space<vmem>>, vector<32x2xf32>
    %2 = arith.truncf %1 : vector<32x2xf32> to vector<32x2xbf16>
    %cst = arith.constant dense<0.000000e+00> : vector<32x2xf32>
    %3 = tpu.matmul %0, %2, %cst {dimension_numbers = #tpu.dot_dimension_numbers<[1], [0], [0], [1], [0, 0, 1, 1], [], []>} : vector<32x32xbf16>, vector<32x2xbf16>, vector<32x2xf32> -> vector<32x2xf32>
    %c0_3 = arith.constant 0 : index
    %c0_4 = arith.constant 0 : index
    %4 = vector.load %arg7[%c0_3, %c0_4] : memref<32x1xf32, #tpu.memory_space<vmem>>, vector<32x1xf32>
    %5 = vector.broadcast %4 : vector<32x1xf32> to vector<32x2xf32>
    %6 = arith.addf %3, %5 : vector<32x2xf32>
    %c0_5 = arith.constant 0 : index
    %c0_6 = arith.constant 0 : index
    %c0_7 = arith.constant 0 : index
    %7 = vector.load %arg0[%c0_5, %c0_6, %c0_7] : memref<2x32x64xf32, #tpu.memory_space<vmem>>, vector<1x32x64xf32>
    %8 = vector.shape_cast %7 : vector<1x32x64xf32> to vector<32x64xf32>
    %cst_8 = arith.constant 0.000000e+00 : f32
    %9 = vector.broadcast %cst_8 : f32 to vector<32x1xf32>
    %10 = tpu.concatenate %9, %8, %9 in 1 : vector<32x1xf32>, vector<32x64xf32>, vector<32x1xf32> -> vector<32x66xf32>
    %11 = arith.truncf %10 : vector<32x66xf32> to vector<32x66xbf16>
    %cst_9 = arith.constant 0.000000e+00 : f32
    %12 = vector.broadcast %cst_9 : f32 to vector<32x64xf32>
    %c0_10 = arith.constant 0 : index
    %c0_11 = arith.constant 0 : index
    %13 = vector.load %arg5[%c0_10, %c0_11] : memref<32x1xf32, #tpu.memory_space<vmem>>, vector<32x1xf32>
    %14 = vector.broadcast %13 : vector<32x1xf32> to vector<32x64xf32>
    %15 = arith.addf %12, %14 : vector<32x64xf32>
    %c0_12 = arith.constant 0 : index
    %c0_13 = arith.constant 0 : index
    %c0_14 = arith.constant 0 : index
    %16 = vector.load %arg4[%c0_12, %c0_13, %c0_14] : memref<3x32x32xbf16, #tpu.memory_space<vmem>>, vector<1x32x32xbf16>
    %17 = vector.shape_cast %16 : vector<1x32x32xbf16> to vector<32x32xbf16>
    %18 = vector.extract_strided_slice %11 {offsets = [0, 0], sizes = [32, 64], strides = [1, 1]} : vector<32x66xbf16> to vector<32x64xbf16>
    %cst_15 = arith.constant dense<0.000000e+00> : vector<32x64xf32>
    %19 = tpu.matmul %17, %18, %cst_15 {dimension_numbers = #tpu.dot_dimension_numbers<[1], [0], [0], [1], [0, 0, 1, 1], [], []>} : vector<32x32xbf16>, vector<32x64xbf16>, vector<32x64xf32> -> vector<32x64xf32>
    %20 = arith.addf %15, %19 : vector<32x64xf32>
    %c1 = arith.constant 1 : index
    %c0_16 = arith.constant 0 : index
    %c0_17 = arith.constant 0 : index
    %21 = vector.load %arg4[%c1, %c0_16, %c0_17] : memref<3x32x32xbf16, #tpu.memory_space<vmem>>, vector<1x32x32xbf16>
    %22 = vector.shape_cast %21 : vector<1x32x32xbf16> to vector<32x32xbf16>
    %23 = vector.extract_strided_slice %11 {offsets = [0, 1], sizes = [32, 64], strides = [1, 1]} : vector<32x66xbf16> to vector<32x64xbf16>
    %cst_18 = arith.constant dense<0.000000e+00> : vector<32x64xf32>
    %24 = tpu.matmul %22, %23, %cst_18 {dimension_numbers = #tpu.dot_dimension_numbers<[1], [0], [0], [1], [0, 0, 1, 1], [], []>} : vector<32x32xbf16>, vector<32x64xbf16>, vector<32x64xf32> -> vector<32x64xf32>
    %25 = arith.addf %20, %24 : vector<32x64xf32>
    %c2 = arith.constant 2 : index
    %c0_19 = arith.constant 0 : index
    %c0_20 = arith.constant 0 : index
    %26 = vector.load %arg4[%c2, %c0_19, %c0_20] : memref<3x32x32xbf16, #tpu.memory_space<vmem>>, vector<1x32x32xbf16>
    %27 = vector.shape_cast %26 : vector<1x32x32xbf16> to vector<32x32xbf16>
    %28 = vector.extract_strided_slice %11 {offsets = [0, 2], sizes = [32, 64], strides = [1, 1]} : vector<32x66xbf16> to vector<32x64xbf16>
    %cst_21 = arith.constant dense<0.000000e+00> : vector<32x64xf32>
    %29 = tpu.matmul %27, %28, %cst_21 {dimension_numbers = #tpu.dot_dimension_numbers<[1], [0], [0], [1], [0, 0, 1, 1], [], []>} : vector<32x32xbf16>, vector<32x64xbf16>, vector<32x64xf32> -> vector<32x64xf32>
    %30 = arith.addf %25, %29 : vector<32x64xf32>
    %31 = vector.extract_strided_slice %6 {offsets = [0, 0], sizes = [32, 1], strides = [1, 1]} : vector<32x2xf32> to vector<32x1xf32>
    %32 = vector.broadcast %31 : vector<32x1xf32> to vector<32x64xf32>
    %33 = arith.addf %30, %32 : vector<32x64xf32>
    %cst_22 = arith.constant 0.000000e+00 : f32
    %34 = vector.broadcast %cst_22 : f32 to vector<32x64xf32>
    %35 = arith.cmpf ogt, %33, %34 : vector<32x64xf32>
    %cst_23 = arith.constant 1.000000e-01 : f32
    %36 = vector.broadcast %cst_23 : f32 to vector<32x64xf32>
    %37 = arith.mulf %36, %33 : vector<32x64xf32>
    %38 = arith.select %35, %33, %37 : vector<32x64xi1>, vector<32x64xf32>
    %39 = arith.truncf %38 : vector<32x64xf32> to vector<32x64xbf16>
    %c0_24 = arith.constant 0 : index
    %c0_25 = arith.constant 0 : index
    %40 = vector.load %arg2[%c0_24, %c0_25] : memref<64x128xbf16, #tpu.memory_space<vmem>>, vector<64x128xbf16>
    %cst_26 = arith.constant dense<0.000000e+00> : vector<32x128xf32>
    %41 = tpu.matmul %39, %40, %cst_26 {dimension_numbers = #tpu.dot_dimension_numbers<[1], [0], [0], [1], [0, 0, 1, 1], [], []>} : vector<32x64xbf16>, vector<64x128xbf16>, vector<32x128xf32> -> vector<32x128xf32>
    %cst_27 = arith.constant 0.000000e+00 : f32
    %42 = vector.broadcast %cst_27 : f32 to vector<32x1xf32>
    %43 = tpu.concatenate %42, %41, %42 in 1 : vector<32x1xf32>, vector<32x128xf32>, vector<32x1xf32> -> vector<32x130xf32>
    %44 = arith.truncf %43 : vector<32x130xf32> to vector<32x130xbf16>
    %cst_28 = arith.constant 0.000000e+00 : f32
    %45 = vector.broadcast %cst_28 : f32 to vector<16x128xf32>
    %c0_29 = arith.constant 0 : index
    %c0_30 = arith.constant 0 : index
    %46 = vector.load %arg9[%c0_29, %c0_30] : memref<16x1xf32, #tpu.memory_space<vmem>>, vector<16x1xf32>
    %47 = vector.broadcast %46 : vector<16x1xf32> to vector<16x128xf32>
    %48 = arith.addf %45, %47 : vector<16x128xf32>
    %c0_31 = arith.constant 0 : index
    %c0_32 = arith.constant 0 : index
    %c0_33 = arith.constant 0 : index
    %49 = vector.load %arg8[%c0_31, %c0_32, %c0_33] : memref<3x16x32xbf16, #tpu.memory_space<vmem>>, vector<1x16x32xbf16>
    %50 = vector.shape_cast %49 : vector<1x16x32xbf16> to vector<16x32xbf16>
    %51 = vector.extract_strided_slice %44 {offsets = [0, 0], sizes = [32, 128], strides = [1, 1]} : vector<32x130xbf16> to vector<32x128xbf16>
    %cst_34 = arith.constant dense<0.000000e+00> : vector<16x128xf32>
    %52 = tpu.matmul %50, %51, %cst_34 {dimension_numbers = #tpu.dot_dimension_numbers<[1], [0], [0], [1], [0, 0, 1, 1], [], []>} : vector<16x32xbf16>, vector<32x128xbf16>, vector<16x128xf32> -> vector<16x128xf32>
    %53 = arith.addf %48, %52 : vector<16x128xf32>
    %c1_35 = arith.constant 1 : index
    %c0_36 = arith.constant 0 : index
    %c0_37 = arith.constant 0 : index
    %54 = vector.load %arg8[%c1_35, %c0_36, %c0_37] : memref<3x16x32xbf16, #tpu.memory_space<vmem>>, vector<1x16x32xbf16>
    %55 = vector.shape_cast %54 : vector<1x16x32xbf16> to vector<16x32xbf16>
    %56 = vector.extract_strided_slice %44 {offsets = [0, 1], sizes = [32, 128], strides = [1, 1]} : vector<32x130xbf16> to vector<32x128xbf16>
    %cst_38 = arith.constant dense<0.000000e+00> : vector<16x128xf32>
    %57 = tpu.matmul %55, %56, %cst_38 {dimension_numbers = #tpu.dot_dimension_numbers<[1], [0], [0], [1], [0, 0, 1, 1], [], []>} : vector<16x32xbf16>, vector<32x128xbf16>, vector<16x128xf32> -> vector<16x128xf32>
    %58 = arith.addf %53, %57 : vector<16x128xf32>
    %c2_39 = arith.constant 2 : index
    %c0_40 = arith.constant 0 : index
    %c0_41 = arith.constant 0 : index
    %59 = vector.load %arg8[%c2_39, %c0_40, %c0_41] : memref<3x16x32xbf16, #tpu.memory_space<vmem>>, vector<1x16x32xbf16>
    %60 = vector.shape_cast %59 : vector<1x16x32xbf16> to vector<16x32xbf16>
    %61 = vector.extract_strided_slice %44 {offsets = [0, 2], sizes = [32, 128], strides = [1, 1]} : vector<32x130xbf16> to vector<32x128xbf16>
    %cst_42 = arith.constant dense<0.000000e+00> : vector<16x128xf32>
    %62 = tpu.matmul %60, %61, %cst_42 {dimension_numbers = #tpu.dot_dimension_numbers<[1], [0], [0], [1], [0, 0, 1, 1], [], []>} : vector<16x32xbf16>, vector<32x128xbf16>, vector<16x128xf32> -> vector<16x128xf32>
    %63 = arith.addf %58, %62 : vector<16x128xf32>
    %cst_43 = arith.constant 0.000000e+00 : f32
    %64 = vector.broadcast %cst_43 : f32 to vector<16x128xf32>
    %65 = arith.cmpf ogt, %63, %64 : vector<16x128xf32>
    %cst_44 = arith.constant 1.000000e-01 : f32
    %66 = vector.broadcast %cst_44 : f32 to vector<16x128xf32>
    %67 = arith.mulf %66, %63 : vector<16x128xf32>
    %68 = arith.select %65, %63, %67 : vector<16x128xi1>, vector<16x128xf32>
    %cst_45 = arith.constant 0.000000e+00 : f32
    %69 = vector.broadcast %cst_45 : f32 to vector<16x1xf32>
    %70 = tpu.concatenate %69, %68, %69 in 1 : vector<16x1xf32>, vector<16x128xf32>, vector<16x1xf32> -> vector<16x130xf32>
    %71 = arith.truncf %70 : vector<16x130xf32> to vector<16x130xbf16>
    %cst_46 = arith.constant 0.000000e+00 : f32
    %72 = vector.broadcast %cst_46 : f32 to vector<16x128xf32>
    %c0_47 = arith.constant 0 : index
    %c0_48 = arith.constant 0 : index
    %73 = vector.load %arg11[%c0_47, %c0_48] : memref<16x1xf32, #tpu.memory_space<vmem>>, vector<16x1xf32>
    %74 = vector.broadcast %73 : vector<16x1xf32> to vector<16x128xf32>
    %75 = arith.addf %72, %74 : vector<16x128xf32>
    %c0_49 = arith.constant 0 : index
    %c0_50 = arith.constant 0 : index
    %c0_51 = arith.constant 0 : index
    %76 = vector.load %arg10[%c0_49, %c0_50, %c0_51] : memref<3x16x16xbf16, #tpu.memory_space<vmem>>, vector<1x16x16xbf16>
    %77 = vector.shape_cast %76 : vector<1x16x16xbf16> to vector<16x16xbf16>
    %78 = vector.extract_strided_slice %71 {offsets = [0, 0], sizes = [16, 128], strides = [1, 1]} : vector<16x130xbf16> to vector<16x128xbf16>
    %cst_52 = arith.constant dense<0.000000e+00> : vector<16x128xf32>
    %79 = tpu.matmul %77, %78, %cst_52 {dimension_numbers = #tpu.dot_dimension_numbers<[1], [0], [0], [1], [0, 0, 1, 1], [], []>} : vector<16x16xbf16>, vector<16x128xbf16>, vector<16x128xf32> -> vector<16x128xf32>
    %80 = arith.addf %75, %79 : vector<16x128xf32>
    %c1_53 = arith.constant 1 : index
    %c0_54 = arith.constant 0 : index
    %c0_55 = arith.constant 0 : index
    %81 = vector.load %arg10[%c1_53, %c0_54, %c0_55] : memref<3x16x16xbf16, #tpu.memory_space<vmem>>, vector<1x16x16xbf16>
    %82 = vector.shape_cast %81 : vector<1x16x16xbf16> to vector<16x16xbf16>
    %83 = vector.extract_strided_slice %71 {offsets = [0, 1], sizes = [16, 128], strides = [1, 1]} : vector<16x130xbf16> to vector<16x128xbf16>
    %cst_56 = arith.constant dense<0.000000e+00> : vector<16x128xf32>
    %84 = tpu.matmul %82, %83, %cst_56 {dimension_numbers = #tpu.dot_dimension_numbers<[1], [0], [0], [1], [0, 0, 1, 1], [], []>} : vector<16x16xbf16>, vector<16x128xbf16>, vector<16x128xf32> -> vector<16x128xf32>
    %85 = arith.addf %80, %84 : vector<16x128xf32>
    %c2_57 = arith.constant 2 : index
    %c0_58 = arith.constant 0 : index
    %c0_59 = arith.constant 0 : index
    %86 = vector.load %arg10[%c2_57, %c0_58, %c0_59] : memref<3x16x16xbf16, #tpu.memory_space<vmem>>, vector<1x16x16xbf16>
    %87 = vector.shape_cast %86 : vector<1x16x16xbf16> to vector<16x16xbf16>
    %88 = vector.extract_strided_slice %71 {offsets = [0, 2], sizes = [16, 128], strides = [1, 1]} : vector<16x130xbf16> to vector<16x128xbf16>
    %cst_60 = arith.constant dense<0.000000e+00> : vector<16x128xf32>
    %89 = tpu.matmul %87, %88, %cst_60 {dimension_numbers = #tpu.dot_dimension_numbers<[1], [0], [0], [1], [0, 0, 1, 1], [], []>} : vector<16x16xbf16>, vector<16x128xbf16>, vector<16x128xf32> -> vector<16x128xf32>
    %90 = arith.addf %85, %89 : vector<16x128xf32>
    %cst_61 = arith.constant 0.000000e+00 : f32
    %91 = vector.broadcast %cst_61 : f32 to vector<16x128xf32>
    %92 = arith.cmpf ogt, %90, %91 : vector<16x128xf32>
    %cst_62 = arith.constant 1.000000e-01 : f32
    %93 = vector.broadcast %cst_62 : f32 to vector<16x128xf32>
    %94 = arith.mulf %93, %90 : vector<16x128xf32>
    %95 = arith.select %92, %90, %94 : vector<16x128xi1>, vector<16x128xf32>
    %cst_63 = arith.constant 0.000000e+00 : f32
    %96 = vector.broadcast %cst_63 : f32 to vector<16x1xf32>
    %97 = tpu.concatenate %96, %95, %96 in 1 : vector<16x1xf32>, vector<16x128xf32>, vector<16x1xf32> -> vector<16x130xf32>
    %98 = arith.truncf %97 : vector<16x130xf32> to vector<16x130xbf16>
    %cst_64 = arith.constant 0.000000e+00 : f32
    %99 = vector.broadcast %cst_64 : f32 to vector<16x128xf32>
    %c0_65 = arith.constant 0 : index
    %c0_66 = arith.constant 0 : index
    %100 = vector.load %arg13[%c0_65, %c0_66] : memref<16x1xf32, #tpu.memory_space<vmem>>, vector<16x1xf32>
    %101 = vector.broadcast %100 : vector<16x1xf32> to vector<16x128xf32>
    %102 = arith.addf %99, %101 : vector<16x128xf32>
    %c0_67 = arith.constant 0 : index
    %c0_68 = arith.constant 0 : index
    %c0_69 = arith.constant 0 : index
    %103 = vector.load %arg12[%c0_67, %c0_68, %c0_69] : memref<3x16x16xbf16, #tpu.memory_space<vmem>>, vector<1x16x16xbf16>
    %104 = vector.shape_cast %103 : vector<1x16x16xbf16> to vector<16x16xbf16>
    %105 = vector.extract_strided_slice %98 {offsets = [0, 0], sizes = [16, 128], strides = [1, 1]} : vector<16x130xbf16> to vector<16x128xbf16>
    %cst_70 = arith.constant dense<0.000000e+00> : vector<16x128xf32>
    %106 = tpu.matmul %104, %105, %cst_70 {dimension_numbers = #tpu.dot_dimension_numbers<[1], [0], [0], [1], [0, 0, 1, 1], [], []>} : vector<16x16xbf16>, vector<16x128xbf16>, vector<16x128xf32> -> vector<16x128xf32>
    %107 = arith.addf %102, %106 : vector<16x128xf32>
    %c1_71 = arith.constant 1 : index
    %c0_72 = arith.constant 0 : index
    %c0_73 = arith.constant 0 : index
    %108 = vector.load %arg12[%c1_71, %c0_72, %c0_73] : memref<3x16x16xbf16, #tpu.memory_space<vmem>>, vector<1x16x16xbf16>
    %109 = vector.shape_cast %108 : vector<1x16x16xbf16> to vector<16x16xbf16>
    %110 = vector.extract_strided_slice %98 {offsets = [0, 1], sizes = [16, 128], strides = [1, 1]} : vector<16x130xbf16> to vector<16x128xbf16>
    %cst_74 = arith.constant dense<0.000000e+00> : vector<16x128xf32>
    %111 = tpu.matmul %109, %110, %cst_74 {dimension_numbers = #tpu.dot_dimension_numbers<[1], [0], [0], [1], [0, 0, 1, 1], [], []>} : vector<16x16xbf16>, vector<16x128xbf16>, vector<16x128xf32> -> vector<16x128xf32>
    %112 = arith.addf %107, %111 : vector<16x128xf32>
    %c2_75 = arith.constant 2 : index
    %c0_76 = arith.constant 0 : index
    %c0_77 = arith.constant 0 : index
    %113 = vector.load %arg12[%c2_75, %c0_76, %c0_77] : memref<3x16x16xbf16, #tpu.memory_space<vmem>>, vector<1x16x16xbf16>
    %114 = vector.shape_cast %113 : vector<1x16x16xbf16> to vector<16x16xbf16>
    %115 = vector.extract_strided_slice %98 {offsets = [0, 2], sizes = [16, 128], strides = [1, 1]} : vector<16x130xbf16> to vector<16x128xbf16>
    %cst_78 = arith.constant dense<0.000000e+00> : vector<16x128xf32>
    %116 = tpu.matmul %114, %115, %cst_78 {dimension_numbers = #tpu.dot_dimension_numbers<[1], [0], [0], [1], [0, 0, 1, 1], [], []>} : vector<16x16xbf16>, vector<16x128xbf16>, vector<16x128xf32> -> vector<16x128xf32>
    %117 = arith.addf %112, %116 : vector<16x128xf32>
    %118 = arith.addf %63, %117 : vector<16x128xf32>
    %cst_79 = arith.constant 0.000000e+00 : f32
    %119 = vector.broadcast %cst_79 : f32 to vector<16x128xf32>
    %120 = arith.cmpf ogt, %118, %119 : vector<16x128xf32>
    %cst_80 = arith.constant 1.000000e-01 : f32
    %121 = vector.broadcast %cst_80 : f32 to vector<16x128xf32>
    %122 = arith.mulf %121, %118 : vector<16x128xf32>
    %123 = arith.select %120, %118, %122 : vector<16x128xi1>, vector<16x128xf32>
    %124 = arith.truncf %123 : vector<16x128xf32> to vector<16x128xbf16>
    %c0_81 = arith.constant 0 : index
    %c0_82 = arith.constant 0 : index
    %125 = vector.load %arg3[%c0_81, %c0_82] : memref<128x256xbf16, #tpu.memory_space<vmem>>, vector<128x256xbf16>
    %cst_83 = arith.constant dense<0.000000e+00> : vector<16x256xf32>
    %126 = tpu.matmul %124, %125, %cst_83 {dimension_numbers = #tpu.dot_dimension_numbers<[1], [0], [0], [1], [0, 0, 1, 1], [], []>} : vector<16x128xbf16>, vector<128x256xbf16>, vector<16x256xf32> -> vector<16x256xf32>
    %cst_84 = arith.constant 0.000000e+00 : f32
    %127 = vector.broadcast %cst_84 : f32 to vector<16x1xf32>
    %128 = tpu.concatenate %127, %126, %127 in 1 : vector<16x1xf32>, vector<16x256xf32>, vector<16x1xf32> -> vector<16x258xf32>
    %129 = arith.truncf %128 : vector<16x258xf32> to vector<16x258xbf16>
    %cst_85 = arith.constant 0.000000e+00 : f32
    %130 = vector.broadcast %cst_85 : f32 to vector<8x256xf32>
    %c0_86 = arith.constant 0 : index
    %c0_87 = arith.constant 0 : index
    %131 = vector.load %arg15[%c0_86, %c0_87] : memref<8x1xf32, #tpu.memory_space<vmem>>, vector<8x1xf32>
    %132 = vector.broadcast %131 : vector<8x1xf32> to vector<8x256xf32>
    %133 = arith.addf %130, %132 : vector<8x256xf32>
    %c0_88 = arith.constant 0 : index
    %c0_89 = arith.constant 0 : index
    %c0_90 = arith.constant 0 : index
    %134 = vector.load %arg14[%c0_88, %c0_89, %c0_90] : memref<3x8x16xbf16, #tpu.memory_space<vmem>>, vector<1x8x16xbf16>
    %135 = vector.shape_cast %134 : vector<1x8x16xbf16> to vector<8x16xbf16>
    %136 = vector.extract_strided_slice %129 {offsets = [0, 0], sizes = [16, 256], strides = [1, 1]} : vector<16x258xbf16> to vector<16x256xbf16>
    %cst_91 = arith.constant dense<0.000000e+00> : vector<8x256xf32>
    %137 = tpu.matmul %135, %136, %cst_91 {dimension_numbers = #tpu.dot_dimension_numbers<[1], [0], [0], [1], [0, 0, 1, 1], [], []>} : vector<8x16xbf16>, vector<16x256xbf16>, vector<8x256xf32> -> vector<8x256xf32>
    %138 = arith.addf %133, %137 : vector<8x256xf32>
    %c1_92 = arith.constant 1 : index
    %c0_93 = arith.constant 0 : index
    %c0_94 = arith.constant 0 : index
    %139 = vector.load %arg14[%c1_92, %c0_93, %c0_94] : memref<3x8x16xbf16, #tpu.memory_space<vmem>>, vector<1x8x16xbf16>
    %140 = vector.shape_cast %139 : vector<1x8x16xbf16> to vector<8x16xbf16>
    %141 = vector.extract_strided_slice %129 {offsets = [0, 1], sizes = [16, 256], strides = [1, 1]} : vector<16x258xbf16> to vector<16x256xbf16>
    %cst_95 = arith.constant dense<0.000000e+00> : vector<8x256xf32>
    %142 = tpu.matmul %140, %141, %cst_95 {dimension_numbers = #tpu.dot_dimension_numbers<[1], [0], [0], [1], [0, 0, 1, 1], [], []>} : vector<8x16xbf16>, vector<16x256xbf16>, vector<8x256xf32> -> vector<8x256xf32>
    %143 = arith.addf %138, %142 : vector<8x256xf32>
    %c2_96 = arith.constant 2 : index
    %c0_97 = arith.constant 0 : index
    %c0_98 = arith.constant 0 : index
    %144 = vector.load %arg14[%c2_96, %c0_97, %c0_98] : memref<3x8x16xbf16, #tpu.memory_space<vmem>>, vector<1x8x16xbf16>
    %145 = vector.shape_cast %144 : vector<1x8x16xbf16> to vector<8x16xbf16>
    %146 = vector.extract_strided_slice %129 {offsets = [0, 2], sizes = [16, 256], strides = [1, 1]} : vector<16x258xbf16> to vector<16x256xbf16>
    %cst_99 = arith.constant dense<0.000000e+00> : vector<8x256xf32>
    %147 = tpu.matmul %145, %146, %cst_99 {dimension_numbers = #tpu.dot_dimension_numbers<[1], [0], [0], [1], [0, 0, 1, 1], [], []>} : vector<8x16xbf16>, vector<16x256xbf16>, vector<8x256xf32> -> vector<8x256xf32>
    %148 = arith.addf %143, %147 : vector<8x256xf32>
    %cst_100 = arith.constant 0.000000e+00 : f32
    %149 = vector.broadcast %cst_100 : f32 to vector<8x256xf32>
    %150 = arith.cmpf ogt, %148, %149 : vector<8x256xf32>
    %cst_101 = arith.constant 1.000000e-01 : f32
    %151 = vector.broadcast %cst_101 : f32 to vector<8x256xf32>
    %152 = arith.mulf %151, %148 : vector<8x256xf32>
    %153 = arith.select %150, %148, %152 : vector<8x256xi1>, vector<8x256xf32>
    %cst_102 = arith.constant 0.000000e+00 : f32
    %154 = vector.broadcast %cst_102 : f32 to vector<8x1xf32>
    %155 = tpu.concatenate %154, %153, %154 in 1 : vector<8x1xf32>, vector<8x256xf32>, vector<8x1xf32> -> vector<8x258xf32>
    %156 = arith.truncf %155 : vector<8x258xf32> to vector<8x258xbf16>
    %cst_103 = arith.constant 0.000000e+00 : f32
    %157 = vector.broadcast %cst_103 : f32 to vector<8x256xf32>
    %c0_104 = arith.constant 0 : index
    %c0_105 = arith.constant 0 : index
    %158 = vector.load %arg17[%c0_104, %c0_105] : memref<8x1xf32, #tpu.memory_space<vmem>>, vector<8x1xf32>
    %159 = vector.broadcast %158 : vector<8x1xf32> to vector<8x256xf32>
    %160 = arith.addf %157, %159 : vector<8x256xf32>
    %c0_106 = arith.constant 0 : index
    %c0_107 = arith.constant 0 : index
    %c0_108 = arith.constant 0 : index
    %161 = vector.load %arg16[%c0_106, %c0_107, %c0_108] : memref<3x8x8xbf16, #tpu.memory_space<vmem>>, vector<1x8x8xbf16>
    %162 = vector.shape_cast %161 : vector<1x8x8xbf16> to vector<8x8xbf16>
    %163 = vector.extract_strided_slice %156 {offsets = [0, 0], sizes = [8, 256], strides = [1, 1]} : vector<8x258xbf16> to vector<8x256xbf16>
    %cst_109 = arith.constant dense<0.000000e+00> : vector<8x256xf32>
    %164 = tpu.matmul %162, %163, %cst_109 {dimension_numbers = #tpu.dot_dimension_numbers<[1], [0], [0], [1], [0, 0, 1, 1], [], []>} : vector<8x8xbf16>, vector<8x256xbf16>, vector<8x256xf32> -> vector<8x256xf32>
    %165 = arith.addf %160, %164 : vector<8x256xf32>
    %c1_110 = arith.constant 1 : index
    %c0_111 = arith.constant 0 : index
    %c0_112 = arith.constant 0 : index
    %166 = vector.load %arg16[%c1_110, %c0_111, %c0_112] : memref<3x8x8xbf16, #tpu.memory_space<vmem>>, vector<1x8x8xbf16>
    %167 = vector.shape_cast %166 : vector<1x8x8xbf16> to vector<8x8xbf16>
    %168 = vector.extract_strided_slice %156 {offsets = [0, 1], sizes = [8, 256], strides = [1, 1]} : vector<8x258xbf16> to vector<8x256xbf16>
    %cst_113 = arith.constant dense<0.000000e+00> : vector<8x256xf32>
    %169 = tpu.matmul %167, %168, %cst_113 {dimension_numbers = #tpu.dot_dimension_numbers<[1], [0], [0], [1], [0, 0, 1, 1], [], []>} : vector<8x8xbf16>, vector<8x256xbf16>, vector<8x256xf32> -> vector<8x256xf32>
    %170 = arith.addf %165, %169 : vector<8x256xf32>
    %c2_114 = arith.constant 2 : index
    %c0_115 = arith.constant 0 : index
    %c0_116 = arith.constant 0 : index
    %171 = vector.load %arg16[%c2_114, %c0_115, %c0_116] : memref<3x8x8xbf16, #tpu.memory_space<vmem>>, vector<1x8x8xbf16>
    %172 = vector.shape_cast %171 : vector<1x8x8xbf16> to vector<8x8xbf16>
    %173 = vector.extract_strided_slice %156 {offsets = [0, 2], sizes = [8, 256], strides = [1, 1]} : vector<8x258xbf16> to vector<8x256xbf16>
    %cst_117 = arith.constant dense<0.000000e+00> : vector<8x256xf32>
    %174 = tpu.matmul %172, %173, %cst_117 {dimension_numbers = #tpu.dot_dimension_numbers<[1], [0], [0], [1], [0, 0, 1, 1], [], []>} : vector<8x8xbf16>, vector<8x256xbf16>, vector<8x256xf32> -> vector<8x256xf32>
    %175 = arith.addf %170, %174 : vector<8x256xf32>
    %cst_118 = arith.constant 0.000000e+00 : f32
    %176 = vector.broadcast %cst_118 : f32 to vector<8x256xf32>
    %177 = arith.cmpf ogt, %175, %176 : vector<8x256xf32>
    %cst_119 = arith.constant 1.000000e-01 : f32
    %178 = vector.broadcast %cst_119 : f32 to vector<8x256xf32>
    %179 = arith.mulf %178, %175 : vector<8x256xf32>
    %180 = arith.select %177, %175, %179 : vector<8x256xi1>, vector<8x256xf32>
    %cst_120 = arith.constant 0.000000e+00 : f32
    %181 = vector.broadcast %cst_120 : f32 to vector<8x1xf32>
    %182 = tpu.concatenate %181, %180, %181 in 1 : vector<8x1xf32>, vector<8x256xf32>, vector<8x1xf32> -> vector<8x258xf32>
    %183 = arith.truncf %182 : vector<8x258xf32> to vector<8x258xbf16>
    %cst_121 = arith.constant 0.000000e+00 : f32
    %184 = vector.broadcast %cst_121 : f32 to vector<8x256xf32>
    %c0_122 = arith.constant 0 : index
    %c0_123 = arith.constant 0 : index
    %185 = vector.load %arg19[%c0_122, %c0_123] : memref<8x1xf32, #tpu.memory_space<vmem>>, vector<8x1xf32>
    %186 = vector.broadcast %185 : vector<8x1xf32> to vector<8x256xf32>
    %187 = arith.addf %184, %186 : vector<8x256xf32>
    %c0_124 = arith.constant 0 : index
    %c0_125 = arith.constant 0 : index
    %c0_126 = arith.constant 0 : index
    %188 = vector.load %arg18[%c0_124, %c0_125, %c0_126] : memref<3x8x8xbf16, #tpu.memory_space<vmem>>, vector<1x8x8xbf16>
    %189 = vector.shape_cast %188 : vector<1x8x8xbf16> to vector<8x8xbf16>
    %190 = vector.extract_strided_slice %183 {offsets = [0, 0], sizes = [8, 256], strides = [1, 1]} : vector<8x258xbf16> to vector<8x256xbf16>
    %cst_127 = arith.constant dense<0.000000e+00> : vector<8x256xf32>
    %191 = tpu.matmul %189, %190, %cst_127 {dimension_numbers = #tpu.dot_dimension_numbers<[1], [0], [0], [1], [0, 0, 1, 1], [], []>} : vector<8x8xbf16>, vector<8x256xbf16>, vector<8x256xf32> -> vector<8x256xf32>
    %192 = arith.addf %187, %191 : vector<8x256xf32>
    %c1_128 = arith.constant 1 : index
    %c0_129 = arith.constant 0 : index
    %c0_130 = arith.constant 0 : index
    %193 = vector.load %arg18[%c1_128, %c0_129, %c0_130] : memref<3x8x8xbf16, #tpu.memory_space<vmem>>, vector<1x8x8xbf16>
    %194 = vector.shape_cast %193 : vector<1x8x8xbf16> to vector<8x8xbf16>
    %195 = vector.extract_strided_slice %183 {offsets = [0, 1], sizes = [8, 256], strides = [1, 1]} : vector<8x258xbf16> to vector<8x256xbf16>
    %cst_131 = arith.constant dense<0.000000e+00> : vector<8x256xf32>
    %196 = tpu.matmul %194, %195, %cst_131 {dimension_numbers = #tpu.dot_dimension_numbers<[1], [0], [0], [1], [0, 0, 1, 1], [], []>} : vector<8x8xbf16>, vector<8x256xbf16>, vector<8x256xf32> -> vector<8x256xf32>
    %197 = arith.addf %192, %196 : vector<8x256xf32>
    %c2_132 = arith.constant 2 : index
    %c0_133 = arith.constant 0 : index
    %c0_134 = arith.constant 0 : index
    %198 = vector.load %arg18[%c2_132, %c0_133, %c0_134] : memref<3x8x8xbf16, #tpu.memory_space<vmem>>, vector<1x8x8xbf16>
    %199 = vector.shape_cast %198 : vector<1x8x8xbf16> to vector<8x8xbf16>
    %200 = vector.extract_strided_slice %183 {offsets = [0, 2], sizes = [8, 256], strides = [1, 1]} : vector<8x258xbf16> to vector<8x256xbf16>
    %cst_135 = arith.constant dense<0.000000e+00> : vector<8x256xf32>
    %201 = tpu.matmul %199, %200, %cst_135 {dimension_numbers = #tpu.dot_dimension_numbers<[1], [0], [0], [1], [0, 0, 1, 1], [], []>} : vector<8x8xbf16>, vector<8x256xbf16>, vector<8x256xf32> -> vector<8x256xf32>
    %202 = arith.addf %197, %201 : vector<8x256xf32>
    %203 = arith.addf %148, %202 : vector<8x256xf32>
    %cst_136 = arith.constant 0.000000e+00 : f32
    %204 = vector.broadcast %cst_136 : f32 to vector<8x256xf32>
    %205 = arith.cmpf ogt, %203, %204 : vector<8x256xf32>
    %cst_137 = arith.constant 1.000000e-01 : f32
    %206 = vector.broadcast %cst_137 : f32 to vector<8x256xf32>
    %207 = arith.mulf %206, %203 : vector<8x256xf32>
    %208 = arith.select %205, %203, %207 : vector<8x256xi1>, vector<8x256xf32>
    %cst_138 = arith.constant 0.000000e+00 : f32
    %209 = vector.broadcast %cst_138 : f32 to vector<8x1xf32>
    %210 = tpu.concatenate %209, %208, %209 in 1 : vector<8x1xf32>, vector<8x256xf32>, vector<8x1xf32> -> vector<8x258xf32>
    %211 = arith.truncf %210 : vector<8x258xf32> to vector<8x258xbf16>
    %cst_139 = arith.constant 0.000000e+00 : f32
    %212 = vector.broadcast %cst_139 : f32 to vector<1x256xf32>
    %c0_140 = arith.constant 0 : index
    %c0_141 = arith.constant 0 : index
    %213 = vector.load %arg21[%c0_140, %c0_141] : memref<1x1xf32, #tpu.memory_space<vmem>>, vector<1x1xf32>
    %214 = vector.broadcast %213 : vector<1x1xf32> to vector<1x256xf32>
    %215 = arith.addf %212, %214 : vector<1x256xf32>
    %c0_142 = arith.constant 0 : index
    %c0_143 = arith.constant 0 : index
    %c0_144 = arith.constant 0 : index
    %216 = vector.load %arg20[%c0_142, %c0_143, %c0_144] : memref<3x1x8xbf16, #tpu.memory_space<vmem>>, vector<1x1x8xbf16>
    %217 = vector.shape_cast %216 : vector<1x1x8xbf16> to vector<1x8xbf16>
    %218 = vector.extract_strided_slice %211 {offsets = [0, 0], sizes = [8, 256], strides = [1, 1]} : vector<8x258xbf16> to vector<8x256xbf16>
    %cst_145 = arith.constant dense<0.000000e+00> : vector<1x256xf32>
    %219 = tpu.matmul %217, %218, %cst_145 {dimension_numbers = #tpu.dot_dimension_numbers<[1], [0], [0], [1], [0, 0, 1, 1], [], []>} : vector<1x8xbf16>, vector<8x256xbf16>, vector<1x256xf32> -> vector<1x256xf32>
    %220 = arith.addf %215, %219 : vector<1x256xf32>
    %c1_146 = arith.constant 1 : index
    %c0_147 = arith.constant 0 : index
    %c0_148 = arith.constant 0 : index
    %221 = vector.load %arg20[%c1_146, %c0_147, %c0_148] : memref<3x1x8xbf16, #tpu.memory_space<vmem>>, vector<1x1x8xbf16>
    %222 = vector.shape_cast %221 : vector<1x1x8xbf16> to vector<1x8xbf16>
    %223 = vector.extract_strided_slice %211 {offsets = [0, 1], sizes = [8, 256], strides = [1, 1]} : vector<8x258xbf16> to vector<8x256xbf16>
    %cst_149 = arith.constant dense<0.000000e+00> : vector<1x256xf32>
    %224 = tpu.matmul %222, %223, %cst_149 {dimension_numbers = #tpu.dot_dimension_numbers<[1], [0], [0], [1], [0, 0, 1, 1], [], []>} : vector<1x8xbf16>, vector<8x256xbf16>, vector<1x256xf32> -> vector<1x256xf32>
    %225 = arith.addf %220, %224 : vector<1x256xf32>
    %c2_150 = arith.constant 2 : index
    %c0_151 = arith.constant 0 : index
    %c0_152 = arith.constant 0 : index
    %226 = vector.load %arg20[%c2_150, %c0_151, %c0_152] : memref<3x1x8xbf16, #tpu.memory_space<vmem>>, vector<1x1x8xbf16>
    %227 = vector.shape_cast %226 : vector<1x1x8xbf16> to vector<1x8xbf16>
    %228 = vector.extract_strided_slice %211 {offsets = [0, 2], sizes = [8, 256], strides = [1, 1]} : vector<8x258xbf16> to vector<8x256xbf16>
    %cst_153 = arith.constant dense<0.000000e+00> : vector<1x256xf32>
    %229 = tpu.matmul %227, %228, %cst_153 {dimension_numbers = #tpu.dot_dimension_numbers<[1], [0], [0], [1], [0, 0, 1, 1], [], []>} : vector<1x8xbf16>, vector<8x256xbf16>, vector<1x256xf32> -> vector<1x256xf32>
    %230 = arith.addf %225, %229 : vector<1x256xf32>
    %231 = math.tanh %230 : vector<1x256xf32>
    %c1_154 = arith.constant 1 : index
    %c0_155 = arith.constant 0 : index
    %c0_156 = arith.constant 0 : index
    %232 = vector.load %arg0[%c1_154, %c0_155, %c0_156] : memref<2x32x64xf32, #tpu.memory_space<vmem>>, vector<1x32x64xf32>
    %233 = vector.shape_cast %232 : vector<1x32x64xf32> to vector<32x64xf32>
    %cst_157 = arith.constant 0.000000e+00 : f32
    %234 = vector.broadcast %cst_157 : f32 to vector<32x1xf32>
    %235 = tpu.concatenate %234, %233, %234 in 1 : vector<32x1xf32>, vector<32x64xf32>, vector<32x1xf32> -> vector<32x66xf32>
    %236 = arith.truncf %235 : vector<32x66xf32> to vector<32x66xbf16>
    %cst_158 = arith.constant 0.000000e+00 : f32
    %237 = vector.broadcast %cst_158 : f32 to vector<32x64xf32>
    %c0_159 = arith.constant 0 : index
    %c0_160 = arith.constant 0 : index
    %238 = vector.load %arg5[%c0_159, %c0_160] : memref<32x1xf32, #tpu.memory_space<vmem>>, vector<32x1xf32>
    %239 = vector.broadcast %238 : vector<32x1xf32> to vector<32x64xf32>
    %240 = arith.addf %237, %239 : vector<32x64xf32>
    %c0_161 = arith.constant 0 : index
    %c0_162 = arith.constant 0 : index
    %c0_163 = arith.constant 0 : index
    %241 = vector.load %arg4[%c0_161, %c0_162, %c0_163] : memref<3x32x32xbf16, #tpu.memory_space<vmem>>, vector<1x32x32xbf16>
    %242 = vector.shape_cast %241 : vector<1x32x32xbf16> to vector<32x32xbf16>
    %243 = vector.extract_strided_slice %236 {offsets = [0, 0], sizes = [32, 64], strides = [1, 1]} : vector<32x66xbf16> to vector<32x64xbf16>
    %cst_164 = arith.constant dense<0.000000e+00> : vector<32x64xf32>
    %244 = tpu.matmul %242, %243, %cst_164 {dimension_numbers = #tpu.dot_dimension_numbers<[1], [0], [0], [1], [0, 0, 1, 1], [], []>} : vector<32x32xbf16>, vector<32x64xbf16>, vector<32x64xf32> -> vector<32x64xf32>
    %245 = arith.addf %240, %244 : vector<32x64xf32>
    %c1_165 = arith.constant 1 : index
    %c0_166 = arith.constant 0 : index
    %c0_167 = arith.constant 0 : index
    %246 = vector.load %arg4[%c1_165, %c0_166, %c0_167] : memref<3x32x32xbf16, #tpu.memory_space<vmem>>, vector<1x32x32xbf16>
    %247 = vector.shape_cast %246 : vector<1x32x32xbf16> to vector<32x32xbf16>
    %248 = vector.extract_strided_slice %236 {offsets = [0, 1], sizes = [32, 64], strides = [1, 1]} : vector<32x66xbf16> to vector<32x64xbf16>
    %cst_168 = arith.constant dense<0.000000e+00> : vector<32x64xf32>
    %249 = tpu.matmul %247, %248, %cst_168 {dimension_numbers = #tpu.dot_dimension_numbers<[1], [0], [0], [1], [0, 0, 1, 1], [], []>} : vector<32x32xbf16>, vector<32x64xbf16>, vector<32x64xf32> -> vector<32x64xf32>
    %250 = arith.addf %245, %249 : vector<32x64xf32>
    %c2_169 = arith.constant 2 : index
    %c0_170 = arith.constant 0 : index
    %c0_171 = arith.constant 0 : index
    %251 = vector.load %arg4[%c2_169, %c0_170, %c0_171] : memref<3x32x32xbf16, #tpu.memory_space<vmem>>, vector<1x32x32xbf16>
    %252 = vector.shape_cast %251 : vector<1x32x32xbf16> to vector<32x32xbf16>
    %253 = vector.extract_strided_slice %236 {offsets = [0, 2], sizes = [32, 64], strides = [1, 1]} : vector<32x66xbf16> to vector<32x64xbf16>
    %cst_172 = arith.constant dense<0.000000e+00> : vector<32x64xf32>
    %254 = tpu.matmul %252, %253, %cst_172 {dimension_numbers = #tpu.dot_dimension_numbers<[1], [0], [0], [1], [0, 0, 1, 1], [], []>} : vector<32x32xbf16>, vector<32x64xbf16>, vector<32x64xf32> -> vector<32x64xf32>
    %255 = arith.addf %250, %254 : vector<32x64xf32>
    %256 = vector.extract_strided_slice %6 {offsets = [0, 1], sizes = [32, 1], strides = [1, 1]} : vector<32x2xf32> to vector<32x1xf32>
    %257 = vector.broadcast %256 : vector<32x1xf32> to vector<32x64xf32>
    %258 = arith.addf %255, %257 : vector<32x64xf32>
    %cst_173 = arith.constant 0.000000e+00 : f32
    %259 = vector.broadcast %cst_173 : f32 to vector<32x64xf32>
    %260 = arith.cmpf ogt, %258, %259 : vector<32x64xf32>
    %cst_174 = arith.constant 1.000000e-01 : f32
    %261 = vector.broadcast %cst_174 : f32 to vector<32x64xf32>
    %262 = arith.mulf %261, %258 : vector<32x64xf32>
    %263 = arith.select %260, %258, %262 : vector<32x64xi1>, vector<32x64xf32>
    %264 = arith.truncf %263 : vector<32x64xf32> to vector<32x64xbf16>
    %c0_175 = arith.constant 0 : index
    %c0_176 = arith.constant 0 : index
    %265 = vector.load %arg2[%c0_175, %c0_176] : memref<64x128xbf16, #tpu.memory_space<vmem>>, vector<64x128xbf16>
    %cst_177 = arith.constant dense<0.000000e+00> : vector<32x128xf32>
    %266 = tpu.matmul %264, %265, %cst_177 {dimension_numbers = #tpu.dot_dimension_numbers<[1], [0], [0], [1], [0, 0, 1, 1], [], []>} : vector<32x64xbf16>, vector<64x128xbf16>, vector<32x128xf32> -> vector<32x128xf32>
    %cst_178 = arith.constant 0.000000e+00 : f32
    %267 = vector.broadcast %cst_178 : f32 to vector<32x1xf32>
    %268 = tpu.concatenate %267, %266, %267 in 1 : vector<32x1xf32>, vector<32x128xf32>, vector<32x1xf32> -> vector<32x130xf32>
    %269 = arith.truncf %268 : vector<32x130xf32> to vector<32x130xbf16>
    %cst_179 = arith.constant 0.000000e+00 : f32
    %270 = vector.broadcast %cst_179 : f32 to vector<16x128xf32>
    %c0_180 = arith.constant 0 : index
    %c0_181 = arith.constant 0 : index
    %271 = vector.load %arg9[%c0_180, %c0_181] : memref<16x1xf32, #tpu.memory_space<vmem>>, vector<16x1xf32>
    %272 = vector.broadcast %271 : vector<16x1xf32> to vector<16x128xf32>
    %273 = arith.addf %270, %272 : vector<16x128xf32>
    %c0_182 = arith.constant 0 : index
    %c0_183 = arith.constant 0 : index
    %c0_184 = arith.constant 0 : index
    %274 = vector.load %arg8[%c0_182, %c0_183, %c0_184] : memref<3x16x32xbf16, #tpu.memory_space<vmem>>, vector<1x16x32xbf16>
    %275 = vector.shape_cast %274 : vector<1x16x32xbf16> to vector<16x32xbf16>
    %276 = vector.extract_strided_slice %269 {offsets = [0, 0], sizes = [32, 128], strides = [1, 1]} : vector<32x130xbf16> to vector<32x128xbf16>
    %cst_185 = arith.constant dense<0.000000e+00> : vector<16x128xf32>
    %277 = tpu.matmul %275, %276, %cst_185 {dimension_numbers = #tpu.dot_dimension_numbers<[1], [0], [0], [1], [0, 0, 1, 1], [], []>} : vector<16x32xbf16>, vector<32x128xbf16>, vector<16x128xf32> -> vector<16x128xf32>
    %278 = arith.addf %273, %277 : vector<16x128xf32>
    %c1_186 = arith.constant 1 : index
    %c0_187 = arith.constant 0 : index
    %c0_188 = arith.constant 0 : index
    %279 = vector.load %arg8[%c1_186, %c0_187, %c0_188] : memref<3x16x32xbf16, #tpu.memory_space<vmem>>, vector<1x16x32xbf16>
    %280 = vector.shape_cast %279 : vector<1x16x32xbf16> to vector<16x32xbf16>
    %281 = vector.extract_strided_slice %269 {offsets = [0, 1], sizes = [32, 128], strides = [1, 1]} : vector<32x130xbf16> to vector<32x128xbf16>
    %cst_189 = arith.constant dense<0.000000e+00> : vector<16x128xf32>
    %282 = tpu.matmul %280, %281, %cst_189 {dimension_numbers = #tpu.dot_dimension_numbers<[1], [0], [0], [1], [0, 0, 1, 1], [], []>} : vector<16x32xbf16>, vector<32x128xbf16>, vector<16x128xf32> -> vector<16x128xf32>
    %283 = arith.addf %278, %282 : vector<16x128xf32>
    %c2_190 = arith.constant 2 : index
    %c0_191 = arith.constant 0 : index
    %c0_192 = arith.constant 0 : index
    %284 = vector.load %arg8[%c2_190, %c0_191, %c0_192] : memref<3x16x32xbf16, #tpu.memory_space<vmem>>, vector<1x16x32xbf16>
    %285 = vector.shape_cast %284 : vector<1x16x32xbf16> to vector<16x32xbf16>
    %286 = vector.extract_strided_slice %269 {offsets = [0, 2], sizes = [32, 128], strides = [1, 1]} : vector<32x130xbf16> to vector<32x128xbf16>
    %cst_193 = arith.constant dense<0.000000e+00> : vector<16x128xf32>
    %287 = tpu.matmul %285, %286, %cst_193 {dimension_numbers = #tpu.dot_dimension_numbers<[1], [0], [0], [1], [0, 0, 1, 1], [], []>} : vector<16x32xbf16>, vector<32x128xbf16>, vector<16x128xf32> -> vector<16x128xf32>
    %288 = arith.addf %283, %287 : vector<16x128xf32>
    %cst_194 = arith.constant 0.000000e+00 : f32
    %289 = vector.broadcast %cst_194 : f32 to vector<16x128xf32>
    %290 = arith.cmpf ogt, %288, %289 : vector<16x128xf32>
    %cst_195 = arith.constant 1.000000e-01 : f32
    %291 = vector.broadcast %cst_195 : f32 to vector<16x128xf32>
    %292 = arith.mulf %291, %288 : vector<16x128xf32>
    %293 = arith.select %290, %288, %292 : vector<16x128xi1>, vector<16x128xf32>
    %cst_196 = arith.constant 0.000000e+00 : f32
    %294 = vector.broadcast %cst_196 : f32 to vector<16x1xf32>
    %295 = tpu.concatenate %294, %293, %294 in 1 : vector<16x1xf32>, vector<16x128xf32>, vector<16x1xf32> -> vector<16x130xf32>
    %296 = arith.truncf %295 : vector<16x130xf32> to vector<16x130xbf16>
    %cst_197 = arith.constant 0.000000e+00 : f32
    %297 = vector.broadcast %cst_197 : f32 to vector<16x128xf32>
    %c0_198 = arith.constant 0 : index
    %c0_199 = arith.constant 0 : index
    %298 = vector.load %arg11[%c0_198, %c0_199] : memref<16x1xf32, #tpu.memory_space<vmem>>, vector<16x1xf32>
    %299 = vector.broadcast %298 : vector<16x1xf32> to vector<16x128xf32>
    %300 = arith.addf %297, %299 : vector<16x128xf32>
    %c0_200 = arith.constant 0 : index
    %c0_201 = arith.constant 0 : index
    %c0_202 = arith.constant 0 : index
    %301 = vector.load %arg10[%c0_200, %c0_201, %c0_202] : memref<3x16x16xbf16, #tpu.memory_space<vmem>>, vector<1x16x16xbf16>
    %302 = vector.shape_cast %301 : vector<1x16x16xbf16> to vector<16x16xbf16>
    %303 = vector.extract_strided_slice %296 {offsets = [0, 0], sizes = [16, 128], strides = [1, 1]} : vector<16x130xbf16> to vector<16x128xbf16>
    %cst_203 = arith.constant dense<0.000000e+00> : vector<16x128xf32>
    %304 = tpu.matmul %302, %303, %cst_203 {dimension_numbers = #tpu.dot_dimension_numbers<[1], [0], [0], [1], [0, 0, 1, 1], [], []>} : vector<16x16xbf16>, vector<16x128xbf16>, vector<16x128xf32> -> vector<16x128xf32>
    %305 = arith.addf %300, %304 : vector<16x128xf32>
    %c1_204 = arith.constant 1 : index
    %c0_205 = arith.constant 0 : index
    %c0_206 = arith.constant 0 : index
    %306 = vector.load %arg10[%c1_204, %c0_205, %c0_206] : memref<3x16x16xbf16, #tpu.memory_space<vmem>>, vector<1x16x16xbf16>
    %307 = vector.shape_cast %306 : vector<1x16x16xbf16> to vector<16x16xbf16>
    %308 = vector.extract_strided_slice %296 {offsets = [0, 1], sizes = [16, 128], strides = [1, 1]} : vector<16x130xbf16> to vector<16x128xbf16>
    %cst_207 = arith.constant dense<0.000000e+00> : vector<16x128xf32>
    %309 = tpu.matmul %307, %308, %cst_207 {dimension_numbers = #tpu.dot_dimension_numbers<[1], [0], [0], [1], [0, 0, 1, 1], [], []>} : vector<16x16xbf16>, vector<16x128xbf16>, vector<16x128xf32> -> vector<16x128xf32>
    %310 = arith.addf %305, %309 : vector<16x128xf32>
    %c2_208 = arith.constant 2 : index
    %c0_209 = arith.constant 0 : index
    %c0_210 = arith.constant 0 : index
    %311 = vector.load %arg10[%c2_208, %c0_209, %c0_210] : memref<3x16x16xbf16, #tpu.memory_space<vmem>>, vector<1x16x16xbf16>
    %312 = vector.shape_cast %311 : vector<1x16x16xbf16> to vector<16x16xbf16>
    %313 = vector.extract_strided_slice %296 {offsets = [0, 2], sizes = [16, 128], strides = [1, 1]} : vector<16x130xbf16> to vector<16x128xbf16>
    %cst_211 = arith.constant dense<0.000000e+00> : vector<16x128xf32>
    %314 = tpu.matmul %312, %313, %cst_211 {dimension_numbers = #tpu.dot_dimension_numbers<[1], [0], [0], [1], [0, 0, 1, 1], [], []>} : vector<16x16xbf16>, vector<16x128xbf16>, vector<16x128xf32> -> vector<16x128xf32>
    %315 = arith.addf %310, %314 : vector<16x128xf32>
    %cst_212 = arith.constant 0.000000e+00 : f32
    %316 = vector.broadcast %cst_212 : f32 to vector<16x128xf32>
    %317 = arith.cmpf ogt, %315, %316 : vector<16x128xf32>
    %cst_213 = arith.constant 1.000000e-01 : f32
    %318 = vector.broadcast %cst_213 : f32 to vector<16x128xf32>
    %319 = arith.mulf %318, %315 : vector<16x128xf32>
    %320 = arith.select %317, %315, %319 : vector<16x128xi1>, vector<16x128xf32>
    %cst_214 = arith.constant 0.000000e+00 : f32
    %321 = vector.broadcast %cst_214 : f32 to vector<16x1xf32>
    %322 = tpu.concatenate %321, %320, %321 in 1 : vector<16x1xf32>, vector<16x128xf32>, vector<16x1xf32> -> vector<16x130xf32>
    %323 = arith.truncf %322 : vector<16x130xf32> to vector<16x130xbf16>
    %cst_215 = arith.constant 0.000000e+00 : f32
    %324 = vector.broadcast %cst_215 : f32 to vector<16x128xf32>
    %c0_216 = arith.constant 0 : index
    %c0_217 = arith.constant 0 : index
    %325 = vector.load %arg13[%c0_216, %c0_217] : memref<16x1xf32, #tpu.memory_space<vmem>>, vector<16x1xf32>
    %326 = vector.broadcast %325 : vector<16x1xf32> to vector<16x128xf32>
    %327 = arith.addf %324, %326 : vector<16x128xf32>
    %c0_218 = arith.constant 0 : index
    %c0_219 = arith.constant 0 : index
    %c0_220 = arith.constant 0 : index
    %328 = vector.load %arg12[%c0_218, %c0_219, %c0_220] : memref<3x16x16xbf16, #tpu.memory_space<vmem>>, vector<1x16x16xbf16>
    %329 = vector.shape_cast %328 : vector<1x16x16xbf16> to vector<16x16xbf16>
    %330 = vector.extract_strided_slice %323 {offsets = [0, 0], sizes = [16, 128], strides = [1, 1]} : vector<16x130xbf16> to vector<16x128xbf16>
    %cst_221 = arith.constant dense<0.000000e+00> : vector<16x128xf32>
    %331 = tpu.matmul %329, %330, %cst_221 {dimension_numbers = #tpu.dot_dimension_numbers<[1], [0], [0], [1], [0, 0, 1, 1], [], []>} : vector<16x16xbf16>, vector<16x128xbf16>, vector<16x128xf32> -> vector<16x128xf32>
    %332 = arith.addf %327, %331 : vector<16x128xf32>
    %c1_222 = arith.constant 1 : index
    %c0_223 = arith.constant 0 : index
    %c0_224 = arith.constant 0 : index
    %333 = vector.load %arg12[%c1_222, %c0_223, %c0_224] : memref<3x16x16xbf16, #tpu.memory_space<vmem>>, vector<1x16x16xbf16>
    %334 = vector.shape_cast %333 : vector<1x16x16xbf16> to vector<16x16xbf16>
    %335 = vector.extract_strided_slice %323 {offsets = [0, 1], sizes = [16, 128], strides = [1, 1]} : vector<16x130xbf16> to vector<16x128xbf16>
    %cst_225 = arith.constant dense<0.000000e+00> : vector<16x128xf32>
    %336 = tpu.matmul %334, %335, %cst_225 {dimension_numbers = #tpu.dot_dimension_numbers<[1], [0], [0], [1], [0, 0, 1, 1], [], []>} : vector<16x16xbf16>, vector<16x128xbf16>, vector<16x128xf32> -> vector<16x128xf32>
    %337 = arith.addf %332, %336 : vector<16x128xf32>
    %c2_226 = arith.constant 2 : index
    %c0_227 = arith.constant 0 : index
    %c0_228 = arith.constant 0 : index
    %338 = vector.load %arg12[%c2_226, %c0_227, %c0_228] : memref<3x16x16xbf16, #tpu.memory_space<vmem>>, vector<1x16x16xbf16>
    %339 = vector.shape_cast %338 : vector<1x16x16xbf16> to vector<16x16xbf16>
    %340 = vector.extract_strided_slice %323 {offsets = [0, 2], sizes = [16, 128], strides = [1, 1]} : vector<16x130xbf16> to vector<16x128xbf16>
    %cst_229 = arith.constant dense<0.000000e+00> : vector<16x128xf32>
    %341 = tpu.matmul %339, %340, %cst_229 {dimension_numbers = #tpu.dot_dimension_numbers<[1], [0], [0], [1], [0, 0, 1, 1], [], []>} : vector<16x16xbf16>, vector<16x128xbf16>, vector<16x128xf32> -> vector<16x128xf32>
    %342 = arith.addf %337, %341 : vector<16x128xf32>
    %343 = arith.addf %288, %342 : vector<16x128xf32>
    %cst_230 = arith.constant 0.000000e+00 : f32
    %344 = vector.broadcast %cst_230 : f32 to vector<16x128xf32>
    %345 = arith.cmpf ogt, %343, %344 : vector<16x128xf32>
    %cst_231 = arith.constant 1.000000e-01 : f32
    %346 = vector.broadcast %cst_231 : f32 to vector<16x128xf32>
    %347 = arith.mulf %346, %343 : vector<16x128xf32>
    %348 = arith.select %345, %343, %347 : vector<16x128xi1>, vector<16x128xf32>
    %349 = arith.truncf %348 : vector<16x128xf32> to vector<16x128xbf16>
    %c0_232 = arith.constant 0 : index
    %c0_233 = arith.constant 0 : index
    %350 = vector.load %arg3[%c0_232, %c0_233] : memref<128x256xbf16, #tpu.memory_space<vmem>>, vector<128x256xbf16>
    %cst_234 = arith.constant dense<0.000000e+00> : vector<16x256xf32>
    %351 = tpu.matmul %349, %350, %cst_234 {dimension_numbers = #tpu.dot_dimension_numbers<[1], [0], [0], [1], [0, 0, 1, 1], [], []>} : vector<16x128xbf16>, vector<128x256xbf16>, vector<16x256xf32> -> vector<16x256xf32>
    %cst_235 = arith.constant 0.000000e+00 : f32
    %352 = vector.broadcast %cst_235 : f32 to vector<16x1xf32>
    %353 = tpu.concatenate %352, %351, %352 in 1 : vector<16x1xf32>, vector<16x256xf32>, vector<16x1xf32> -> vector<16x258xf32>
    %354 = arith.truncf %353 : vector<16x258xf32> to vector<16x258xbf16>
    %cst_236 = arith.constant 0.000000e+00 : f32
    %355 = vector.broadcast %cst_236 : f32 to vector<8x256xf32>
    %c0_237 = arith.constant 0 : index
    %c0_238 = arith.constant 0 : index
    %356 = vector.load %arg15[%c0_237, %c0_238] : memref<8x1xf32, #tpu.memory_space<vmem>>, vector<8x1xf32>
    %357 = vector.broadcast %356 : vector<8x1xf32> to vector<8x256xf32>
    %358 = arith.addf %355, %357 : vector<8x256xf32>
    %c0_239 = arith.constant 0 : index
    %c0_240 = arith.constant 0 : index
    %c0_241 = arith.constant 0 : index
    %359 = vector.load %arg14[%c0_239, %c0_240, %c0_241] : memref<3x8x16xbf16, #tpu.memory_space<vmem>>, vector<1x8x16xbf16>
    %360 = vector.shape_cast %359 : vector<1x8x16xbf16> to vector<8x16xbf16>
    %361 = vector.extract_strided_slice %354 {offsets = [0, 0], sizes = [16, 256], strides = [1, 1]} : vector<16x258xbf16> to vector<16x256xbf16>
    %cst_242 = arith.constant dense<0.000000e+00> : vector<8x256xf32>
    %362 = tpu.matmul %360, %361, %cst_242 {dimension_numbers = #tpu.dot_dimension_numbers<[1], [0], [0], [1], [0, 0, 1, 1], [], []>} : vector<8x16xbf16>, vector<16x256xbf16>, vector<8x256xf32> -> vector<8x256xf32>
    %363 = arith.addf %358, %362 : vector<8x256xf32>
    %c1_243 = arith.constant 1 : index
    %c0_244 = arith.constant 0 : index
    %c0_245 = arith.constant 0 : index
    %364 = vector.load %arg14[%c1_243, %c0_244, %c0_245] : memref<3x8x16xbf16, #tpu.memory_space<vmem>>, vector<1x8x16xbf16>
    %365 = vector.shape_cast %364 : vector<1x8x16xbf16> to vector<8x16xbf16>
    %366 = vector.extract_strided_slice %354 {offsets = [0, 1], sizes = [16, 256], strides = [1, 1]} : vector<16x258xbf16> to vector<16x256xbf16>
    %cst_246 = arith.constant dense<0.000000e+00> : vector<8x256xf32>
    %367 = tpu.matmul %365, %366, %cst_246 {dimension_numbers = #tpu.dot_dimension_numbers<[1], [0], [0], [1], [0, 0, 1, 1], [], []>} : vector<8x16xbf16>, vector<16x256xbf16>, vector<8x256xf32> -> vector<8x256xf32>
    %368 = arith.addf %363, %367 : vector<8x256xf32>
    %c2_247 = arith.constant 2 : index
    %c0_248 = arith.constant 0 : index
    %c0_249 = arith.constant 0 : index
    %369 = vector.load %arg14[%c2_247, %c0_248, %c0_249] : memref<3x8x16xbf16, #tpu.memory_space<vmem>>, vector<1x8x16xbf16>
    %370 = vector.shape_cast %369 : vector<1x8x16xbf16> to vector<8x16xbf16>
    %371 = vector.extract_strided_slice %354 {offsets = [0, 2], sizes = [16, 256], strides = [1, 1]} : vector<16x258xbf16> to vector<16x256xbf16>
    %cst_250 = arith.constant dense<0.000000e+00> : vector<8x256xf32>
    %372 = tpu.matmul %370, %371, %cst_250 {dimension_numbers = #tpu.dot_dimension_numbers<[1], [0], [0], [1], [0, 0, 1, 1], [], []>} : vector<8x16xbf16>, vector<16x256xbf16>, vector<8x256xf32> -> vector<8x256xf32>
    %373 = arith.addf %368, %372 : vector<8x256xf32>
    %cst_251 = arith.constant 0.000000e+00 : f32
    %374 = vector.broadcast %cst_251 : f32 to vector<8x256xf32>
    %375 = arith.cmpf ogt, %373, %374 : vector<8x256xf32>
    %cst_252 = arith.constant 1.000000e-01 : f32
    %376 = vector.broadcast %cst_252 : f32 to vector<8x256xf32>
    %377 = arith.mulf %376, %373 : vector<8x256xf32>
    %378 = arith.select %375, %373, %377 : vector<8x256xi1>, vector<8x256xf32>
    %cst_253 = arith.constant 0.000000e+00 : f32
    %379 = vector.broadcast %cst_253 : f32 to vector<8x1xf32>
    %380 = tpu.concatenate %379, %378, %379 in 1 : vector<8x1xf32>, vector<8x256xf32>, vector<8x1xf32> -> vector<8x258xf32>
    %381 = arith.truncf %380 : vector<8x258xf32> to vector<8x258xbf16>
    %cst_254 = arith.constant 0.000000e+00 : f32
    %382 = vector.broadcast %cst_254 : f32 to vector<8x256xf32>
    %c0_255 = arith.constant 0 : index
    %c0_256 = arith.constant 0 : index
    %383 = vector.load %arg17[%c0_255, %c0_256] : memref<8x1xf32, #tpu.memory_space<vmem>>, vector<8x1xf32>
    %384 = vector.broadcast %383 : vector<8x1xf32> to vector<8x256xf32>
    %385 = arith.addf %382, %384 : vector<8x256xf32>
    %c0_257 = arith.constant 0 : index
    %c0_258 = arith.constant 0 : index
    %c0_259 = arith.constant 0 : index
    %386 = vector.load %arg16[%c0_257, %c0_258, %c0_259] : memref<3x8x8xbf16, #tpu.memory_space<vmem>>, vector<1x8x8xbf16>
    %387 = vector.shape_cast %386 : vector<1x8x8xbf16> to vector<8x8xbf16>
    %388 = vector.extract_strided_slice %381 {offsets = [0, 0], sizes = [8, 256], strides = [1, 1]} : vector<8x258xbf16> to vector<8x256xbf16>
    %cst_260 = arith.constant dense<0.000000e+00> : vector<8x256xf32>
    %389 = tpu.matmul %387, %388, %cst_260 {dimension_numbers = #tpu.dot_dimension_numbers<[1], [0], [0], [1], [0, 0, 1, 1], [], []>} : vector<8x8xbf16>, vector<8x256xbf16>, vector<8x256xf32> -> vector<8x256xf32>
    %390 = arith.addf %385, %389 : vector<8x256xf32>
    %c1_261 = arith.constant 1 : index
    %c0_262 = arith.constant 0 : index
    %c0_263 = arith.constant 0 : index
    %391 = vector.load %arg16[%c1_261, %c0_262, %c0_263] : memref<3x8x8xbf16, #tpu.memory_space<vmem>>, vector<1x8x8xbf16>
    %392 = vector.shape_cast %391 : vector<1x8x8xbf16> to vector<8x8xbf16>
    %393 = vector.extract_strided_slice %381 {offsets = [0, 1], sizes = [8, 256], strides = [1, 1]} : vector<8x258xbf16> to vector<8x256xbf16>
    %cst_264 = arith.constant dense<0.000000e+00> : vector<8x256xf32>
    %394 = tpu.matmul %392, %393, %cst_264 {dimension_numbers = #tpu.dot_dimension_numbers<[1], [0], [0], [1], [0, 0, 1, 1], [], []>} : vector<8x8xbf16>, vector<8x256xbf16>, vector<8x256xf32> -> vector<8x256xf32>
    %395 = arith.addf %390, %394 : vector<8x256xf32>
    %c2_265 = arith.constant 2 : index
    %c0_266 = arith.constant 0 : index
    %c0_267 = arith.constant 0 : index
    %396 = vector.load %arg16[%c2_265, %c0_266, %c0_267] : memref<3x8x8xbf16, #tpu.memory_space<vmem>>, vector<1x8x8xbf16>
    %397 = vector.shape_cast %396 : vector<1x8x8xbf16> to vector<8x8xbf16>
    %398 = vector.extract_strided_slice %381 {offsets = [0, 2], sizes = [8, 256], strides = [1, 1]} : vector<8x258xbf16> to vector<8x256xbf16>
    %cst_268 = arith.constant dense<0.000000e+00> : vector<8x256xf32>
    %399 = tpu.matmul %397, %398, %cst_268 {dimension_numbers = #tpu.dot_dimension_numbers<[1], [0], [0], [1], [0, 0, 1, 1], [], []>} : vector<8x8xbf16>, vector<8x256xbf16>, vector<8x256xf32> -> vector<8x256xf32>
    %400 = arith.addf %395, %399 : vector<8x256xf32>
    %cst_269 = arith.constant 0.000000e+00 : f32
    %401 = vector.broadcast %cst_269 : f32 to vector<8x256xf32>
    %402 = arith.cmpf ogt, %400, %401 : vector<8x256xf32>
    %cst_270 = arith.constant 1.000000e-01 : f32
    %403 = vector.broadcast %cst_270 : f32 to vector<8x256xf32>
    %404 = arith.mulf %403, %400 : vector<8x256xf32>
    %405 = arith.select %402, %400, %404 : vector<8x256xi1>, vector<8x256xf32>
    %cst_271 = arith.constant 0.000000e+00 : f32
    %406 = vector.broadcast %cst_271 : f32 to vector<8x1xf32>
    %407 = tpu.concatenate %406, %405, %406 in 1 : vector<8x1xf32>, vector<8x256xf32>, vector<8x1xf32> -> vector<8x258xf32>
    %408 = arith.truncf %407 : vector<8x258xf32> to vector<8x258xbf16>
    %cst_272 = arith.constant 0.000000e+00 : f32
    %409 = vector.broadcast %cst_272 : f32 to vector<8x256xf32>
    %c0_273 = arith.constant 0 : index
    %c0_274 = arith.constant 0 : index
    %410 = vector.load %arg19[%c0_273, %c0_274] : memref<8x1xf32, #tpu.memory_space<vmem>>, vector<8x1xf32>
    %411 = vector.broadcast %410 : vector<8x1xf32> to vector<8x256xf32>
    %412 = arith.addf %409, %411 : vector<8x256xf32>
    %c0_275 = arith.constant 0 : index
    %c0_276 = arith.constant 0 : index
    %c0_277 = arith.constant 0 : index
    %413 = vector.load %arg18[%c0_275, %c0_276, %c0_277] : memref<3x8x8xbf16, #tpu.memory_space<vmem>>, vector<1x8x8xbf16>
    %414 = vector.shape_cast %413 : vector<1x8x8xbf16> to vector<8x8xbf16>
    %415 = vector.extract_strided_slice %408 {offsets = [0, 0], sizes = [8, 256], strides = [1, 1]} : vector<8x258xbf16> to vector<8x256xbf16>
    %cst_278 = arith.constant dense<0.000000e+00> : vector<8x256xf32>
    %416 = tpu.matmul %414, %415, %cst_278 {dimension_numbers = #tpu.dot_dimension_numbers<[1], [0], [0], [1], [0, 0, 1, 1], [], []>} : vector<8x8xbf16>, vector<8x256xbf16>, vector<8x256xf32> -> vector<8x256xf32>
    %417 = arith.addf %412, %416 : vector<8x256xf32>
    %c1_279 = arith.constant 1 : index
    %c0_280 = arith.constant 0 : index
    %c0_281 = arith.constant 0 : index
    %418 = vector.load %arg18[%c1_279, %c0_280, %c0_281] : memref<3x8x8xbf16, #tpu.memory_space<vmem>>, vector<1x8x8xbf16>
    %419 = vector.shape_cast %418 : vector<1x8x8xbf16> to vector<8x8xbf16>
    %420 = vector.extract_strided_slice %408 {offsets = [0, 1], sizes = [8, 256], strides = [1, 1]} : vector<8x258xbf16> to vector<8x256xbf16>
    %cst_282 = arith.constant dense<0.000000e+00> : vector<8x256xf32>
    %421 = tpu.matmul %419, %420, %cst_282 {dimension_numbers = #tpu.dot_dimension_numbers<[1], [0], [0], [1], [0, 0, 1, 1], [], []>} : vector<8x8xbf16>, vector<8x256xbf16>, vector<8x256xf32> -> vector<8x256xf32>
    %422 = arith.addf %417, %421 : vector<8x256xf32>
    %c2_283 = arith.constant 2 : index
    %c0_284 = arith.constant 0 : index
    %c0_285 = arith.constant 0 : index
    %423 = vector.load %arg18[%c2_283, %c0_284, %c0_285] : memref<3x8x8xbf16, #tpu.memory_space<vmem>>, vector<1x8x8xbf16>
    %424 = vector.shape_cast %423 : vector<1x8x8xbf16> to vector<8x8xbf16>
    %425 = vector.extract_strided_slice %408 {offsets = [0, 2], sizes = [8, 256], strides = [1, 1]} : vector<8x258xbf16> to vector<8x256xbf16>
    %cst_286 = arith.constant dense<0.000000e+00> : vector<8x256xf32>
    %426 = tpu.matmul %424, %425, %cst_286 {dimension_numbers = #tpu.dot_dimension_numbers<[1], [0], [0], [1], [0, 0, 1, 1], [], []>} : vector<8x8xbf16>, vector<8x256xbf16>, vector<8x256xf32> -> vector<8x256xf32>
    %427 = arith.addf %422, %426 : vector<8x256xf32>
    %428 = arith.addf %373, %427 : vector<8x256xf32>
    %cst_287 = arith.constant 0.000000e+00 : f32
    %429 = vector.broadcast %cst_287 : f32 to vector<8x256xf32>
    %430 = arith.cmpf ogt, %428, %429 : vector<8x256xf32>
    %cst_288 = arith.constant 1.000000e-01 : f32
    %431 = vector.broadcast %cst_288 : f32 to vector<8x256xf32>
    %432 = arith.mulf %431, %428 : vector<8x256xf32>
    %433 = arith.select %430, %428, %432 : vector<8x256xi1>, vector<8x256xf32>
    %cst_289 = arith.constant 0.000000e+00 : f32
    %434 = vector.broadcast %cst_289 : f32 to vector<8x1xf32>
    %435 = tpu.concatenate %434, %433, %434 in 1 : vector<8x1xf32>, vector<8x256xf32>, vector<8x1xf32> -> vector<8x258xf32>
    %436 = arith.truncf %435 : vector<8x258xf32> to vector<8x258xbf16>
    %cst_290 = arith.constant 0.000000e+00 : f32
    %437 = vector.broadcast %cst_290 : f32 to vector<1x256xf32>
    %c0_291 = arith.constant 0 : index
    %c0_292 = arith.constant 0 : index
    %438 = vector.load %arg21[%c0_291, %c0_292] : memref<1x1xf32, #tpu.memory_space<vmem>>, vector<1x1xf32>
    %439 = vector.broadcast %438 : vector<1x1xf32> to vector<1x256xf32>
    %440 = arith.addf %437, %439 : vector<1x256xf32>
    %c0_293 = arith.constant 0 : index
    %c0_294 = arith.constant 0 : index
    %c0_295 = arith.constant 0 : index
    %441 = vector.load %arg20[%c0_293, %c0_294, %c0_295] : memref<3x1x8xbf16, #tpu.memory_space<vmem>>, vector<1x1x8xbf16>
    %442 = vector.shape_cast %441 : vector<1x1x8xbf16> to vector<1x8xbf16>
    %443 = vector.extract_strided_slice %436 {offsets = [0, 0], sizes = [8, 256], strides = [1, 1]} : vector<8x258xbf16> to vector<8x256xbf16>
    %cst_296 = arith.constant dense<0.000000e+00> : vector<1x256xf32>
    %444 = tpu.matmul %442, %443, %cst_296 {dimension_numbers = #tpu.dot_dimension_numbers<[1], [0], [0], [1], [0, 0, 1, 1], [], []>} : vector<1x8xbf16>, vector<8x256xbf16>, vector<1x256xf32> -> vector<1x256xf32>
    %445 = arith.addf %440, %444 : vector<1x256xf32>
    %c1_297 = arith.constant 1 : index
    %c0_298 = arith.constant 0 : index
    %c0_299 = arith.constant 0 : index
    %446 = vector.load %arg20[%c1_297, %c0_298, %c0_299] : memref<3x1x8xbf16, #tpu.memory_space<vmem>>, vector<1x1x8xbf16>
    %447 = vector.shape_cast %446 : vector<1x1x8xbf16> to vector<1x8xbf16>
    %448 = vector.extract_strided_slice %436 {offsets = [0, 1], sizes = [8, 256], strides = [1, 1]} : vector<8x258xbf16> to vector<8x256xbf16>
    %cst_300 = arith.constant dense<0.000000e+00> : vector<1x256xf32>
    %449 = tpu.matmul %447, %448, %cst_300 {dimension_numbers = #tpu.dot_dimension_numbers<[1], [0], [0], [1], [0, 0, 1, 1], [], []>} : vector<1x8xbf16>, vector<8x256xbf16>, vector<1x256xf32> -> vector<1x256xf32>
    %450 = arith.addf %445, %449 : vector<1x256xf32>
    %c2_301 = arith.constant 2 : index
    %c0_302 = arith.constant 0 : index
    %c0_303 = arith.constant 0 : index
    %451 = vector.load %arg20[%c2_301, %c0_302, %c0_303] : memref<3x1x8xbf16, #tpu.memory_space<vmem>>, vector<1x1x8xbf16>
    %452 = vector.shape_cast %451 : vector<1x1x8xbf16> to vector<1x8xbf16>
    %453 = vector.extract_strided_slice %436 {offsets = [0, 2], sizes = [8, 256], strides = [1, 1]} : vector<8x258xbf16> to vector<8x256xbf16>
    %cst_304 = arith.constant dense<0.000000e+00> : vector<1x256xf32>
    %454 = tpu.matmul %452, %453, %cst_304 {dimension_numbers = #tpu.dot_dimension_numbers<[1], [0], [0], [1], [0, 0, 1, 1], [], []>} : vector<1x8xbf16>, vector<8x256xbf16>, vector<1x256xf32> -> vector<1x256xf32>
    %455 = arith.addf %450, %454 : vector<1x256xf32>
    %456 = math.tanh %455 : vector<1x256xf32>
    %457 = tpu.concatenate %231, %456 in 0 : vector<1x256xf32>, vector<1x256xf32> -> vector<2x256xf32>
    %c0_305 = arith.constant 0 : index
    %c0_306 = arith.constant 0 : index
    %458 = vector.load %arg22[%c0_305, %c0_306] : memref<2x256xf32, #tpu.memory_space<vmem>>, vector<2x256xf32>
    tpu.vector_store %arg22[%c0_305, %c0_306], %457 {strides = array<i32>} : memref<2x256xf32, #tpu.memory_space<vmem>>, vector<2x256xf32>,
    return
  }
}

</mosaic_0001>

<bundles_post_ra>
// kernel: ne.45
= control target key start
LH: loop header
LB: loop body
LE: loop exit
PB: predicated region body
PF: predicated region fallthrough
CT: control target
= control target key end

     0   :  { %vm7_vm0 = vcmask 64512   ;;  %vm13_vm1 = vcmask 130112   ;;  %s39_s0 = inlined_call_operand.vmem [shape: s32[2,8], index: 0, kind: input, shape index: {}]   ;;  %s40_s1 = inlined_call_operand.vmem [shape: s32[16], index: 1, kind: output, shape index: {}]  }
   0x1   :  { %v4_v0 = vld [vmem:[%s39_s0] sm:$0x3]  ;;  %s22_s0 = smov 8  }
   0x2   :  { %5 = vst [vmem:[#allocation1] sm:$0x3] %v4_v0 }
   0x9   :  { %v10_v1 = vld [vmem:[#allocation1 + $0x1] sm:$0x1]   ;;  %v6_v2 = vld [vmem:[#allocation1] sm:$0x1]  }
   0xa   :  { %11 = vrot.lane.b32.xlu0 %v10_v1, %s22_s0  ;;  %8 = vst.msk [vmem:[#allocation0] sm:$0x1] %vm7_vm0, %v6_v2  }
  0x7c   :  { %v12_v3 = vpop.permute.xlu0 %11  }
  0x7d   :  { %14 = vst.msk [vmem:[#allocation0] sm:$0x1] %vm13_vm1, %v12_v3  }
  0x84   :  { %v18_v4 = vld [vmem:[#allocation0] sm:$0x1] }
  0x85   :  { %20 = vst [vmem:[%s40_s1] sm:$0x1] %v18_v4 }

// kernel: jets_forward.4
= control target key start
LH: loop header
LB: loop body
LE: loop exit
PB: predicated region body
PF: predicated region fallthrough
CT: control target
= control target key end

     0   :  { %v1402_v0 = vmov 0.0   ;;  %vm1403_vm0 = vmmov 0   ;;  %vm81_vm1 = vcmask 261120   ;;  %s1405_s27 = smov 96   ;;  %s1406_s28 = smov 80   ;;  %vm130_vm2 = vcmask 130048   ;;  %s1757_s3 = inlined_call_operand.vmem [shape: bf16[32,96], index: 3, kind: input, shape index: {}]   ;;  %s1758_s0 = inlined_call_operand.vmem [shape: f32[16,32], index: 0, kind: input, shape index: {}]   ;;  %s1759_s4 = inlined_call_operand.vmem [shape: f32[1,96], index: 4, kind: input, shape index: {}]   ;;  %s1760_s1 = inlined_call_operand.vmem [shape: f32[16,16], index: 1, kind: input, shape index: {}]   ;;  %s1761_s5 = inlined_call_operand.vmem [shape: bf16[32,32], index: 5, kind: input, shape index: {}]   ;;  %s1762_s6 = inlined_call_operand.vmem [shape: f32[1,32], index: 6, kind: input, shape index: {}]   ;;  %s1763_s2 = inlined_call_operand.vmem [shape: f32[16,1], index: 2, kind: input, shape index: {}]   ;;  %s1764_s9 = inlined_call_operand.vmem [shape: bf16[3,32,64], index: 9, kind: input, shape index: {}]   ;;  %s1765_s11 = inlined_call_operand.vmem [shape: bf16[3,64,32], index: 11, kind: input, shape index: {}]   ;;  %s1766_s7 = inlined_call_operand.vmem [shape: f32[1,32], index: 7, kind: input, shape index: {}]   ;;  %s1767_s8 = inlined_call_operand.vmem [shape: f32[1,32], index: 8, kind: input, shape index: {}]   ;;  %s1768_s10 = inlined_call_operand.vmem [shape: f32[1,64], index: 10, kind: input, shape index: {}]   ;;  %s1769_s12 = inlined_call_operand.vmem [shape: f32[1,32], index: 12, kind: input, shape index: {}]   ;;  %s1770_s13 = inlined_call_operand.vmem [shape: f32[1,32], index: 13, kind: input, shape index: {}]   ;;  %s1771_s14 = inlined_call_operand.vmem [shape: f32[1,32], index: 14, kind: input, shape index: {}]   ;;  %s1772_s15 = inlined_call_operand.vmem [shape: f32[16,32], index: 15, kind: output, shape index: {}]  }
   0x1   :  { %1230 = vmatprep.subr.bf16.mxu0 %v1402_v0  ;;  %v1356_v1 = vld [vmem:[%s1757_s3] sm:$0xff]   ;;  %1234 = vmatprep.mubr.msk.bf16.mxu0 %vm1403_vm0, %v1402_v0  ;;  %v1357_v2 = vld [vmem:[%s1757_s3 + $0x8] sm:$0xff]   ;;  %s1408_s17 = smov 64   ;;  %s1409_s22 = smov 16   ;;  %vm525_vm5 = vcmask 1040384   ;;  %vm707_vm10 = vcmask 1041408  }
   0x2   :  { %1238 = vmatprep.subr.bf16.mxu1 %v1402_v0  ;;  %1240 = vmatprep.mubr.msk.bf16.mxu1 %vm1403_vm0, %v1402_v0  ;;  %v1506_v3 = vld [vmem:[%s1758_s0] sm:$0xff]  ;;  %v1511_v4 = vld [vmem:[%s1758_s0 + $0x8] sm:$0xff]  ;;  %s1404_s0 = smov 112   ;;  %vm624_vm11 = vsmask.f32 7424  ;;  %vm726_vm12 = vcmask 1046528  }
   0x3   :  { %1231 = vmatpush3.bf16.msra.mxu0 %v1356_v1  ;;  %v57_v5 = vpack.c.bf16 %v1511_v4, %v1506_v3  ;;  %v1126_v6 = vld [vmem:[%s1759_s4] ss:$0 sm:$0xff]  ;;  %v54_v20 = vld [vmem:[%s1760_s1 + $0x8] sm:$0xff]  ;;  %vm843_vm13 = vcmask 523264  }
   0x4   :  { %1232 = vmatprep.subr.bf16.mxu0 %v1402_v0  ;;  %v53_v19 = vld [vmem:[%s1760_s1] sm:$0xff]  ;;  %vm181_vm4 = vcmp.gt.f32.partialorder %v54_v20, 0.5  ;;  %s1407_s1 = smov 48  }
   0x5   :  { %vm180_vm3 = vcmp.gt.f32.partialorder %v53_v19, 0.5  ;;  %v1359_v19 = vld [vmem:[%s1761_s5 + $0x8] sm:$0xff]  }
   0x7   :  { %1233 = vmatpush3.bf16.msra.mxu0 %v1357_v2 }
   0x8   :  { %1244 = vmatprep.subr.bf16.mxu0 %v1402_v0 }
   0xa   :  { %1235 = vmatmul.mubr.msk.bf16.vlgmr.msra.gmra.mrb[0].mxu0 %vm81_vm1, %v57_v5 }
   0xb   :  { %1246 = vmatprep.mubr.msk.bf16.mxu0 %vm1403_vm0, %v1402_v0 }
  0xdd   :  { %v119_v7 = vpop.f32.mrb[0].mxu0 }
  0xde   :  { %v1236_v8 = vpop.f32.mrb[1].mxu0  ;;  %v120_v10 = vadd.f32 %v1126_v6, %v119_v7 }
  0xdf   :  { %v122_v9 = vpop.f32.mrb[2].mxu0 }
  0xe0   :  { %v123_v11 = vadd.f32 %v1126_v6, %v122_v9  ;;  %v1237_v12 = vpop.f32.mrb[3].mxu0 }
  0xe2   :  { %v1523_v13 = vpack.c.bf16 %v123_v11, %v120_v10 }
  0xe4   :  { %254 = vrot.lane.b32.xlu1 %v1523_v13, %s1404_s0  ;;  %128 = vrot.lane.b32.xlu0 %v1523_v13, %s1405_s27 }
  0xe8   :  { %256 = vrot.lane.b32.xlu0 %v1523_v13, %s1406_s28 }
 0x156   :  { %v129_v14 = vpop.permute.xlu0 %128  ;;  %v255_v18 = vpop.permute.xlu1 %254 }
 0x157   :  { %v135_v15 = vsel %vm130_vm2, %v129_v14, 0 }
 0x158   :  { %1239 = vmatpush3.bf16.xpose.msra.mxu1 %v135_v15 }
 0x159   :  { %1250 = vmatprep.subr.bf16.mxu1 %v1402_v0 }
 0x15a   :  { %v257_v16 = vpop.permute.xlu0 %256 }
 0x15b   :  { %v262_v17 = vsel %vm130_vm2, %v257_v16, 0  ;;  %v1358_v16 = vld [vmem:[%s1761_s5] sm:$0xff]  }
 0x15f   :  { %1241 = vmatmul.mubr.msk.bf16.vlgmr.msra.gmra.mrb[0].mxu1 %vm130_vm2, %v1523_v13 }
 0x160   :  { %1251 = vmatpush3.bf16.xpose.msra.mxu1 %v262_v17  ;;  %1252 = vmatprep.mubr.msk.bf16.mxu1 %vm1403_vm0, %v1402_v0 }
 0x161   :  { %1262 = vmatprep.subr.bf16.mxu1 %v1402_v0 }
 0x167   :  { %1253 = vmatmul.mubr.msk.bf16.vlgmr.msra.gmra.mrb[4].mxu1 %vm130_vm2, %v255_v18 }
 0x168   :  { %1266 = vmatprep.mubr.msk.bf16.mxu1 %vm1403_vm0, %v1402_v0  ;;  %1263 = vmatpush3.bf16.msra.mxu1 %v1358_v16 }
 0x169   :  { %1264 = vmatprep.subr.bf16.mxu1 %v1402_v0 }
 0x16c   :  { %1265 = vmatpush3.bf16.msra.mxu1 %v1359_v19 }
 0x16d   :  { %1294 = vmatprep.subr.bf16.mxu1 %v1402_v0 }
 0x232   :  { %v171_v21 = vpop.f32.mrb[0].mxu1 }
 0x233   :  { %v178_v22 = vmul.f32 0.25, %v171_v21  ;;  %v1242_v23 = vpop.f32.mrb[1].mxu1 }
 0x234   :  { %v174_v24 = vpop.f32.mrb[2].mxu1 }
 0x235   :  { %v179_v25 = vmul.f32 0.25, %v174_v24  ;;  %v1243_v26 = vpop.f32.mrb[3].mxu1  ;;  %v182_v27 = vsel %vm180_vm3, -1e+09, %v178_v22 }
 0x236   :  { %v184_v28 = vsel %vm130_vm2, %v182_v27, -inf }
 0x237   :  { %185 = vmax.xlane.f32.xlu1 %v184_v28  ;;  %v183_v29 = vsel %vm181_vm4, -1e+09, %v179_v25 }
 0x238   :  { %v187_v30 = vsel %vm130_vm2, %v183_v29, -inf }
 0x239   :  { %188 = vmax.xlane.f32.xlu0 %v187_v30 }
 0x23a   :  { %v298_v31 = vpop.f32.mrb[4].mxu1 }
 0x23b   :  { %v305_v32 = vmul.f32 0.25, %v298_v31  ;;  %v1254_v33 = vpop.f32.mrb[5].mxu1 }
 0x23c   :  { %v301_v34 = vpop.f32.mrb[6].mxu1  ;;  %v1134_v33 = vld [vmem:[%s1762_s6] ss:$0 sm:$0xff] }
 0x23d   :  { %v306_v35 = vmul.f32 0.25, %v301_v34  ;;  %v1255_v36 = vpop.f32.mrb[7].mxu1  ;;  %v307_v37 = vsel %vm180_vm3, -1e+09, %v305_v32 }
 0x23e   :  { %v309_v38 = vsel %vm130_vm2, %v307_v37, -inf }
 0x23f   :  { %310 = vmax.xlane.f32.xlu0 %v309_v38  ;;  %v308_v39 = vsel %vm181_vm4, -1e+09, %v306_v35 }
 0x240   :  { %v312_v40 = vsel %vm130_vm2, %v308_v39, -inf }
 0x241   :  { %313 = vmax.xlane.f32.xlu1 %v312_v40 }
 0x2c4   :  { %v186_v41 = vpop.xlane.xlu1 %185 }
 0x2c5   :  { %v190_v42 = vsub.f32 %v182_v27, %v186_v41 }
 0x2c6   :  { %v189_v43 = vpop.xlane.xlu0 %188 }
 0x2c7   :  { %v192_v44 = vmul.f32 1.442695, %v190_v42  ;;  %v191_v45 = vsub.f32 %v183_v29, %v189_v43 }
 0x2c9   :  { %1378 = vpow2.f32 %v192_v44  ;;  %v194_v46 = vmul.f32 1.442695, %v191_v45  ;;  %v1410_v44 = vmov 0   ;;  %v55_v45 = vld [vmem:[%s1763_s2] sm:$0xff] }
 0x2ca   :  { %1354 = vset.pattern.permute.xlu1 %v1410_v44  ;;  %1355 = vset.pattern.permute.xlu0 %v1410_v44 }
 0x2cb   :  { %1380 = vpow2.f32 %v194_v46  ;;  %v504_v46 = vsub.f32 1.0, %v55_v45 }
 0x2cc   :  { %v311_v47 = vpop.xlane.xlu0 %310 }
 0x2cd   :  { %v315_v48 = vsub.f32 %v307_v37, %v311_v47 }
 0x2ce   :  { %v314_v49 = vpop.xlane.xlu1 %313 }
 0x2cf   :  { %v317_v50 = vmul.f32 1.442695, %v315_v48  ;;  %v316_v51 = vsub.f32 %v308_v39, %v314_v49 }
 0x2d1   :  { %1382 = vpow2.f32 %v317_v50  ;;  %v319_v52 = vmul.f32 1.442695, %v316_v51 }
 0x2d3   :  { %v1379_v53 = vpop.eup %1378  ;;  %1384 = vpow2.f32 %v319_v52 }
 0x2d4   :  { %v196_v54 = vsel %vm130_vm2, %v1379_v53, 0.0 }
 0x2d5   :  { %v1381_v55 = vpop.eup %1380  ;;  %197 = vadd.xlane.f32.xlu0 %v196_v54 }
 0x2d6   :  { %v199_v56 = vsel %vm130_vm2, %v1381_v55, 0.0 }
 0x2d7   :  { %200 = vadd.xlane.f32.xlu1 %v199_v56 }
 0x2db   :  { %v1383_v57 = vpop.eup %1382 }
 0x2dc   :  { %v321_v58 = vsel %vm130_vm2, %v1383_v57, 0.0 }
 0x2dd   :  { %v1385_v59 = vpop.eup %1384  ;;  %322 = vadd.xlane.f32.xlu0 %v321_v58  ;;  %v1361_v58 = vld [vmem:[%s1764_s9 + $0x8] sm:$0xff]  }
 0x2de   :  { %v324_v60 = vsel %vm130_vm2, %v1385_v59, 0.0 }
 0x2df   :  { %325 = vadd.xlane.f32.xlu1 %v324_v60 }
 0x2f0   :  { %332 = vrot.lane.b32.xlu1 %v1523_v13, %s1407_s1 }
 0x2f3   :  { %207 = vrot.lane.b32.xlu0 %v1523_v13, %s1408_s17 }
 0x362   :  { %v198_v61 = vpop.xlane.xlu0 %197 }
 0x363   :  { %1386 = vrcp.f32 %v198_v61 }
 0x364   :  { %v201_v62 = vpop.xlane.xlu1 %200 }
 0x365   :  { %1388 = vrcp.f32 %v201_v62 }
 0x36a   :  { %v323_v63 = vpop.xlane.xlu0 %322 }
 0x36b   :  { %1390 = vrcp.f32 %v323_v63 }
 0x36c   :  { %v326_v1 = vpop.xlane.xlu1 %325 }
 0x36d   :  { %v1387_v2 = vpop.eup %1386  ;;  %1392 = vrcp.f32 %v326_v1 }
 0x36e   :  { %v208_v5 = vpop.permute.xlu0 %207  ;;  %v204_v7 = vmul.f32 %v1387_v2, %v1379_v53 }
 0x36f   :  { %v1389_v6 = vpop.eup %1388  ;;  %1245 = vmatpush3.bf16.msra.mxu0 %v208_v5  ;;  %v518_v5 = vlaneseq }
 0x370   :  { %v205_v8 = vmul.f32 %v1389_v6, %v1381_v55  ;;  %1256 = vmatprep.subr.bf16.mxu0 %v1402_v0  ;;  %v333_v10 = vpop.permute.xlu1 %332  ;;  %v56_v55 = vld [vmem:[%s1763_s2 + $0x8] sm:$0xff] }
 0x371   :  { %v505_v56 = vsub.f32 1.0, %v56_v55  ;;  %v519_v6 = vshrl.u32 %v518_v5, 7  ;;  %v1371_v5 = vld [vmem:[%s1765_s11 + $0x18] sm:$0xff]  }
 0x372   :  { %v206_v9 = vpack.c.bf16 %v205_v8, %v204_v7  ;;  %v1138_v8 = vld [vmem:[%s1766_s7] ss:$0 sm:$0xff] }
 0x374   :  { %1247 = vmatmul.mubr.msk.bf16.vlgmr.msra.gmra.mrb[4].mxu0 %vm130_vm2, %v206_v9  ;;  %v520_v9 = vadd.s32 8, %v519_v6 }
 0x375   :  { %v1391_v11 = vpop.eup %1390  ;;  %1257 = vmatpush3.bf16.msra.mxu0 %v333_v10  ;;  %1258 = vmatprep.mubr.msk.bf16.mxu0 %vm1403_vm0, %v1402_v0 }
 0x376   :  { %1270 = vmatprep.subr.bf16.mxu0 %v1402_v0  ;;  %v329_v13 = vmul.f32 %v1391_v11, %v1383_v57  ;;  %v1360_v57 = vld [vmem:[%s1764_s9] sm:$0xff]   ;;  %v522_v16 = vand.u32 7, %v520_v9 }
 0x377   :  { %v1393_v12 = vpop.eup %1392  ;;  %v1139_v11 = vld [vmem:[%s1767_s8] ss:$0 sm:$0xff] }
 0x378   :  { %v330_v14 = vmul.f32 %v1393_v12, %v1385_v59  ;;  %v1366_v59 = vld [vmem:[%s1765_s11] sm:$0xff]  }
 0x37a   :  { %v331_v15 = vpack.c.bf16 %v330_v14, %v329_v13  ;;  %v521_v14 = vand.u32 7, %v519_v6  ;;  %v1372_v6 = vld [vmem:[%s1765_s11 + $0x50] sm:$0xff]  }
 0x37c   :  { %1259 = vmatmul.mubr.msk.bf16.vlgmr.msra.gmra.mrb[8].mxu0 %vm130_vm2, %v331_v15  ;;  %v542_v19 = vadd.s32 4294967295, %v521_v14 }
 0x37d   :  { %1274 = vmatprep.mubr.msk.bf16.mxu0 %vm1403_vm0, %v1402_v0  ;;  %1271 = vmatpush3.bf16.msra.mxu0 %v1360_v57 }
 0x37e   :  { %1272 = vmatprep.subr.bf16.mxu0 %v1402_v0  ;;  %vm544_vm6 = vcmp.ge.s32.totalorder %v542_v19, 0 }
 0x381   :  { %1273 = vmatpush3.bf16.msra.mxu0 %v1361_v58 }
 0x382   :  { %1278 = vmatprep.subr.bf16.mxu0 %v1402_v0 }
 0x447   :  { %v247_v17 = vpop.f32.mrb[4].mxu0 }
 0x448   :  { %v1248_v18 = vpop.f32.mrb[5].mxu0 }
 0x449   :  { %v250_v20 = vpop.f32.mrb[6].mxu0 }
 0x44a   :  { %v1249_v21 = vpop.f32.mrb[7].mxu0 }
 0x44f   :  { %v372_v22 = vpop.f32.mrb[8].mxu0 }
 0x450   :  { %v1260_v23 = vpop.f32.mrb[9].mxu0 }
 0x451   :  { %v375_v24 = vpop.f32.mrb[10].mxu0 }
 0x452   :  { %v1349_v25 = vpack.i.bf16 %v375_v24, %v372_v22  ;;  %v1261_v26 = vpop.f32.mrb[11].mxu0 }
 0x454   :  { %1350 = vrot.lane.b32.xlu1 %v1349_v25, %s1409_s22 }
 0x4c6   :  { %v1351_v27 = vpop.permute.xlu1 %1350 }
 0x4c7   :  { %v1353_v28 = vunpack.i.h.bf16 %v1351_v27  ;;  %v1352_v29 = vunpack.i.l.bf16 %v1351_v27  ;;  %v1625_v27 = vsel %vm544_vm6, 1.0, %v1402_v0 }
 0x4c9   :  { %v388_v30 = vsel %vm130_vm2, %v250_v20, %v1353_v28  ;;  %v387_v31 = vsel %vm130_vm2, %v247_v17, %v1352_v29  ;;  %v543_v20 = vadd.s32 4294967295, %v522_v16 }
 0x4ca   :  { %v389_v32 = vpack.c.bf16 %v388_v30, %v387_v31  ;;  %v696_v31 = vadd.s32 1, %v522_v16 }
 0x4cb   :  { %vm545_vm7 = vcmp.ge.s32.totalorder %v543_v20, 0 }
 0x4cc   :  { %1267 = vmatmul.mubr.msk.bf16.vlgmr.msra.gmra.mrb[8].mxu1 %vm81_vm1, %v389_v32  ;;  %v1629_v29 = vsel %vm545_vm7, 1.0, %v1402_v0  ;;  %vm700_vm8 = vcmp.lt.s32.totalorder %v696_v31, 8 }
 0x4cd   :  { %1302 = vmatprep.mubr.msk.bf16.mxu1 %vm1403_vm0, %v1402_v0  ;;  %1295 = vmatpush3.bf16.msra.mxu1 %v1366_v59 }
 0x4ce   :  { %1296 = vmatprep.subr.bf16.mxu1 %v1402_v0 }
 0x59f   :  { %v450_v34 = vpop.f32.mrb[8].mxu1 }
 0x5a0   :  { %v451_v35 = vadd.f32 %v1134_v33, %v450_v34  ;;  %v1268_v36 = vpop.f32.mrb[9].mxu1 }
 0x5a1   :  { %v453_v37 = vpop.f32.mrb[10].mxu1 }
 0x5a2   :  { %v454_v38 = vadd.f32 %v1134_v33, %v453_v37  ;;  %v1269_v39 = vpop.f32.mrb[11].mxu1  ;;  %v459_v40 = vadd.f32 %v451_v35, %v1506_v3  ;;  %v695_v33 = vadd.s32 1, %v521_v14  ;;  %v1362_v37 = vld [vmem:[%s1764_s9 + $0x10] sm:$0xff]  }
 0x5a4   :  { %v461_v41 = vsel %vm81_vm1, %v459_v40, 0.0  ;;  %v460_v42 = vadd.f32 %v454_v38, %v1511_v4  ;;  %vm699_vm9 = vcmp.lt.s32.totalorder %v695_v33, 8 }
 0x5a5   :  { %462 = vadd.xlane.f32.xlu0 %v461_v41  ;;  %v704_v41 = vsel %vm700_vm8, 1.0, %v1402_v0  ;;  %v703_v44 = vsel %vm699_vm9, 1.0, %v1402_v0 }
 0x5a6   :  { %v464_v43 = vsel %vm81_vm1, %v460_v42, 0.0 }
 0x5a7   :  { %465 = vadd.xlane.f32.xlu1 %v464_v43  ;;  %v1363_v43 = vld [vmem:[%s1764_s9 + $0x18] sm:$0xff]  }
 0x5b8   :  { %508 = vperm.xlu1 %1354, %v504_v46   ;;  %v1648_v46 = vrot.slane %v704_v41, 6 }
 0x632   :  { %v463_v47 = vpop.xlane.xlu0 %462 }
 0x633   :  { %v468_v48 = vmul.f32 0.03125, %v463_v47 }
 0x634   :  { %v466_v3 = vpop.xlane.xlu1 %465 }
 0x635   :  { %v470_v49 = vsub.f32 %v459_v40, %v468_v48  ;;  %v469_v50 = vmul.f32 0.03125, %v466_v3  ;;  %v1650_v3 = vrot.slane %v703_v44, 6 }
 0x637   :  { %v471_v51 = vsub.f32 %v460_v42, %v469_v50  ;;  %v472_v4 = vmul.f32 %v470_v49, %v470_v49  ;;  %v710_v50 = vsel %vm707_vm10, %v1650_v3, %v1648_v46 }
 0x638   :  { %v1613_v15 = vpop.permute.xlu1 %508 }
 0x639   :  { %v474_v52 = vsel %vm81_vm1, %v472_v4, 0.0  ;;  %v473_v53 = vmul.f32 %v471_v51, %v471_v51  ;;  %v1364_v4 = vld [vmem:[%s1764_s9 + $0x20] sm:$0xff]  }
 0x63a   :  { %475 = vadd.xlane.f32.xlu0 %v474_v52 }
 0x63b   :  { %v477_v54 = vsel %vm81_vm1, %v473_v53, 0.0 }
 0x63e   :  { %478 = vadd.xlane.f32.xlu0 %v477_v54 }
 0x654   :  { %513 = vperm.xlu0 %1355, %v505_v56   ;;  %v1365_v56 = vld [vmem:[%s1764_s9 + $0x28] sm:$0xff]  }
 0x6c7   :  { %v476_v60 = vpop.xlane.xlu0 %475 }
 0x6c8   :  { %v480_v61 = vmul.f32 0.03125, %v476_v60 }
 0x6ca   :  { %v482_v62 = vadd.f32 1e-05, %v480_v61 }
 0x6cb   :  { %v479_v63 = vpop.xlane.xlu0 %478 }
 0x6cc   :  { %1394 = vrsqrt.f32 %v482_v62  ;;  %v481_v1 = vmul.f32 0.03125, %v479_v63  ;;  %v1367_v62 = vld [vmem:[%s1765_s11 + $0x8] sm:$0xff]   ;;  %v1368_v63 = vld [vmem:[%s1765_s11 + $0x40] sm:$0xff]  }
 0x6cd   :  { %1297 = vmatpush3.bf16.msra.mxu1 %v1367_v62 }
 0x6ce   :  { %v483_v2 = vadd.f32 1e-05, %v481_v1  ;;  %1298 = vmatprep.subr.bf16.mxu1 %v1402_v0  ;;  %v1369_v1 = vld [vmem:[%s1765_s11 + $0x10] sm:$0xff]  }
 0x6d0   :  { %1396 = vrsqrt.f32 %v483_v2  ;;  %v1370_v2 = vld [vmem:[%s1765_s11 + $0x48] sm:$0xff]  }
 0x6d1   :  { %1299 = vmatpush3.bf16.msra.mxu1 %v1369_v1 }
 0x6d2   :  { %1300 = vmatprep.subr.bf16.mxu1 %v1402_v0 }
 0x6d3   :  { %v1618_v23 = vpop.permute.xlu0 %513 }
 0x6d5   :  { %1301 = vmatpush3.bf16.msra.mxu1 %v1371_v5 }
 0x6d6   :  { %v1395_v7 = vpop.eup %1394  ;;  %1306 = vmatprep.subr.bf16.mxu1 %v1402_v0 }
 0x6d7   :  { %v486_v10 = vmul.f32 %v1395_v7, %v470_v49  ;;  %v1374_v7 = vld [vmem:[%s1765_s11 + $0x58] sm:$0xff]  }
 0x6d9   :  { %v494_v12 = vmul.f32 %v1138_v8, %v486_v10 }
 0x6da   :  { %v1397_v13 = vpop.eup %1396 }
 0x6db   :  { %v502_v17 = vadd.f32 %v1139_v11, %v494_v12  ;;  %v487_v18 = vmul.f32 %v1397_v13, %v471_v51 }
 0x6dd   :  { %v1616_v21 = vmul.f32 %v1613_v15, %v502_v17  ;;  %v495_v22 = vmul.f32 %v1138_v8, %v487_v18  ;;  %v1140_v8 = vld [vmem:[%s1768_s10] ss:$0 sm:$0xff] }
 0x6df   :  { %v526_v24 = vrot.slane %v1616_v21, 7  ;;  %v503_v25 = vadd.f32 %v1139_v11, %v495_v22 }
 0x6e1   :  { %v1622_v26 = vmul.f32 %v1618_v23, %v503_v25  ;;  %v532_v28 = vsel %vm525_vm5, 0.0, %v526_v24 }
 0x6e2   :  { %v552_v34 = vmul.f32 %v1625_v27, %v532_v28  ;;  %v714_v55 = vmul.f32 %v1650_v3, %v532_v28 }
 0x6e3   :  { %v527_v30 = vrot.slane %v1622_v26, 7 }
 0x6e5   :  { %v528_v32 = vsel %vm525_vm5, %v526_v24, %v527_v30  ;;  %v533_v38 = vsel %vm525_vm5, %v527_v30, 0.0 }
 0x6e6   :  { %v553_v35 = vmul.f32 %v1629_v29, %v528_v32  ;;  %v617_v36 = vpack.c.bf16 %v528_v32, %v532_v28  ;;  %v618_v42 = vpack.c.bf16 %v533_v38, %v533_v38  ;;  %v715_v52 = vmul.f32 %v710_v50, %v528_v32 }
 0x6e7   :  { %v716_v53 = vmul.f32 %v1648_v46, %v533_v38 }
 0x6e8   :  { %v554_v39 = vpack.c.bf16 %v553_v35, %v552_v34  ;;  %v628_v40 = vshll.u32 %v617_v36, 16  ;;  %v633_v47 = vshll.u32 %v618_v42, 16  ;;  %v626_v48 = vshrl.u32 %v617_v36, 16  ;;  %v1373_v35 = vld [vmem:[%s1765_s11 + $0x20] sm:$0xff]  }
 0x6e9   :  { %v718_v57 = vpack.c.bf16 %v716_v53, %v716_v53  ;;  %v717_v58 = vpack.c.bf16 %v715_v52, %v714_v55 }
 0x6ea   :  { %1275 = vmatmul.mubr.msk.bf16.vlgmr.msra.gmra.mrb[12].mxu0 %vm81_vm1, %v554_v39  ;;  %v630_v45 = vrot.slane %v628_v40, 1  ;;  %v635_v51 = vrot.slane %v633_v47, 1 }
 0x6eb   :  { %1279 = vmatpush3.bf16.msra.mxu0 %v1362_v37  ;;  %1282 = vmatprep.mubr.msk.bf16.mxu0 %vm1403_vm0, %v1402_v0  ;;  %v728_v59 = vrot.slane %v718_v57, 1  ;;  %v727_v60 = vrot.slane %v717_v58, 1 }
 0x6ec   :  { %1280 = vmatprep.subr.bf16.mxu0 %v1402_v0  ;;  %v631_v49 = vor.u32 %v630_v45, %v626_v48  ;;  %v1376_v48 = vld [vmem:[%s1765_s11 + $0x30] sm:$0xff]  }
 0x6ed   :  { %v729_v61 = vsel %vm726_vm12, %v727_v60, %v728_v59 }
 0x6ee   :  { %v636_v54 = vsel %vm624_vm11, %v631_v49, %v635_v51 }
 0x6ef   :  { %1281 = vmatpush3.bf16.msra.mxu0 %v1363_v43  ;;  %v1375_v43 = vld [vmem:[%s1765_s11 + $0x28] sm:$0xff]  }
 0x6f0   :  { %1286 = vmatprep.subr.bf16.mxu0 %v1402_v0 }
 0x6f6   :  { %1283 = vmatmul.mubr.msk.bf16.vlgmr.msra.gmra.mrb[12].mxu0 %vm81_vm1, %v636_v54 }
 0x6f7   :  { %1287 = vmatpush3.bf16.msra.mxu0 %v1364_v4  ;;  %1290 = vmatprep.mubr.msk.bf16.mxu0 %vm1403_vm0, %v1402_v0 }
 0x6f8   :  { %1288 = vmatprep.subr.bf16.mxu0 %v1402_v0 }
 0x6fb   :  { %1289 = vmatpush3.bf16.msra.mxu0 %v1365_v56  ;;  %v1158_v56 = vld [vmem:[%s1769_s12] ss:$0 sm:$0xff] }
 0x6fc   :  { %1318 = vmatprep.subr.bf16.mxu0 %v1402_v0 }
 0x702   :  { %1291 = vmatmul.mubr.msk.bf16.vlgmr.msra.gmra.mrb[12].mxu0 %vm81_vm1, %v729_v61 }
 0x703   :  { %1326 = vmatprep.mubr.msk.bf16.mxu0 %vm1403_vm0, %v1402_v0  ;;  %1319 = vmatpush3.bf16.msra.mxu0 %v1368_v63 }
 0x704   :  { %1320 = vmatprep.subr.bf16.mxu0 %v1402_v0 }
 0x707   :  { %1321 = vmatpush3.bf16.msra.mxu0 %v1370_v2 }
 0x708   :  { %1322 = vmatprep.subr.bf16.mxu0 %v1402_v0 }
 0x70b   :  { %1323 = vmatpush3.bf16.msra.mxu0 %v1372_v6 }
 0x70c   :  { %1324 = vmatprep.subr.bf16.mxu0 %v1402_v0 }
 0x70f   :  { %1325 = vmatpush3.bf16.msra.mxu0 %v1374_v7 }
 0x7d5   :  { %v779_v9 = vpop.f32.mrb[12].mxu0 }
 0x7d6   :  { %v1330_v10 = vadd.f32 %v1140_v8, %v779_v9  ;;  %v1292_v11 = vpop.f32.mrb[13].mxu0 }
 0x7d7   :  { %v782_v12 = vpop.f32.mrb[14].mxu0 }
 0x7d8   :  { %v788_v13 = vmax.f32 %v1330_v10, 0.0  ;;  %v1331_v14 = vadd.f32 %v1140_v8, %v782_v12  ;;  %v1293_v16 = vpop.f32.mrb[15].mxu0 }
 0x7da   :  { %v792_v17 = vrot.slane %v788_v13, 7  ;;  %v789_v18 = vmax.f32 %v1331_v14, 0.0 }
 0x7dc   :  { %v798_v19 = vsel %vm525_vm5, 0.0, %v792_v17  ;;  %v793_v20 = vrot.slane %v789_v18, 7 }
 0x7dd   :  { %v808_v22 = vmul.f32 %v798_v19, %v1625_v27  ;;  %v983_v33 = vmul.f32 %v798_v19, %v1650_v3  ;;  %v1377_v3 = vld [vmem:[%s1765_s11 + $0x38] sm:$0xff]  }
 0x7de   :  { %v794_v24 = vsel %vm525_vm5, %v792_v17, %v793_v20  ;;  %v799_v25 = vsel %vm525_vm5, %v793_v20, 0.0 }
 0x7df   :  { %v809_v28 = vmul.f32 %v794_v24, %v1629_v29  ;;  %v890_v30 = vpack.c.bf16 %v794_v24, %v798_v19  ;;  %v891_v31 = vpack.c.bf16 %v799_v25, %v799_v25  ;;  %v984_v32 = vmul.f32 %v794_v24, %v710_v50 }
 0x7e0   :  { %v985_v34 = vmul.f32 %v799_v25, %v1648_v46 }
 0x7e1   :  { %v810_v36 = vpack.c.bf16 %v809_v28, %v808_v22  ;;  %v904_v27 = vshll.u32 %v890_v30, 16  ;;  %v909_v37 = vshll.u32 %v891_v31, 16  ;;  %v986_v38 = vpack.c.bf16 %v984_v32, %v983_v33  ;;  %v1191_v32 = vld [vmem:[%s1771_s14] ss:$0 sm:$0xff] }
 0x7e2   :  { %v987_v39 = vpack.c.bf16 %v985_v34, %v985_v34  ;;  %v902_v40 = vshrl.u32 %v890_v30, 16  ;;  %v1190_v30 = vld [vmem:[%s1770_s13] ss:$0 sm:$0xff] }
 0x7e3   :  { %v906_v41 = vrot.slane %v904_v27, 1  ;;  %1303 = vmatmul.mubr.msk.bf16.vlgmr.msra.gmra.mrb[12].mxu1 %vm843_vm13, %v810_v36  ;;  %v999_v42 = vrot.slane %v986_v38, 1  ;;  %v911_v44 = vrot.slane %v909_v37, 1 }
 0x7e4   :  { %v1000_v29 = vrot.slane %v987_v39, 1  ;;  %1307 = vmatpush3.bf16.msra.mxu1 %v1373_v35  ;;  %1314 = vmatprep.mubr.msk.bf16.mxu1 %vm1403_vm0, %v1402_v0 }
 0x7e5   :  { %1308 = vmatprep.subr.bf16.mxu1 %v1402_v0  ;;  %v907_v45 = vor.u32 %v906_v41, %v902_v40 }
 0x7e6   :  { %v1001_v46 = vsel %vm726_vm12, %v999_v42, %v1000_v29 }
 0x7e7   :  { %1327 = vmatmul.mubr.msk.bf16.vlgmr.msra.gmra.mrb[16].mxu0 %vm843_vm13, %v1001_v46  ;;  %v912_v47 = vsel %vm624_vm11, %v907_v45, %v911_v44 }
 0x7e8   :  { %1309 = vmatpush3.bf16.msra.mxu1 %v1375_v43 }
 0x7e9   :  { %1310 = vmatprep.subr.bf16.mxu1 %v1402_v0 }
 0x7ec   :  { %1311 = vmatpush3.bf16.msra.mxu1 %v1376_v48 }
 0x7ed   :  { %1312 = vmatprep.subr.bf16.mxu1 %v1402_v0 }
 0x7f0   :  { %1313 = vmatpush3.bf16.msra.mxu1 %v1377_v3 }
 0x7f3   :  { %1315 = vmatmul.mubr.msk.bf16.vlgmr.msra.gmra.mrb[16].mxu1 %vm843_vm13, %v912_v47 }
 0x8b6   :  { %v881_v49 = vpop.f32.mrb[12].mxu1 }
 0x8b7   :  { %v1304_v50 = vpop.f32.mrb[13].mxu1  ;;  %v888_v57 = vadd.f32 %v1158_v56, %v881_v49 }
 0x8b8   :  { %v884_v51 = vpop.f32.mrb[14].mxu1 }
 0x8b9   :  { %v1305_v4 = vpop.f32.mrb[15].mxu1  ;;  %v889_v59 = vadd.f32 %v1158_v56, %v884_v51 }
 0x8ba   :  { %v1063_v52 = vpop.f32.mrb[16].mxu0 }
 0x8bb   :  { %v1328_v53 = vpop.f32.mrb[17].mxu0 }
 0x8bc   :  { %v1066_v54 = vpop.f32.mrb[18].mxu0 }
 0x8bd   :  { %v1329_v55 = vpop.f32.mrb[19].mxu0 }
 0x8c6   :  { %v974_v58 = vpop.f32.mrb[16].mxu1 }
 0x8c7   :  { %v981_v60 = vadd.f32 %v974_v58, %v888_v57  ;;  %v1316_v0 = vpop.f32.mrb[17].mxu1 }
 0x8c8   :  { %v977_v61 = vpop.f32.mrb[18].mxu1 }
 0x8c9   :  { %v1070_v62 = vadd.f32 %v1063_v52, %v981_v60  ;;  %v982_v63 = vadd.f32 %v977_v61, %v889_v59  ;;  %v1317_v1 = vpop.f32.mrb[19].mxu1 }
 0x8cb   :  { %v1071_v2 = vadd.f32 %v1066_v54, %v982_v63  ;;  %v1074_v5 = vadd.f32 %v1070_v62, %v1616_v21 }
 0x8cd   :  { %v1076_v6 = vsel %vm81_vm1, %v1074_v5, 0.0  ;;  %v1075_v7 = vadd.f32 %v1071_v2, %v1622_v26 }
 0x8ce   :  { %1077 = vadd.xlane.f32.xlu1 %v1076_v6 }
 0x8cf   :  { %v1079_v8 = vsel %vm81_vm1, %v1075_v7, 0.0 }
 0x8d0   :  { %1080 = vadd.xlane.f32.xlu0 %v1079_v8 }
 0x95b   :  { %v1078_v9 = vpop.xlane.xlu1 %1077 }
 0x95c   :  { %v1082_v10 = vmul.f32 0.03125, %v1078_v9 }
 0x95d   :  { %v1081_v11 = vpop.xlane.xlu0 %1080 }
 0x95e   :  { %v1084_v12 = vsub.f32 %v1074_v5, %v1082_v10  ;;  %v1083_v13 = vmul.f32 0.03125, %v1081_v11 }
 0x960   :  { %v1085_v14 = vsub.f32 %v1075_v7, %v1083_v13  ;;  %v1086_v16 = vmul.f32 %v1084_v12, %v1084_v12 }
 0x962   :  { %v1088_v17 = vsel %vm81_vm1, %v1086_v16, 0.0  ;;  %v1087_v18 = vmul.f32 %v1085_v14, %v1085_v14 }
 0x963   :  { %1089 = vadd.xlane.f32.xlu1 %v1088_v17 }
 0x964   :  { %v1091_v21 = vsel %vm81_vm1, %v1087_v18, 0.0 }
 0x967   :  { %1092 = vadd.xlane.f32.xlu1 %v1091_v21 }
 0x9f0   :  { %v1090_v19 = vpop.xlane.xlu1 %1089 }
 0x9f1   :  { %v1094_v26 = vmul.f32 0.03125, %v1090_v19 }
 0x9f3   :  { %v1096_v20 = vadd.f32 1e-05, %v1094_v26 }
 0x9f4   :  { %v1093_v22 = vpop.xlane.xlu1 %1092 }
 0x9f5   :  { %1398 = vrsqrt.f32 %v1096_v20  ;;  %v1095_v24 = vmul.f32 0.03125, %v1093_v22 }
 0x9f7   :  { %v1097_v25 = vadd.f32 1e-05, %v1095_v24 }
 0x9f9   :  { %1400 = vrsqrt.f32 %v1097_v25 }
 0x9ff   :  { %v1399_v28 = vpop.eup %1398 }
 0xa00   :  { %v1100_v31 = vmul.f32 %v1399_v28, %v1084_v12 }
 0xa02   :  { %v1108_v33 = vmul.f32 %v1190_v30, %v1100_v31 }
 0xa03   :  { %v1401_v34 = vpop.eup %1400 }
 0xa04   :  { %v1116_v35 = vadd.f32 %v1191_v32, %v1108_v33  ;;  %v1101_v36 = vmul.f32 %v1401_v34, %v1085_v14 }
 0xa06   :  { %v1118_v27 = vmul.f32 %v1116_v35, %v1613_v15  ;;  %v1109_v37 = vmul.f32 %v1190_v30, %v1101_v36 }
 0xa08   :  { %1120 = vst.msk [vmem:[%s1772_s15] sm:$0xff] %vm81_vm1, %v1118_v27  ;;  %v1117_v38 = vadd.f32 %v1191_v32, %v1109_v37 }
 0xa0a   :  { %v1119_v39 = vmul.f32 %v1117_v38, %v1618_v23 }
 0xa0c   :  { %1121 = vst.msk [vmem:[%s1772_s15 + $0x8] sm:$0xff] %vm81_vm1, %v1119_v39 }

// kernel: jets_forward.5
= control target key start
LH: loop header
LB: loop body
LE: loop exit
PB: predicated region body
PF: predicated region fallthrough
CT: control target
= control target key end

     0   :  { %v46_v0 = vlaneseq  ;;  %v1316_v1 = vmov 0.0   ;;  %vm1317_vm0 = vmmov 0   ;;  %vm53_vm1 = vcmask 1040384   ;;  %s1318_s19 = smov 64   ;;  %s1319_s20 = smov 96   ;;  %s1710_s2 = inlined_call_operand.vmem [shape: bf16[3,32,96], index: 2, kind: input, shape index: {}]   ;;  %s1711_s0 = inlined_call_operand.vmem [shape: f32[16,32], index: 0, kind: input, shape index: {}]   ;;  %s1712_s3 = inlined_call_operand.vmem [shape: f32[1,96], index: 3, kind: input, shape index: {}]   ;;  %s1713_s6 = inlined_call_operand.vmem [shape: bf16[3,96,96], index: 6, kind: input, shape index: {}]   ;;  %s1714_s4 = inlined_call_operand.vmem [shape: f32[1,96], index: 4, kind: input, shape index: {}]   ;;  %s1715_s5 = inlined_call_operand.vmem [shape: f32[1,96], index: 5, kind: input, shape index: {}]   ;;  %s1716_s7 = inlined_call_operand.vmem [shape: f32[1,96], index: 7, kind: input, shape index: {}]   ;;  %s1717_s10 = inlined_call_operand.vmem [shape: bf16[96,3], index: 10, kind: input, shape index: {}]   ;;  %s1718_s1 = inlined_call_operand.vmem [shape: f32[16,1], index: 1, kind: input, shape index: {}]   ;;  %s1719_s8 = inlined_call_operand.vmem [shape: f32[1,96], index: 8, kind: input, shape index: {}]   ;;  %s1720_s9 = inlined_call_operand.vmem [shape: f32[1,96], index: 9, kind: input, shape index: {}]   ;;  %s1721_s11 = inlined_call_operand.vmem [shape: f32[1,3], index: 11, kind: input, shape index: {}]   ;;  %s1722_s12 = inlined_call_operand.vmem [shape: f32[16,3], index: 12, kind: output, shape index: {}]  }
   0x1   :  { %1147 = vmatprep.subr.bf16.mxu0 %v1316_v1  ;;  %v1262_v2 = vld [vmem:[%s1710_s2] sm:$0xff]   ;;  %1151 = vmatprep.mubr.msk.bf16.mxu0 %vm1317_vm0, %v1316_v1  ;;  %v1263_v3 = vld [vmem:[%s1710_s2 + $0x8] sm:$0xff]   ;;  %vm99_vm6 = vcmask 261120   ;;  %v1264_v24 = vld [vmem:[%s1710_s2 + $0x10] sm:$0xff]   ;;  %vm236_vm7 = vcmask 1041408   ;;  %vm255_vm9 = vcmask 1046528  }
   0x2   :  { %v47_v4 = vshrl.u32 %v46_v0, 7  ;;  %1171 = vmatprep.subr.bf16.mxu1 %v1316_v1  ;;  %1183 = vmatprep.mubr.msk.bf16.mxu1 %vm1317_vm0, %v1316_v1  ;;  %v42_v5 = vld [vmem:[%s1711_s0] sm:$0xff]  ;;  %v43_v6 = vld [vmem:[%s1711_s0 + $0x8] sm:$0xff]  ;;  %v1265_v30 = vld [vmem:[%s1710_s2 + $0x18] sm:$0xff]   ;;  %vm153_vm8 = vsmask.f32 7424 }
   0x3   :  { %1148 = vmatpush3.bf16.msra.mxu0 %v1262_v2  ;;  %v54_v9 = vrot.slane %v42_v5, 7  ;;  %v55_v10 = vrot.slane %v43_v6, 7  ;;  %v1266_v40 = vld [vmem:[%s1710_s2 + $0x20] sm:$0xff]   ;;  %v1267_v44 = vld [vmem:[%s1710_s2 + $0x28] sm:$0xff]   ;;  %vm432_vm10 = vcmask 523264   ;;  %vm520_vm11 = vcmask 785408  }
   0x4   :  { %1149 = vmatprep.subr.bf16.mxu0 %v1316_v1  ;;  %v48_v7 = vadd.s32 8, %v47_v4  ;;  %v49_v8 = vand.u32 7, %v47_v4  ;;  %v1034_v50 = vld [vmem:[%s1712_s3] ss:$0 sm:$0xff]  ;;  %vm1027_vm12 = vcmask 23552  }
   0x5   :  { %v56_v13 = vsel %vm53_vm1, %v54_v9, %v55_v10  ;;  %v60_v14 = vsel %vm53_vm1, 0.0, %v54_v9  ;;  %v61_v21 = vsel %vm53_vm1, %v55_v10, 0.0 }
   0x6   :  { %v50_v11 = vand.u32 7, %v48_v7  ;;  %v70_v12 = vadd.s32 4294967295, %v49_v8  ;;  %v224_v16 = vadd.s32 1, %v49_v8  ;;  %v146_v19 = vpack.c.bf16 %v56_v13, %v60_v14 }
   0x7   :  { %1150 = vmatpush3.bf16.msra.mxu0 %v1263_v3  ;;  %v147_v25 = vpack.c.bf16 %v61_v21, %v61_v21 }
   0x8   :  { %1155 = vmatprep.subr.bf16.mxu0 %v1316_v1  ;;  %v71_v15 = vadd.s32 4294967295, %v50_v11  ;;  %vm72_vm2 = vcmp.ge.s32.totalorder %v70_v12, 0  ;;  %v225_v17 = vadd.s32 1, %v50_v11  ;;  %vm228_vm4 = vcmp.lt.s32.totalorder %v224_v16, 8 }
   0x9   :  { %v1409_v18 = vsel %vm72_vm2, 1.0, %v1316_v1  ;;  %v157_v26 = vshll.u32 %v146_v19, 16  ;;  %v232_v28 = vsel %vm228_vm4, 1.0, %v1316_v1  ;;  %v155_v31 = vshrl.u32 %v146_v19, 16 }
   0xa   :  { %vm73_vm3 = vcmp.ge.s32.totalorder %v71_v15, 0  ;;  %v80_v20 = vmul.f32 %v1409_v18, %v60_v14  ;;  %vm229_vm5 = vcmp.lt.s32.totalorder %v225_v17, 8  ;;  %v162_v33 = vshll.u32 %v147_v25, 16 }
   0xb   :  { %v1414_v22 = vsel %vm73_vm3, 1.0, %v1316_v1  ;;  %v233_v29 = vsel %vm229_vm5, 1.0, %v1316_v1  ;;  %v159_v32 = vrot.slane %v157_v26, 1  ;;  %v1429_v34 = vrot.slane %v232_v28, 6 }
   0xc   :  { %v81_v23 = vmul.f32 %v1414_v22, %v56_v13  ;;  %v1431_v35 = vrot.slane %v233_v29, 6  ;;  %v164_v37 = vrot.slane %v162_v33, 1 }
   0xd   :  { %v160_v36 = vor.u32 %v159_v32, %v155_v31  ;;  %v243_v41 = vmul.f32 %v1429_v34, %v60_v14 }
   0xe   :  { %v82_v27 = vpack.c.bf16 %v81_v23, %v80_v20  ;;  %v1436_v38 = vsel %vm236_vm7, %v1429_v34, %v1431_v35  ;;  %v245_v43 = vmul.f32 %v1431_v35, %v61_v21 }
   0xf   :  { %v165_v39 = vsel %vm153_vm8, %v160_v36, %v164_v37  ;;  %v244_v42 = vmul.f32 %v1436_v38, %v56_v13 }
  0x10   :  { %1152 = vmatmul.mubr.msk.bf16.vlgmr.msra.gmra.mrb[0].mxu0 %vm99_vm6, %v82_v27  ;;  %v247_v46 = vpack.c.bf16 %v245_v43, %v245_v43 }
  0x11   :  { %1156 = vmatpush3.bf16.msra.mxu0 %v1264_v24  ;;  %1159 = vmatprep.mubr.msk.bf16.mxu0 %vm1317_vm0, %v1316_v1  ;;  %v246_v45 = vpack.c.bf16 %v244_v42, %v243_v41 }
  0x12   :  { %1157 = vmatprep.subr.bf16.mxu0 %v1316_v1  ;;  %v257_v48 = vrot.slane %v247_v46, 1  ;;  %v1269_v46 = vld [vmem:[%s1713_s6 + $0x8] sm:$0xff]  }
  0x13   :  { %v256_v47 = vrot.slane %v246_v45, 1  ;;  %v1268_v45 = vld [vmem:[%s1713_s6] sm:$0xff]  }
  0x14   :  { %1172 = vmatpush3.bf16.msra.mxu1 %v1268_v45  ;;  %v1278_v45 = vld [vmem:[%s1713_s6 + $0x50] sm:$0xff]  }
  0x15   :  { %1158 = vmatpush3.bf16.msra.mxu0 %v1265_v30  ;;  %v258_v49 = vsel %vm255_vm9, %v256_v47, %v257_v48  ;;  %1173 = vmatprep.subr.bf16.mxu1 %v1316_v1  ;;  %v1270_v47 = vld [vmem:[%s1713_s6 + $0x10] sm:$0xff]   ;;  %v1271_v48 = vld [vmem:[%s1713_s6 + $0x18] sm:$0xff]  }
  0x16   :  { %1163 = vmatprep.subr.bf16.mxu0 %v1316_v1 }
  0x18   :  { %1174 = vmatpush3.bf16.msra.mxu1 %v1269_v46 }
  0x19   :  { %1175 = vmatprep.subr.bf16.mxu1 %v1316_v1 }
  0x1c   :  { %1160 = vmatmul.mubr.msk.bf16.vlgmr.msra.gmra.mrb[0].mxu0 %vm99_vm6, %v165_v39  ;;  %1176 = vmatpush3.bf16.msra.mxu1 %v1270_v47 }
  0x1d   :  { %1164 = vmatpush3.bf16.msra.mxu0 %v1266_v40  ;;  %1167 = vmatprep.mubr.msk.bf16.mxu0 %vm1317_vm0, %v1316_v1 }
  0x1e   :  { %1165 = vmatprep.subr.bf16.mxu0 %v1316_v1  ;;  %1177 = vmatprep.subr.bf16.mxu1 %v1316_v1 }
  0x20   :  { %1178 = vmatpush3.bf16.msra.mxu1 %v1271_v48  ;;  %v1279_v48 = vld [vmem:[%s1713_s6 + $0x58] sm:$0xff]  }
  0x21   :  { %1166 = vmatpush3.bf16.msra.mxu0 %v1267_v44  ;;  %1179 = vmatprep.subr.bf16.mxu1 %v1316_v1 }
  0x22   :  { %1219 = vmatprep.subr.bf16.mxu0 %v1316_v1 }
  0x28   :  { %1168 = vmatmul.mubr.msk.bf16.vlgmr.msra.gmra.mrb[0].mxu0 %vm99_vm6, %v258_v49  ;;  %v1272_v49 = vld [vmem:[%s1713_s6 + $0x20] sm:$0xff]  }
  0x29   :  { %1231 = vmatprep.mubr.msk.bf16.mxu0 %vm1317_vm0, %v1316_v1  ;;  %1180 = vmatpush3.bf16.msra.mxu1 %v1272_v49 }
  0x2a   :  { %1181 = vmatprep.subr.bf16.mxu1 %v1316_v1 }
  0xfb   :  { %v308_v51 = vpop.f32.mrb[0].mxu0 }
  0xfc   :  { %v1235_v52 = vadd.f32 %v1034_v50, %v308_v51  ;;  %v1169_v53 = vpop.f32.mrb[1].mxu0 }
  0xfd   :  { %v311_v54 = vpop.f32.mrb[2].mxu0 }
  0xfe   :  { %v317_v55 = vmax.f32 %v1235_v52, 0.0  ;;  %v1236_v56 = vadd.f32 %v1034_v50, %v311_v54  ;;  %v1170_v57 = vpop.f32.mrb[3].mxu0  ;;  %v1273_v50 = vld [vmem:[%s1713_s6 + $0x28] sm:$0xff]  }
  0xff   :  { %1182 = vmatpush3.bf16.msra.mxu1 %v1273_v50 }
 0x100   :  { %390 = vrot.lane.b32.xlu1 %v317_v55, %s1318_s19  ;;  %350 = vrot.lane.b32.xlu0 %v317_v55, %s1319_s20  ;;  %v318_v58 = vmax.f32 %v1236_v56, 0.0  ;;  %v321_v4 = vsel %vm99_vm6, %v317_v55, 0.0 }
 0x101   :  { %1187 = vmatprep.subr.bf16.mxu1 %v1316_v1 }
 0x102   :  { %v324_v5 = vsel %vm99_vm6, %v318_v58, 0.0 }
 0x104   :  { %392 = vrot.lane.b32.xlu1 %v318_v58, %s1318_s19  ;;  %352 = vrot.lane.b32.xlu0 %v318_v58, %s1319_s20 }
 0x172   :  { %v391_v59 = vpop.permute.xlu1 %390  ;;  %v351_v60 = vpop.permute.xlu0 %350 }
 0x173   :  { %v356_v61 = vsel %vm99_vm6, %v351_v60, 0.0  ;;  %v396_v63 = vsel %vm99_vm6, %v391_v59, 0.0 }
 0x174   :  { %357 = vadd.xlane.f32.xlu0 %v356_v61 }
 0x176   :  { %v353_v62 = vpop.permute.xlu0 %352  ;;  %v393_v2 = vpop.permute.xlu1 %392 }
 0x177   :  { %v359_v0 = vsel %vm99_vm6, %v353_v62, 0.0  ;;  %v399_v3 = vsel %vm99_vm6, %v393_v2, 0.0 }
 0x178   :  { %397 = vadd.xlane.f32.xlu0 %v396_v63  ;;  %360 = vadd.xlane.f32.xlu1 %v359_v0 }
 0x17c   :  { %400 = vadd.xlane.f32.xlu0 %v399_v3  ;;  %322 = vadd.xlane.f32.xlu1 %v321_v4 }
 0x180   :  { %325 = vadd.xlane.f32.xlu0 %v324_v5 }
 0x201   :  { %v358_v6 = vpop.xlane.xlu0 %357 }
 0x202   :  { %v362_v7 = vmul.f32 0.03125, %v358_v6 }
 0x204   :  { %v1470_v8 = vsub.f32 %v317_v55, %v362_v7 }
 0x205   :  { %v361_v9 = vpop.xlane.xlu1 %360  ;;  %v398_v10 = vpop.xlane.xlu0 %397 }
 0x206   :  { %v363_v11 = vmul.f32 0.03125, %v361_v9  ;;  %v402_v12 = vmul.f32 0.03125, %v398_v10  ;;  %v366_v13 = vmul.f32 %v1470_v8, %v1470_v8 }
 0x208   :  { %v1474_v14 = vsub.f32 %v318_v58, %v363_v11  ;;  %v1476_v15 = vsub.f32 %v317_v55, %v402_v12  ;;  %370 = vrot.lane.b32.xlu1 %v366_v13, %s1319_s20 }
 0x209   :  { %v401_v16 = vpop.xlane.xlu0 %400  ;;  %v323_v24 = vpop.xlane.xlu1 %322 }
 0x20a   :  { %v403_v17 = vmul.f32 0.03125, %v401_v16  ;;  %v406_v19 = vmul.f32 %v1476_v15, %v1476_v15  ;;  %v367_v20 = vmul.f32 %v1474_v14, %v1474_v14  ;;  %v328_v25 = vmul.f32 0.03125, %v323_v24 }
 0x20c   :  { %v1483_v21 = vsub.f32 %v318_v58, %v403_v17  ;;  %410 = vrot.lane.b32.xlu1 %v406_v19, %s1318_s19  ;;  %372 = vrot.lane.b32.xlu0 %v367_v20, %s1319_s20  ;;  %v1490_v26 = vsub.f32 %v317_v55, %v328_v25  ;;  %v1052_v17 = vld [vmem:[%s1714_s4] ss:$0 sm:$0xff] }
 0x20d   :  { %v326_v27 = vpop.xlane.xlu0 %325 }
 0x20e   :  { %v407_v23 = vmul.f32 %v1483_v21, %v1483_v21  ;;  %v332_v28 = vmul.f32 %v1490_v26, %v1490_v26  ;;  %v329_v29 = vmul.f32 0.03125, %v326_v27 }
 0x210   :  { %412 = vrot.lane.b32.xlu1 %v407_v23, %s1318_s19  ;;  %v334_v30 = vsel %vm99_vm6, %v332_v28, 0.0  ;;  %v1495_v31 = vsub.f32 %v318_v58, %v329_v29 }
 0x212   :  { %v333_v32 = vmul.f32 %v1495_v31, %v1495_v31 }
 0x214   :  { %v337_v33 = vsel %vm99_vm6, %v333_v32, 0.0 }
 0x22b   :  { %335 = vadd.xlane.f32.xlu0 %v334_v30 }
 0x234   :  { %338 = vadd.xlane.f32.xlu1 %v337_v33 }
 0x27a   :  { %v371_v36 = vpop.permute.xlu1 %370 }
 0x27b   :  { %v376_v37 = vsel %vm99_vm6, %v371_v36, 0.0 }
 0x27c   :  { %377 = vadd.xlane.f32.xlu0 %v376_v37 }
 0x27e   :  { %v411_v39 = vpop.permute.xlu1 %410  ;;  %v373_v40 = vpop.permute.xlu0 %372 }
 0x27f   :  { %v416_v41 = vsel %vm99_vm6, %v411_v39, 0.0  ;;  %v379_v42 = vsel %vm99_vm6, %v373_v40, 0.0 }
 0x280   :  { %417 = vadd.xlane.f32.xlu1 %v416_v41  ;;  %380 = vadd.xlane.f32.xlu0 %v379_v42  ;;  %v1275_v41 = vld [vmem:[%s1713_s6 + $0x38] sm:$0xff]   ;;  %v1277_v42 = vld [vmem:[%s1713_s6 + $0x48] sm:$0xff]  }
 0x282   :  { %v413_v43 = vpop.permute.xlu1 %412 }
 0x283   :  { %v419_v44 = vsel %vm99_vm6, %v413_v43, 0.0 }
 0x284   :  { %420 = vadd.xlane.f32.xlu0 %v419_v44 }
 0x2b8   :  { %v336_v51 = vpop.xlane.xlu0 %335 }
 0x2b9   :  { %v340_v53 = vmul.f32 0.03125, %v336_v51 }
 0x2bb   :  { %v342_v57 = vadd.f32 1e-05, %v340_v53  ;;  %v1280_v53 = vld [vmem:[%s1713_s6 + $0x60] sm:$0xff]  }
 0x2c1   :  { %v339_v52 = vpop.xlane.xlu1 %338 }
 0x2c2   :  { %v341_v54 = vmul.f32 0.03125, %v339_v52 }
 0x2c4   :  { %v343_v59 = vadd.f32 1e-05, %v341_v54 }
 0x309   :  { %v378_v55 = vpop.xlane.xlu0 %377 }
 0x30a   :  { %v382_v56 = vmul.f32 0.03125, %v378_v55  ;;  %v1281_v55 = vld [vmem:[%s1713_s6 + $0x68] sm:$0xff]  }
 0x30c   :  { %v384_v58 = vadd.f32 1e-05, %v382_v56  ;;  %v1282_v56 = vld [vmem:[%s1713_s6 + $0x70] sm:$0xff]  }
 0x30d   :  { %v418_v60 = vpop.xlane.xlu1 %417  ;;  %v381_v61 = vpop.xlane.xlu0 %380 }
 0x30e   :  { %1292 = vrsqrt.f32 %v384_v58  ;;  %v422_v62 = vmul.f32 0.03125, %v418_v60  ;;  %v383_v63 = vmul.f32 0.03125, %v381_v61  ;;  %v1284_v60 = vld [vmem:[%s1713_s6 + $0x80] sm:$0xff]  }
 0x30f   :  { %1294 = vrsqrt.f32 %v342_v57  ;;  %v1283_v57 = vld [vmem:[%s1713_s6 + $0x78] sm:$0xff]  }
 0x310   :  { %v424_v0 = vadd.f32 1e-05, %v422_v62  ;;  %v385_v2 = vadd.f32 1e-05, %v383_v63  ;;  %1296 = vrsqrt.f32 %v343_v59 }
 0x311   :  { %v421_v3 = vpop.xlane.xlu0 %420 }
 0x312   :  { %1298 = vrsqrt.f32 %v424_v0  ;;  %v423_v4 = vmul.f32 0.03125, %v421_v3  ;;  %v1285_v0 = vld [vmem:[%s1713_s6 + $0x88] sm:$0xff]  }
 0x313   :  { %1300 = vrsqrt.f32 %v385_v2 }
 0x314   :  { %v425_v5 = vadd.f32 1e-05, %v423_v4 }
 0x316   :  { %1302 = vrsqrt.f32 %v425_v5 }
 0x318   :  { %v1293_v6 = vpop.eup %1292 }
 0x319   :  { %v1295_v7 = vpop.eup %1294  ;;  %v388_v9 = vmul.f32 %v1293_v6, %v1470_v8  ;;  %v1053_v8 = vld [vmem:[%s1715_s5] ss:$0 sm:$0xff] }
 0x31a   :  { %v1297_v10 = vpop.eup %1296  ;;  %v346_v12 = vmul.f32 %v1295_v7, %v1490_v26 }
 0x31b   :  { %v347_v25 = vmul.f32 %v1297_v10, %v1495_v31 }
 0x31c   :  { %v1299_v11 = vpop.eup %1298  ;;  %v430_v19 = vsel %vm99_vm6, %v346_v12, %v388_v9 }
 0x31d   :  { %v1301_v13 = vpop.eup %1300  ;;  %v428_v16 = vmul.f32 %v1299_v11, %v1476_v15 }
 0x31e   :  { %v389_v20 = vmul.f32 %v1301_v13, %v1474_v14 }
 0x31f   :  { %v433_v23 = vsel %vm432_vm10, %v430_v19, %v428_v16 }
 0x320   :  { %v1303_v24 = vpop.eup %1302  ;;  %v441_v26 = vmul.f32 %v1052_v17, %v433_v23  ;;  %v431_v27 = vsel %vm99_vm6, %v347_v25, %v389_v20 }
 0x321   :  { %v429_v15 = vmul.f32 %v1303_v24, %v1483_v21  ;;  %v1274_v21 = vld [vmem:[%s1713_s6 + $0x30] sm:$0xff]  }
 0x322   :  { %v449_v28 = vadd.f32 %v1053_v8, %v441_v26 }
 0x323   :  { %v434_v29 = vsel %vm432_vm10, %v431_v27, %v429_v15 }
 0x324   :  { %v442_v30 = vmul.f32 %v1052_v17, %v434_v29  ;;  %v453_v32 = vrot.slane %v449_v28, 7 }
 0x326   :  { %v450_v14 = vadd.f32 %v1053_v8, %v442_v30  ;;  %v459_v36 = vsel %vm53_vm1, 0.0, %v453_v32 }
 0x327   :  { %v469_v39 = vmul.f32 %v459_v36, %v1409_v18  ;;  %v1276_v18 = vld [vmem:[%s1713_s6 + $0x40] sm:$0xff]   ;;  %v676_v61 = vmul.f32 %v459_v36, %v1429_v34 }
 0x328   :  { %v454_v33 = vrot.slane %v450_v14, 7  ;;  %v1054_v34 = vld [vmem:[%s1716_s7] ss:$0 sm:$0xff] }
 0x32a   :  { %v455_v37 = vsel %vm53_vm1, %v453_v32, %v454_v33  ;;  %v460_v43 = vsel %vm53_vm1, %v454_v33, 0.0 }
 0x32b   :  { %v470_v31 = vmul.f32 %v455_v37, %v1414_v22  ;;  %v567_v22 = vpack.c.bf16 %v455_v37, %v459_v36  ;;  %v568_v46 = vpack.c.bf16 %v460_v43, %v460_v43  ;;  %v677_v58 = vmul.f32 %v455_v37, %v1436_v38 }
 0x32c   :  { %v678_v59 = vmul.f32 %v460_v43, %v1431_v35 }
 0x32d   :  { %v471_v40 = vpack.c.bf16 %v470_v31, %v469_v39  ;;  %v585_v44 = vshll.u32 %v567_v22, 16  ;;  %v583_v49 = vshrl.u32 %v567_v22, 16  ;;  %v590_v50 = vshll.u32 %v568_v46, 16 }
 0x32e   :  { %v679_v62 = vpack.c.bf16 %v677_v58, %v676_v61  ;;  %v680_v63 = vpack.c.bf16 %v678_v59, %v678_v59  ;;  %v1286_v58 = vld [vmem:[%s1717_s10] sm:$0xff]   ;;  %v1287_v59 = vld [vmem:[%s1717_s10 + $0x8] sm:$0xff]   ;;  %v1289_v61 = vld [vmem:[%s1717_s10 + $0x18] sm:$0xff]  }
 0x32f   :  { %1184 = vmatmul.mubr.msk.bf16.vlgmr.msra.gmra.mrb[0].mxu1 %vm520_vm11, %v471_v40  ;;  %v587_v47 = vrot.slane %v585_v44, 1  ;;  %v592_v52 = vrot.slane %v590_v50, 1  ;;  %1220 = vmatpush3.bf16.msra.mxu0 %v1286_v58 }
 0x330   :  { %1188 = vmatpush3.bf16.msra.mxu1 %v1274_v21  ;;  %1199 = vmatprep.mubr.msk.bf16.mxu1 %vm1317_vm0, %v1316_v1  ;;  %v696_v38 = vrot.slane %v679_v62, 1  ;;  %v697_v35 = vrot.slane %v680_v63, 1  ;;  %v1290_v62 = vld [vmem:[%s1717_s10 + $0x20] sm:$0xff]   ;;  %v1291_v63 = vld [vmem:[%s1717_s10 + $0x28] sm:$0xff]  }
 0x331   :  { %1189 = vmatprep.subr.bf16.mxu1 %v1316_v1  ;;  %v588_v51 = vor.u32 %v587_v47, %v583_v49  ;;  %1221 = vmatprep.subr.bf16.mxu0 %v1316_v1 }
 0x332   :  { %v698_v2 = vsel %vm255_vm9, %v696_v38, %v697_v35  ;;  %v44_v38 = vld [vmem:[%s1718_s1] sm:$0xff]  ;;  %v45_v35 = vld [vmem:[%s1718_s1 + $0x8] sm:$0xff] }
 0x333   :  { %v593_v54 = vsel %vm153_vm8, %v588_v51, %v592_v52  ;;  %1222 = vmatpush3.bf16.msra.mxu0 %v1287_v59 }
 0x334   :  { %1190 = vmatpush3.bf16.msra.mxu1 %v1275_v41  ;;  %1223 = vmatprep.subr.bf16.mxu0 %v1316_v1 }
 0x335   :  { %1191 = vmatprep.subr.bf16.mxu1 %v1316_v1 }
 0x338   :  { %1192 = vmatpush3.bf16.msra.mxu1 %v1276_v18 }
 0x339   :  { %1193 = vmatprep.subr.bf16.mxu1 %v1316_v1 }
 0x33c   :  { %1194 = vmatpush3.bf16.msra.mxu1 %v1277_v42 }
 0x33d   :  { %1195 = vmatprep.subr.bf16.mxu1 %v1316_v1 }
 0x340   :  { %1196 = vmatpush3.bf16.msra.mxu1 %v1278_v45 }
 0x341   :  { %1197 = vmatprep.subr.bf16.mxu1 %v1316_v1 }
 0x344   :  { %1198 = vmatpush3.bf16.msra.mxu1 %v1279_v48 }
 0x345   :  { %1203 = vmatprep.subr.bf16.mxu1 %v1316_v1 }
 0x347   :  { %1200 = vmatmul.mubr.msk.bf16.vlgmr.msra.gmra.mrb[0].mxu1 %vm520_vm11, %v593_v54 }
 0x348   :  { %1204 = vmatpush3.bf16.msra.mxu1 %v1280_v53  ;;  %1215 = vmatprep.mubr.msk.bf16.mxu1 %vm1317_vm0, %v1316_v1 }
 0x349   :  { %1205 = vmatprep.subr.bf16.mxu1 %v1316_v1 }
 0x34c   :  { %1206 = vmatpush3.bf16.msra.mxu1 %v1281_v55 }
 0x34d   :  { %1207 = vmatprep.subr.bf16.mxu1 %v1316_v1 }
 0x350   :  { %1208 = vmatpush3.bf16.msra.mxu1 %v1282_v56 }
 0x351   :  { %1209 = vmatprep.subr.bf16.mxu1 %v1316_v1 }
 0x354   :  { %1210 = vmatpush3.bf16.msra.mxu1 %v1283_v57 }
 0x355   :  { %1211 = vmatprep.subr.bf16.mxu1 %v1316_v1 }
 0x358   :  { %1212 = vmatpush3.bf16.msra.mxu1 %v1284_v60  ;;  %v1288_v60 = vld [vmem:[%s1717_s10 + $0x10] sm:$0xff]  }
 0x359   :  { %1213 = vmatprep.subr.bf16.mxu1 %v1316_v1  ;;  %1224 = vmatpush3.bf16.msra.mxu0 %v1288_v60 }
 0x35a   :  { %1225 = vmatprep.subr.bf16.mxu0 %v1316_v1 }
 0x35c   :  { %1214 = vmatpush3.bf16.msra.mxu1 %v1285_v0  ;;  %v1320_v0 = vmov 0  }
 0x35d   :  { %1226 = vmatpush3.bf16.msra.mxu0 %v1289_v61  ;;  %1260 = vset.pattern.permute.xlu1 %v1320_v0 }
 0x35e   :  { %1227 = vmatprep.subr.bf16.mxu0 %v1316_v1  ;;  %1261 = vset.pattern.permute.xlu0 %v1320_v0 }
 0x35f   :  { %1216 = vmatmul.mubr.msk.bf16.vlgmr.msra.gmra.mrb[0].mxu1 %vm520_vm11, %v698_v2  ;;  %v1013_v2 = vsub.f32 1.0, %v44_v38 }
 0x361   :  { %1228 = vmatpush3.bf16.msra.mxu0 %v1290_v62 }
 0x362   :  { %1229 = vmatprep.subr.bf16.mxu0 %v1316_v1 }
 0x365   :  { %1230 = vmatpush3.bf16.msra.mxu0 %v1291_v63 }
 0x432   :  { %v772_v3 = vpop.f32.mrb[0].mxu1 }
 0x433   :  { %v1237_v4 = vadd.f32 %v1054_v34, %v772_v3  ;;  %v1217_v5 = vpop.f32.mrb[1].mxu1 }
 0x434   :  { %v775_v6 = vpop.f32.mrb[2].mxu1 }
 0x435   :  { %v781_v7 = vmax.f32 %v1237_v4, 0.0  ;;  %v1238_v9 = vadd.f32 %v1054_v34, %v775_v6  ;;  %v1218_v10 = vpop.f32.mrb[3].mxu1  ;;  %v1014_v34 = vsub.f32 1.0, %v45_v35 }
 0x437   :  { %v782_v11 = vmax.f32 %v1238_v9, 0.0  ;;  %813 = vrot.lane.b32.xlu1 %v781_v7, %s1319_s20  ;;  %v785_v23 = vsel %vm99_vm6, %v781_v7, 0.0 }
 0x439   :  { %815 = vrot.lane.b32.xlu0 %v782_v11, %s1319_s20  ;;  %v788_v25 = vsel %vm99_vm6, %v782_v11, 0.0 }
 0x43b   :  { %853 = vrot.lane.b32.xlu1 %v781_v7, %s1318_s19 }
 0x43f   :  { %855 = vrot.lane.b32.xlu1 %v782_v11, %s1318_s19 }
 0x4a9   :  { %v814_v12 = vpop.permute.xlu1 %813 }
 0x4aa   :  { %v819_v13 = vsel %vm99_vm6, %v814_v12, 0.0 }
 0x4ab   :  { %820 = vadd.xlane.f32.xlu0 %v819_v13  ;;  %v816_v16 = vpop.permute.xlu0 %815 }
 0x4ac   :  { %v822_v17 = vsel %vm99_vm6, %v816_v16, 0.0 }
 0x4ad   :  { %v854_v19 = vpop.permute.xlu1 %853  ;;  %823 = vadd.xlane.f32.xlu1 %v822_v17 }
 0x4ae   :  { %v859_v20 = vsel %vm99_vm6, %v854_v19, 0.0 }
 0x4af   :  { %860 = vadd.xlane.f32.xlu0 %v859_v20 }
 0x4b1   :  { %v856_v8 = vpop.permute.xlu1 %855  ;;  %786 = vadd.xlane.f32.xlu1 %v785_v23 }
 0x4b2   :  { %v862_v24 = vsel %vm99_vm6, %v856_v8, 0.0 }
 0x4b3   :  { %863 = vadd.xlane.f32.xlu0 %v862_v24 }
 0x4b7   :  { %789 = vadd.xlane.f32.xlu0 %v788_v25 }
 0x538   :  { %v821_v26 = vpop.xlane.xlu0 %820 }
 0x539   :  { %v825_v15 = vmul.f32 0.03125, %v821_v26 }
 0x53a   :  { %v824_v27 = vpop.xlane.xlu1 %823 }
 0x53b   :  { %v1621_v28 = vsub.f32 %v781_v7, %v825_v15  ;;  %v826_v29 = vmul.f32 0.03125, %v824_v27 }
 0x53c   :  { %v861_v30 = vpop.xlane.xlu0 %860 }
 0x53d   :  { %v1623_v32 = vsub.f32 %v782_v11, %v826_v29  ;;  %v865_v14 = vmul.f32 0.03125, %v861_v30  ;;  %v829_v33 = vmul.f32 %v1621_v28, %v1621_v28 }
 0x53e   :  { %v787_v18 = vpop.xlane.xlu1 %786 }
 0x53f   :  { %v1627_v36 = vsub.f32 %v781_v7, %v865_v14  ;;  %833 = vrot.lane.b32.xlu1 %v829_v33, %s1319_s20  ;;  %v830_v37 = vmul.f32 %v1623_v32, %v1623_v32  ;;  %v791_v22 = vmul.f32 0.03125, %v787_v18 }
 0x540   :  { %v864_v39 = vpop.xlane.xlu0 %863 }
 0x541   :  { %v866_v31 = vmul.f32 0.03125, %v864_v39  ;;  %835 = vrot.lane.b32.xlu0 %v830_v37, %s1319_s20  ;;  %v869_v21 = vmul.f32 %v1627_v36, %v1627_v36  ;;  %v1641_v42 = vsub.f32 %v781_v7, %v791_v22 }
 0x543   :  { %v1635_v40 = vsub.f32 %v782_v11, %v866_v31  ;;  %873 = vrot.lane.b32.xlu1 %v869_v21, %s1318_s19  ;;  %v795_v44 = vmul.f32 %v1641_v42, %v1641_v42  ;;  %v1100_v31 = vld [vmem:[%s1719_s8] ss:$0 sm:$0xff] }
 0x544   :  { %v790_v43 = vpop.xlane.xlu0 %789 }
 0x545   :  { %v870_v41 = vmul.f32 %v1635_v40, %v1635_v40  ;;  %v792_v45 = vmul.f32 0.03125, %v790_v43  ;;  %v797_v46 = vsel %vm99_vm6, %v795_v44, 0.0 }
 0x547   :  { %875 = vrot.lane.b32.xlu1 %v870_v41, %s1318_s19  ;;  %v1646_v47 = vsub.f32 %v782_v11, %v792_v45 }
 0x549   :  { %v796_v48 = vmul.f32 %v1646_v47, %v1646_v47 }
 0x54b   :  { %v800_v49 = vsel %vm99_vm6, %v796_v48, 0.0 }
 0x560   :  { %798 = vadd.xlane.f32.xlu0 %v797_v46 }
 0x56b   :  { %801 = vadd.xlane.f32.xlu1 %v800_v49 }
 0x5b1   :  { %v834_v50 = vpop.permute.xlu1 %833 }
 0x5b2   :  { %v839_v51 = vsel %vm99_vm6, %v834_v50, 0.0 }
 0x5b3   :  { %840 = vadd.xlane.f32.xlu0 %v839_v51  ;;  %v836_v52 = vpop.permute.xlu0 %835 }
 0x5b4   :  { %v842_v55 = vsel %vm99_vm6, %v836_v52, 0.0 }
 0x5b5   :  { %v874_v53 = vpop.permute.xlu1 %873 }
 0x5b6   :  { %v879_v54 = vsel %vm99_vm6, %v874_v53, 0.0 }
 0x5b7   :  { %880 = vadd.xlane.f32.xlu1 %v879_v54  ;;  %843 = vadd.xlane.f32.xlu0 %v842_v55 }
 0x5b9   :  { %v876_v56 = vpop.permute.xlu1 %875 }
 0x5ba   :  { %v882_v57 = vsel %vm99_vm6, %v876_v56, 0.0 }
 0x5bb   :  { %883 = vadd.xlane.f32.xlu0 %v882_v57 }
 0x5c8   :  { %1017 = vperm.xlu1 %1260, %v1013_v2  }
 0x5d1   :  { %1022 = vperm.xlu0 %1261, %v1014_v34  }
 0x5ed   :  { %v799_v3 = vpop.xlane.xlu0 %798 }
 0x5ee   :  { %v803_v5 = vmul.f32 0.03125, %v799_v3 }
 0x5f0   :  { %v805_v9 = vadd.f32 1e-05, %v803_v5 }
 0x5f8   :  { %v802_v4 = vpop.xlane.xlu1 %801 }
 0x5f9   :  { %v804_v1 = vmul.f32 0.03125, %v802_v4 }
 0x5fb   :  { %v806_v11 = vadd.f32 1e-05, %v804_v1 }
 0x640   :  { %v841_v6 = vpop.xlane.xlu0 %840 }
 0x641   :  { %v845_v7 = vmul.f32 0.03125, %v841_v6 }
 0x643   :  { %v847_v10 = vadd.f32 1e-05, %v845_v7 }
 0x644   :  { %v881_v12 = vpop.xlane.xlu1 %880  ;;  %v844_v13 = vpop.xlane.xlu0 %843 }
 0x645   :  { %1304 = vrsqrt.f32 %v847_v10  ;;  %v885_v16 = vmul.f32 0.03125, %v881_v12  ;;  %v846_v17 = vmul.f32 0.03125, %v844_v13 }
 0x646   :  { %1306 = vrsqrt.f32 %v805_v9 }
 0x647   :  { %v887_v19 = vadd.f32 1e-05, %v885_v16  ;;  %v848_v20 = vadd.f32 1e-05, %v846_v17  ;;  %1308 = vrsqrt.f32 %v806_v11 }
 0x648   :  { %v884_v23 = vpop.xlane.xlu0 %883  ;;  %v1018_v48 = vpop.permute.xlu1 %1017 }
 0x649   :  { %1310 = vrsqrt.f32 %v887_v19  ;;  %v886_v8 = vmul.f32 0.03125, %v884_v23 }
 0x64a   :  { %1312 = vrsqrt.f32 %v848_v20 }
 0x64b   :  { %v888_v24 = vadd.f32 1e-05, %v886_v8 }
 0x64d   :  { %1314 = vrsqrt.f32 %v888_v24 }
 0x64f   :  { %v1305_v25 = vpop.eup %1304 }
 0x650   :  { %v1307_v26 = vpop.eup %1306  ;;  %v851_v15 = vmul.f32 %v1305_v25, %v1621_v28  ;;  %v1023_v52 = vpop.permute.xlu0 %1022 }
 0x651   :  { %v1309_v27 = vpop.eup %1308  ;;  %v809_v30 = vmul.f32 %v1307_v26, %v1641_v42 }
 0x652   :  { %v810_v28 = vmul.f32 %v1309_v27, %v1646_v47  ;;  %v1102_v47 = vld [vmem:[%s1721_s11] ss:$0 sm:$0xff] }
 0x653   :  { %v1311_v29 = vpop.eup %1310  ;;  %v893_v37 = vsel %vm99_vm6, %v809_v30, %v851_v15 }
 0x654   :  { %v1313_v14 = vpop.eup %1312  ;;  %v891_v33 = vmul.f32 %v1311_v29, %v1627_v36  ;;  %v1101_v36 = vld [vmem:[%s1720_s9] ss:$0 sm:$0xff] }
 0x655   :  { %v852_v39 = vmul.f32 %v1313_v14, %v1623_v32 }
 0x656   :  { %v895_v21 = vsel %vm432_vm10, %v893_v37, %v891_v33 }
 0x657   :  { %v1315_v41 = vpop.eup %1314  ;;  %v894_v22 = vsel %vm99_vm6, %v810_v28, %v852_v39  ;;  %v903_v42 = vmul.f32 %v1100_v31, %v895_v21 }
 0x658   :  { %v892_v18 = vmul.f32 %v1315_v41, %v1635_v40 }
 0x659   :  { %v911_v44 = vadd.f32 %v1101_v36, %v903_v42 }
 0x65a   :  { %v896_v32 = vsel %vm432_vm10, %v894_v22, %v892_v18 }
 0x65b   :  { %v904_v43 = vmul.f32 %v1100_v31, %v896_v32 }
 0x65d   :  { %v912_v45 = vadd.f32 %v1101_v36, %v904_v43 }
 0x65f   :  { %v913_v46 = vpack.c.bf16 %v912_v45, %v911_v44 }
 0x661   :  { %1232 = vmatmul.mubr.msk.bf16.vlgmr.msra.gmra.mrb[4].mxu0 %vm520_vm11, %v913_v46 }
 0x734   :  { %v1006_v40 = vpop.f32.mrb[4].mxu0 }
 0x735   :  { %v1007_v49 = vadd.f32 %v1102_v47, %v1006_v40  ;;  %v1233_v50 = vpop.f32.mrb[5].mxu0 }
 0x736   :  { %v1009_v51 = vpop.f32.mrb[6].mxu0 }
 0x737   :  { %v1025_v53 = vmul.f32 %v1018_v48, %v1007_v49  ;;  %v1010_v54 = vadd.f32 %v1102_v47, %v1009_v51  ;;  %v1234_v55 = vpop.f32.mrb[7].mxu0 }
 0x739   :  { %1028 = vst.msk [vmem:[%s1722_s12] sm:$0xff] %vm1027_vm12, %v1025_v53  ;;  %v1026_v56 = vmul.f32 %v1023_v52, %v1010_v54 }
 0x73b   :  { %1029 = vst.msk [vmem:[%s1722_s12 + $0x8] sm:$0xff] %vm1027_vm12, %v1026_v56 }

// kernel: jets_forward.6
= control target key start
LH: loop header
LB: loop body
LE: loop exit
PB: predicated region body
PF: predicated region fallthrough
CT: control target
= control target key end

     0   :  { %vm6851_vm0 = vcmask 261120   ;;  %vm284_vm1 = vcmask 130048   ;;  %s4849_s24 = smov 96   ;;  %s4851_s17 = smov 80   ;;  %s6835_s3 = inlined_call_operand.vmem [shape: bf16[32,96], index: 3, kind: input, shape index: {}]   ;;  %s6836_s0 = inlined_call_operand.vmem [shape: f32[128,32], index: 0, kind: input, shape index: {}]   ;;  %s6837_s4 = inlined_call_operand.vmem [shape: f32[1,96], index: 4, kind: input, shape index: {}]   ;;  %s6838_s1 = inlined_call_operand.vmem [shape: f32[128,128], index: 1, kind: input, shape index: {}]   ;;  %s6839_s5 = inlined_call_operand.vmem [shape: bf16[32,32], index: 5, kind: input, shape index: {}]   ;;  %s6840_s2 = inlined_call_operand.vmem [shape: f32[128,1], index: 2, kind: input, shape index: {}]   ;;  %s6841_s6 = inlined_call_operand.vmem [shape: f32[1,32], index: 6, kind: input, shape index: {}]   ;;  %s6842_s9 = inlined_call_operand.vmem [shape: bf16[3,32,64], index: 9, kind: input, shape index: {}]   ;;  %s6843_s7 = inlined_call_operand.vmem [shape: f32[1,32], index: 7, kind: input, shape index: {}]   ;;  %s6844_s8 = inlined_call_operand.vmem [shape: f32[1,32], index: 8, kind: input, shape index: {}]   ;;  %s6845_s11 = inlined_call_operand.vmem [shape: bf16[3,64,32], index: 11, kind: input, shape index: {}]   ;;  %s6846_s10 = inlined_call_operand.vmem [shape: f32[1,64], index: 10, kind: input, shape index: {}]   ;;  %s6847_s12 = inlined_call_operand.vmem [shape: f32[1,32], index: 12, kind: input, shape index: {}]   ;;  %s6848_s13 = inlined_call_operand.vmem [shape: f32[1,32], index: 13, kind: input, shape index: {}]   ;;  %s6849_s14 = inlined_call_operand.vmem [shape: f32[1,32], index: 14, kind: input, shape index: {}]   ;;  %s6850_s15 = inlined_call_operand.vmem [shape: f32[128,32], index: 15, kind: output, shape index: {}]  }
   0x1   :  { %v4619_v0 = vld [vmem:[%s6835_s3] sm:$0xff]   ;;  %v4620_v1 = vld [vmem:[%s6835_s3 + $0x8] sm:$0xff]   ;;  %v53_v5 = vld [vmem:[%s6836_s0 + $0x10] sm:$0xff]  ;;  %s4853_s25 = smov 48   ;;  %s4854_s29 = smov 16  }
   0x2   :  { %4140 = vmatprep.subr.bf16.mxu0 %v4619_v0  ;;  %v51_v2 = vld [vmem:[%s6836_s0] sm:$0xff]  ;;  %v52_v3 = vld [vmem:[%s6836_s0 + $0x8] sm:$0xff]  ;;  %v54_v6 = vld [vmem:[%s6836_s0 + $0x18] sm:$0xff] }
   0x3   :  { %4141 = vmatpush3.bf16.msra.mxu0 %v4619_v0  ;;  %v99_v4 = vpack.c.bf16 %v52_v3, %v51_v2  ;;  %v55_v7 = vld [vmem:[%s6836_s0 + $0x20] sm:$0xff]  ;;  %v56_v8 = vld [vmem:[%s6836_s0 + $0x28] sm:$0xff]  ;;  %v100_v9 = vpack.c.bf16 %v54_v6, %v53_v5  ;;  %v57_v11 = vld [vmem:[%s6836_s0 + $0x30] sm:$0xff] }
   0x4   :  { %4142 = vmatprep.subr.bf16.mxu0 %v4620_v1  ;;  %v101_v10 = vpack.c.bf16 %v56_v8, %v55_v7  ;;  %v58_v12 = vld [vmem:[%s6836_s0 + $0x38] sm:$0xff]  ;;  %v59_v13 = vld [vmem:[%s6836_s0 + $0x40] sm:$0xff]  ;;  %v60_v14 = vld [vmem:[%s6836_s0 + $0x48] sm:$0xff] }
   0x5   :  { %4144 = vmatprep.mubr.msk.bf16.mxu0 %vm6851_vm0, %v99_v4  ;;  %v102_v15 = vpack.c.bf16 %v58_v12, %v57_v11  ;;  %v103_v16 = vpack.c.bf16 %v60_v14, %v59_v13  ;;  %v61_v17 = vld [vmem:[%s6836_s0 + $0x50] sm:$0xff]  ;;  %v62_v18 = vld [vmem:[%s6836_s0 + $0x58] sm:$0xff]  ;;  %v63_v19 = vld [vmem:[%s6836_s0 + $0x60] sm:$0xff] }
   0x6   :  { %v64_v20 = vld [vmem:[%s6836_s0 + $0x68] sm:$0xff]  ;;  %v104_v21 = vpack.c.bf16 %v62_v18, %v61_v17  ;;  %v65_v23 = vld [vmem:[%s6836_s0 + $0x70] sm:$0xff]  ;;  %v66_v24 = vld [vmem:[%s6836_s0 + $0x78] sm:$0xff] }
   0x7   :  { %4143 = vmatpush3.bf16.msra.mxu0 %v4620_v1  ;;  %v105_v22 = vpack.c.bf16 %v64_v20, %v63_v19  ;;  %v106_v25 = vpack.c.bf16 %v66_v24, %v65_v23  ;;  %v3856_v27 = vld [vmem:[%s6837_s4] ss:$0 sm:$0xff]  ;;  %s4850_s4 = smov 64  }
   0xa   :  { %4145 = vmatmul.mubr.msk.bf16.vlgmr.msra.gmra.mrb[0].mxu0 %vm6851_vm0, %v100_v9 }
   0xb   :  { %4148 = vmatprep.mubr.msk.bf16.mxu0 %vm6851_vm0, %v101_v10 }
  0x12   :  { %4149 = vmatmul.mubr.msk.bf16.gmra.mrb[4].mxu0 %vm6851_vm0, %v102_v15 }
  0x13   :  { %4152 = vmatprep.mubr.msk.bf16.mxu0 %vm6851_vm0, %v103_v16 }
  0x1a   :  { %4153 = vmatmul.mubr.msk.bf16.gmra.mrb[8].mxu0 %vm6851_vm0, %v104_v21 }
  0x1b   :  { %4156 = vmatprep.mubr.msk.bf16.mxu0 %vm6851_vm0, %v105_v22 }
  0x22   :  { %4157 = vmatmul.mubr.msk.bf16.gmra.mrb[12].mxu0 %vm6851_vm0, %v106_v25 }
  0xdd   :  { %v4146_v26 = vpop.f32.mrb[0].mxu0 }
  0xde   :  { %v189_v28 = vpop.f32.mrb[1].mxu0  ;;  %v198_v30 = vadd.f32 %v4146_v26, %v3856_v27 }
  0xdf   :  { %v4147_v29 = vpop.f32.mrb[2].mxu0  ;;  %v190_v33 = vadd.f32 %v3856_v27, %v189_v28 }
  0xe0   :  { %v201_v31 = vadd.f32 %v4147_v29, %v3856_v27  ;;  %v192_v32 = vpop.f32.mrb[3].mxu0  ;;  %v5084_v29 = vld [vmem:[%s6838_s1 + $0x8] sm:$0xff] }
  0xe1   :  { %v193_v34 = vadd.f32 %v3856_v27, %v192_v32  ;;  %v5089_v32 = vld [vmem:[%s6838_s1] sm:$0xff]  ;;  %vm447_vm3 = vcmp.gt.f32.partialorder %v5084_v29, 0.5 }
  0xe2   :  { %v5003_v35 = vpack.c.bf16 %v201_v31, %v198_v30  ;;  %vm446_vm4 = vcmp.gt.f32.partialorder %v5089_v32, 0.5 }
  0xe3   :  { %v5005_v36 = vpack.c.bf16 %v193_v34, %v190_v33 }
  0xe5   :  { %268 = vrot.lane.b32.xlu0 %v5005_v36, %s4849_s24  ;;  %4176 = vmatprep.mubr.msk.bf16.mxu1 %vm284_vm1, %v5005_v36  ;;  %v4150_v37 = vpop.f32.mrb[4].mxu0 }
  0xe6   :  { %v214_v38 = vadd.f32 %v4150_v37, %v3856_v27  ;;  %v205_v39 = vpop.f32.mrb[5].mxu0 }
  0xe7   :  { %v206_v40 = vadd.f32 %v3856_v27, %v205_v39  ;;  %v4151_v41 = vpop.f32.mrb[6].mxu0 }
  0xe8   :  { %v217_v42 = vadd.f32 %v4151_v41, %v3856_v27  ;;  %v208_v43 = vpop.f32.mrb[7].mxu0 }
  0xe9   :  { %v209_v44 = vadd.f32 %v3856_v27, %v208_v43  ;;  %270 = vrot.lane.b32.xlu0 %v5003_v35, %s4849_s24 }
  0xea   :  { %v5013_v45 = vpack.c.bf16 %v217_v42, %v214_v38 }
  0xeb   :  { %v5015_v46 = vpack.c.bf16 %v209_v44, %v206_v40  ;;  %v5101_v40 = vld [vmem:[%s6838_s1 + $0x18] sm:$0xff] }
  0xec   :  { %vm449_vm5 = vcmp.gt.f32.partialorder %v5101_v40, 0.5 }
  0xed   :  { %272 = vrot.lane.b32.xlu1 %v5015_v46, %s4849_s24  ;;  %v4154_v47 = vpop.f32.mrb[8].mxu0 }
  0xee   :  { %v230_v48 = vadd.f32 %v4154_v47, %v3856_v27  ;;  %v221_v49 = vpop.f32.mrb[9].mxu0 }
  0xef   :  { %v222_v50 = vadd.f32 %v3856_v27, %v221_v49  ;;  %v4155_v51 = vpop.f32.mrb[10].mxu0 }
  0xf0   :  { %v233_v52 = vadd.f32 %v4155_v51, %v3856_v27  ;;  %v224_v53 = vpop.f32.mrb[11].mxu0 }
  0xf1   :  { %274 = vrot.lane.b32.xlu1 %v5013_v45, %s4849_s24  ;;  %v225_v54 = vadd.f32 %v3856_v27, %v224_v53 }
  0xf2   :  { %v5021_v55 = vpack.c.bf16 %v233_v52, %v230_v48 }
  0xf3   :  { %v5023_v56 = vpack.c.bf16 %v225_v54, %v222_v50 }
  0xf5   :  { %v4158_v57 = vpop.f32.mrb[12].mxu0  ;;  %278 = vrot.lane.b32.xlu1 %v5021_v55, %s4849_s24  ;;  %276 = vrot.lane.b32.xlu0 %v5023_v56, %s4849_s24 }
  0xf6   :  { %v246_v58 = vadd.f32 %v4158_v57, %v3856_v27  ;;  %v237_v59 = vpop.f32.mrb[13].mxu0 }
  0xf7   :  { %v238_v60 = vadd.f32 %v3856_v27, %v237_v59  ;;  %v4159_v61 = vpop.f32.mrb[14].mxu0 }
  0xf8   :  { %v249_v62 = vadd.f32 %v4159_v61, %v3856_v27  ;;  %v240_v63 = vpop.f32.mrb[15].mxu0  ;;  %v5126_v61 = vld [vmem:[%s6838_s1 + $0x30] sm:$0xff] }
  0xf9   :  { %v241_v0 = vadd.f32 %v3856_v27, %v240_v63  ;;  %v5078_v27 = vld [vmem:[%s6838_s1 + $0x10] sm:$0xff]  ;;  %vm452_vm6 = vcmp.gt.f32.partialorder %v5126_v61, 0.5  ;;  %v5132_v63 = vld [vmem:[%s6838_s1 + $0x20] sm:$0xff] }
  0xfa   :  { %v5029_v1 = vpack.c.bf16 %v249_v62, %v246_v58  ;;  %vm448_vm2 = vcmp.gt.f32.partialorder %v5078_v27, 0.5  ;;  %vm450_vm7 = vcmp.gt.f32.partialorder %v5132_v63, 0.5 }
  0xfb   :  { %v5031_v2 = vpack.c.bf16 %v241_v0, %v238_v60  ;;  %v5137_v0 = vld [vmem:[%s6838_s1 + $0x38] sm:$0xff] }
  0xfc   :  { %282 = vrot.lane.b32.xlu1 %v5029_v1, %s4849_s24  ;;  %vm453_vm8 = vcmp.gt.f32.partialorder %v5137_v0, 0.5 }
  0xfd   :  { %280 = vrot.lane.b32.xlu0 %v5031_v2, %s4849_s24 }
 0x100   :  { %630 = vrot.lane.b32.xlu1 %v5005_v36, %s4850_s4 }
 0x101   :  { %632 = vrot.lane.b32.xlu0 %v5003_v35, %s4850_s4 }
 0x104   :  { %634 = vrot.lane.b32.xlu1 %v5015_v46, %s4850_s4 }
 0x105   :  { %636 = vrot.lane.b32.xlu0 %v5013_v45, %s4850_s4 }
 0x108   :  { %638 = vrot.lane.b32.xlu1 %v5023_v56, %s4850_s4 }
 0x10c   :  { %640 = vrot.lane.b32.xlu1 %v5021_v55, %s4850_s4 }
 0x110   :  { %644 = vrot.lane.b32.xlu1 %v5029_v1, %s4850_s4 }
 0x114   :  { %642 = vrot.lane.b32.xlu1 %v5031_v2, %s4850_s4 }
 0x157   :  { %v269_v3 = vpop.permute.xlu0 %268 }
 0x158   :  { %4552 = vmatprep.subr.msk.bf16.mxu1 %vm284_vm1, %v269_v3  ;;  %v310_v4 = vsel %vm284_vm1, %v269_v3, 0 }
 0x159   :  { %4161 = vmatpush3.bf16.xpose.msra.mxu1 %v310_v4 }
 0x15b   :  { %v271_v5 = vpop.permute.xlu0 %270 }
 0x15c   :  { %4553 = vmatprep.subr.msk.bf16.mxu1 %vm284_vm1, %v271_v5  ;;  %v313_v7 = vsel %vm284_vm1, %v271_v5, 0 }
 0x15f   :  { %v273_v6 = vpop.permute.xlu1 %272 }
 0x160   :  { %v316_v9 = vsel %vm284_vm1, %v273_v6, 0 }
 0x161   :  { %4163 = vmatpush3.bf16.xpose.msra.mxu1 %v313_v7  ;;  %v5154_v7 = vld [vmem:[%s6838_s1 + $0x28] sm:$0xff] }
 0x162   :  { %4554 = vmatprep.subr.msk.bf16.mxu1 %vm284_vm1, %v273_v6  ;;  %v5149_v6 = vld [vmem:[%s6838_s1 + $0x50] sm:$0xff]  ;;  %vm451_vm10 = vcmp.gt.f32.partialorder %v5154_v7, 0.5 }
 0x163   :  { %v275_v8 = vpop.permute.xlu1 %274  ;;  %vm456_vm9 = vcmp.gt.f32.partialorder %v5149_v6, 0.5 }
 0x164   :  { %v319_v14 = vsel %vm284_vm1, %v275_v8, 0 }
 0x167   :  { %v279_v10 = vpop.permute.xlu1 %278  ;;  %v277_v11 = vpop.permute.xlu0 %276 }
 0x168   :  { %v322_v18 = vsel %vm284_vm1, %v277_v11, 0  ;;  %v325_v22 = vsel %vm284_vm1, %v279_v10, 0 }
 0x169   :  { %4165 = vmatpush3.bf16.xpose.msra.mxu1 %v316_v9 }
 0x16a   :  { %4555 = vmatprep.subr.msk.bf16.mxu1 %vm284_vm1, %v275_v8 }
 0x16e   :  { %v283_v12 = vpop.permute.xlu1 %282 }
 0x16f   :  { %v281_v13 = vpop.permute.xlu0 %280  ;;  %v331_v26 = vsel %vm284_vm1, %v283_v12, 0 }
 0x170   :  { %v328_v25 = vsel %vm284_vm1, %v281_v13, 0 }
 0x171   :  { %4167 = vmatpush3.bf16.xpose.msra.mxu1 %v319_v14 }
 0x172   :  { %v631_v15 = vpop.permute.xlu1 %630  ;;  %4556 = vmatprep.subr.msk.bf16.mxu1 %vm284_vm1, %v277_v11 }
 0x173   :  { %4192 = vmatprep.subr.bf16.mxu0 %v631_v15  ;;  %v633_v16 = vpop.permute.xlu0 %632 }
 0x174   :  { %4193 = vmatpush3.bf16.msra.mxu0 %v631_v15 }
 0x175   :  { %4194 = vmatprep.subr.bf16.mxu0 %v633_v16 }
 0x176   :  { %v635_v17 = vpop.permute.xlu1 %634 }
 0x177   :  { %v637_v20 = vpop.permute.xlu0 %636 }
 0x178   :  { %4195 = vmatpush3.bf16.msra.mxu0 %v633_v16 }
 0x179   :  { %4169 = vmatpush3.bf16.xpose.msra.mxu1 %v322_v18  ;;  %4196 = vmatprep.subr.bf16.mxu0 %v635_v17  ;;  %v5193_v18 = vld [vmem:[%s6838_s1 + $0x70] sm:$0xff] }
 0x17a   :  { %v639_v19 = vpop.permute.xlu1 %638  ;;  %4557 = vmatprep.subr.msk.bf16.mxu1 %vm284_vm1, %v279_v10  ;;  %vm6852_vm13 = vcmp.gt.f32.partialorder %v5193_v18, 0.5 }
 0x17c   :  { %4197 = vmatpush3.bf16.msra.mxu0 %v635_v17 }
 0x17d   :  { %4198 = vmatprep.subr.bf16.mxu0 %v637_v20 }
 0x17e   :  { %v641_v21 = vpop.permute.xlu1 %640 }
 0x180   :  { %4199 = vmatpush3.bf16.msra.mxu0 %v637_v20 }
 0x181   :  { %4171 = vmatpush3.bf16.xpose.msra.mxu1 %v325_v22  ;;  %4200 = vmatprep.subr.bf16.mxu0 %v639_v19 }
 0x182   :  { %v645_v23 = vpop.permute.xlu1 %644  ;;  %4558 = vmatprep.subr.msk.bf16.mxu1 %vm284_vm1, %v281_v13  ;;  %v5176_v13 = vld [vmem:[%s6838_s1 + $0x58] sm:$0xff] }
 0x183   :  { %vm457_vm12 = vcmp.gt.f32.partialorder %v5176_v13, 0.5 }
 0x184   :  { %4201 = vmatpush3.bf16.msra.mxu0 %v639_v19  ;;  %v5198_v19 = vld [vmem:[%s6838_s1 + $0x48] sm:$0xff] }
 0x185   :  { %4202 = vmatprep.subr.bf16.mxu0 %v641_v21  ;;  %vm455_vm14 = vcmp.gt.f32.partialorder %v5198_v19, 0.5 }
 0x186   :  { %v643_v24 = vpop.permute.xlu1 %642 }
 0x188   :  { %4203 = vmatpush3.bf16.msra.mxu0 %v641_v21 }
 0x189   :  { %4173 = vmatpush3.bf16.xpose.msra.mxu1 %v328_v25  ;;  %4204 = vmatprep.subr.bf16.mxu0 %v643_v24  ;;  %v5220_v25 = vld [vmem:[%s6838_s1 + $0x78] sm:$0xff] }
 0x18a   :  { %4559 = vmatprep.subr.msk.bf16.mxu1 %vm284_vm1, %v283_v12  ;;  %v5171_v12 = vld [vmem:[%s6838_s1 + $0x40] sm:$0xff]  ;;  %vm461_vm0 = vcmp.gt.f32.partialorder %v5220_v25, 0.5 }
 0x18b   :  { %vm454_vm11 = vcmp.gt.f32.partialorder %v5171_v12, 0.5 }
 0x18c   :  { %4205 = vmatpush3.bf16.msra.mxu0 %v643_v24  ;;  %v5215_v24 = vld [vmem:[%s6838_s1 + $0x60] sm:$0xff] }
 0x18d   :  { %4206 = vmatprep.subr.bf16.mxu0 %v645_v23  ;;  %vm458_vm15 = vcmp.gt.f32.partialorder %v5215_v24, 0.5 }
 0x190   :  { %4207 = vmatpush3.bf16.msra.mxu0 %v645_v23 }
 0x191   :  { %4175 = vmatpush3.bf16.xpose.msra.mxu1 %v331_v26 }
 0x198   :  { %4177 = vmatmul.mubr.msk.bf16.vlgmr.msra.gmra.mrb[0].mxu1 %vm284_vm1, %v5003_v35 }
 0x199   :  { %4180 = vmatprep.mubr.msk.bf16.mxu1 %vm284_vm1, %v5015_v46 }
 0x1a0   :  { %4181 = vmatmul.mubr.msk.bf16.gmra.mrb[4].mxu1 %vm284_vm1, %v5013_v45 }
 0x1a1   :  { %4184 = vmatprep.mubr.msk.bf16.mxu1 %vm284_vm1, %v5023_v56 }
 0x1a8   :  { %4185 = vmatmul.mubr.msk.bf16.gmra.mrb[8].mxu1 %vm284_vm1, %v5021_v55 }
 0x1a9   :  { %4188 = vmatprep.mubr.msk.bf16.mxu1 %vm284_vm1, %v5031_v2 }
 0x1b0   :  { %4189 = vmatmul.mubr.msk.bf16.gmra.mrb[12].mxu1 %vm284_vm1, %v5029_v1 }
 0x26b   :  { %v4178_v28 = vpop.f32.mrb[0].mxu1 }
 0x26c   :  { %v432_v30 = vmul.f32 0.25, %v4178_v28  ;;  %v367_v31 = vpop.f32.mrb[1].mxu1 }
 0x26d   :  { %v4179_v33 = vpop.f32.mrb[2].mxu1  ;;  %v430_v34 = vmul.f32 0.25, %v367_v31 }
 0x26e   :  { %v370_v37 = vpop.f32.mrb[3].mxu1  ;;  %v5093_v38 = vsel %vm448_vm2, -1e+09, %v432_v30  ;;  %v433_v42 = vmul.f32 0.25, %v4179_v33  ;;  %v5237_v33 = vld [vmem:[%s6838_s1 + $0x68] sm:$0xff]  ;;  %s4852_s1 = smov 112  }
 0x26f   :  { %v431_v39 = vmul.f32 0.25, %v370_v37  ;;  %482 = vmax.xlane.f32.xlu0 %v5093_v38  ;;  %v5110_v43 = vsel %vm446_vm4, -1e+09, %v430_v34 }
 0x270   :  { %v5116_v50 = vsel %vm449_vm5, -1e+09, %v433_v42 }
 0x271   :  { %v5105_v41 = vsel %vm447_vm3, -1e+09, %v431_v39 }
 0x272   :  { %480 = vmax.xlane.f32.xlu1 %v5105_v41 }
 0x273   :  { %478 = vmax.xlane.f32.xlu0 %v5110_v43  ;;  %v4182_v44 = vpop.f32.mrb[4].mxu1 }
 0x274   :  { %v383_v47 = vpop.f32.mrb[5].mxu1  ;;  %v436_v62 = vmul.f32 0.25, %v4182_v44 }
 0x275   :  { %v4183_v48 = vpop.f32.mrb[6].mxu1  ;;  %v434_v3 = vmul.f32 0.25, %v383_v47 }
 0x276   :  { %v386_v49 = vpop.f32.mrb[7].mxu1  ;;  %v5141_v4 = vsel %vm452_vm6, -1e+09, %v436_v62  ;;  %v437_v5 = vmul.f32 0.25, %v4183_v48 }
 0x277   :  { %484 = vmax.xlane.f32.xlu0 %v5116_v50  ;;  %v5158_v9 = vsel %vm450_vm7, -1e+09, %v434_v3  ;;  %v435_v10 = vmul.f32 0.25, %v386_v49 }
 0x278   :  { %v5163_v11 = vsel %vm453_vm8, -1e+09, %v437_v5 }
 0x279   :  { %v5185_v17 = vsel %vm451_vm10, -1e+09, %v435_v10 }
 0x27b   :  { %v4186_v51 = vpop.f32.mrb[8].mxu1 }
 0x27c   :  { %v399_v52 = vpop.f32.mrb[9].mxu1  ;;  %v440_v8 = vmul.f32 0.25, %v4186_v51 }
 0x27d   :  { %v4187_v53 = vpop.f32.mrb[10].mxu1  ;;  %v438_v14 = vmul.f32 0.25, %v399_v52 }
 0x27e   :  { %v402_v54 = vpop.f32.mrb[11].mxu1  ;;  %v5180_v15 = vsel %vm456_vm9, -1e+09, %v440_v8  ;;  %v441_v16 = vmul.f32 0.25, %v4187_v53 }
 0x27f   :  { %v5202_v21 = vsel %vm454_vm11, -1e+09, %v438_v14  ;;  %v439_v22 = vmul.f32 0.25, %v402_v54 }
 0x280   :  { %v5207_v23 = vsel %vm457_vm12, -1e+09, %v441_v16 }
 0x281   :  { %v5229_v31 = vsel %vm455_vm14, -1e+09, %v439_v22 }
 0x283   :  { %769 = vrot.lane.b32.xlu1 %v5003_v35, %s4851_s17  ;;  %v4190_v57 = vpop.f32.mrb[12].mxu1 }
 0x284   :  { %v415_v58 = vpop.f32.mrb[13].mxu1  ;;  %v444_v20 = vmul.f32 0.25, %v4190_v57 }
 0x285   :  { %v4191_v59 = vpop.f32.mrb[14].mxu1  ;;  %v442_v26 = vmul.f32 0.25, %v415_v58 }
 0x286   :  { %v418_v60 = vpop.f32.mrb[15].mxu1  ;;  %v5224_v28 = vsel %vm6852_vm13, -1e+09, %v444_v20  ;;  %v445_v30 = vmul.f32 0.25, %v4191_v59  ;;  %vm459_vm13 = vcmp.gt.f32.partialorder %v5237_v33, 0.5 }
 0x287   :  { %v5241_v34 = vsel %vm458_vm15, -1e+09, %v442_v26  ;;  %v443_v37 = vmul.f32 0.25, %v418_v60 }
 0x288   :  { %v5246_v39 = vsel %vm461_vm0, -1e+09, %v445_v30 }
 0x289   :  { %v5252_v42 = vsel %vm459_vm13, -1e+09, %v443_v37 }
 0x28d   :  { %767 = vrot.lane.b32.xlu0 %v5005_v36, %s4851_s17 }
 0x2a7   :  { %490 = vmax.xlane.f32.xlu1 %v5141_v4 }
 0x2ab   :  { %486 = vmax.xlane.f32.xlu1 %v5158_v9 }
 0x2ac   :  { %492 = vmax.xlane.f32.xlu0 %v5163_v11 }
 0x2af   :  { %498 = vmax.xlane.f32.xlu1 %v5180_v15 }
 0x2b0   :  { %488 = vmax.xlane.f32.xlu0 %v5185_v17 }
 0x2b3   :  { %494 = vmax.xlane.f32.xlu1 %v5202_v21 }
 0x2b4   :  { %500 = vmax.xlane.f32.xlu0 %v5207_v23 }
 0x2b7   :  { %506 = vmax.xlane.f32.xlu1 %v5224_v28 }
 0x2b8   :  { %496 = vmax.xlane.f32.xlu0 %v5229_v31 }
 0x2bb   :  { %502 = vmax.xlane.f32.xlu1 %v5241_v34 }
 0x2bc   :  { %508 = vmax.xlane.f32.xlu0 %v5246_v39 }
 0x2c0   :  { %504 = vmax.xlane.f32.xlu0 %v5252_v42 }
 0x2cc   :  { %771 = vrot.lane.b32.xlu1 %v5015_v46, %s4851_s17 }
 0x2fc   :  { %v483_v44 = vpop.xlane.xlu0 %482 }
 0x2fd   :  { %v512_v47 = vsub.f32 %v5093_v38, %v483_v44 }
 0x2ff   :  { %v530_v48 = vmul.f32 1.442695, %v512_v47  ;;  %v481_v52 = vpop.xlane.xlu1 %480 }
 0x300   :  { %v479_v49 = vpop.xlane.xlu0 %478  ;;  %v511_v57 = vsub.f32 %v5105_v41, %v481_v52 }
 0x301   :  { %4641 = vpow2.f32 %v530_v48  ;;  %v510_v51 = vsub.f32 %v5110_v43, %v479_v49 }
 0x302   :  { %v528_v62 = vmul.f32 1.442695, %v511_v57 }
 0x303   :  { %v526_v53 = vmul.f32 1.442695, %v510_v51  ;;  %v5277_v3 = vpop.permute.xlu1 %769 }
 0x304   :  { %v485_v54 = vpop.xlane.xlu0 %484 }
 0x305   :  { %4643 = vpow2.f32 %v526_v53  ;;  %v513_v58 = vsub.f32 %v5116_v50, %v485_v54 }
 0x307   :  { %v532_v59 = vmul.f32 1.442695, %v513_v58 }
 0x308   :  { %v5261_v60 = vpop.permute.xlu0 %767 }
 0x309   :  { %4645 = vpow2.f32 %v532_v59  ;;  %4560 = vmatprep.subr.msk.bf16.mxu0 %vm284_vm1, %v5261_v60 }
 0x30a   :  { %4647 = vpow2.f32 %v528_v62 }
 0x30b   :  { %v5265_v38 = vpop.eup %4641 }
 0x30c   :  { %562 = vadd.xlane.f32.xlu0 %v5265_v38 }
 0x30f   :  { %v5268_v43 = vpop.eup %4643 }
 0x310   :  { %558 = vadd.xlane.f32.xlu1 %v5268_v43 }
 0x313   :  { %v5271_v41 = vpop.eup %4645 }
 0x314   :  { %564 = vadd.xlane.f32.xlu0 %v5271_v41  ;;  %v5274_v50 = vpop.eup %4647 }
 0x318   :  { %560 = vadd.xlane.f32.xlu0 %v5274_v50 }
 0x334   :  { %v491_v5 = vpop.xlane.xlu1 %490 }
 0x335   :  { %v516_v8 = vsub.f32 %v5141_v4, %v491_v5 }
 0x337   :  { %v538_v10 = vmul.f32 1.442695, %v516_v8 }
 0x338   :  { %v487_v14 = vpop.xlane.xlu1 %486 }
 0x339   :  { %4649 = vpow2.f32 %v538_v10  ;;  %v514_v16 = vsub.f32 %v5158_v9, %v487_v14  ;;  %v493_v20 = vpop.xlane.xlu0 %492 }
 0x33a   :  { %v517_v22 = vsub.f32 %v5163_v11, %v493_v20 }
 0x33b   :  { %v534_v26 = vmul.f32 1.442695, %v514_v16 }
 0x33c   :  { %v540_v30 = vmul.f32 1.442695, %v517_v22  ;;  %v499_v53 = vpop.xlane.xlu1 %498 }
 0x33d   :  { %4651 = vpow2.f32 %v534_v26  ;;  %v489_v37 = vpop.xlane.xlu0 %488  ;;  %v520_v57 = vsub.f32 %v5180_v15, %v499_v53 }
 0x33e   :  { %v515_v44 = vsub.f32 %v5185_v17, %v489_v37  ;;  %4653 = vpow2.f32 %v540_v30 }
 0x33f   :  { %v546_v62 = vmul.f32 1.442695, %v520_v57 }
 0x340   :  { %v536_v47 = vmul.f32 1.442695, %v515_v44  ;;  %v495_v58 = vpop.xlane.xlu1 %494 }
 0x341   :  { %v501_v17 = vpop.xlane.xlu0 %500  ;;  %v518_v5 = vsub.f32 %v5202_v21, %v495_v58 }
 0x342   :  { %4655 = vpow2.f32 %v536_v47  ;;  %v521_v10 = vsub.f32 %v5207_v23, %v501_v17 }
 0x343   :  { %v5283_v48 = vpop.eup %4649  ;;  %v542_v8 = vmul.f32 1.442695, %v518_v5 }
 0x344   :  { %570 = vadd.xlane.f32.xlu0 %v5283_v48  ;;  %v507_v14 = vpop.xlane.xlu1 %506  ;;  %v548_v16 = vmul.f32 1.442695, %v521_v10 }
 0x345   :  { %v497_v49 = vpop.xlane.xlu0 %496  ;;  %v524_v15 = vsub.f32 %v5224_v28, %v507_v14 }
 0x346   :  { %v519_v20 = vsub.f32 %v5229_v31, %v497_v49 }
 0x347   :  { %v5286_v4 = vpop.eup %4651  ;;  %v554_v30 = vmul.f32 1.442695, %v524_v15 }
 0x348   :  { %566 = vadd.xlane.f32.xlu0 %v5286_v4  ;;  %v5289_v9 = vpop.eup %4653  ;;  %v503_v26 = vpop.xlane.xlu1 %502 }
 0x349   :  { %v509_v51 = vpop.xlane.xlu0 %508  ;;  %v522_v23 = vsub.f32 %v5241_v34, %v503_v26 }
 0x34a   :  { %v525_v28 = vsub.f32 %v5246_v39, %v509_v51 }
 0x34b   :  { %v550_v31 = vmul.f32 1.442695, %v522_v23 }
 0x34c   :  { %v5291_v11 = vpop.eup %4655  ;;  %572 = vadd.xlane.f32.xlu0 %v5289_v9  ;;  %v556_v47 = vmul.f32 1.442695, %v525_v28  ;;  %v772_v51 = vpop.permute.xlu1 %771 }
 0x34d   :  { %568 = vadd.xlane.f32.xlu1 %v5291_v11  ;;  %v505_v52 = vpop.xlane.xlu0 %504 }
 0x34e   :  { %v523_v54 = vsub.f32 %v5252_v42, %v505_v52  ;;  %v544_v42 = vmul.f32 1.442695, %v519_v20 }
 0x350   :  { %v552_v59 = vmul.f32 1.442695, %v523_v54 }
 0x352   :  { %4657 = vpow2.f32 %v552_v59 }
 0x353   :  { %4659 = vpow2.f32 %v546_v62 }
 0x354   :  { %4661 = vpow2.f32 %v542_v8 }
 0x355   :  { %4663 = vpow2.f32 %v548_v16 }
 0x356   :  { %4665 = vpow2.f32 %v544_v42  ;;  %v808_v42 = vsel %vm284_vm1, %v5261_v60, 0  ;;  %v814_v60 = vsel %vm284_vm1, %v772_v51, 0 }
 0x357   :  { %4667 = vpow2.f32 %v554_v30 }
 0x358   :  { %4669 = vpow2.f32 %v550_v31 }
 0x359   :  { %4671 = vpow2.f32 %v556_v47 }
 0x35c   :  { %v5306_v22 = vpop.eup %4657 }
 0x35d   :  { %v5310_v21 = vpop.eup %4659 }
 0x35e   :  { %773 = vrot.lane.b32.xlu1 %v5013_v45, %s4851_s17  ;;  %v5314_v37 = vpop.eup %4661 }
 0x35f   :  { %v5318_v44 = vpop.eup %4663 }
 0x360   :  { %v5321_v17 = vpop.eup %4665 }
 0x361   :  { %v5326_v34 = vpop.eup %4667 }
 0x362   :  { %775 = vrot.lane.b32.xlu0 %v5023_v56, %s4851_s17  ;;  %v5331_v39 = vpop.eup %4669 }
 0x363   :  { %v5336_v49 = vpop.eup %4671 }
 0x366   :  { %777 = vrot.lane.b32.xlu0 %v5021_v55, %s4851_s17 }
 0x382   :  { %584 = vadd.xlane.f32.xlu1 %v5306_v22 }
 0x385   :  { %578 = vadd.xlane.f32.xlu0 %v5310_v21 }
 0x389   :  { %574 = vadd.xlane.f32.xlu0 %v5314_v37 }
 0x38d   :  { %580 = vadd.xlane.f32.xlu0 %v5318_v44 }
 0x391   :  { %576 = vadd.xlane.f32.xlu0 %v5321_v17 }
 0x393   :  { %781 = vrot.lane.b32.xlu1 %v5029_v1, %s4851_s17 }
 0x395   :  { %586 = vadd.xlane.f32.xlu0 %v5326_v34 }
 0x397   :  { %759 = vrot.lane.b32.xlu1 %v5023_v56, %s4852_s1 }
 0x399   :  { %582 = vadd.xlane.f32.xlu0 %v5331_v39  ;;  %v563_v52 = vpop.xlane.xlu0 %562 }
 0x39b   :  { %763 = vrot.lane.b32.xlu1 %v5031_v2, %s4852_s1 }
 0x39d   :  { %588 = vadd.xlane.f32.xlu0 %v5336_v49  ;;  %v559_v53 = vpop.xlane.xlu1 %558 }
 0x39f   :  { %1114 = vrot.lane.b32.xlu1 %v5003_v35, %s4853_s25 }
 0x3a1   :  { %v565_v54 = vpop.xlane.xlu0 %564 }
 0x3a2   :  { %4673 = vrcp.f32 %v565_v54 }
 0x3a3   :  { %4675 = vrcp.f32 %v559_v53 }
 0x3a4   :  { %4677 = vrcp.f32 %v563_v52 }
 0x3a5   :  { %v561_v57 = vpop.xlane.xlu0 %560 }
 0x3a6   :  { %4679 = vrcp.f32 %v561_v57 }
 0x3ac   :  { %v4674_v58 = vpop.eup %4673 }
 0x3ad   :  { %v4676_v59 = vpop.eup %4675  ;;  %v609_v8 = vmul.f32 %v4674_v58, %v5271_v41 }
 0x3ae   :  { %v4678_v62 = vpop.eup %4677  ;;  %v606_v10 = vmul.f32 %v4676_v59, %v5268_v43 }
 0x3af   :  { %v608_v16 = vmul.f32 %v4678_v62, %v5265_v38  ;;  %v811_v38 = vsel %vm284_vm1, %v5277_v3, 0 }
 0x3b0   :  { %v4680_v5 = vpop.eup %4679 }
 0x3b1   :  { %v607_v14 = vmul.f32 %v4680_v5, %v5274_v50  ;;  %v623_v15 = vpack.c.bf16 %v609_v8, %v608_v16 }
 0x3b3   :  { %779 = vrot.lane.b32.xlu0 %v5031_v2, %s4851_s17  ;;  %v622_v20 = vpack.c.bf16 %v607_v14, %v606_v10 }
 0x3b5   :  { %4208 = vmatprep.mubr.bf16.mxu0 %v622_v20 }
 0x3b6   :  { %4209 = vmatmul.mubr.bf16.vlgmr.msra.gmra.mrb[16].mxu0 %v623_v15 }
 0x3b7   :  { %4225 = vmatpush3.bf16.xpose.msra.mxu0 %v808_v42  ;;  %751 = vrot.lane.b32.xlu0 %v5005_v36, %s4852_s1 }
 0x3b8   :  { %4561 = vmatprep.subr.msk.bf16.mxu0 %vm284_vm1, %v5277_v3 }
 0x3bb   :  { %753 = vrot.lane.b32.xlu0 %v5003_v35, %s4852_s1 }
 0x3bf   :  { %4227 = vmatpush3.bf16.xpose.msra.mxu0 %v811_v38  ;;  %755 = vrot.lane.b32.xlu0 %v5015_v46, %s4852_s1 }
 0x3c0   :  { %4562 = vmatprep.subr.msk.bf16.mxu0 %vm284_vm1, %v772_v51 }
 0x3c3   :  { %757 = vrot.lane.b32.xlu0 %v5013_v45, %s4852_s1 }
 0x3c7   :  { %4229 = vmatpush3.bf16.xpose.msra.mxu0 %v814_v60  ;;  %761 = vrot.lane.b32.xlu0 %v5021_v55, %s4852_s1 }
 0x3cb   :  { %765 = vrot.lane.b32.xlu0 %v5029_v1, %s4852_s1 }
 0x3cf   :  { %1112 = vrot.lane.b32.xlu0 %v5005_v36, %s4853_s25 }
 0x3d1   :  { %v571_v35 = vpop.xlane.xlu0 %570 }
 0x3d2   :  { %4681 = vrcp.f32 %v571_v35 }
 0x3d5   :  { %v567_v43 = vpop.xlane.xlu0 %566 }
 0x3d6   :  { %4683 = vrcp.f32 %v567_v43 }
 0x3d9   :  { %v573_v41 = vpop.xlane.xlu0 %572 }
 0x3da   :  { %4685 = vrcp.f32 %v573_v41  ;;  %v569_v50 = vpop.xlane.xlu1 %568 }
 0x3db   :  { %4687 = vrcp.f32 %v569_v50 }
 0x3dc   :  { %v4682_v23 = vpop.eup %4681 }
 0x3dd   :  { %v776_v30 = vpop.permute.xlu0 %775  ;;  %v612_v54 = vmul.f32 %v4682_v23, %v5283_v48 }
 0x3de   :  { %v774_v3 = vpop.permute.xlu1 %773  ;;  %v820_v53 = vsel %vm284_vm1, %v776_v30, 0 }
 0x3df   :  { %4563 = vmatprep.subr.msk.bf16.mxu0 %vm284_vm1, %v774_v3  ;;  %v817_v26 = vsel %vm284_vm1, %v774_v3, 0 }
 0x3e0   :  { %4231 = vmatpush3.bf16.xpose.msra.mxu0 %v817_v26  ;;  %v4684_v31 = vpop.eup %4683 }
 0x3e1   :  { %4564 = vmatprep.subr.msk.bf16.mxu0 %vm284_vm1, %v776_v30  ;;  %v610_v51 = vmul.f32 %v4684_v31, %v5286_v4  ;;  %v778_v57 = vpop.permute.xlu0 %777 }
 0x3e2   :  { %v823_v62 = vsel %vm284_vm1, %v778_v57, 0 }
 0x3e4   :  { %v4686_v36 = vpop.eup %4685 }
 0x3e5   :  { %v4688_v28 = vpop.eup %4687  ;;  %v613_v47 = vmul.f32 %v4686_v36, %v5289_v9 }
 0x3e6   :  { %v611_v52 = vmul.f32 %v4688_v28, %v5291_v11 }
 0x3e7   :  { %v625_v59 = vpack.c.bf16 %v613_v47, %v612_v54 }
 0x3e8   :  { %4233 = vmatpush3.bf16.xpose.msra.mxu0 %v820_v53  ;;  %v624_v58 = vpack.c.bf16 %v611_v52, %v610_v51 }
 0x3e9   :  { %4565 = vmatprep.subr.msk.bf16.mxu0 %vm284_vm1, %v778_v57 }
 0x3ea   :  { %4212 = vmatprep.mubr.bf16.mxu0 %v624_v58 }
 0x3eb   :  { %4213 = vmatmul.mubr.bf16.gmra.mrb[20].mxu0 %v625_v59 }
 0x3f0   :  { %4235 = vmatpush3.bf16.xpose.msra.mxu0 %v823_v62 }
 0x40f   :  { %v585_v48 = vpop.xlane.xlu1 %584 }
 0x412   :  { %v579_v9 = vpop.xlane.xlu0 %578 }
 0x413   :  { %v782_v23 = vpop.permute.xlu1 %781 }
 0x414   :  { %v829_v53 = vsel %vm284_vm1, %v782_v23, 0 }
 0x416   :  { %v575_v5 = vpop.xlane.xlu0 %574 }
 0x417   :  { %v760_v58 = vpop.permute.xlu1 %759 }
 0x41a   :  { %v581_v4 = vpop.xlane.xlu0 %580 }
 0x41b   :  { %4689 = vrcp.f32 %v581_v4  ;;  %v764_v59 = vpop.permute.xlu1 %763 }
 0x41c   :  { %4691 = vrcp.f32 %v575_v5 }
 0x41d   :  { %4693 = vrcp.f32 %v579_v9 }
 0x41e   :  { %v577_v11 = vpop.xlane.xlu0 %576 }
 0x41f   :  { %4695 = vrcp.f32 %v577_v11 }
 0x420   :  { %4697 = vrcp.f32 %v585_v48 }
 0x422   :  { %v587_v8 = vpop.xlane.xlu0 %586 }
 0x425   :  { %v4690_v10 = vpop.eup %4689 }
 0x426   :  { %v583_v14 = vpop.xlane.xlu0 %582  ;;  %v4692_v16 = vpop.eup %4691  ;;  %v617_v42 = vmul.f32 %v4690_v10, %v5318_v44 }
 0x427   :  { %4699 = vrcp.f32 %v583_v14  ;;  %v4694_v20 = vpop.eup %4693  ;;  %v614_v60 = vmul.f32 %v4692_v16, %v5314_v37 }
 0x428   :  { %4701 = vrcp.f32 %v587_v8  ;;  %v616_v43 = vmul.f32 %v4694_v20, %v5310_v21 }
 0x429   :  { %v4696_v15 = vpop.eup %4695 }
 0x42a   :  { %v589_v38 = vpop.xlane.xlu0 %588  ;;  %v615_v35 = vmul.f32 %v4696_v15, %v5321_v17  ;;  %v627_v50 = vpack.c.bf16 %v617_v42, %v616_v43  ;;  %v4698_v26 = vpop.eup %4697 }
 0x42b   :  { %4703 = vrcp.f32 %v589_v38  ;;  %v619_v21 = vmul.f32 %v4698_v26, %v5306_v22 }
 0x42c   :  { %v626_v41 = vpack.c.bf16 %v615_v35, %v614_v60 }
 0x42e   :  { %4216 = vmatprep.mubr.bf16.mxu0 %v626_v41  ;;  %v780_v3 = vpop.permute.xlu0 %779 }
 0x42f   :  { %4217 = vmatmul.mubr.bf16.gmra.mrb[24].mxu0 %v627_v50  ;;  %4566 = vmatprep.subr.msk.bf16.mxu0 %vm284_vm1, %v780_v3  ;;  %v826_v30 = vsel %vm284_vm1, %v780_v3, 0 }
 0x430   :  { %4237 = vmatpush3.bf16.xpose.msra.mxu0 %v826_v30 }
 0x431   :  { %v4700_v44 = vpop.eup %4699  ;;  %4567 = vmatprep.subr.msk.bf16.mxu0 %vm284_vm1, %v782_v23 }
 0x432   :  { %v752_v37 = vpop.permute.xlu0 %751  ;;  %v618_v17 = vmul.f32 %v4700_v44, %v5331_v39  ;;  %v4702_v31 = vpop.eup %4701 }
 0x433   :  { %v620_v51 = vmul.f32 %v4702_v31, %v5326_v34 }
 0x434   :  { %v628_v36 = vpack.c.bf16 %v619_v21, %v618_v17 }
 0x435   :  { %v4704_v28 = vpop.eup %4703 }
 0x436   :  { %4220 = vmatprep.mubr.bf16.mxu0 %v628_v36  ;;  %v754_v47 = vpop.permute.xlu0 %753  ;;  %v621_v52 = vmul.f32 %v4704_v28, %v5336_v49  ;;  %v1115_v49 = vpop.permute.xlu1 %1114 }
 0x438   :  { %4239 = vmatpush3.bf16.xpose.msra.mxu0 %v829_v53  ;;  %v629_v54 = vpack.c.bf16 %v621_v52, %v620_v51 }
 0x43a   :  { %4221 = vmatmul.mubr.bf16.gmra.mrb[28].mxu0 %v629_v54  ;;  %v756_v57 = vpop.permute.xlu0 %755 }
 0x43b   :  { %4240 = vmatprep.mubr.msk.bf16.mxu0 %vm284_vm1, %v752_v37 }
 0x43e   :  { %v758_v39 = vpop.permute.xlu0 %757 }
 0x442   :  { %4241 = vmatmul.mubr.msk.bf16.vlgmr.msra.gmra.mrb[32].mxu0 %vm284_vm1, %v754_v47  ;;  %v762_v22 = vpop.permute.xlu0 %761 }
 0x443   :  { %4244 = vmatprep.mubr.msk.bf16.mxu0 %vm284_vm1, %v756_v57 }
 0x446   :  { %v766_v62 = vpop.permute.xlu0 %765 }
 0x44a   :  { %4245 = vmatmul.mubr.msk.bf16.gmra.mrb[36].mxu0 %vm284_vm1, %v758_v39  ;;  %v1113_v34 = vpop.permute.xlu0 %1112 }
 0x44b   :  { %4248 = vmatprep.mubr.msk.bf16.mxu0 %vm284_vm1, %v760_v58  ;;  %4256 = vmatprep.subr.bf16.mxu0 %v1113_v34 }
 0x44c   :  { %4440 = vmatprep.subr.bf16.mxu1 %v1113_v34  ;;  %4257 = vmatpush3.bf16.msra.mxu0 %v1113_v34 }
 0x44d   :  { %4448 = vmatpush3.bf16.msra.mxu1 %v1113_v34  ;;  %4258 = vmatprep.subr.bf16.mxu0 %v1115_v49 }
 0x44e   :  { %4441 = vmatprep.subr.bf16.mxu1 %v1115_v49 }
 0x450   :  { %4259 = vmatpush3.bf16.msra.mxu0 %v1115_v49 }
 0x451   :  { %4449 = vmatpush3.bf16.msra.mxu1 %v1115_v49 }
 0x452   :  { %4249 = vmatmul.mubr.msk.bf16.gmra.mrb[40].mxu0 %vm284_vm1, %v762_v22 }
 0x453   :  { %4252 = vmatprep.mubr.msk.bf16.mxu0 %vm284_vm1, %v764_v59 }
 0x45a   :  { %4253 = vmatmul.mubr.msk.bf16.gmra.mrb[44].mxu0 %vm284_vm1, %v766_v62 }
 0x489   :  { %v5399_v9 = vpop.f32.mrb[16].mxu0 }
 0x48a   :  { %v5401_v5 = vpop.f32.mrb[17].mxu0 }
 0x48b   :  { %v5403_v4 = vpop.f32.mrb[18].mxu0 }
 0x48c   :  { %v5405_v11 = vpop.f32.mrb[19].mxu0 }
 0x4be   :  { %v5407_v48 = vpop.f32.mrb[20].mxu0 }
 0x4bf   :  { %v5409_v8 = vpop.f32.mrb[21].mxu0 }
 0x4c0   :  { %v5411_v10 = vpop.f32.mrb[22].mxu0 }
 0x4c1   :  { %v5413_v14 = vpop.f32.mrb[23].mxu0 }
 0x502   :  { %v5415_v16 = vpop.f32.mrb[24].mxu0 }
 0x503   :  { %v5417_v20 = vpop.f32.mrb[25].mxu0 }
 0x504   :  { %v5419_v15 = vpop.f32.mrb[26].mxu0 }
 0x505   :  { %v5421_v42 = vpop.f32.mrb[27].mxu0 }
 0x50d   :  { %v5423_v38 = vpop.f32.mrb[28].mxu0 }
 0x50e   :  { %v5425_v60 = vpop.f32.mrb[29].mxu0 }
 0x50f   :  { %v5427_v35 = vpop.f32.mrb[30].mxu0 }
 0x510   :  { %v5429_v43 = vpop.f32.mrb[31].mxu0 }
 0x515   :  { %v4242_v41 = vpop.f32.mrb[32].mxu0 }
 0x516   :  { %v930_v50 = vmul.f32 0.25, %v4242_v41  ;;  %v865_v3 = vpop.f32.mrb[33].mxu0 }
 0x517   :  { %v928_v26 = vmul.f32 0.25, %v865_v3  ;;  %v4243_v30 = vpop.f32.mrb[34].mxu0 }
 0x518   :  { %v868_v23 = vpop.f32.mrb[35].mxu0  ;;  %v5433_v44 = vsel %vm448_vm2, -1e+09, %v930_v50  ;;  %v931_v37 = vmul.f32 0.25, %v4243_v30  ;;  %vm6866_vm2 = vcmp.gt.f32.partialorder %v5193_v18, 0.5 }
 0x519   :  { %v929_v17 = vmul.f32 0.25, %v868_v23  ;;  %964 = vmax.xlane.f32.xlu0 %v5433_v44  ;;  %v5438_v21 = vsel %vm446_vm4, -1e+09, %v928_v26 }
 0x51a   :  { %960 = vmax.xlane.f32.xlu1 %v5438_v21  ;;  %v5448_v27 = vsel %vm449_vm5, -1e+09, %v931_v37 }
 0x51b   :  { %v5443_v31 = vsel %vm447_vm3, -1e+09, %v929_v17 }
 0x51d   :  { %962 = vmax.xlane.f32.xlu0 %v5443_v31  ;;  %v4246_v36 = vpop.f32.mrb[36].mxu0 }
 0x51e   :  { %v934_v28 = vmul.f32 0.25, %v4246_v36  ;;  %966 = vmax.xlane.f32.xlu1 %v5448_v27  ;;  %v881_v47 = vpop.f32.mrb[37].mxu0 }
 0x51f   :  { %v4247_v32 = vpop.f32.mrb[38].mxu0  ;;  %v932_v51 = vmul.f32 0.25, %v881_v47 }
 0x520   :  { %v935_v52 = vmul.f32 0.25, %v4247_v32  ;;  %v884_v53 = vpop.f32.mrb[39].mxu0  ;;  %v950_v29 = vsel %vm452_vm6, -1e+09, %v934_v28 }
 0x521   :  { %972 = vmax.xlane.f32.xlu0 %v950_v29  ;;  %v933_v54 = vmul.f32 0.25, %v884_v53  ;;  %v5460_v40 = vsel %vm450_vm7, -1e+09, %v932_v51 }
 0x522   :  { %v5455_v57 = vsel %vm453_vm8, -1e+09, %v935_v52 }
 0x523   :  { %974 = vmax.xlane.f32.xlu1 %v5455_v57  ;;  %v5465_v61 = vsel %vm451_vm10, -1e+09, %v933_v54 }
 0x525   :  { %968 = vmax.xlane.f32.xlu0 %v5460_v40  ;;  %v4250_v39 = vpop.f32.mrb[40].mxu0 }
 0x526   :  { %v938_v58 = vmul.f32 0.25, %v4250_v39  ;;  %v897_v22 = vpop.f32.mrb[41].mxu0 }
 0x527   :  { %970 = vmax.xlane.f32.xlu1 %v5465_v61  ;;  %v4251_v0 = vpop.f32.mrb[42].mxu0  ;;  %v936_v59 = vmul.f32 0.25, %v897_v22 }
 0x528   :  { %v939_v62 = vmul.f32 0.25, %v4251_v0  ;;  %v900_v34 = vpop.f32.mrb[43].mxu0  ;;  %v5470_v63 = vsel %vm456_vm9, -1e+09, %v938_v58 }
 0x529   :  { %980 = vmax.xlane.f32.xlu0 %v5470_v63  ;;  %v937_v49 = vmul.f32 0.25, %v900_v34  ;;  %v5480_v7 = vsel %vm454_vm11, -1e+09, %v936_v59 }
 0x52a   :  { %v5475_v41 = vsel %vm457_vm12, -1e+09, %v939_v62 }
 0x52b   :  { %982 = vmax.xlane.f32.xlu1 %v5475_v41  ;;  %v5485_v26 = vsel %vm455_vm14, -1e+09, %v937_v49 }
 0x52d   :  { %976 = vmax.xlane.f32.xlu0 %v5480_v7  ;;  %v4254_v50 = vpop.f32.mrb[44].mxu0 }
 0x52e   :  { %v942_v3 = vmul.f32 0.25, %v4254_v50  ;;  %v913_v6 = vpop.f32.mrb[45].mxu0 }
 0x52f   :  { %978 = vmax.xlane.f32.xlu1 %v5485_v26  ;;  %v4255_v13 = vpop.f32.mrb[46].mxu0  ;;  %v940_v30 = vmul.f32 0.25, %v913_v6 }
 0x530   :  { %v916_v23 = vpop.f32.mrb[47].mxu0  ;;  %v5490_v37 = vsel %vm6866_vm2, -1e+09, %v942_v3  ;;  %v943_v18 = vmul.f32 0.25, %v4255_v13 }
 0x531   :  { %988 = vmax.xlane.f32.xlu0 %v5490_v37  ;;  %v5495_v12 = vsel %vm458_vm15, -1e+09, %v940_v30  ;;  %v941_v19 = vmul.f32 0.25, %v916_v23 }
 0x532   :  { %v5508_v24 = vsel %vm461_vm0, -1e+09, %v943_v18  ;;  %vm6867_vm0 = vcmask 261120  }
 0x533   :  { %vm6868_vm3 = vmmov %vm6867_vm0 }
 0x534   :  { %vm6869_vm4 = vmmov %vm6867_vm0 }
 0x535   :  { %984 = vmax.xlane.f32.xlu0 %v5495_v12  ;;  %vm6870_vm5 = vmmov %vm6867_vm0 }
 0x536   :  { %vm6871_vm6 = vmmov %vm6867_vm0 }
 0x537   :  { %vm6872_vm7 = vmmov %vm6867_vm0 }
 0x538   :  { %vm6873_vm8 = vmmov %vm6867_vm0 }
 0x539   :  { %vm6874_vm9 = vmmov %vm6867_vm0 }
 0x53a   :  { %vm6876_vm10 = vmmov %vm6867_vm0 }
 0x53b   :  { %vm6877_vm11 = vmmov %vm6867_vm0 }
 0x53c   :  { %vm6878_vm12 = vmmov %vm6867_vm0 }
 0x53d   :  { %vm6880_vm14 = vmmov %vm6867_vm0 }
 0x53e   :  { %vm6881_vm15 = vmmov %vm6867_vm0 }
 0x53f   :  { %vm6882_vm2 = vmmov %vm6867_vm0 }
 0x540   :  { %1120 = vrot.lane.b32.xlu1 %v5023_v56, %s4853_s25  ;;  %v5513_v56 = vsel %vm459_vm13, -1e+09, %v941_v19  ;;  %vm6879_vm13 = vmmov %vm6867_vm0 }
 0x54b   :  { %1116 = vrot.lane.b32.xlu0 %v5015_v46, %s4853_s25 }
 0x54f   :  { %1118 = vrot.lane.b32.xlu0 %v5013_v45, %s4853_s25 }
 0x553   :  { %1124 = vrot.lane.b32.xlu0 %v5031_v2, %s4853_s25 }
 0x564   :  { %990 = vmax.xlane.f32.xlu1 %v5508_v24 }
 0x568   :  { %986 = vmax.xlane.f32.xlu1 %v5513_v56 }
 0x579   :  { %1122 = vrot.lane.b32.xlu1 %v5021_v55, %s4853_s25 }
 0x5a6   :  { %v965_v45 = vpop.xlane.xlu0 %964 }
 0x5a7   :  { %v994_v46 = vsub.f32 %v5433_v44, %v965_v45  ;;  %v961_v2 = vpop.xlane.xlu1 %960 }
 0x5a8   :  { %v992_v17 = vsub.f32 %v5438_v21, %v961_v2 }
 0x5a9   :  { %v1012_v25 = vmul.f32 1.442695, %v994_v46 }
 0x5aa   :  { %v963_v36 = vpop.xlane.xlu0 %962  ;;  %v1008_v28 = vmul.f32 1.442695, %v992_v17 }
 0x5ab   :  { %4705 = vpow2.f32 %v1012_v25  ;;  %v967_v47 = vpop.xlane.xlu1 %966  ;;  %v993_v32 = vsub.f32 %v5443_v31, %v963_v36 }
 0x5ac   :  { %v995_v33 = vsub.f32 %v5448_v27, %v967_v47  ;;  %4707 = vpow2.f32 %v1008_v28 }
 0x5ad   :  { %v1010_v39 = vmul.f32 1.442695, %v993_v32 }
 0x5ae   :  { %v1014_v51 = vmul.f32 1.442695, %v995_v33  ;;  %v973_v52 = vpop.xlane.xlu0 %972 }
 0x5af   :  { %v998_v53 = vsub.f32 %v950_v29, %v973_v52 }
 0x5b0   :  { %v975_v55 = vpop.xlane.xlu1 %974  ;;  %4709 = vpow2.f32 %v1014_v51 }
 0x5b1   :  { %v1020_v54 = vmul.f32 1.442695, %v998_v53  ;;  %v999_v44 = vsub.f32 %v5455_v57, %v975_v55 }
 0x5b2   :  { %v969_v21 = vpop.xlane.xlu0 %968 }
 0x5b3   :  { %4711 = vpow2.f32 %v1020_v54  ;;  %v996_v58 = vsub.f32 %v5460_v40, %v969_v21  ;;  %v1022_v59 = vmul.f32 1.442695, %v999_v44 }
 0x5b4   :  { %v971_v22 = vpop.xlane.xlu1 %970  ;;  %4713 = vpow2.f32 %v1010_v39 }
 0x5b5   :  { %v5524_v0 = vpop.eup %4705  ;;  %v1016_v27 = vmul.f32 1.442695, %v996_v58  ;;  %v997_v31 = vsub.f32 %v5465_v61, %v971_v22 }
 0x5b6   :  { %1044 = vadd.xlane.f32.xlu1 %v5524_v0  ;;  %v981_v29 = vpop.xlane.xlu0 %980  ;;  %v5529_v49 = vpop.eup %4707 }
 0x5b7   :  { %4715 = vpow2.f32 %v1016_v27  ;;  %v1018_v62 = vmul.f32 1.442695, %v997_v31  ;;  %v1002_v34 = vsub.f32 %v5470_v63, %v981_v29 }
 0x5b8   :  { %v983_v57 = vpop.xlane.xlu1 %982  ;;  %4717 = vpow2.f32 %v1022_v59 }
 0x5b9   :  { %4719 = vpow2.f32 %v1018_v62  ;;  %v1028_v50 = vmul.f32 1.442695, %v1002_v34  ;;  %v1003_v63 = vsub.f32 %v5475_v41, %v983_v57 }
 0x5ba   :  { %1040 = vadd.xlane.f32.xlu1 %v5529_v49  ;;  %v977_v40 = vpop.xlane.xlu0 %976  ;;  %v5533_v3 = vpop.eup %4709 }
 0x5bb   :  { %v1000_v61 = vsub.f32 %v5480_v7, %v977_v40  ;;  %4721 = vpow2.f32 %v1028_v50 }
 0x5bc   :  { %v979_v6 = vpop.xlane.xlu1 %978 }
 0x5bd   :  { %v5535_v13 = vpop.eup %4711  ;;  %v1001_v30 = vsub.f32 %v5485_v26, %v979_v6  ;;  %v1024_v18 = vmul.f32 1.442695, %v1000_v61  ;;  %v1030_v26 = vmul.f32 1.442695, %v1003_v63 }
 0x5be   :  { %1046 = vadd.xlane.f32.xlu1 %v5533_v3  ;;  %1052 = vadd.xlane.f32.xlu0 %v5535_v13  ;;  %v989_v23 = vpop.xlane.xlu0 %988  ;;  %v5542_v7 = vpop.eup %4713 }
 0x5bf   :  { %v1026_v19 = vmul.f32 1.442695, %v1001_v30  ;;  %v1006_v45 = vsub.f32 %v5490_v37, %v989_v23 }
 0x5c0   :  { %v1121_v32 = vpop.permute.xlu1 %1120 }
 0x5c1   :  { %v5544_v46 = vpop.eup %4715  ;;  %4723 = vpow2.f32 %v1026_v19  ;;  %v1036_v2 = vmul.f32 1.442695, %v1006_v45 }
 0x5c2   :  { %1042 = vadd.xlane.f32.xlu1 %v5542_v7  ;;  %1048 = vadd.xlane.f32.xlu0 %v5544_v46  ;;  %v985_v41 = vpop.xlane.xlu0 %984  ;;  %4725 = vpow2.f32 %v1024_v18  ;;  %v5549_v25 = vpop.eup %4717 }
 0x5c3   :  { %v1004_v17 = vsub.f32 %v5495_v12, %v985_v41  ;;  %v5551_v36 = vpop.eup %4719  ;;  %4727 = vpow2.f32 %v1036_v2 }
 0x5c4   :  { %4729 = vpow2.f32 %v1030_v26 }
 0x5c5   :  { %v1032_v37 = vmul.f32 1.442695, %v1004_v17  ;;  %v5555_v47 = vpop.eup %4721 }
 0x5c6   :  { %1050 = vadd.xlane.f32.xlu1 %v5551_v36  ;;  %1054 = vadd.xlane.f32.xlu0 %v5549_v25  ;;  %v1117_v28 = vpop.permute.xlu0 %1116 }
 0x5c7   :  { %4260 = vmatprep.subr.bf16.mxu0 %v1117_v28  ;;  %4442 = vmatprep.subr.bf16.mxu1 %v1117_v28  ;;  %4731 = vpow2.f32 %v1032_v37 }
 0x5c8   :  { %4261 = vmatpush3.bf16.msra.mxu0 %v1117_v28  ;;  %4450 = vmatpush3.bf16.msra.mxu1 %v1117_v28 }
 0x5ca   :  { %1060 = vadd.xlane.f32.xlu0 %v5555_v47  ;;  %v1119_v12 = vpop.permute.xlu0 %1118 }
 0x5cb   :  { %v5558_v33 = vpop.eup %4723  ;;  %4262 = vmatprep.subr.bf16.mxu0 %v1119_v12  ;;  %4443 = vmatprep.subr.bf16.mxu1 %v1119_v12 }
 0x5cc   :  { %1058 = vadd.xlane.f32.xlu1 %v5558_v33  ;;  %4263 = vmatpush3.bf16.msra.mxu0 %v1119_v12  ;;  %v5561_v51 = vpop.eup %4725 }
 0x5cd   :  { %4451 = vmatpush3.bf16.msra.mxu1 %v1119_v12  ;;  %4264 = vmatprep.subr.bf16.mxu0 %v1121_v32  ;;  %v5564_v52 = vpop.eup %4727 }
 0x5ce   :  { %4444 = vmatprep.subr.bf16.mxu1 %v1121_v32  ;;  %1056 = vadd.xlane.f32.xlu0 %v5561_v51  ;;  %v5567_v53 = vpop.eup %4729  ;;  %v1125_v31 = vpop.permute.xlu0 %1124 }
 0x5d0   :  { %1068 = vadd.xlane.f32.xlu1 %v5564_v52  ;;  %4265 = vmatpush3.bf16.msra.mxu0 %v1121_v32 }
 0x5d1   :  { %4452 = vmatpush3.bf16.msra.mxu1 %v1121_v32  ;;  %v5570_v55 = vpop.eup %4731 }
 0x5d2   :  { %1062 = vadd.xlane.f32.xlu0 %v5567_v53 }
 0x5d4   :  { %1064 = vadd.xlane.f32.xlu1 %v5570_v55 }
 0x5e5   :  { %1126 = vrot.lane.b32.xlu1 %v5029_v1, %s4853_s25 }
 0x5f1   :  { %v991_v54 = vpop.xlane.xlu1 %990 }
 0x5f2   :  { %v1007_v44 = vsub.f32 %v5508_v24, %v991_v54 }
 0x5f4   :  { %v1038_v27 = vmul.f32 1.442695, %v1007_v44 }
 0x5f5   :  { %v987_v39 = vpop.xlane.xlu1 %986 }
 0x5f6   :  { %v1005_v21 = vsub.f32 %v5513_v56, %v987_v39 }
 0x5f8   :  { %v1034_v58 = vmul.f32 1.442695, %v1005_v21 }
 0x5f9   :  { %v1123_v22 = vpop.permute.xlu1 %1122 }
 0x5fa   :  { %4733 = vpow2.f32 %v1034_v58  ;;  %4266 = vmatprep.subr.bf16.mxu0 %v1123_v22  ;;  %4445 = vmatprep.subr.bf16.mxu1 %v1123_v22 }
 0x5fb   :  { %4267 = vmatpush3.bf16.msra.mxu0 %v1123_v22  ;;  %4453 = vmatpush3.bf16.msra.mxu1 %v1123_v22  ;;  %4735 = vpow2.f32 %v1038_v27 }
 0x5fc   :  { %4268 = vmatprep.subr.bf16.mxu0 %v1125_v31  ;;  %4446 = vmatprep.subr.bf16.mxu1 %v1125_v31 }
 0x5ff   :  { %4269 = vmatpush3.bf16.msra.mxu0 %v1125_v31  ;;  %4454 = vmatpush3.bf16.msra.mxu1 %v1125_v31 }
 0x604   :  { %v5577_v1 = vpop.eup %4733 }
 0x605   :  { %1066 = vadd.xlane.f32.xlu0 %v5577_v1  ;;  %v5580_v24 = vpop.eup %4735 }
 0x609   :  { %1070 = vadd.xlane.f32.xlu0 %v5580_v24 }
 0x643   :  { %v1045_v56 = vpop.xlane.xlu1 %1044 }
 0x647   :  { %v1041_v59 = vpop.xlane.xlu1 %1040 }
 0x648   :  { %4737 = vrcp.f32 %v1041_v59 }
 0x64b   :  { %v1047_v29 = vpop.xlane.xlu1 %1046  ;;  %v1053_v62 = vpop.xlane.xlu0 %1052 }
 0x64f   :  { %v1043_v34 = vpop.xlane.xlu1 %1042  ;;  %v1049_v57 = vpop.xlane.xlu0 %1048 }
 0x650   :  { %4739 = vrcp.f32 %v1043_v34 }
 0x651   :  { %4741 = vrcp.f32 %v1049_v57 }
 0x652   :  { %v4738_v6 = vpop.eup %4737 }
 0x653   :  { %v1051_v40 = vpop.xlane.xlu1 %1050  ;;  %v1055_v50 = vpop.xlane.xlu0 %1054  ;;  %v1088_v18 = vmul.f32 %v4738_v6, %v5529_v49 }
 0x654   :  { %4743 = vrcp.f32 %v1051_v40 }
 0x655   :  { %4745 = vrcp.f32 %v1047_v29 }
 0x656   :  { %4747 = vrcp.f32 %v1055_v50 }
 0x657   :  { %v1061_v61 = vpop.xlane.xlu0 %1060  ;;  %4749 = vrcp.f32 %v1045_v56 }
 0x658   :  { %4751 = vrcp.f32 %v1053_v62 }
 0x659   :  { %v1059_v30 = vpop.xlane.xlu1 %1058 }
 0x65a   :  { %v4740_v63 = vpop.eup %4739  ;;  %4753 = vrcp.f32 %v1059_v30 }
 0x65b   :  { %v1057_v23 = vpop.xlane.xlu0 %1056  ;;  %v1089_v19 = vmul.f32 %v4740_v63, %v5542_v7  ;;  %v4742_v45 = vpop.eup %4741 }
 0x65c   :  { %4755 = vrcp.f32 %v1057_v23  ;;  %v1092_v37 = vmul.f32 %v4742_v45, %v5544_v46 }
 0x65d   :  { %v1069_v2 = vpop.xlane.xlu1 %1068  ;;  %v1104_v41 = vpack.c.bf16 %v1089_v19, %v1088_v18  ;;  %v4621_v18 = vld [vmem:[%s6839_s5] sm:$0xff]  }
 0x65e   :  { %v4744_v26 = vpop.eup %4743 }
 0x65f   :  { %4272 = vmatprep.mubr.bf16.mxu0 %v1104_v41  ;;  %v1063_v17 = vpop.xlane.xlu0 %1062  ;;  %v1093_v28 = vmul.f32 %v4744_v26, %v5551_v36  ;;  %v4746_v12 = vpop.eup %4745 }
 0x660   :  { %4757 = vrcp.f32 %v1063_v17  ;;  %v4748_v32 = vpop.eup %4747  ;;  %v1091_v21 = vmul.f32 %v4746_v12, %v5533_v3 }
 0x661   :  { %4759 = vrcp.f32 %v1061_v61  ;;  %v1065_v54 = vpop.xlane.xlu1 %1064  ;;  %v1106_v39 = vpack.c.bf16 %v1093_v28, %v1092_v37  ;;  %v4750_v49 = vpop.eup %4749  ;;  %v1095_v58 = vmul.f32 %v4748_v32, %v5549_v25 }
 0x662   :  { %v4752_v44 = vpop.eup %4751  ;;  %v1090_v46 = vmul.f32 %v4750_v49, %v5524_v0  ;;  %4761 = vrcp.f32 %v1065_v54 }
 0x663   :  { %4276 = vmatprep.mubr.bf16.mxu1 %v1106_v39  ;;  %v1094_v36 = vmul.f32 %v4752_v44, %v5535_v13 }
 0x664   :  { %v4754_v7 = vpop.eup %4753  ;;  %v1105_v59 = vpack.c.bf16 %v1091_v21, %v1090_v46  ;;  %v83_v46 = vld [vmem:[%s6840_s2] sm:$0xff] }
 0x665   :  { %v1127_v22 = vpop.permute.xlu1 %1126  ;;  %v1097_v56 = vmul.f32 %v4754_v7, %v5558_v33  ;;  %v1107_v29 = vpack.c.bf16 %v1095_v58, %v1094_v36  ;;  %v4855_v58 = vmov 0  }
 0x666   :  { %v4756_v27 = vpop.eup %4755  ;;  %4270 = vmatprep.subr.bf16.mxu0 %v1127_v22  ;;  %4447 = vmatprep.subr.bf16.mxu1 %v1127_v22 }
 0x667   :  { %4271 = vmatpush3.bf16.msra.mxu0 %v1127_v22  ;;  %4455 = vmatpush3.bf16.msra.mxu1 %v1127_v22  ;;  %v1096_v31 = vmul.f32 %v4756_v27, %v5561_v51 }
 0x668   :  { %4288 = vmatprep.subr.bf16.mxu1 %v4621_v18  ;;  %4618 = vset.pattern.permute.xlu1 %v4855_v58 }
 0x669   :  { %v1108_v62 = vpack.c.bf16 %v1097_v56, %v1096_v31  ;;  %4617 = vset.pattern.permute.xlu0 %v4855_v58  ;;  %v84_v56 = vld [vmem:[%s6840_s2 + $0x8] sm:$0xff] }
 0x66a   :  { %v4758_v3 = vpop.eup %4757  ;;  %4273 = vmatmul.mubr.bf16.vlgmr.msra.gmra.mrb[48].mxu0 %v1105_v59  ;;  %4277 = vmatmul.mubr.bf16.vlgmr.msra.gmra.mrb[16].mxu1 %v1107_v29  ;;  %v1736_v29 = vsub.f32 1.0, %v83_v46 }
 0x66b   :  { %v4760_v25 = vpop.eup %4759  ;;  %4280 = vmatprep.mubr.bf16.mxu1 %v1108_v62  ;;  %v1099_v0 = vmul.f32 %v4758_v3, %v5567_v53  ;;  %4289 = vmatpush3.bf16.msra.mxu1 %v4621_v18  ;;  %v1737_v62 = vsub.f32 1.0, %v84_v56  ;;  %v92_v3 = vld [vmem:[%s6840_s2 + $0x48] sm:$0xff] }
 0x66c   :  { %v1098_v13 = vmul.f32 %v4760_v25, %v5555_v47  ;;  %v4762_v33 = vpop.eup %4761  ;;  %v85_v25 = vld [vmem:[%s6840_s2 + $0x10] sm:$0xff] }
 0x66d   :  { %v1100_v50 = vmul.f32 %v4762_v33, %v5570_v55  ;;  %v4622_v55 = vld [vmem:[%s6839_s5 + $0x8] sm:$0xff]  }
 0x66e   :  { %v1109_v34 = vpack.c.bf16 %v1099_v0, %v1098_v13  ;;  %4290 = vmatprep.subr.bf16.mxu1 %v4622_v55  ;;  %v1745_v0 = vsub.f32 1.0, %v92_v3  ;;  %v1738_v13 = vsub.f32 1.0, %v85_v25 }
 0x66f   :  { %4291 = vmatpush3.bf16.msra.mxu1 %v4622_v55  ;;  %v93_v55 = vld [vmem:[%s6840_s2 + $0x50] sm:$0xff] }
 0x672   :  { %4281 = vmatmul.mubr.bf16.gmra.mrb[20].mxu1 %v1109_v34  ;;  %v94_v34 = vld [vmem:[%s6840_s2 + $0x58] sm:$0xff] }
 0x692   :  { %v1067_v57 = vpop.xlane.xlu0 %1066 }
 0x693   :  { %4763 = vrcp.f32 %v1067_v57  ;;  %v86_v57 = vld [vmem:[%s6840_s2 + $0x18] sm:$0xff] }
 0x694   :  { %4765 = vrcp.f32 %v1069_v2  ;;  %v1739_v33 = vsub.f32 1.0, %v86_v57 }
 0x696   :  { %v1071_v51 = vpop.xlane.xlu0 %1070 }
 0x697   :  { %4767 = vrcp.f32 %v1071_v51  ;;  %v1747_v51 = vsub.f32 1.0, %v94_v34 }
 0x69d   :  { %v4764_v40 = vpop.eup %4763 }
 0x69e   :  { %v1101_v61 = vmul.f32 %v4764_v40, %v5577_v1  ;;  %v4766_v6 = vpop.eup %4765  ;;  %v87_v40 = vld [vmem:[%s6840_s2 + $0x20] sm:$0xff] }
 0x69f   :  { %v1102_v47 = vmul.f32 %v4766_v6, %v5564_v52 }
 0x6a0   :  { %v1110_v30 = vpack.c.bf16 %v1101_v61, %v1100_v50  ;;  %v1740_v50 = vsub.f32 1.0, %v87_v40  ;;  %v88_v61 = vld [vmem:[%s6840_s2 + $0x28] sm:$0xff]  ;;  %v5684_v40 = vld [vmem:[%s6841_s6] ss:$0 sm:$0xff] }
 0x6a1   :  { %v4768_v63 = vpop.eup %4767  ;;  %v1741_v6 = vsub.f32 1.0, %v88_v61 }
 0x6a2   :  { %4284 = vmatprep.mubr.bf16.mxu1 %v1110_v30  ;;  %v1103_v53 = vmul.f32 %v4768_v63, %v5580_v24  ;;  %v89_v30 = vld [vmem:[%s6840_s2 + $0x30] sm:$0xff] }
 0x6a3   :  { %v1742_v63 = vsub.f32 1.0, %v89_v30 }
 0x6a4   :  { %v1111_v23 = vpack.c.bf16 %v1103_v53, %v1102_v47  ;;  %v90_v47 = vld [vmem:[%s6840_s2 + $0x38] sm:$0xff] }
 0x6a5   :  { %v1743_v53 = vsub.f32 1.0, %v90_v47  ;;  %v4834_v47 = vld [vmem:[%s6836_s0] sm:$0xff] }
 0x6a6   :  { %4285 = vmatmul.mubr.bf16.gmra.mrb[24].mxu1 %v1111_v23  ;;  %v91_v23 = vld [vmem:[%s6840_s2 + $0x40] sm:$0xff] }
 0x6a7   :  { %v1744_v18 = vsub.f32 1.0, %v91_v23 }
 0x73d   :  { %v4274_v1 = vpop.f32.mrb[48].mxu0  ;;  %v4278_v19 = vpop.f32.mrb[16].mxu1 }
 0x73e   :  { %v1170_v45 = vpop.f32.mrb[49].mxu0  ;;  %v1186_v52 = vpop.f32.mrb[17].mxu1 }
 0x73f   :  { %v4275_v2 = vpop.f32.mrb[50].mxu0  ;;  %v4279_v24 = vpop.f32.mrb[18].mxu1 }
 0x740   :  { %v4582_v41 = vpack.i.bf16 %v4275_v2, %v4274_v1  ;;  %v4592_v26 = vpack.i.bf16 %v4279_v24, %v4278_v19  ;;  %v1173_v17 = vpop.f32.mrb[51].mxu0  ;;  %v1189_v37 = vpop.f32.mrb[19].mxu1  ;;  %v1746_v1 = vsub.f32 1.0, %v93_v55  ;;  %v4835_v55 = vld [vmem:[%s6836_s0 + $0x18] sm:$0xff] }
 0x741   :  { %v4577_v28 = vpack.i.bf16 %v1173_v17, %v1170_v45  ;;  %v4587_v12 = vpack.i.bf16 %v1189_v37, %v1186_v52 }
 0x742   :  { %4583 = vrot.lane.b32.xlu1 %v4582_v41, %s4854_s29 }
 0x743   :  { %4578 = vrot.lane.b32.xlu0 %v4577_v28, %s4854_s29 }
 0x745   :  { %v4282_v32 = vpop.f32.mrb[20].mxu1 }
 0x746   :  { %4588 = vrot.lane.b32.xlu1 %v4587_v12, %s4854_s29  ;;  %v1202_v54 = vpop.f32.mrb[21].mxu1 }
 0x747   :  { %4593 = vrot.lane.b32.xlu0 %v4592_v26, %s4854_s29  ;;  %v4283_v39 = vpop.f32.mrb[22].mxu1 }
 0x748   :  { %v4602_v49 = vpack.i.bf16 %v4283_v39, %v4282_v32  ;;  %v1205_v44 = vpop.f32.mrb[23].mxu1 }
 0x749   :  { %v4597_v7 = vpack.i.bf16 %v1205_v44, %v1202_v54 }
 0x74b   :  { %4603 = vrot.lane.b32.xlu0 %v4602_v49, %s4854_s29  ;;  %4598 = vrot.lane.b32.xlu1 %v4597_v7, %s4854_s29 }
 0x779   :  { %v4286_v21 = vpop.f32.mrb[24].mxu1 }
 0x77a   :  { %v1218_v22 = vpop.f32.mrb[25].mxu1 }
 0x77b   :  { %v4287_v27 = vpop.f32.mrb[26].mxu1 }
 0x77c   :  { %v4612_v36 = vpack.i.bf16 %v4287_v27, %v4286_v21  ;;  %v1221_v31 = vpop.f32.mrb[27].mxu1 }
 0x77d   :  { %v4607_v59 = vpack.i.bf16 %v1221_v31, %v1218_v22 }
 0x77e   :  { %4613 = vrot.lane.b32.xlu0 %v4612_v36, %s4854_s29 }
 0x77f   :  { %4608 = vrot.lane.b32.xlu1 %v4607_v59, %s4854_s29 }
 0x782   :  { %1754 = vperm.xlu0 %4617, %v1736_v29  }
 0x783   :  { %1759 = vperm.xlu1 %4618, %v1737_v62  }
 0x786   :  { %1799 = vperm.xlu0 %4617, %v1745_v0  }
 0x787   :  { %1764 = vperm.xlu1 %4618, %v1738_v13  }
 0x78a   :  { %1809 = vperm.xlu0 %4617, %v1747_v51  }
 0x78b   :  { %1769 = vperm.xlu1 %4618, %v1739_v33  }
 0x78f   :  { %1774 = vperm.xlu1 %4618, %v1740_v50  }
 0x793   :  { %1779 = vperm.xlu1 %4618, %v1741_v6  }
 0x797   :  { %1784 = vperm.xlu1 %4618, %v1742_v63  }
 0x79b   :  { %1789 = vperm.xlu1 %4618, %v1743_v53  }
 0x79f   :  { %1794 = vperm.xlu1 %4618, %v1744_v18  }
 0x7a3   :  { %1804 = vperm.xlu1 %4618, %v1746_v1  }
 0x7b4   :  { %v4584_v19 = vpop.permute.xlu1 %4583 }
 0x7b5   :  { %v4586_v45 = vunpack.i.h.bf16 %v4584_v19  ;;  %v4585_v52 = vunpack.i.l.bf16 %v4584_v19  ;;  %v4579_v2 = vpop.permute.xlu0 %4578  ;;  %v4836_v19 = vld [vmem:[%s6836_s0 + $0x8] sm:$0xff] }
 0x7b6   :  { %v4581_v24 = vunpack.i.h.bf16 %v4579_v2  ;;  %v4580_v41 = vunpack.i.l.bf16 %v4579_v2 }
 0x7b7   :  { %v1300_v26 = vsel %vm284_vm1, %v5403_v4, %v4586_v45  ;;  %v1299_v17 = vsel %vm284_vm1, %v5399_v9, %v4585_v52 }
 0x7b8   :  { %v1314_v37 = vpack.c.bf16 %v1300_v26, %v1299_v17  ;;  %v1298_v28 = vsel %vm284_vm1, %v5405_v11, %v4581_v24  ;;  %v1297_v12 = vsel %vm284_vm1, %v5401_v5, %v4580_v41  ;;  %v4589_v32 = vpop.permute.xlu1 %4588 }
 0x7b9   :  { %v1313_v54 = vpack.c.bf16 %v1298_v28, %v1297_v12  ;;  %v4591_v39 = vunpack.i.h.bf16 %v4589_v32  ;;  %v4590_v49 = vunpack.i.l.bf16 %v4589_v32  ;;  %v4594_v44 = vpop.permute.xlu0 %4593  ;;  %v4837_v12 = vld [vmem:[%s6836_s0 + $0x30] sm:$0xff] }
 0x7ba   :  { %v4596_v7 = vunpack.i.h.bf16 %v4594_v44  ;;  %v4595_v21 = vunpack.i.l.bf16 %v4594_v44  ;;  %v4838_v44 = vld [vmem:[%s6836_s0 + $0x20] sm:$0xff] }
 0x7bb   :  { %v1302_v4 = vsel %vm284_vm1, %v5413_v14, %v4591_v39  ;;  %v1301_v9 = vsel %vm284_vm1, %v5409_v8, %v4590_v49  ;;  %4292 = vmatprep.mubr.msk.bf16.mxu1 %vm6867_vm0, %v1313_v54 }
 0x7bc   :  { %v1315_v58 = vpack.c.bf16 %v1302_v4, %v1301_v9  ;;  %v1304_v11 = vsel %vm284_vm1, %v5411_v10, %v4596_v7  ;;  %v1303_v5 = vsel %vm284_vm1, %v5407_v48, %v4595_v21  ;;  %4293 = vmatmul.mubr.msk.bf16.vlgmr.msra.gmra.mrb[28].mxu1 %vm6868_vm3, %v1314_v37  ;;  %v4839_v21 = vld [vmem:[%s6836_s0 + $0x38] sm:$0xff]  ;;  %vm6883_vm3 = vmmov %vm6867_vm0 }
 0x7bd   :  { %v1316_v22 = vpack.c.bf16 %v1304_v11, %v1303_v5  ;;  %v4599_v27 = vpop.permute.xlu1 %4598  ;;  %v4604_v46 = vpop.permute.xlu0 %4603 }
 0x7be   :  { %v4601_v36 = vunpack.i.h.bf16 %v4599_v27  ;;  %v4600_v31 = vunpack.i.l.bf16 %v4599_v27  ;;  %v4606_v14 = vunpack.i.h.bf16 %v4604_v46  ;;  %v4605_v56 = vunpack.i.l.bf16 %v4604_v46  ;;  %4296 = vmatprep.mubr.msk.bf16.mxu1 %vm6869_vm4, %v1315_v58  ;;  %v4840_v58 = vld [vmem:[%s6836_s0 + $0x28] sm:$0xff]  ;;  %vm6884_vm4 = vmmov %vm6867_vm0 }
 0x7c0   :  { %v1306_v8 = vsel %vm284_vm1, %v5421_v42, %v4601_v36  ;;  %v1305_v10 = vsel %vm284_vm1, %v5417_v20, %v4600_v31  ;;  %v1308_v48 = vsel %vm284_vm1, %v5419_v15, %v4606_v14  ;;  %v1307_v59 = vsel %vm284_vm1, %v5415_v16, %v4605_v56  ;;  %v4841_v56 = vld [vmem:[%s6836_s0 + $0x50] sm:$0xff] }
 0x7c1   :  { %v1317_v29 = vpack.c.bf16 %v1306_v8, %v1305_v10  ;;  %v1318_v62 = vpack.c.bf16 %v1308_v48, %v1307_v59 }
 0x7c4   :  { %4297 = vmatmul.mubr.msk.bf16.gmra.mrb[32].mxu1 %vm6870_vm5, %v1316_v22  ;;  %vm6885_vm5 = vmmov %vm6867_vm0 }
 0x7c5   :  { %4300 = vmatprep.mubr.msk.bf16.mxu1 %vm6871_vm6, %v1317_v29  ;;  %vm6886_vm6 = vmmov %vm6867_vm0 }
 0x7cc   :  { %4301 = vmatmul.mubr.msk.bf16.gmra.mrb[36].mxu1 %vm6872_vm7, %v1318_v62  ;;  %v4842_v62 = vld [vmem:[%s6836_s0 + $0x40] sm:$0xff]  ;;  %vm6887_vm7 = vmmov %vm6867_vm0 }
 0x7f0   :  { %v4614_v3 = vpop.permute.xlu0 %4613 }
 0x7f1   :  { %v4616_v25 = vunpack.i.h.bf16 %v4614_v3  ;;  %v4615_v42 = vunpack.i.l.bf16 %v4614_v3  ;;  %v4609_v0 = vpop.permute.xlu1 %4608 }
 0x7f2   :  { %v4611_v13 = vunpack.i.h.bf16 %v4609_v0  ;;  %v4610_v20 = vunpack.i.l.bf16 %v4609_v0 }
 0x7f3   :  { %v1312_v15 = vsel %vm284_vm1, %v5427_v35, %v4616_v25  ;;  %v1311_v16 = vsel %vm284_vm1, %v5423_v38, %v4615_v42  ;;  %v4843_v25 = vld [vmem:[%s6836_s0 + $0x58] sm:$0xff] }
 0x7f4   :  { %v1320_v34 = vpack.c.bf16 %v1312_v15, %v1311_v16  ;;  %v1310_v57 = vsel %vm284_vm1, %v5429_v43, %v4611_v13  ;;  %v1309_v51 = vsel %vm284_vm1, %v5425_v60, %v4610_v20  ;;  %v4833_v60 = vld [vmem:[%s6836_s0 + $0x10] sm:$0xff]  ;;  %vm6875_vm1 = vmmov %vm6867_vm0  ;;  %v4844_v13 = vld [vmem:[%s6836_s0 + $0x48] sm:$0xff] }
 0x7f5   :  { %v1319_v33 = vpack.c.bf16 %v1310_v57, %v1309_v51 }
 0x7f7   :  { %4304 = vmatprep.mubr.msk.bf16.mxu1 %vm6873_vm8, %v1319_v33  ;;  %vm6888_vm8 = vmmov %vm6867_vm0 }
 0x7f8   :  { %4305 = vmatmul.mubr.msk.bf16.gmra.mrb[40].mxu1 %vm6874_vm9, %v1320_v34  ;;  %vm6889_vm9 = vmmov %vm6867_vm0 }
 0x88f   :  { %v4294_v35 = vpop.f32.mrb[28].mxu1 }
 0x890   :  { %v1411_v38 = vadd.f32 %v4294_v35, %v5684_v40  ;;  %v1402_v50 = vpop.f32.mrb[29].mxu1 }
 0x891   :  { %v1403_v61 = vadd.f32 %v5684_v40, %v1402_v50  ;;  %v4295_v43 = vpop.f32.mrb[30].mxu1  ;;  %v4845_v50 = vld [vmem:[%s6836_s0 + $0x70] sm:$0xff] }
 0x892   :  { %v5691_v6 = vadd.f32 %v4833_v60, %v1411_v38  ;;  %v1414_v30 = vadd.f32 %v4295_v43, %v5684_v40  ;;  %v1405_v63 = vpop.f32.mrb[31].mxu1 }
 0x893   :  { %v5697_v53 = vadd.f32 %v4834_v47, %v1403_v61  ;;  %v1406_v23 = vadd.f32 %v5684_v40, %v1405_v63  ;;  %v4846_v63 = vld [vmem:[%s6836_s0 + $0x60] sm:$0xff] }
 0x894   :  { %v1489_v18 = vsel %vm6875_vm1, %v5691_v6, 0.0  ;;  %v5705_v1 = vadd.f32 %v4835_v55, %v1414_v30  ;;  %vm6898_vm1 = vmmov %vm6867_vm0 }
 0x895   :  { %v5710_v45 = vadd.f32 %v4836_v19, %v1406_v23  ;;  %1490 = vadd.xlane.f32.xlu0 %v1489_v18  ;;  %v1483_v52 = vsel %vm6876_vm10, %v5697_v53, 0.0  ;;  %v4847_v23 = vld [vmem:[%s6836_s0 + $0x78] sm:$0xff]  ;;  %vm6899_vm10 = vmmov %vm6867_vm0 }
 0x896   :  { %1484 = vadd.xlane.f32.xlu1 %v1483_v52  ;;  %v1492_v28 = vsel %vm6878_vm12, %v5705_v1, 0.0  ;;  %vm6901_vm12 = vmmov %vm6867_vm0 }
 0x897   :  { %v4298_v2 = vpop.f32.mrb[32].mxu1  ;;  %v1486_v24 = vsel %vm6877_vm11, %v5710_v45, 0.0  ;;  %vm6900_vm11 = vmmov %vm6867_vm0 }
 0x898   :  { %v1427_v41 = vadd.f32 %v4298_v2, %v5684_v40  ;;  %v1418_v26 = vpop.f32.mrb[33].mxu1 }
 0x899   :  { %v1419_v17 = vadd.f32 %v5684_v40, %v1418_v26  ;;  %v4299_v37 = vpop.f32.mrb[34].mxu1  ;;  %1487 = vadd.xlane.f32.xlu0 %v1486_v24 }
 0x89a   :  { %v5723_v32 = vadd.f32 %v4837_v12, %v1427_v41  ;;  %v1430_v54 = vadd.f32 %v4299_v37, %v5684_v40  ;;  %v1421_v39 = vpop.f32.mrb[35].mxu1  ;;  %1493 = vadd.xlane.f32.xlu1 %v1492_v28  ;;  %v95_v41 = vld [vmem:[%s6840_s2 + $0x60] sm:$0xff]  ;;  %v5820_v28 = vpop.permute.xlu1 %1759 }
 0x89b   :  { %v1422_v49 = vadd.f32 %v5684_v40, %v1421_v39  ;;  %v5730_v7 = vadd.f32 %v4838_v44, %v1419_v17  ;;  %v1748_v26 = vsub.f32 1.0, %v95_v41  ;;  %v96_v17 = vld [vmem:[%s6840_s2 + $0x68] sm:$0xff]  ;;  %6890 = vst [vmem:[#allocation2_spill] sm:$0xff] %v5820_v28 }
 0x89c   :  { %v5735_v4 = vadd.f32 %v4839_v21, %v1430_v54  ;;  %v1501_v9 = vsel %vm6879_vm13, %v5723_v32, 0.0  ;;  %v1749_v37 = vsub.f32 1.0, %v96_v17  ;;  %v5832_v21 = vpop.permute.xlu0 %1754  ;;  %vm6902_vm13 = vmmov %vm6867_vm0 }
 0x89d   :  { %1502 = vadd.xlane.f32.xlu0 %v1501_v9  ;;  %v5742_v11 = vadd.f32 %v4840_v58, %v1422_v49  ;;  %v1495_v36 = vsel %vm6881_vm15, %v5730_v7, 0.0  ;;  %vm6904_vm15 = vmmov %vm6867_vm0 }
 0x89e   :  { %v1504_v5 = vsel %vm6880_vm14, %v5735_v4, 0.0  ;;  %v5822_v12 = vpop.permute.xlu1 %1764  ;;  %vm6903_vm14 = vmmov %vm6867_vm0 }
 0x89f   :  { %v4302_v22 = vpop.f32.mrb[36].mxu1  ;;  %1505 = vadd.xlane.f32.xlu1 %v1504_v5  ;;  %v1498_v59 = vsel %vm6882_vm2, %v5742_v11, 0.0  ;;  %vm6905_vm2 = vmmov %vm6867_vm0 }
 0x8a0   :  { %v1443_v27 = vadd.f32 %v4302_v22, %v5684_v40  ;;  %v1434_v46 = vpop.f32.mrb[37].mxu1  ;;  %v5836_v58 = vpop.permute.xlu0 %1799 }
 0x8a1   :  { %v1435_v31 = vadd.f32 %v5684_v40, %v1434_v46  ;;  %v4303_v14 = vpop.f32.mrb[38].mxu1  ;;  %1496 = vadd.xlane.f32.xlu0 %v1495_v36  ;;  %6894 = vst [vmem:[#allocation6_spill] sm:$0xff] %v5836_v58 }
 0x8a2   :  { %v5753_v8 = vadd.f32 %v4841_v56, %v1443_v27  ;;  %v1446_v10 = vadd.f32 %v4303_v14, %v5684_v40  ;;  %v1437_v48 = vpop.f32.mrb[39].mxu1  ;;  %v5824_v54 = vpop.permute.xlu1 %1769 }
 0x8a3   :  { %v1438_v29 = vadd.f32 %v5684_v40, %v1437_v48  ;;  %1499 = vadd.xlane.f32.xlu1 %v1498_v59  ;;  %v5762_v3 = vadd.f32 %v4842_v62, %v1435_v31 }
 0x8a4   :  { %v5767_v42 = vadd.f32 %v4843_v25, %v1446_v10  ;;  %v1513_v0 = vsel %vm6867_vm0, %v5753_v8, 0.0  ;;  %v5840_v22 = vpop.permute.xlu0 %1809 }
 0x8a5   :  { %1514 = vadd.xlane.f32.xlu0 %v1513_v0  ;;  %v5774_v20 = vadd.f32 %v4844_v13, %v1438_v29  ;;  %v1507_v16 = vsel %vm6884_vm4, %v5762_v3, 0.0  ;;  %6896 = vst [vmem:[#allocation8_spill] sm:$0xff] %v5840_v22  ;;  %vm6907_vm4 = vmmov %vm6867_vm0 }
 0x8a6   :  { %v1516_v15 = vsel %vm6883_vm3, %v5767_v42, 0.0  ;;  %v5826_v39 = vpop.permute.xlu1 %1774  ;;  %vm6906_vm3 = vmmov %vm6867_vm0 }
 0x8a7   :  { %1517 = vadd.xlane.f32.xlu1 %v1516_v15  ;;  %v1510_v34 = vsel %vm6885_vm5, %v5774_v20, 0.0  ;;  %6891 = vst [vmem:[#allocation3_spill] sm:$0xff] %v5826_v39  ;;  %vm6908_vm5 = vmmov %vm6867_vm0 }
 0x8a9   :  { %1508 = vadd.xlane.f32.xlu0 %v1507_v16 }
 0x8aa   :  { %v5828_v49 = vpop.permute.xlu1 %1779 }
 0x8ab   :  { %1511 = vadd.xlane.f32.xlu1 %v1510_v34  ;;  %6892 = vst [vmem:[#allocation4_spill] sm:$0xff] %v5828_v49 }
 0x8ae   :  { %v5830_v44 = vpop.permute.xlu1 %1784 }
 0x8b2   :  { %v5834_v9 = vpop.permute.xlu1 %1789 }
 0x8b3   :  { %6893 = vst [vmem:[#allocation5_spill] sm:$0xff] %v5834_v9 }
 0x8b6   :  { %v5838_v5 = vpop.permute.xlu1 %1794 }
 0x8b7   :  { %6895 = vst [vmem:[#allocation7_spill] sm:$0xff] %v5838_v5 }
 0x8ba   :  { %v5842_v27 = vpop.permute.xlu1 %1804 }
 0x8bb   :  { %6897 = vst [vmem:[#allocation9_spill] sm:$0xff] %v5842_v27 }
 0x8cb   :  { %v4306_v57 = vpop.f32.mrb[40].mxu1 }
 0x8cc   :  { %v1459_v51 = vadd.f32 %v4306_v57, %v5684_v40  ;;  %v1450_v33 = vpop.f32.mrb[41].mxu1 }
 0x8cd   :  { %v1451_v35 = vadd.f32 %v5684_v40, %v1450_v33  ;;  %v4307_v38 = vpop.f32.mrb[42].mxu1 }
 0x8ce   :  { %v5787_v61 = vadd.f32 %v4845_v50, %v1459_v51  ;;  %v1462_v43 = vadd.f32 %v4307_v38, %v5684_v40  ;;  %v1453_v60 = vpop.f32.mrb[43].mxu1 }
 0x8cf   :  { %v1454_v30 = vadd.f32 %v5684_v40, %v1453_v60  ;;  %v5794_v47 = vadd.f32 %v4846_v63, %v1451_v35  ;;  %v4848_v40 = vld [vmem:[%s6836_s0 + $0x68] sm:$0xff] }
 0x8d0   :  { %v5799_v18 = vadd.f32 %v4847_v23, %v1462_v43  ;;  %v1525_v55 = vsel %vm6886_vm6, %v5787_v61, 0.0 }
 0x8d1   :  { %1526 = vadd.xlane.f32.xlu0 %v1525_v55  ;;  %v5806_v19 = vadd.f32 %v4848_v40, %v1454_v30  ;;  %v1519_v2 = vsel %vm6888_vm8, %v5794_v47, 0.0  ;;  %vm6910_vm8 = vmmov %vm6867_vm0 }
 0x8d2   :  { %v1528_v52 = vsel %vm6887_vm7, %v5799_v18, 0.0  ;;  %vm6909_vm7 = vmmov %vm6867_vm0 }
 0x8d3   :  { %1529 = vadd.xlane.f32.xlu1 %v1528_v52  ;;  %v1522_v24 = vsel %vm6889_vm9, %v5806_v19, 0.0  ;;  %vm6911_vm9 = vmmov %vm6867_vm0 }
 0x8d5   :  { %1520 = vadd.xlane.f32.xlu0 %v1519_v2 }
 0x8d7   :  { %1523 = vadd.xlane.f32.xlu1 %v1522_v24 }
 0x8e8   :  { %1814 = vperm.xlu1 %4618, %v1748_v26  }
 0x8eb   :  { %1819 = vperm.xlu0 %4617, %v1749_v37  }
 0x922   :  { %v1491_v46 = vpop.xlane.xlu0 %1490 }
 0x923   :  { %v1534_v36 = vmul.f32 0.03125, %v1491_v46  ;;  %v1485_v31 = vpop.xlane.xlu1 %1484 }
 0x924   :  { %v1532_v14 = vmul.f32 0.03125, %v1485_v31 }
 0x925   :  { %v5845_v56 = vsub.f32 %v5691_v6, %v1534_v36 }
 0x926   :  { %v5848_v10 = vsub.f32 %v5697_v53, %v1532_v14  ;;  %v1488_v48 = vpop.xlane.xlu0 %1487 }
 0x927   :  { %v1533_v59 = vmul.f32 0.03125, %v1488_v48  ;;  %v1494_v29 = vpop.xlane.xlu1 %1493  ;;  %v1566_v62 = vmul.f32 %v5845_v56, %v5845_v56 }
 0x928   :  { %v1535_v25 = vmul.f32 0.03125, %v1494_v29  ;;  %v1564_v13 = vmul.f32 %v5848_v10, %v5848_v10 }
 0x929   :  { %v1586_v0 = vsel %vm6898_vm1, %v1566_v62, 0.0  ;;  %v5856_v15 = vsub.f32 %v5710_v45, %v1533_v59  ;;  %vm6912_vm1 = vmmov %vm6867_vm0 }
 0x92a   :  { %v5859_v6 = vsub.f32 %v5705_v1, %v1535_v25  ;;  %1587 = vadd.xlane.f32.xlu0 %v1586_v0  ;;  %v1503_v53 = vpop.xlane.xlu0 %1502  ;;  %v1580_v35 = vsel %vm6899_vm10, %v1564_v13, 0.0 }
 0x92b   :  { %v1538_v16 = vmul.f32 0.03125, %v1503_v53  ;;  %v1565_v1 = vmul.f32 %v5856_v15, %v5856_v15 }
 0x92c   :  { %v1506_v34 = vpop.xlane.xlu1 %1505  ;;  %v1567_v57 = vmul.f32 %v5859_v6, %v5859_v6 }
 0x92d   :  { %v5864_v51 = vsub.f32 %v5723_v32, %v1538_v16  ;;  %v1539_v33 = vmul.f32 0.03125, %v1506_v34  ;;  %v1583_v40 = vsel %vm6902_vm13, %v1565_v1, 0.0  ;;  %v1848_v34 = vlaneseq  ;;  %vm6915_vm13 = vmmov %vm6867_vm0 }
 0x92e   :  { %v1497_v38 = vpop.xlane.xlu0 %1496  ;;  %1581 = vadd.xlane.f32.xlu0 %v1580_v35  ;;  %v1589_v45 = vsel %vm6900_vm11, %v1567_v57, 0.0  ;;  %v4624_v35 = vld [vmem:[%s6842_s9 + $0x8] sm:$0xff]  }
 0x92f   :  { %v5871_v50 = vsub.f32 %v5735_v4, %v1539_v33  ;;  %v1536_v43 = vmul.f32 0.03125, %v1497_v38  ;;  %1590 = vadd.xlane.f32.xlu1 %v1589_v45  ;;  %v1570_v60 = vmul.f32 %v5864_v51, %v5864_v51  ;;  %v5919_v57 = vshrl.u32 %v1848_v34, 7 }
 0x930   :  { %v1500_v32 = vpop.xlane.xlu1 %1499 }
 0x931   :  { %v5876_v30 = vsub.f32 %v5730_v7, %v1536_v43  ;;  %v1537_v63 = vmul.f32 0.03125, %v1500_v32  ;;  %v1598_v23 = vsel %vm6901_vm12, %v1570_v60, 0.0  ;;  %v1571_v4 = vmul.f32 %v5871_v50, %v5871_v50 }
 0x932   :  { %v1515_v55 = vpop.xlane.xlu0 %1514  ;;  %1599 = vadd.xlane.f32.xlu0 %v1598_v23  ;;  %v1856_v33 = vadd.s32 56, %v5919_v57  ;;  %v4856_v43 = vmov 0.0   ;;  %vm1897_vm12 = vcmask 1040384  }
 0x933   :  { %v5883_v52 = vsub.f32 %v5742_v11, %v1537_v63  ;;  %v1542_v2 = vmul.f32 0.03125, %v1515_v55  ;;  %1584 = vadd.xlane.f32.xlu1 %v1583_v40  ;;  %v1568_v24 = vmul.f32 %v5876_v30, %v5876_v30  ;;  %v1601_v46 = vsel %vm6904_vm15, %v1571_v4, 0.0 }
 0x934   :  { %v1518_v7 = vpop.xlane.xlu1 %1517  ;;  %v1872_v38 = vand.u32 63, %v1856_v33  ;;  %vm2541_vm15 = vcmask 1041408  }
 0x935   :  { %v5888_v41 = vsub.f32 %v5753_v8, %v1542_v2  ;;  %v1543_v26 = vmul.f32 0.03125, %v1518_v7  ;;  %v1592_v17 = vsel %vm6903_vm14, %v1568_v24, 0.0  ;;  %v1569_v11 = vmul.f32 %v5883_v52, %v5883_v52  ;;  %vm6916_vm14 = vmmov %vm6867_vm0 }
 0x936   :  { %v1509_v37 = vpop.xlane.xlu0 %1508  ;;  %1593 = vadd.xlane.f32.xlu0 %v1592_v17  ;;  %v2452_v45 = vadd.s32 1, %v1872_v38 }
 0x937   :  { %v5895_v36 = vsub.f32 %v5767_v42, %v1543_v26  ;;  %v1540_v31 = vmul.f32 0.03125, %v1509_v37  ;;  %1602 = vadd.xlane.f32.xlu1 %v1601_v46  ;;  %v1574_v14 = vmul.f32 %v5888_v41, %v5888_v41  ;;  %v1595_v62 = vsel %vm6867_vm0, %v1569_v11, 0.0 }
 0x938   :  { %v1512_v8 = vpop.xlane.xlu1 %1511  ;;  %vm2484_vm6 = vcmp.lt.s32.totalorder %v2452_v45, 64 }
 0x939   :  { %v5900_v48 = vsub.f32 %v5762_v3, %v1540_v31  ;;  %v1541_v59 = vmul.f32 0.03125, %v1512_v8  ;;  %v1610_v29 = vsel %vm6905_vm2, %v1574_v14, 0.0  ;;  %v1575_v25 = vmul.f32 %v5895_v36, %v5895_v36 }
 0x93a   :  { %1611 = vadd.xlane.f32.xlu0 %v1610_v29  ;;  %v5926_v60 = vsel %vm2484_vm6, 1.0, %v4856_v43  ;;  %vm6919_vm6 = vmmov %vm6867_vm0 }
 0x93b   :  { %v5907_v42 = vsub.f32 %v5774_v20, %v1541_v59  ;;  %1596 = vadd.xlane.f32.xlu1 %v1595_v62  ;;  %v1572_v0 = vmul.f32 %v5900_v48, %v5900_v48  ;;  %v1613_v3 = vsel %vm6907_vm4, %v1575_v25, 0.0  ;;  %v4623_v20 = vld [vmem:[%s6842_s9] sm:$0xff]   ;;  %v98_v59 = vld [vmem:[%s6840_s2 + $0x78] sm:$0xff]  ;;  %v1864_v62 = vadd.s32 120, %v5919_v57  ;;  %vm6918_vm4 = vmmov %vm6867_vm0 }
 0x93c   :  { %4308 = vmatprep.subr.bf16.mxu0 %v4623_v20  ;;  %v1751_v29 = vsub.f32 1.0, %v98_v59  ;;  %v5976_v59 = vld [vmem:[%s6843_s7] ss:$0 sm:$0xff] }
 0x93d   :  { %v1604_v13 = vsel %vm6906_vm3, %v1572_v0, 0.0  ;;  %v1573_v53 = vmul.f32 %v5907_v42, %v5907_v42  ;;  %4309 = vmatpush3.bf16.msra.mxu0 %v4623_v20  ;;  %v1880_v25 = vand.u32 63, %v1864_v62  ;;  %vm6917_vm3 = vmmov %vm6867_vm0 }
 0x93e   :  { %1605 = vadd.xlane.f32.xlu0 %v1604_v13  ;;  %4310 = vmatprep.subr.bf16.mxu0 %v4624_v35 }
 0x93f   :  { %1614 = vadd.xlane.f32.xlu1 %v1613_v3  ;;  %v1607_v16 = vsel %vm6908_vm5, %v1573_v53, 0.0  ;;  %v2460_v0 = vadd.s32 1, %v1880_v25  ;;  %v5965_v3 = vld [vmem:[%s6842_s9 + $0x10] sm:$0xff]   ;;  %v1865_v25 = vand.u32 63, %v5919_v57  ;;  %vm2630_vm5 = vcmask 1046528  }
 0x941   :  { %4311 = vmatpush3.bf16.msra.mxu0 %v4624_v35  ;;  %vm2492_vm10 = vcmp.lt.s32.totalorder %v2460_v0, 64 }
 0x942   :  { %v5960_v13 = vsel %vm2492_vm10, 1.0, %v4856_v43  ;;  %4328 = vmatprep.subr.bf16.mxu0 %v5965_v3  ;;  %vm6926_vm10 = vmmov %vm6867_vm0 }
 0x943   :  { %1608 = vadd.xlane.f32.xlu1 %v1607_v16 }
 0x95e   :  { %v1527_v1 = vpop.xlane.xlu0 %1526 }
 0x95f   :  { %v1546_v32 = vmul.f32 0.03125, %v1527_v1 }
 0x960   :  { %v1530_v63 = vpop.xlane.xlu1 %1529 }
 0x961   :  { %v5929_v23 = vsub.f32 %v5787_v61, %v1546_v32  ;;  %v1547_v55 = vmul.f32 0.03125, %v1530_v63 }
 0x962   :  { %v1521_v40 = vpop.xlane.xlu0 %1520 }
 0x963   :  { %v5932_v4 = vsub.f32 %v5799_v18, %v1547_v55  ;;  %v1544_v2 = vmul.f32 0.03125, %v1521_v40  ;;  %v1578_v24 = vmul.f32 %v5929_v23, %v5929_v23 }
 0x964   :  { %v1524_v7 = vpop.xlane.xlu1 %1523 }
 0x965   :  { %v5937_v26 = vsub.f32 %v5794_v47, %v1544_v2  ;;  %v1545_v17 = vmul.f32 0.03125, %v1524_v7  ;;  %v1622_v37 = vsel %vm6909_vm7, %v1578_v24, 0.0  ;;  %v1579_v61 = vmul.f32 %v5932_v4, %v5932_v4 }
 0x966   :  { %1623 = vadd.xlane.f32.xlu0 %v1622_v37  ;;  %vm2227_vm7 = vsmask.f32 7424 }
 0x967   :  { %v5943_v46 = vsub.f32 %v5806_v19, %v1545_v17  ;;  %v1625_v18 = vsel %vm6910_vm8, %v1579_v61, 0.0  ;;  %v1576_v11 = vmul.f32 %v5937_v26, %v5937_v26  ;;  %v97_v19 = vld [vmem:[%s6840_s2 + $0x70] sm:$0xff]  ;;  %vm6923_vm8 = vmmov %vm6867_vm0 }
 0x968   :  { %1626 = vadd.xlane.f32.xlu1 %v1625_v18  ;;  %v1750_v8 = vsub.f32 1.0, %v97_v19  ;;  %v5970_v34 = vpop.permute.xlu1 %1814 }
 0x969   :  { %v1616_v31 = vsel %vm6911_vm9, %v1576_v11, 0.0  ;;  %v1577_v47 = vmul.f32 %v5943_v46, %v5943_v46  ;;  %6914 = vst [vmem:[#allocation11_spill] sm:$0xff] %v5970_v34  ;;  %vm6924_vm9 = vmmov %vm6867_vm0 }
 0x96a   :  { %1617 = vadd.xlane.f32.xlu0 %v1616_v31  ;;  %v5968_v53 = vpop.permute.xlu0 %1819 }
 0x96b   :  { %v1619_v14 = vsel %vm6912_vm1, %v1577_v47, 0.0  ;;  %6913 = vst [vmem:[#allocation10_spill] sm:$0xff] %v5968_v53  ;;  %vm6925_vm1 = vmmov %vm6867_vm0 }
 0x96c   :  { %1620 = vadd.xlane.f32.xlu1 %v1619_v14 }
 0x97d   :  { %1824 = vperm.xlu1 %4618, %v1750_v8  }
 0x980   :  { %1829 = vperm.xlu0 %4617, %v1751_v29  }
 0x9b7   :  { %v1588_v16 = vpop.xlane.xlu0 %1587 }
 0x9b8   :  { %v1630_v20 = vmul.f32 0.03125, %v1588_v16 }
 0x9ba   :  { %v1646_v33 = vadd.f32 1e-05, %v1630_v20 }
 0x9bb   :  { %v1582_v35 = vpop.xlane.xlu0 %1581 }
 0x9bc   :  { %4769 = vrsqrt.f32 %v1646_v33  ;;  %v1628_v38 = vmul.f32 0.03125, %v1582_v35  ;;  %v1591_v45 = vpop.xlane.xlu1 %1590 }
 0x9bd   :  { %v1631_v1 = vmul.f32 0.03125, %v1591_v45 }
 0x9be   :  { %v1644_v32 = vadd.f32 1e-05, %v1628_v38 }
 0x9bf   :  { %v1647_v63 = vadd.f32 1e-05, %v1631_v1  ;;  %v1600_v55 = vpop.xlane.xlu0 %1599  ;;  %v5984_v1 = vld [vmem:[%s6844_s8] ss:$0 sm:$0xff] }
 0x9c0   :  { %4771 = vrsqrt.f32 %v1644_v32  ;;  %v1634_v40 = vmul.f32 0.03125, %v1600_v55  ;;  %v1585_v2 = vpop.xlane.xlu1 %1584 }
 0x9c1   :  { %4773 = vrsqrt.f32 %v1647_v63  ;;  %v1629_v24 = vmul.f32 0.03125, %v1585_v2 }
 0x9c2   :  { %v1650_v7 = vadd.f32 1e-05, %v1634_v40  ;;  %v1956_v40 = vadd.s32 4294967295, %v1865_v25 }
 0x9c3   :  { %v1645_v17 = vadd.f32 1e-05, %v1629_v24  ;;  %v1594_v37 = vpop.xlane.xlu0 %1593 }
 0x9c4   :  { %4775 = vrsqrt.f32 %v1650_v7  ;;  %v1632_v61 = vmul.f32 0.03125, %v1594_v37  ;;  %v1603_v18 = vpop.xlane.xlu1 %1602  ;;  %vm1972_vm11 = vcmp.ge.s32.totalorder %v1956_v40, 0 }
 0x9c5   :  { %4777 = vrsqrt.f32 %v1645_v17  ;;  %v1635_v11 = vmul.f32 0.03125, %v1603_v18 }
 0x9c6   :  { %v4770_v31 = vpop.eup %4769  ;;  %v1648_v47 = vadd.f32 1e-05, %v1632_v61 }
 0x9c7   :  { %v1678_v14 = vmul.f32 %v4770_v31, %v5845_v56  ;;  %v1651_v19 = vadd.f32 1e-05, %v1635_v11  ;;  %v1612_v8 = vpop.xlane.xlu0 %1611 }
 0x9c8   :  { %4779 = vrsqrt.f32 %v1648_v47  ;;  %v1638_v29 = vmul.f32 0.03125, %v1612_v8  ;;  %v1597_v62 = vpop.xlane.xlu1 %1596 }
 0x9c9   :  { %4781 = vrsqrt.f32 %v1651_v19  ;;  %v1633_v0 = vmul.f32 0.03125, %v1597_v62  ;;  %v1700_v35 = vmul.f32 %v5976_v59, %v1678_v14 }
 0x9ca   :  { %v4772_v16 = vpop.eup %4771  ;;  %v1654_v20 = vadd.f32 1e-05, %v1638_v29 }
 0x9cb   :  { %v4774_v33 = vpop.eup %4773  ;;  %v1676_v56 = vmul.f32 %v4772_v16, %v5848_v10  ;;  %v1649_v38 = vadd.f32 1e-05, %v1633_v0  ;;  %v1606_v45 = vpop.xlane.xlu0 %1605  ;;  %v1722_v61 = vadd.f32 %v5984_v1, %v1700_v35  ;;  %v1857_v0 = vadd.s32 64, %v5919_v57 }
 0x9cc   :  { %v1679_v32 = vmul.f32 %v4774_v33, %v5859_v6  ;;  %4783 = vrsqrt.f32 %v1654_v20  ;;  %v1636_v63 = vmul.f32 0.03125, %v1606_v45  ;;  %v1615_v55 = vpop.xlane.xlu1 %1614  ;;  %v6012_v45 = vsel %vm1972_vm11, 1.0, %v4856_v43  ;;  %vm6927_vm11 = vmmov %vm6867_vm0 }
 0x9cd   :  { %v1698_v2 = vmul.f32 %v5976_v59, %v1676_v56  ;;  %4785 = vrsqrt.f32 %v1649_v38  ;;  %v1639_v24 = vmul.f32 0.03125, %v1615_v55  ;;  %v6004_v16 = vmul.f32 %v5822_v12, %v1722_v61 }
 0x9ce   :  { %v4776_v7 = vpop.eup %4775  ;;  %v1701_v10 = vmul.f32 %v5976_v59, %v1679_v32  ;;  %v1652_v17 = vadd.f32 1e-05, %v1636_v63  ;;  %v1873_v61 = vand.u32 63, %v1857_v0 }
 0x9cf   :  { %v4778_v37 = vpop.eup %4777  ;;  %v1720_v18 = vadd.f32 %v5984_v1, %v1698_v2  ;;  %v1682_v11 = vmul.f32 %v4776_v7, %v5864_v51  ;;  %v1655_v6 = vadd.f32 1e-05, %v1639_v24 }
 0x9d0   :  { %v1723_v31 = vadd.f32 %v5984_v1, %v1701_v10  ;;  %v1677_v47 = vmul.f32 %v4778_v37, %v5856_v15  ;;  %4787 = vrsqrt.f32 %v1652_v17  ;;  %v1609_v14 = vpop.xlane.xlu1 %1608  ;;  %v1901_v37 = vrot.slane %v6004_v16, 7 }
 0x9d1   :  { %v1704_v19 = vmul.f32 %v5976_v59, %v1682_v11  ;;  %4789 = vrsqrt.f32 %v1655_v6  ;;  %v1637_v8 = vmul.f32 0.03125, %v1609_v14  ;;  %v5996_v29 = vmul.f32 %v5832_v21, %v1720_v18 }
 0x9d2   :  { %v4780_v62 = vpop.eup %4779  ;;  %v5999_v25 = vmul.f32 %v5824_v54, %v1723_v31  ;;  %v1699_v51 = vmul.f32 %v5976_v59, %v1677_v47  ;;  %v4629_v31 = vld [vmem:[%s6845_s11] sm:$0xff]  }
 0x9d3   :  { %v4782_v15 = vpop.eup %4781  ;;  %v1680_v20 = vmul.f32 %v4780_v62, %v5876_v30  ;;  %v1653_v33 = vadd.f32 1e-05, %v1637_v8  ;;  %v1898_v35 = vrot.slane %v5996_v29, 7  ;;  %v1726_v32 = vadd.f32 %v5984_v1, %v1704_v19  ;;  %4368 = vmatprep.subr.bf16.mxu1 %v4629_v31 }
 0x9d4   :  { %v1721_v56 = vadd.f32 %v5984_v1, %v1699_v51  ;;  %v1683_v38 = vmul.f32 %v4782_v15, %v5871_v50  ;;  %v1903_v63 = vrot.slane %v5999_v25, 7  ;;  %v4857_v50 = vmov 1.0   ;;  %4369 = vmatpush3.bf16.msra.mxu1 %v4629_v31 }
 0x9d5   :  { %v1702_v57 = vmul.f32 %v5976_v59, %v1680_v20  ;;  %4791 = vrsqrt.f32 %v1653_v33  ;;  %v6022_v24 = vsel %vm1897_vm12, 0.0, %v1898_v35  ;;  %v6024_v40 = vrot.slane %v4857_v50, 6 }
 0x9d6   :  { %v4784_v55 = vpop.eup %4783  ;;  %v1705_v30 = vmul.f32 %v5976_v59, %v1683_v38  ;;  %v6019_v2 = vmul.f32 %v5820_v28, %v1721_v56  ;;  %v2036_v47 = vmul.f32 %v6012_v45, %v6022_v24  ;;  %v6038_v14 = vsel %vm1897_vm12, %v1901_v37, %v1903_v63 }
 0x9d7   :  { %v4786_v7 = vpop.eup %4785  ;;  %v1724_v10 = vadd.f32 %v5984_v1, %v1702_v57  ;;  %v1686_v17 = vmul.f32 %v4784_v55, %v5888_v41  ;;  %v6044_v19 = vmul.f32 %v5830_v44, %v1726_v32 }
 0x9d8   :  { %v1727_v18 = vadd.f32 %v5984_v1, %v1705_v30  ;;  %v1681_v11 = vmul.f32 %v4786_v7, %v5883_v52  ;;  %v1899_v6 = vrot.slane %v6019_v2, 7  ;;  %v4630_v52 = vld [vmem:[%s6845_s11 + $0x8] sm:$0xff]  }
 0x9d9   :  { %v6041_v41 = vmul.f32 %v5826_v39, %v1724_v10  ;;  %v1708_v33 = vmul.f32 %v5976_v59, %v1686_v17  ;;  %4370 = vmatprep.subr.bf16.mxu1 %v4630_v52  ;;  %v1964_v10 = vadd.s32 4294967295, %v1873_v61 }
 0x9da   :  { %v4788_v8 = vpop.eup %4787  ;;  %v1703_v62 = vmul.f32 %v5976_v59, %v1681_v11  ;;  %v6051_v51 = vsel %vm1897_vm12, %v1898_v35, %v1899_v6  ;;  %v6054_v0 = vsel %vm1897_vm12, %v1899_v6, %v1901_v37  ;;  %v6057_v15 = vmul.f32 %v5834_v9, %v1727_v18  ;;  %v4626_v35 = vld [vmem:[%s6842_s9 + $0x18] sm:$0xff]   ;;  %4371 = vmatpush3.bf16.msra.mxu1 %v4630_v52 }
 0x9db   :  { %v4790_v20 = vpop.eup %4789  ;;  %v1684_v56 = vmul.f32 %v4788_v8, %v5900_v48  ;;  %v2052_v38 = vpack.c.bf16 %v6051_v51, %v2036_v47  ;;  %v6064_v32 = vpack.c.bf16 %v6038_v14, %v6054_v0  ;;  %v1905_v30 = vrot.slane %v6041_v41, 7  ;;  %v4631_v48 = vld [vmem:[%s6845_s11 + $0x10] sm:$0xff]  }
 0x9dc   :  { %v1725_v57 = vadd.f32 %v5984_v1, %v1703_v62  ;;  %v1687_v55 = vmul.f32 %v4790_v20, %v5895_v36  ;;  %v1911_v7 = vrot.slane %v6057_v15, 7  ;;  %v1730_v18 = vadd.f32 %v5984_v1, %v1708_v33  ;;  %v6095_v62 = vld [vmem:[%s6842_s9 + $0x20] sm:$0xff]   ;;  %4372 = vmatprep.subr.bf16.mxu1 %v4631_v48 }
 0x9dd   :  { %v1706_v50 = vmul.f32 %v5976_v59, %v1684_v56  ;;  %4312 = vmatprep.mubr.msk.bf16.mxu0 %vm6915_vm13, %v2052_v38  ;;  %v1909_v6 = vrot.slane %v6044_v19, 7  ;;  %v1906_v47 = vsel %vm1897_vm12, %v1903_v63, %v1905_v30  ;;  %vm1980_vm2 = vcmp.ge.s32.totalorder %v1964_v10, 0  ;;  %vm6928_vm13 = vmmov %vm6867_vm0 }
 0x9de   :  { %v1709_v17 = vmul.f32 %v5976_v59, %v1687_v55  ;;  %4313 = vmatmul.mubr.msk.bf16.vlgmr.msra.gmra.mrb[52].mxu0 %vm6916_vm14, %v6064_v32  ;;  %v6082_v36 = vmul.f32 %v5828_v49, %v1725_v57  ;;  %v2594_v57 = vmul.f32 %v6024_v40, %v1906_v47  ;;  %4373 = vmatpush3.bf16.msra.mxu1 %v4631_v48  ;;  %vm6929_vm14 = vmmov %vm6867_vm0 }
 0x9df   :  { %v4792_v37 = vpop.eup %4791  ;;  %v1728_v11 = vadd.f32 %v5984_v1, %v1706_v50  ;;  %4329 = vmatpush3.bf16.msra.mxu0 %v5965_v3  ;;  %v1912_v20 = vsel %vm1897_vm12, %v1909_v6, %v1911_v7  ;;  %v2555_v3 = vrot.slane %v5926_v60, 6  ;;  %v2590_v10 = vmul.f32 %v6024_v40, %v6022_v24 }
 0x9e0   :  { %v1731_v61 = vadd.f32 %v5984_v1, %v1709_v17  ;;  %v1685_v31 = vmul.f32 %v4792_v37, %v5907_v42  ;;  %v1907_v8 = vrot.slane %v6082_v36, 7  ;;  %4330 = vmatprep.subr.bf16.mxu0 %v4626_v35 }
 0x9e1   :  { %v6100_v52 = vmul.f32 %v5838_v5, %v1728_v11  ;;  %v6124_v11 = vsel %vm2541_vm15, %v6024_v40, %v2555_v3 }
 0x9e2   :  { %v1707_v42 = vmul.f32 %v5976_v59, %v1685_v31  ;;  %v1908_v63 = vsel %vm1897_vm12, %v1905_v30, %v1907_v8  ;;  %v1910_v33 = vsel %vm1897_vm12, %v1907_v8, %v1909_v6  ;;  %v6106_v56 = vmul.f32 %v5840_v22, %v1731_v61 }
 0x9e3   :  { %v6108_v38 = vpack.c.bf16 %v1908_v63, %v1906_v47  ;;  %v2595_v55 = vmul.f32 %v6024_v40, %v1908_v63  ;;  %v6112_v60 = vpack.c.bf16 %v1912_v20, %v1910_v33  ;;  %4331 = vmatpush3.bf16.msra.mxu0 %v4626_v35  ;;  %v1913_v17 = vrot.slane %v6100_v52, 7 }
 0x9e4   :  { %v1729_v50 = vadd.f32 %v5984_v1, %v1707_v42  ;;  %v6117_v30 = vmul.f32 %v5842_v27, %v1730_v18  ;;  %4348 = vmatprep.subr.bf16.mxu0 %v6095_v62  ;;  %v6128_v35 = vsel %vm1980_vm2, 1.0, %v4856_v43  ;;  %v2596_v18 = vmul.f32 %v6024_v40, %v1910_v33  ;;  %vm6930_vm2 = vmmov %vm6867_vm0 }
 0x9e5   :  { %4316 = vmatprep.mubr.msk.bf16.mxu0 %vm6867_vm0, %v6108_v38  ;;  %v2609_v37 = vpack.c.bf16 %v2595_v55, %v2594_v57  ;;  %v6137_v48 = vsel %vm1897_vm12, %v1911_v7, %v1913_v17  ;;  %v6857_v61 = vrot.slane %v6106_v56, 7  ;;  %v2597_v31 = vmul.f32 %v6124_v11, %v1912_v20 }
 0x9e6   :  { %4317 = vmatmul.mubr.msk.bf16.gmra.mrb[56].mxu0 %vm6917_vm3, %v6112_v60  ;;  %v6134_v6 = vmul.f32 %v5836_v58, %v1729_v50  ;;  %v1917_v43 = vrot.slane %v6117_v30, 7  ;;  %v2044_v8 = vmul.f32 %v6128_v35, %v6137_v48  ;;  %v2591_v42 = vmul.f32 %v6024_v40, %v6051_v51  ;;  %vm6931_vm3 = vmmov %vm6867_vm0 }
 0x9e7   :  { %v2592_v7 = vmul.f32 %v6024_v40, %v6054_v0  ;;  %v2593_v63 = vmul.f32 %v6024_v40, %v6038_v14  ;;  %v2610_v55 = vpack.c.bf16 %v2597_v31, %v2596_v18  ;;  %v2634_v0 = vrot.slane %v2609_v37, 1 }
 0x9e8   :  { %v1915_v47 = vrot.slane %v6134_v6, 7  ;;  %v1920_v57 = vsel %vm1897_vm12, %v1917_v43, %v6857_v61  ;;  %v2607_v5 = vpack.c.bf16 %v2591_v42, %v2590_v10  ;;  %v6166_v14 = vsel %vm2541_vm15, %v2555_v3, %v6024_v40 }
 0x9e9   :  { %v2608_v49 = vpack.c.bf16 %v2593_v63, %v2592_v7  ;;  %v2598_v37 = vmul.f32 %v6166_v14, %v6137_v48 }
 0x9ea   :  { %v6154_v20 = vsel %vm1897_vm12, %v1913_v17, %v1915_v47  ;;  %v1918_v33 = vsel %vm1897_vm12, %v1915_v47, %v1917_v43  ;;  %v2601_v17 = vmul.f32 %v6024_v40, %v1920_v57  ;;  %v2631_v18 = vrot.slane %v2607_v5, 1 }
 0x9eb   :  { %v2056_v50 = vpack.c.bf16 %v6154_v20, %v2044_v8  ;;  %v6161_v58 = vpack.c.bf16 %v1920_v57, %v1918_v33  ;;  %v2600_v22 = vmul.f32 %v6024_v40, %v1918_v33  ;;  %v2632_v31 = vrot.slane %v2608_v49, 1 }
 0x9ec   :  { %v2636_v47 = vrot.slane %v2610_v55, 1  ;;  %v2599_v43 = vmul.f32 %v6024_v40, %v6154_v20 }
 0x9ed   :  { %4320 = vmatprep.mubr.msk.bf16.mxu0 %vm6918_vm4, %v2056_v50  ;;  %v2612_v10 = vpack.c.bf16 %v2601_v17, %v2600_v22  ;;  %v6177_v3 = vsel %vm2630_vm5, %v2631_v18, %v2632_v31  ;;  %v6180_v8 = vsel %vm2630_vm5, %v2632_v31, %v2634_v0  ;;  %vm6932_vm4 = vmmov %vm6867_vm0 }
 0x9ee   :  { %4321 = vmatmul.mubr.msk.bf16.gmra.mrb[60].mxu0 %vm6919_vm6, %v6161_v58  ;;  %v6183_v42 = vsel %vm2630_vm5, %v2634_v0, %v2636_v47  ;;  %v2611_v7 = vpack.c.bf16 %v2599_v43, %v2598_v37  ;;  %vm6933_vm6 = vmmov %vm6867_vm0 }
 0x9ef   :  { %v6185_v5 = vrot.slane %v2612_v10, 1 }
 0x9f0   :  { %v2638_v63 = vrot.slane %v2611_v7, 1 }
 0x9f2   :  { %v6188_v55 = vsel %vm2630_vm5, %v2636_v47, %v2638_v63  ;;  %v6192_v22 = vsel %vm2630_vm5, %v2638_v63, %v6185_v5 }
 0x9f3   :  { %v1624_v49 = vpop.xlane.xlu0 %1623 }
 0x9f4   :  { %v1642_v33 = vmul.f32 0.03125, %v1624_v49 }
 0x9f5   :  { %v1627_v57 = vpop.xlane.xlu1 %1626 }
 0x9f6   :  { %v1658_v50 = vadd.f32 1e-05, %v1642_v33  ;;  %v1643_v17 = vmul.f32 0.03125, %v1627_v57 }
 0x9f7   :  { %v1618_v18 = vpop.xlane.xlu0 %1617 }
 0x9f8   :  { %4793 = vrsqrt.f32 %v1658_v50  ;;  %v1659_v0 = vadd.f32 1e-05, %v1643_v17  ;;  %v1640_v31 = vmul.f32 0.03125, %v1618_v18  ;;  %v2213_v18 = vpack.c.bf16 %v6051_v51, %v6022_v24 }
 0x9f9   :  { %v1621_v37 = vpop.xlane.xlu1 %1620 }
 0x9fa   :  { %4795 = vrsqrt.f32 %v1659_v0  ;;  %v1656_v43 = vadd.f32 1e-05, %v1640_v31  ;;  %v1641_v10 = vmul.f32 0.03125, %v1621_v37 }
 0x9fc   :  { %4797 = vrsqrt.f32 %v1656_v43  ;;  %v1657_v7 = vadd.f32 1e-05, %v1641_v10 }
 0x9fe   :  { %4799 = vrsqrt.f32 %v1657_v7  ;;  %v6209_v7 = vpop.permute.xlu1 %1824 }
 0x9ff   :  { %6921 = vst [vmem:[#allocation13_spill] sm:$0xff] %v6209_v7 }
 0xa02   :  { %v4794_v49 = vpop.eup %4793 }
 0xa03   :  { %v1690_v47 = vmul.f32 %v4794_v49, %v5929_v23 }
 0xa04   :  { %v4796_v61 = vpop.eup %4795 }
 0xa05   :  { %v1712_v63 = vmul.f32 %v5976_v59, %v1690_v47  ;;  %v1691_v33 = vmul.f32 %v4796_v61, %v5932_v4  ;;  %v6207_v61 = vpop.permute.xlu0 %1829 }
 0xa06   :  { %v4798_v57 = vpop.eup %4797  ;;  %6920 = vst [vmem:[#allocation12_spill] sm:$0xff] %v6207_v61 }
 0xa07   :  { %v1688_v50 = vmul.f32 %v4798_v57, %v5937_v26  ;;  %v1713_v17 = vmul.f32 %v5976_v59, %v1691_v33  ;;  %v1734_v23 = vadd.f32 %v5984_v1, %v1712_v63  ;;  %v2231_v26 = vshll.u32 %v2213_v18, 16 }
 0xa08   :  { %v4800_v0 = vpop.eup %4799 }
 0xa09   :  { %v1710_v31 = vmul.f32 %v5976_v59, %v1688_v50  ;;  %v1689_v37 = vmul.f32 %v4800_v0, %v5943_v46  ;;  %v1735_v43 = vadd.f32 %v5984_v1, %v1713_v17  ;;  %v6216_v46 = vmul.f32 %v6209_v7, %v1734_v23 }
 0xa0a   :  { %v2233_v63 = vrot.slane %v2231_v26, 1  ;;  %v2229_v17 = vshrl.u32 %v2213_v18, 16  ;;  %v2244_v0 = vshll.u32 %v6108_v38, 16 }
 0xa0b   :  { %v1732_v10 = vadd.f32 %v5984_v1, %v1710_v31  ;;  %v1711_v4 = vmul.f32 %v5976_v59, %v1689_v37  ;;  %v6212_v24 = vmul.f32 %v6207_v61, %v1735_v43  ;;  %v1925_v50 = vrot.slane %v6216_v46, 7 }
 0xa0c   :  { %v6922_v37 = vrot.slane %v6106_v56, 7  ;;  %v2246_v61 = vrot.slane %v2244_v0, 1  ;;  %v4628_v0 = vld [vmem:[%s6842_s9 + $0x28] sm:$0xff]  }
 0xa0d   :  { %v1733_v51 = vadd.f32 %v5984_v1, %v1711_v4  ;;  %v6219_v49 = vmul.f32 %v5970_v34, %v1732_v10  ;;  %v1927_v33 = vrot.slane %v6212_v24, 7  ;;  %v2236_v1 = vshll.u32 %v6064_v32, 16 }
 0xa0e   :  { %v2234_v10 = vor.u32 %v2233_v63, %v2229_v17  ;;  %v2217_v63 = vpack.c.bf16 %v6154_v20, %v6137_v48  ;;  %v2240_v17 = vshrl.u32 %v6064_v32, 16 }
 0xa0f   :  { %v6222_v47 = vmul.f32 %v5968_v53, %v1733_v51  ;;  %v1921_v59 = vrot.slane %v6219_v49, 7  ;;  %v6242_v4 = vsel %vm1897_vm12, %v1925_v50, %v1927_v33  ;;  %v2238_v51 = vrot.slane %v2236_v1, 1 }
 0xa10   :  { %v2260_v1 = vshll.u32 %v2217_v63, 16  ;;  %v2264_v32 = vshrl.u32 %v2217_v63, 16  ;;  %v1947_v63 = vsel %vm1897_vm12, %v1927_v33, 0.0 }
 0xa11   :  { %v1923_v57 = vrot.slane %v6222_v47, 7  ;;  %v6236_v23 = vsel %vm1897_vm12, %v6922_v37, %v1921_v59  ;;  %v2242_v7 = vor.u32 %v2240_v17, %v2238_v51 }
 0xa12   :  { %v2262_v20 = vrot.slane %v2260_v1, 1 }
 0xa13   :  { %v6231_v31 = vsel %vm1897_vm12, %v1923_v57, %v1925_v50  ;;  %v6239_v43 = vsel %vm1897_vm12, %v1921_v59, %v1923_v57  ;;  %v2239_v59 = vsel %vm2227_vm7, %v2234_v10, %v2238_v51  ;;  %v2248_v57 = vshrl.u32 %v6108_v38, 16 }
 0xa14   :  { %v2058_v18 = vpack.c.bf16 %v6239_v43, %v6236_v23  ;;  %v2059_v26 = vpack.c.bf16 %v6242_v4, %v6231_v31  ;;  %v2252_v50 = vshll.u32 %v6112_v60, 16  ;;  %v2247_v10 = vsel %vm2227_vm7, %v2242_v7, %v2246_v61 }
 0xa15   :  { %v2250_v37 = vor.u32 %v2248_v57, %v2246_v61  ;;  %v2268_v38 = vshll.u32 %v6161_v58, 16  ;;  %v2256_v51 = vshrl.u32 %v6112_v60, 16  ;;  %v2272_v60 = vshrl.u32 %v6161_v58, 16 }
 0xa16   :  { %4324 = vmatprep.mubr.msk.bf16.mxu0 %vm6923_vm8, %v2058_v18  ;;  %v2254_v53 = vrot.slane %v2252_v50, 1  ;;  %v2276_v57 = vshll.u32 %v2058_v18, 16  ;;  %v2284_v1 = vshll.u32 %v2059_v26, 16  ;;  %v6282_v58 = vrot.slane %v5960_v13, 6  ;;  %vm6934_vm8 = vmmov %vm6867_vm0 }
 0xa17   :  { %4325 = vmatmul.mubr.msk.bf16.gmra.mrb[64].mxu0 %vm6924_vm9, %v2059_v26  ;;  %v2270_v61 = vrot.slane %v2268_v38, 1  ;;  %v2602_v13 = vmul.f32 %v6024_v40, %v6236_v23  ;;  %vm6935_vm9 = vmmov %vm6867_vm0 }
 0xa18   :  { %4332 = vmatprep.mubr.msk.bf16.mxu0 %vm6925_vm1, %v2239_v59  ;;  %v2255_v48 = vsel %vm2227_vm7, %v2250_v37, %v2254_v53  ;;  %v2266_v59 = vor.u32 %v2264_v32, %v2262_v20  ;;  %v2258_v50 = vor.u32 %v2256_v51, %v2254_v53  ;;  %v2280_v37 = vshrl.u32 %v2058_v18, 16  ;;  %vm6937_vm1 = vmmov %vm6867_vm0 }
 0xa19   :  { %v2274_v53 = vor.u32 %v2272_v60, %v2270_v61  ;;  %v2288_v51 = vshrl.u32 %v2059_v26, 16  ;;  %v6291_v26 = vsel %vm2541_vm15, %v6024_v40, %v6282_v58  ;;  %vm6936_vm15 = vmmov %vm6867_vm0 }
 0xa1a   :  { %v2263_v7 = vsel %vm2227_vm7, %v2258_v50, %v2262_v20  ;;  %v2271_v17 = vsel %vm2227_vm7, %v2266_v59, %v2270_v61 }
 0xa1f   :  { %4333 = vmatmul.mubr.msk.bf16.vlgmr.msra.gmra.mrb[52].mxu0 %vm6926_vm10, %v2247_v10  ;;  %vm6938_vm10 = vmmov %vm6867_vm0 }
 0xa20   :  { %4349 = vmatpush3.bf16.msra.mxu0 %v6095_v62  ;;  %4336 = vmatprep.mubr.msk.bf16.mxu0 %vm6927_vm11, %v2255_v48  ;;  %v2278_v62 = vrot.slane %v2276_v57, 1  ;;  %v2221_v48 = vpack.c.bf16 %v1947_v63, %v1947_v63  ;;  %v2603_v57 = vmul.f32 %v6024_v40, %v6239_v43  ;;  %v2606_v43 = vmul.f32 %v6282_v58, %v1947_v63  ;;  %vm6939_vm11 = vmmov %vm6867_vm0 }
 0xa21   :  { %4350 = vmatprep.subr.bf16.mxu0 %v4628_v0 }
 0xa22   :  { %v2282_v10 = vor.u32 %v2280_v37, %v2278_v62  ;;  %v2279_v32 = vsel %vm2227_vm7, %v2274_v53, %v2278_v62  ;;  %v2292_v38 = vshll.u32 %v2221_v48, 16  ;;  %v2613_v50 = vpack.c.bf16 %v2603_v57, %v2602_v13  ;;  %v6322_v62 = vld [vmem:[%s6846_s10] ss:$0 sm:$0xff] }
 0xa24   :  { %4351 = vmatpush3.bf16.msra.mxu0 %v4628_v0  ;;  %v2286_v0 = vrot.slane %v2284_v1, 1  ;;  %v2294_v33 = vrot.slane %v2292_v38, 1  ;;  %v2642_v61 = vrot.slane %v2613_v50, 1 }
 0xa26   :  { %v2287_v20 = vsel %vm2227_vm7, %v2282_v10, %v2286_v0  ;;  %v2290_v59 = vor.u32 %v2288_v51, %v2286_v0 }
 0xa27   :  { %4337 = vmatmul.mubr.msk.bf16.gmra.mrb[56].mxu0 %vm6928_vm13, %v2263_v7  ;;  %vm2943_vm13 = vcmask 523264  }
 0xa28   :  { %4340 = vmatprep.mubr.msk.bf16.mxu0 %vm6929_vm14, %v2271_v17  ;;  %v2295_v18 = vsel %vm2227_vm7, %v2290_v59, %v2294_v33  ;;  %vm6945_vm14 = vmmov %vm6867_vm0 }
 0xa2f   :  { %4341 = vmatmul.mubr.msk.bf16.gmra.mrb[60].mxu0 %vm6930_vm2, %v2279_v32  ;;  %vm6946_vm2 = vmmov %vm6867_vm0 }
 0xa30   :  { %4344 = vmatprep.mubr.msk.bf16.mxu0 %vm6867_vm0, %v2287_v20 }
 0xa37   :  { %4345 = vmatmul.mubr.msk.bf16.gmra.mrb[64].mxu0 %vm6931_vm3, %v2295_v18  ;;  %vm6947_vm3 = vmmov %vm6867_vm0 }
 0xa38   :  { %4352 = vmatprep.mubr.msk.bf16.mxu0 %vm6932_vm4, %v6177_v3  ;;  %v2604_v3 = vmul.f32 %v6024_v40, %v6231_v31  ;;  %v2643_v31 = vsel %vm2630_vm5, %v6185_v5, %v2642_v61  ;;  %v4633_v5 = vld [vmem:[%s6845_s11 + $0x20] sm:$0xff]   ;;  %vm6948_vm4 = vmmov %vm6867_vm0 }
 0xa3f   :  { %4353 = vmatmul.mubr.msk.bf16.vlgmr.msra.gmra.mrb[52].mxu0 %vm6933_vm6, %v6180_v8  ;;  %v2605_v8 = vmul.f32 %v6291_v26, %v6242_v4  ;;  %v2615_v4 = vpack.c.bf16 %v2606_v43, %v2606_v43  ;;  %vm6949_vm6 = vmmov %vm6867_vm0 }
 0xa40   :  { %4356 = vmatprep.mubr.msk.bf16.mxu0 %vm6934_vm8, %v6183_v42  ;;  %vm6950_vm8 = vmmov %vm6867_vm0 }
 0xa41   :  { %v2614_v42 = vpack.c.bf16 %v2605_v8, %v2604_v3  ;;  %v2646_v17 = vrot.slane %v2615_v4, 1 }
 0xa43   :  { %v2644_v7 = vrot.slane %v2614_v42, 1 }
 0xa45   :  { %v2645_v23 = vsel %vm2630_vm5, %v2642_v61, %v2644_v7 }
 0xa47   :  { %4357 = vmatmul.mubr.msk.bf16.gmra.mrb[56].mxu0 %vm6935_vm9, %v6188_v55  ;;  %v2647_v55 = vsel %vm2630_vm5, %v2644_v7, %v2646_v17  ;;  %vm6951_vm9 = vmmov %vm6867_vm0 }
 0xa48   :  { %4360 = vmatprep.mubr.msk.bf16.mxu0 %vm6936_vm15, %v6192_v22  ;;  %v4632_v22 = vld [vmem:[%s6845_s11 + $0x18] sm:$0xff]   ;;  %vm6952_vm15 = vmmov %vm6867_vm0 }
 0xa49   :  { %4374 = vmatprep.subr.bf16.mxu1 %v4632_v22 }
 0xa4a   :  { %4375 = vmatpush3.bf16.msra.mxu1 %v4632_v22 }
 0xa4b   :  { %4392 = vmatprep.subr.bf16.mxu1 %v4633_v5 }
 0xa4f   :  { %4361 = vmatmul.mubr.msk.bf16.gmra.mrb[60].mxu0 %vm6937_vm1, %v2643_v31  ;;  %vm6953_vm1 = vmmov %vm6867_vm0 }
 0xa50   :  { %4364 = vmatprep.mubr.msk.bf16.mxu0 %vm6938_vm10, %v2645_v23  ;;  %vm6954_vm10 = vmmov %vm6867_vm0 }
 0xa57   :  { %4365 = vmatmul.mubr.msk.bf16.gmra.mrb[64].mxu0 %vm6939_vm11, %v2647_v55  ;;  %vm6955_vm11 = vmmov %vm6867_vm0 }
 0xb12   :  { %v4354_v63 = vpop.f32.mrb[52].mxu0 }
 0xb13   :  { %v4456_v37 = vadd.f32 %v4354_v63, %v6322_v62  ;;  %v2718_v1 = vpop.f32.mrb[53].mxu0 }
 0xb14   :  { %v4457_v60 = vadd.f32 %v6322_v62, %v2718_v1  ;;  %v4355_v10 = vpop.f32.mrb[54].mxu0 }
 0xb15   :  { %v2799_v48 = vmax.f32 %v4456_v37, 0.0  ;;  %v4458_v53 = vadd.f32 %v4355_v10, %v6322_v62  ;;  %v2721_v0 = vpop.f32.mrb[55].mxu0 }
 0xb16   :  { %v2797_v32 = vmax.f32 %v4457_v60, 0.0  ;;  %v4459_v20 = vadd.f32 %v6322_v62, %v2721_v0 }
 0xb17   :  { %v2800_v38 = vmax.f32 %v4458_v53, 0.0  ;;  %v2832_v33 = vrot.slane %v2799_v48, 7 }
 0xb18   :  { %v2829_v51 = vrot.slane %v2797_v32, 7  ;;  %v2798_v59 = vmax.f32 %v4459_v20, 0.0 }
 0xb19   :  { %v2834_v18 = vrot.slane %v2800_v38, 7 }
 0xb1a   :  { %v2877_v57 = vsel %vm1897_vm12, 0.0, %v2829_v51  ;;  %v2830_v3 = vrot.slane %v2798_v59, 7  ;;  %v4358_v13 = vpop.f32.mrb[56].mxu0  ;;  %v4634_v59 = vld [vmem:[%s6845_s11 + $0x28] sm:$0xff]  }
 0xb1b   :  { %v2887_v8 = vmul.f32 %v2877_v57, %v6012_v45  ;;  %v2835_v50 = vsel %vm1897_vm12, %v2832_v33, %v2834_v18  ;;  %v4460_v42 = vadd.f32 %v4358_v13, %v6322_v62  ;;  %v2734_v61 = vpop.f32.mrb[57].mxu0  ;;  %v6349_v48 = vmul.f32 %v2877_v57, %v6024_v40 }
 0xb1c   :  { %v6333_v7 = vmul.f32 %v2835_v50, %v6024_v40  ;;  %v2831_v43 = vsel %vm1897_vm12, %v2829_v51, %v2830_v3  ;;  %v2833_v31 = vsel %vm1897_vm12, %v2830_v3, %v2832_v33  ;;  %v4461_v23 = vadd.f32 %v6322_v62, %v2734_v61  ;;  %v4359_v4 = vpop.f32.mrb[58].mxu0 }
 0xb1d   :  { %v6338_v17 = vpack.c.bf16 %v2835_v50, %v2833_v31  ;;  %v3081_v55 = vpack.c.bf16 %v2831_v43, %v2877_v57  ;;  %v6341_v45 = vmul.f32 %v2831_v43, %v6024_v40  ;;  %v6344_v22 = vmul.f32 %v2833_v31, %v6024_v40  ;;  %v2737_v63 = vpop.f32.mrb[59].mxu0 }
 0xb1e   :  { %v2803_v37 = vmax.f32 %v4460_v42, 0.0  ;;  %v2801_v1 = vmax.f32 %v4461_v23, 0.0  ;;  %v4462_v60 = vadd.f32 %v4359_v4, %v6322_v62  ;;  %v4463_v10 = vadd.f32 %v6322_v62, %v2737_v63 }
 0xb1f   :  { %v3102_v53 = vshll.u32 %v3081_v55, 16  ;;  %v3111_v0 = vshrl.u32 %v6338_v17, 16  ;;  %v2903_v32 = vpack.c.bf16 %v2831_v43, %v2887_v8  ;;  %v3100_v33 = vshrl.u32 %v3081_v55, 16 }
 0xb20   :  { %v2836_v20 = vrot.slane %v2801_v1, 7  ;;  %v2804_v38 = vmax.f32 %v4462_v60, 0.0  ;;  %v2802_v51 = vmax.f32 %v4463_v10, 0.0  ;;  %v3107_v13 = vshll.u32 %v6338_v17, 16 }
 0xb21   :  { %4376 = vmatprep.mubr.msk.bf16.mxu1 %vm2943_vm13, %v2903_v32  ;;  %v3104_v3 = vrot.slane %v3102_v53, 1  ;;  %v2840_v8 = vrot.slane %v2803_v37, 7 }
 0xb22   :  { %v2837_v42 = vsel %vm1897_vm12, %v2834_v18, %v2836_v20  ;;  %v2842_v61 = vrot.slane %v2804_v38, 7  ;;  %v2838_v43 = vrot.slane %v2802_v51, 7  ;;  %4377 = vmatmul.mubr.msk.bf16.vlgmr.msra.gmra.mrb[44].mxu1 %vm2943_vm13, %v6338_v17  ;;  %v4362_v31 = vpop.f32.mrb[60].mxu0  ;;  %v3109_v1 = vrot.slane %v3107_v13, 1  ;;  %v4635_v17 = vld [vmem:[%s6845_s11 + $0x30] sm:$0xff]  }
 0xb23   :  { %v3332_v23 = vmul.f32 %v2837_v42, %v6024_v40  ;;  %4393 = vmatpush3.bf16.msra.mxu1 %v4633_v5  ;;  %v4464_v4 = vadd.f32 %v4362_v31, %v6322_v62  ;;  %v2750_v55 = vpop.f32.mrb[61].mxu0  ;;  %v3105_v63 = vor.u32 %v3104_v3, %v3100_v33 }
 0xb24   :  { %v2843_v60 = vsel %vm1897_vm12, %v2840_v8, %v2842_v61  ;;  %v2839_v37 = vsel %vm1897_vm12, %v2836_v20, %v2838_v43  ;;  %v2841_v18 = vsel %vm1897_vm12, %v2838_v43, %v2840_v8  ;;  %v4465_v10 = vadd.f32 %v6322_v62, %v2750_v55  ;;  %v4363_v53 = vpop.f32.mrb[62].mxu0  ;;  %4394 = vmatprep.subr.bf16.mxu1 %v4634_v59 }
 0xb25   :  { %v6374_v5 = vmul.f32 %v2843_v60, %v6124_v11  ;;  %v2905_v32 = vpack.c.bf16 %v2839_v37, %v2837_v42  ;;  %v6376_v38 = vpack.c.bf16 %v2843_v60, %v2841_v18  ;;  %v3333_v51 = vmul.f32 %v2839_v37, %v6024_v40  ;;  %v2753_v33 = vpop.f32.mrb[63].mxu0 }
 0xb26   :  { %v6380_v20 = vmul.f32 %v2841_v18, %v6024_v40  ;;  %v2807_v3 = vmax.f32 %v4464_v4, 0.0  ;;  %v2805_v13 = vmax.f32 %v4465_v10, 0.0  ;;  %v4466_v8 = vadd.f32 %v4363_v53, %v6322_v62  ;;  %v4636_v4 = vld [vmem:[%s6845_s11 + $0x38] sm:$0xff]  }
 0xb27   :  { %v3115_v43 = vshll.u32 %v2905_v32, 16  ;;  %v3347_v31 = vpack.c.bf16 %v3333_v51, %v3332_v23  ;;  %v4467_v55 = vadd.f32 %v6322_v62, %v2753_v33  ;;  %4380 = vmatprep.mubr.msk.bf16.mxu1 %vm2943_vm13, %v2905_v32  ;;  %4395 = vmatpush3.bf16.msra.mxu1 %v4634_v59  ;;  %v6386_v11 = vsel %vm2227_vm7, %v3105_v63, %v3109_v1 }
 0xb28   :  { %v2848_v42 = vrot.slane %v2807_v3, 7  ;;  %v2844_v60 = vrot.slane %v2805_v13, 7  ;;  %v2808_v37 = vmax.f32 %v4466_v8, 0.0  ;;  %4396 = vmatprep.subr.bf16.mxu1 %v4635_v17  ;;  %v3113_v18 = vor.u32 %v3111_v0, %v3109_v1 }
 0xb29   :  { %v3117_v10 = vrot.slane %v3115_v43, 1  ;;  %v6391_v53 = vrot.slane %v3347_v31, 1  ;;  %v2806_v23 = vmax.f32 %v4467_v55, 0.0  ;;  %v3119_v51 = vshrl.u32 %v2905_v32, 16 }
 0xb2a   :  { %v2845_v33 = vsel %vm1897_vm12, %v2842_v61, %v2844_v60  ;;  %v2850_v59 = vrot.slane %v2808_v37, 7  ;;  %4381 = vmatmul.mubr.msk.bf16.gmra.mrb[48].mxu1 %vm2943_vm13, %v6376_v38  ;;  %v4366_v63 = vpop.f32.mrb[64].mxu0  ;;  %v3123_v3 = vshll.u32 %v6376_v38, 16  ;;  %v3127_v13 = vshrl.u32 %v6376_v38, 16  ;;  %v6408_v38 = vld [vmem:[%s6845_s11 + $0x40] sm:$0xff]  }
 0xb2b   :  { %v2895_v8 = vmul.f32 %v2845_v33, %v6128_v35  ;;  %v6400_v0 = vmul.f32 %v2845_v33, %v6166_v14  ;;  %v2846_v1 = vrot.slane %v2806_v23, 7  ;;  %v4468_v43 = vadd.f32 %v4366_v63, %v6322_v62  ;;  %v2766_v32 = vpop.f32.mrb[65].mxu0  ;;  %4397 = vmatpush3.bf16.msra.mxu1 %v4635_v17 }
 0xb2c   :  { %v2851_v61 = vsel %vm1897_vm12, %v2848_v42, %v2850_v59  ;;  %v4469_v31 = vadd.f32 %v6322_v62, %v2766_v32  ;;  %v4367_v55 = vpop.f32.mrb[66].mxu0  ;;  %4398 = vmatprep.subr.bf16.mxu1 %v4636_v4  ;;  %v6411_v35 = vsel %vm2227_vm7, %v3113_v18, %v3117_v10  ;;  %v3121_v14 = vor.u32 %v3119_v51, %v3117_v10 }
 0xb2d   :  { %v6414_v37 = vmul.f32 %v2851_v61, %v6024_v40  ;;  %v2847_v17 = vsel %vm1897_vm12, %v2844_v60, %v2846_v1  ;;  %v2849_v23 = vsel %vm1897_vm12, %v2846_v1, %v2848_v42  ;;  %v2811_v63 = vmax.f32 %v4468_v43, 0.0  ;;  %v2769_v32 = vpop.f32.mrb[67].mxu0 }
 0xb2e   :  { %v2908_v50 = vpack.c.bf16 %v2851_v61, %v2849_v23  ;;  %v3085_v57 = vpack.c.bf16 %v2847_v17, %v2845_v33  ;;  %v6419_v34 = vmul.f32 %v2847_v17, %v6024_v40  ;;  %v6422_v27 = vmul.f32 %v2849_v23, %v6024_v40 }
 0xb2f   :  { %v2856_v18 = vrot.slane %v2811_v63, 7  ;;  %v2809_v9 = vmax.f32 %v4469_v31, 0.0  ;;  %v4470_v10 = vadd.f32 %v4367_v55, %v6322_v62  ;;  %v4471_v51 = vadd.f32 %v6322_v62, %v2769_v32  ;;  %4399 = vmatpush3.bf16.msra.mxu1 %v4636_v4 }
 0xb30   :  { %v2907_v60 = vpack.c.bf16 %v2847_v17, %v2895_v8  ;;  %4416 = vmatprep.subr.bf16.mxu1 %v6408_v38  ;;  %v3125_v42 = vrot.slane %v3123_v3, 1  ;;  %v3131_v1 = vshll.u32 %v3085_v57, 16  ;;  %v3135_v43 = vshrl.u32 %v3085_v57, 16 }
 0xb31   :  { %v2852_v33 = vrot.slane %v2809_v9, 7  ;;  %v2812_v61 = vmax.f32 %v4470_v10, 0.0  ;;  %v2810_v39 = vmax.f32 %v4471_v51, 0.0  ;;  %v3139_v28 = vshll.u32 %v2908_v50, 16 }
 0xb32   :  { %4384 = vmatprep.mubr.msk.bf16.mxu1 %vm2943_vm13, %v2907_v60  ;;  %v6429_v23 = vsel %vm2227_vm7, %v3121_v14, %v3125_v42  ;;  %v3129_v31 = vor.u32 %v3127_v13, %v3125_v42  ;;  %v3133_v55 = vrot.slane %v3131_v1, 1  ;;  %v3143_v63 = vshrl.u32 %v2908_v50, 16 }
 0xb33   :  { %v2853_v62 = vsel %vm1897_vm12, %v2850_v59, %v2852_v33  ;;  %v2858_v4 = vrot.slane %v2812_v61, 7  ;;  %v2854_v8 = vrot.slane %v2810_v39, 7  ;;  %4385 = vmatmul.mubr.msk.bf16.gmra.mrb[52].mxu1 %vm2943_vm13, %v2908_v50  ;;  %v3141_v3 = vrot.slane %v3139_v28, 1 }
 0xb34   :  { %v3340_v9 = vmul.f32 %v2853_v62, %v6024_v40  ;;  %v3134_v57 = vsel %vm2227_vm7, %v3129_v31, %v3133_v55  ;;  %v3137_v17 = vor.u32 %v3135_v43, %v3133_v55  ;;  %v6940_v32 = vpack.c.bf16 %v6341_v45, %v6349_v48 }
 0xb35   :  { %v2859_v13 = vsel %vm1897_vm12, %v2856_v18, %v2858_v4  ;;  %v2878_v10 = vsel %vm1897_vm12, %v2858_v4, 0.0  ;;  %v2855_v59 = vsel %vm1897_vm12, %v2852_v33, %v2854_v8  ;;  %v2857_v39 = vsel %vm1897_vm12, %v2854_v8, %v2856_v18  ;;  %vm6942_vm12 = vmmov %vm6867_vm0 }
 0xb36   :  { %v3372_v14 = vrot.slane %v6940_v32, 1  ;;  %v3089_v51 = vpack.c.bf16 %v2878_v10, %v2878_v10  ;;  %v3343_v28 = vmul.f32 %v2859_v13, %v6291_v26  ;;  %v3344_v50 = vmul.f32 %v2878_v10, %v6282_v58 }
 0xb37   :  { %v2909_v60 = vpack.c.bf16 %v2855_v59, %v2853_v62  ;;  %v2910_v42 = vpack.c.bf16 %v2859_v13, %v2857_v39  ;;  %v3341_v1 = vmul.f32 %v2855_v59, %v6024_v40  ;;  %v3342_v45 = vmul.f32 %v2857_v39, %v6024_v40 }
 0xb38   :  { %v3142_v48 = vsel %vm2227_vm7, %v3137_v17, %v3141_v3  ;;  %v3163_v43 = vshll.u32 %v3089_v51, 16  ;;  %v3353_v61 = vpack.c.bf16 %v3344_v50, %v3344_v50  ;;  %v3145_v33 = vor.u32 %v3143_v63, %v3141_v3 }
 0xb39   :  { %4388 = vmatprep.mubr.msk.bf16.mxu1 %vm2943_vm13, %v2909_v60  ;;  %v3147_v31 = vshll.u32 %v2909_v60, 16  ;;  %v3151_v18 = vshrl.u32 %v2909_v60, 16  ;;  %v3155_v55 = vshll.u32 %v2910_v42, 16  ;;  %v3159_v4 = vshrl.u32 %v2910_v42, 16 }
 0xb3a   :  { %v6941_v58 = vpack.c.bf16 %v6333_v7, %v6344_v22  ;;  %v3165_v62 = vrot.slane %v3163_v43, 1  ;;  %v3387_v8 = vrot.slane %v3353_v61, 1  ;;  %v3348_v40 = vpack.c.bf16 %v6374_v5, %v6380_v20 }
 0xb3b   :  { %v3149_v32 = vrot.slane %v3147_v31, 1  ;;  %4389 = vmatmul.mubr.msk.bf16.gmra.mrb[56].mxu1 %vm2943_vm13, %v2910_v42  ;;  %v3157_v17 = vrot.slane %v3155_v55, 1  ;;  %v3349_v3 = vpack.c.bf16 %v6419_v34, %v6400_v0  ;;  %v3350_v5 = vpack.c.bf16 %v6414_v37, %v6422_v27  ;;  %v4638_v27 = vld [vmem:[%s6845_s11 + $0x48] sm:$0xff]  }
 0xb3c   :  { %v3373_v26 = vrot.slane %v6941_v58, 1  ;;  %4400 = vmatprep.mubr.msk.bf16.mxu1 %vm2943_vm13, %v6386_v11  ;;  %v3377_v10 = vrot.slane %v3348_v40, 1  ;;  %v3351_v39 = vpack.c.bf16 %v3341_v1, %v3340_v9  ;;  %v4640_v1 = vld [vmem:[%s6845_s11 + $0x58] sm:$0xff]  }
 0xb3d   :  { %v3150_v7 = vsel %vm2227_vm7, %v3145_v33, %v3149_v32  ;;  %v3153_v22 = vor.u32 %v3151_v18, %v3149_v32  ;;  %v3161_v20 = vor.u32 %v3159_v4, %v3157_v17  ;;  %v3379_v59 = vrot.slane %v3349_v3, 1 }
 0xb3e   :  { %v3374_v13 = vsel %vm2630_vm5, %v3372_v14, %v3373_v26  ;;  %v3376_v63 = vsel %vm2630_vm5, %v3373_v26, %v6391_v53  ;;  %v3352_v14 = vpack.c.bf16 %v3343_v28, %v3342_v45  ;;  %v3378_v50 = vsel %vm2630_vm5, %v6391_v53, %v3377_v10  ;;  %v4639_v53 = vld [vmem:[%s6845_s11 + $0x50] sm:$0xff]  }
 0xb3f   :  { %v3158_v51 = vsel %vm2227_vm7, %v3153_v22, %v3157_v17  ;;  %v3381_v34 = vrot.slane %v3350_v5, 1  ;;  %v3166_v0 = vsel %vm2227_vm7, %v3161_v20, %v3165_v62  ;;  %v3380_v11 = vsel %vm2630_vm5, %v3377_v10, %v3379_v59  ;;  %vm6944_vm7 = vmmov %vm6867_vm0 }
 0xb40   :  { %v3383_v60 = vrot.slane %v3351_v39, 1  ;;  %v3385_v42 = vrot.slane %v3352_v14, 1 }
 0xb41   :  { %v3382_v43 = vsel %vm2630_vm5, %v3379_v59, %v3381_v34 }
 0xb42   :  { %v3384_v37 = vsel %vm2630_vm5, %v3381_v34, %v3383_v60  ;;  %v3386_v9 = vsel %vm2630_vm5, %v3383_v60, %v3385_v42  ;;  %v3388_v28 = vsel %vm2630_vm5, %v3385_v42, %v3387_v8  ;;  %vm6943_vm5 = vmmov %vm6867_vm0 }
 0xb43   :  { %4401 = vmatmul.mubr.msk.bf16.vlgmr.msra.gmra.mrb[44].mxu1 %vm2943_vm13, %v6411_v35 }
 0xb44   :  { %4417 = vmatpush3.bf16.msra.mxu1 %v6408_v38  ;;  %4404 = vmatprep.mubr.msk.bf16.mxu1 %vm2943_vm13, %v6429_v23  ;;  %v6503_v38 = vld [vmem:[%s6847_s12] ss:$0 sm:$0xff] }
 0xb45   :  { %4418 = vmatprep.subr.bf16.mxu1 %v4638_v27 }
 0xb48   :  { %4419 = vmatpush3.bf16.msra.mxu1 %v4638_v27 }
 0xb49   :  { %4420 = vmatprep.subr.bf16.mxu1 %v4639_v53 }
 0xb4b   :  { %4405 = vmatmul.mubr.msk.bf16.gmra.mrb[48].mxu1 %vm2943_vm13, %v3134_v57 }
 0xb4c   :  { %4408 = vmatprep.mubr.msk.bf16.mxu1 %vm2943_vm13, %v3142_v48  ;;  %4421 = vmatpush3.bf16.msra.mxu1 %v4639_v53 }
 0xb4d   :  { %4422 = vmatprep.subr.bf16.mxu1 %v4640_v1 }
 0xb50   :  { %4423 = vmatpush3.bf16.msra.mxu1 %v4640_v1 }
 0xb53   :  { %4409 = vmatmul.mubr.msk.bf16.gmra.mrb[52].mxu1 %vm2943_vm13, %v3150_v7 }
 0xb54   :  { %4412 = vmatprep.mubr.msk.bf16.mxu1 %vm2943_vm13, %v3158_v51 }
 0xb5b   :  { %4413 = vmatmul.mubr.msk.bf16.gmra.mrb[56].mxu1 %vm2943_vm13, %v3166_v0 }
 0xb5c   :  { %4424 = vmatprep.mubr.msk.bf16.mxu1 %vm2943_vm13, %v3374_v13 }
 0xb63   :  { %4425 = vmatmul.mubr.msk.bf16.vlgmr.msra.gmra.mrb[44].mxu1 %vm2943_vm13, %v3376_v63 }
 0xb64   :  { %4428 = vmatprep.mubr.msk.bf16.mxu1 %vm2943_vm13, %v3378_v50 }
 0xb6b   :  { %4429 = vmatmul.mubr.msk.bf16.gmra.mrb[48].mxu1 %vm2943_vm13, %v3380_v11 }
 0xb6c   :  { %4432 = vmatprep.mubr.msk.bf16.mxu1 %vm2943_vm13, %v3382_v43 }
 0xb73   :  { %4433 = vmatmul.mubr.msk.bf16.gmra.mrb[52].mxu1 %vm2943_vm13, %v3384_v37 }
 0xb74   :  { %4436 = vmatprep.mubr.msk.bf16.mxu1 %vm2943_vm13, %v3386_v9 }
 0xb7b   :  { %4437 = vmatmul.mubr.msk.bf16.gmra.mrb[56].mxu1 %vm2943_vm13, %v3388_v28  ;;  %vm6956_vm13 = vmmov %vm6867_vm0 }
 0xc36   :  { %v4426_v35 = vpop.f32.mrb[44].mxu1 }
 0xc37   :  { %v4472_v23 = vadd.f32 %v4426_v35, %v6503_v38  ;;  %v3471_v57 = vpop.f32.mrb[45].mxu1 }
 0xc38   :  { %v4473_v45 = vadd.f32 %v6503_v38, %v3471_v57  ;;  %v4427_v48 = vpop.f32.mrb[46].mxu1 }
 0xc39   :  { %v6508_v61 = vadd.f32 %v4472_v23, %v6004_v16  ;;  %v4474_v33 = vadd.f32 %v4427_v48, %v6503_v38  ;;  %v3474_v31 = vpop.f32.mrb[47].mxu1 }
 0xc3a   :  { %v6512_v18 = vadd.f32 %v4473_v45, %v5996_v29  ;;  %v4475_v4 = vadd.f32 %v6503_v38, %v3474_v31 }
 0xc3b   :  { %v6515_v55 = vadd.f32 %v4474_v33, %v5999_v25  ;;  %v3574_v58 = vsel %vm6942_vm12, %v6508_v61, 0.0  ;;  %vm6957_vm12 = vmmov %vm6867_vm0 }
 0xc3c   :  { %3575 = vadd.xlane.f32.xlu0 %v3574_v58  ;;  %v3568_v26 = vsel %vm6943_vm5, %v6512_v18, 0.0  ;;  %v6523_v62 = vadd.f32 %v4475_v4, %v6019_v2  ;;  %vm6958_vm5 = vmmov %vm6867_vm0 }
 0xc3d   :  { %3569 = vadd.xlane.f32.xlu1 %v3568_v26  ;;  %v3577_v25 = vsel %vm6944_vm7, %v6515_v55, 0.0  ;;  %vm6959_vm7 = vmmov %vm6867_vm0 }
 0xc3e   :  { %v4430_v16 = vpop.f32.mrb[48].mxu1  ;;  %v3571_v22 = vsel %vm6945_vm14, %v6523_v62, 0.0  ;;  %vm6960_vm14 = vmmov %vm6867_vm0 }
 0xc3f   :  { %v4476_v29 = vadd.f32 %v4430_v16, %v6503_v38  ;;  %v3487_v8 = vpop.f32.mrb[49].mxu1 }
 0xc40   :  { %v4477_v32 = vadd.f32 %v6503_v38, %v3487_v8  ;;  %3578 = vadd.xlane.f32.xlu0 %v3577_v25  ;;  %v4431_v40 = vpop.f32.mrb[50].mxu1 }
 0xc41   :  { %v6530_v17 = vadd.f32 %v4476_v29, %v6044_v19  ;;  %v4478_v13 = vadd.f32 %v4431_v40, %v6503_v38  ;;  %v3490_v63 = vpop.f32.mrb[51].mxu1 }
 0xc42   :  { %v4479_v3 = vadd.f32 %v6503_v38, %v3490_v63  ;;  %v6535_v2 = vadd.f32 %v4477_v32, %v6041_v41 }
 0xc43   :  { %v6538_v7 = vadd.f32 %v4478_v13, %v6057_v15  ;;  %v3586_v10 = vsel %vm6946_vm2, %v6530_v17, 0.0  ;;  %vm6961_vm2 = vmmov %vm6867_vm0 }
 0xc44   :  { %3572 = vadd.xlane.f32.xlu0 %v3571_v22  ;;  %3587 = vadd.xlane.f32.xlu1 %v3586_v10  ;;  %v6545_v19 = vadd.f32 %v4479_v3, %v6082_v36  ;;  %v3580_v41 = vsel %vm6867_vm0, %v6535_v2, 0.0 }
 0xc45   :  { %v3589_v15 = vsel %vm6947_vm3, %v6538_v7, 0.0  ;;  %vm6962_vm3 = vmmov %vm6867_vm0 }
 0xc46   :  { %v4434_v5 = vpop.f32.mrb[52].mxu1  ;;  %v3583_v34 = vsel %vm6948_vm4, %v6545_v19, 0.0  ;;  %vm6963_vm4 = vmmov %vm6867_vm0 }
 0xc47   :  { %v4480_v20 = vadd.f32 %v4434_v5, %v6503_v38  ;;  %v3503_v59 = vpop.f32.mrb[53].mxu1 }
 0xc48   :  { %v4481_v39 = vadd.f32 %v6503_v38, %v3503_v59  ;;  %3581 = vadd.xlane.f32.xlu1 %v3580_v41  ;;  %3590 = vadd.xlane.f32.xlu0 %v3589_v15  ;;  %v4435_v14 = vpop.f32.mrb[54].mxu1 }
 0xc49   :  { %v6554_v51 = vadd.f32 %v4480_v20, %v6117_v30  ;;  %v4482_v36 = vadd.f32 %v4435_v14, %v6503_v38  ;;  %v3506_v50 = vpop.f32.mrb[55].mxu1 }
 0xc4a   :  { %v6560_v0 = vadd.f32 %v4481_v39, %v6100_v52  ;;  %v4483_v60 = vadd.f32 %v6503_v38, %v3506_v50 }
 0xc4b   :  { %v6563_v11 = vadd.f32 %v4482_v36, %v6106_v56  ;;  %v3598_v42 = vsel %vm6949_vm6, %v6554_v51, 0.0  ;;  %vm6964_vm6 = vmmov %vm6867_vm0 }
 0xc4c   :  { %3584 = vadd.xlane.f32.xlu0 %v3583_v34  ;;  %3599 = vadd.xlane.f32.xlu1 %v3598_v42  ;;  %v6569_v43 = vadd.f32 %v4483_v60, %v6134_v6  ;;  %v3592_v37 = vsel %vm6950_vm8, %v6560_v0, 0.0  ;;  %vm6965_vm8 = vmmov %vm6867_vm0 }
 0xc4d   :  { %v3601_v52 = vsel %vm6951_vm9, %v6563_v11, 0.0  ;;  %vm6966_vm9 = vmmov %vm6867_vm0 }
 0xc4e   :  { %v4438_v30 = vpop.f32.mrb[56].mxu1  ;;  %v3595_v23 = vsel %vm6952_vm15, %v6569_v43, 0.0  ;;  %vm6967_vm15 = vmmov %vm6867_vm0 }
 0xc4f   :  { %v3519_v27 = vpop.f32.mrb[57].mxu1  ;;  %v4484_v56 = vadd.f32 %v4438_v30, %v6503_v38 }
 0xc50   :  { %v4485_v9 = vadd.f32 %v6503_v38, %v3519_v27  ;;  %3593 = vadd.xlane.f32.xlu1 %v3592_v37  ;;  %3602 = vadd.xlane.f32.xlu0 %v3601_v52  ;;  %v4439_v28 = vpop.f32.mrb[58].mxu1 }
 0xc51   :  { %v3522_v53 = vpop.f32.mrb[59].mxu1  ;;  %v4486_v35 = vadd.f32 %v4439_v28, %v6503_v38  ;;  %v6585_v57 = vadd.f32 %v4484_v56, %v6216_v46 }
 0xc52   :  { %v6578_v1 = vadd.f32 %v4485_v9, %v6219_v49  ;;  %v4487_v6 = vadd.f32 %v6503_v38, %v3522_v53 }
 0xc53   :  { %v6595_v33 = vadd.f32 %v4486_v35, %v6212_v24  ;;  %v3610_v38 = vsel %vm6955_vm11, %v6585_v57, 0.0  ;;  %vm6970_vm11 = vmmov %vm6867_vm0 }
 0xc54   :  { %v6588_v45 = vadd.f32 %v4487_v6, %v6222_v47  ;;  %3596 = vadd.xlane.f32.xlu0 %v3595_v23  ;;  %v3604_v48 = vsel %vm6953_vm1, %v6578_v1, 0.0  ;;  %vm6968_vm1 = vmmov %vm6867_vm0 }
 0xc55   :  { %3605 = vadd.xlane.f32.xlu1 %v3604_v48  ;;  %v3613_v46 = vsel %vm6956_vm13, %v6595_v33, 0.0  ;;  %vm6971_vm13 = vmmov %vm6867_vm0 }
 0xc56   :  { %v3607_v49 = vsel %vm6954_vm10, %v6588_v45, 0.0  ;;  %vm6969_vm10 = vmmov %vm6867_vm0 }
 0xc58   :  { %3608 = vadd.xlane.f32.xlu0 %v3607_v49 }
 0xc59   :  { %3611 = vadd.xlane.f32.xlu1 %v3610_v38 }
 0xc5c   :  { %3614 = vadd.xlane.f32.xlu0 %v3613_v46 }
 0xcc9   :  { %v3576_v47 = vpop.xlane.xlu0 %3575 }
 0xcca   :  { %v3618_v31 = vmul.f32 0.03125, %v3576_v47  ;;  %v3570_v4 = vpop.xlane.xlu1 %3569 }
 0xccb   :  { %v3616_v58 = vmul.f32 0.03125, %v3570_v4 }
 0xccc   :  { %v6602_v26 = vsub.f32 %v6508_v61, %v3618_v31 }
 0xccd   :  { %v6605_v16 = vsub.f32 %v6512_v18, %v3616_v58  ;;  %v3579_v24 = vpop.xlane.xlu0 %3578 }
 0xcce   :  { %v3619_v29 = vmul.f32 0.03125, %v3579_v24  ;;  %v3650_v8 = vmul.f32 %v6602_v26, %v6602_v26 }
 0xccf   :  { %v3648_v40 = vmul.f32 %v6605_v16, %v6605_v16 }
 0xcd0   :  { %v6610_v25 = vsub.f32 %v6515_v55, %v3619_v29  ;;  %v3670_v32 = vsel %vm6957_vm12, %v3650_v8, 0.0  ;;  %vm6972_vm12 = vmmov %vm6867_vm0 }
 0xcd1   :  { %v3573_v13 = vpop.xlane.xlu0 %3572  ;;  %v3588_v63 = vpop.xlane.xlu1 %3587  ;;  %3671 = vadd.xlane.f32.xlu1 %v3670_v32  ;;  %v3664_v55 = vsel %vm6958_vm5, %v3648_v40, 0.0  ;;  %vm6973_vm5 = vmmov %vm6867_vm0 }
 0xcd2   :  { %v3617_v61 = vmul.f32 0.03125, %v3573_v13  ;;  %v3622_v3 = vmul.f32 0.03125, %v3588_v63  ;;  %v3651_v18 = vmul.f32 %v6610_v25, %v6610_v25 }
 0xcd4   :  { %v6618_v22 = vsub.f32 %v6523_v62, %v3617_v61  ;;  %v6621_v10 = vsub.f32 %v6530_v17, %v3622_v3  ;;  %v3673_v5 = vsel %vm6959_vm7, %v3651_v18, 0.0  ;;  %vm6974_vm7 = vmmov %vm6867_vm0 }
 0xcd5   :  { %v3582_v20 = vpop.xlane.xlu1 %3581  ;;  %v3591_v59 = vpop.xlane.xlu0 %3590  ;;  %3665 = vadd.xlane.f32.xlu1 %v3664_v55  ;;  %3674 = vadd.xlane.f32.xlu0 %v3673_v5 }
 0xcd6   :  { %v3620_v41 = vmul.f32 0.03125, %v3582_v20  ;;  %v3623_v15 = vmul.f32 0.03125, %v3591_v59  ;;  %v3654_v39 = vmul.f32 %v6621_v10, %v6621_v10  ;;  %v3649_v62 = vmul.f32 %v6618_v22, %v6618_v22 }
 0xcd8   :  { %v6630_v14 = vsub.f32 %v6535_v2, %v3620_v41  ;;  %v6633_v17 = vsub.f32 %v6538_v7, %v3623_v15  ;;  %v3682_v36 = vsel %vm6960_vm14, %v3654_v39, 0.0  ;;  %v3667_v50 = vsel %vm6961_vm2, %v3649_v62, 0.0  ;;  %vm6976_vm14 = vmmov %vm6867_vm0 }
 0xcd9   :  { %v3585_v34 = vpop.xlane.xlu0 %3584  ;;  %v3600_v60 = vpop.xlane.xlu1 %3599  ;;  %3683 = vadd.xlane.f32.xlu1 %v3682_v36  ;;  %3668 = vadd.xlane.f32.xlu0 %v3667_v50  ;;  %vm6977_vm2 = vmmov %vm6867_vm0 }
 0xcda   :  { %v3621_v42 = vmul.f32 0.03125, %v3585_v34  ;;  %v3626_v30 = vmul.f32 0.03125, %v3600_v60  ;;  %v3652_v27 = vmul.f32 %v6630_v14, %v6630_v14  ;;  %v3655_v2 = vmul.f32 %v6633_v17, %v6633_v17 }
 0xcdc   :  { %v6642_v37 = vsub.f32 %v6545_v19, %v3621_v42  ;;  %v6645_v7 = vsub.f32 %v6554_v51, %v3626_v30  ;;  %v3676_v52 = vsel %vm6867_vm0, %v3652_v27, 0.0  ;;  %v3685_v56 = vsel %vm6962_vm3, %v3655_v2, 0.0  ;;  %vm6980_vm3 = vmmov %vm6867_vm0 }
 0xcdd   :  { %v3594_v9 = vpop.xlane.xlu1 %3593  ;;  %v3603_v28 = vpop.xlane.xlu0 %3602  ;;  %3677 = vadd.xlane.f32.xlu1 %v3676_v52  ;;  %3686 = vadd.xlane.f32.xlu0 %v3685_v56 }
 0xcde   :  { %v3624_v53 = vmul.f32 0.03125, %v3594_v9  ;;  %v3627_v6 = vmul.f32 0.03125, %v3603_v28  ;;  %v3658_v35 = vmul.f32 %v6645_v7, %v6645_v7  ;;  %v3653_v19 = vmul.f32 %v6642_v37, %v6642_v37 }
 0xce0   :  { %v6654_v23 = vsub.f32 %v6560_v0, %v3624_v53  ;;  %v6657_v51 = vsub.f32 %v6563_v11, %v3627_v6  ;;  %v3694_v48 = vsel %vm6963_vm4, %v3658_v35, 0.0  ;;  %v3679_v49 = vsel %vm6964_vm6, %v3653_v19, 0.0  ;;  %vm6983_vm4 = vmmov %vm6867_vm0 }
 0xce1   :  { %v3597_v38 = vpop.xlane.xlu0 %3596  ;;  %3695 = vadd.xlane.f32.xlu1 %v3694_v48  ;;  %3680 = vadd.xlane.f32.xlu0 %v3679_v49  ;;  %vm6984_vm6 = vmmov %vm6867_vm0 }
 0xce2   :  { %v3625_v46 = vmul.f32 0.03125, %v3597_v38  ;;  %v3606_v47 = vpop.xlane.xlu1 %3605  ;;  %v3656_v31 = vmul.f32 %v6654_v23, %v6654_v23  ;;  %v3659_v4 = vmul.f32 %v6657_v51, %v6657_v51  ;;  %v6700_v38 = vld [vmem:[%s6848_s13] ss:$0 sm:$0xff] }
 0xce3   :  { %v3628_v0 = vmul.f32 0.03125, %v3606_v47 }
 0xce4   :  { %v6666_v58 = vsub.f32 %v6569_v43, %v3625_v46  ;;  %v3688_v11 = vsel %vm6965_vm8, %v3656_v31, 0.0  ;;  %v3697_v24 = vsel %vm6966_vm9, %v3659_v4, 0.0  ;;  %vm6987_vm8 = vmmov %vm6867_vm0 }
 0xce5   :  { %v6671_v29 = vsub.f32 %v6578_v1, %v3628_v0  ;;  %3689 = vadd.xlane.f32.xlu1 %v3688_v11  ;;  %3698 = vadd.xlane.f32.xlu0 %v3697_v24  ;;  %v3609_v8 = vpop.xlane.xlu0 %3608  ;;  %v6706_v11 = vld [vmem:[%s6849_s14] ss:$0 sm:$0xff]  ;;  %vm6988_vm9 = vmmov %vm6867_vm0 }
 0xce6   :  { %v3629_v32 = vmul.f32 0.03125, %v3609_v8  ;;  %v3612_v40 = vpop.xlane.xlu1 %3611  ;;  %v3657_v13 = vmul.f32 %v6666_v58, %v6666_v58 }
 0xce7   :  { %v3630_v63 = vmul.f32 0.03125, %v3612_v40  ;;  %v3660_v43 = vmul.f32 %v6671_v29, %v6671_v29 }
 0xce8   :  { %v6678_v61 = vsub.f32 %v6588_v45, %v3629_v32  ;;  %v3691_v3 = vsel %vm6967_vm15, %v3657_v13, 0.0  ;;  %vm6991_vm15 = vmmov %vm6867_vm0 }
 0xce9   :  { %v6682_v1 = vsub.f32 %v6585_v57, %v3630_v63  ;;  %3692 = vadd.xlane.f32.xlu0 %v3691_v3  ;;  %v3615_v18 = vpop.xlane.xlu0 %3614  ;;  %v3700_v55 = vsel %vm6968_vm1, %v3660_v43, 0.0  ;;  %vm6992_vm1 = vmmov %vm6867_vm0 }
 0xcea   :  { %v3631_v5 = vmul.f32 0.03125, %v3615_v18  ;;  %3701 = vadd.xlane.f32.xlu1 %v3700_v55  ;;  %v3661_v20 = vmul.f32 %v6678_v61, %v6678_v61 }
 0xceb   :  { %v3662_v59 = vmul.f32 %v6682_v1, %v6682_v1 }
 0xcec   :  { %v6690_v45 = vsub.f32 %v6595_v33, %v3631_v5  ;;  %v3703_v41 = vsel %vm6969_vm10, %v3661_v20, 0.0  ;;  %vm6995_vm10 = vmmov %vm6867_vm0 }
 0xced   :  { %3704 = vadd.xlane.f32.xlu0 %v3703_v41  ;;  %v3706_v57 = vsel %vm6970_vm11, %v3662_v59, 0.0  ;;  %vm6996_vm11 = vmmov %vm6867_vm0 }
 0xcee   :  { %3707 = vadd.xlane.f32.xlu1 %v3706_v57  ;;  %v3663_v15 = vmul.f32 %v6690_v45, %v6690_v45 }
 0xcf0   :  { %v3709_v39 = vsel %vm6971_vm13, %v3663_v15, 0.0  ;;  %vm6998_vm13 = vmmov %vm6867_vm0 }
 0xcf1   :  { %3710 = vadd.xlane.f32.xlu0 %v3709_v39 }
 0xd5e   :  { %v3672_v62 = vpop.xlane.xlu1 %3671 }
 0xd5f   :  { %v3714_v36 = vmul.f32 0.03125, %v3672_v62 }
 0xd61   :  { %v3730_v50 = vadd.f32 1e-05, %v3714_v36 }
 0xd62   :  { %v3666_v34 = vpop.xlane.xlu1 %3665  ;;  %v3675_v60 = vpop.xlane.xlu0 %3674 }
 0xd63   :  { %4801 = vrsqrt.f32 %v3730_v50  ;;  %v3712_v33 = vmul.f32 0.03125, %v3666_v34  ;;  %v3715_v42 = vmul.f32 0.03125, %v3675_v60 }
 0xd65   :  { %v3728_v30 = vadd.f32 1e-05, %v3712_v33  ;;  %v3731_v27 = vadd.f32 1e-05, %v3715_v42 }
 0xd66   :  { %v3684_v2 = vpop.xlane.xlu1 %3683  ;;  %v3669_v52 = vpop.xlane.xlu0 %3668 }
 0xd67   :  { %4803 = vrsqrt.f32 %v3728_v30  ;;  %v3718_v56 = vmul.f32 0.03125, %v3684_v2  ;;  %v3713_v9 = vmul.f32 0.03125, %v3669_v52 }
 0xd68   :  { %4805 = vrsqrt.f32 %v3731_v27 }
 0xd69   :  { %v3734_v28 = vadd.f32 1e-05, %v3718_v56  ;;  %v3729_v53 = vadd.f32 1e-05, %v3713_v9 }
 0xd6a   :  { %v3678_v6 = vpop.xlane.xlu1 %3677  ;;  %v3687_v35 = vpop.xlane.xlu0 %3686 }
 0xd6b   :  { %4807 = vrsqrt.f32 %v3734_v28  ;;  %v3716_v19 = vmul.f32 0.03125, %v3678_v6  ;;  %v3719_v48 = vmul.f32 0.03125, %v3687_v35 }
 0xd6c   :  { %4809 = vrsqrt.f32 %v3729_v53 }
 0xd6d   :  { %v4802_v49 = vpop.eup %4801  ;;  %v3732_v46 = vadd.f32 1e-05, %v3716_v19  ;;  %v3735_v47 = vadd.f32 1e-05, %v3719_v48 }
 0xd6e   :  { %v3762_v31 = vmul.f32 %v4802_v49, %v6602_v26  ;;  %v3696_v4 = vpop.xlane.xlu1 %3695  ;;  %v3681_v0 = vpop.xlane.xlu0 %3680 }
 0xd6f   :  { %4811 = vrsqrt.f32 %v3732_v46  ;;  %v3722_v24 = vmul.f32 0.03125, %v3696_v4  ;;  %v3717_v8 = vmul.f32 0.03125, %v3681_v0 }
 0xd70   :  { %v3784_v32 = vmul.f32 %v6700_v38, %v3762_v31  ;;  %4813 = vrsqrt.f32 %v3735_v47  ;;  %v6975_v31 = vld [vmem:[#allocation2_spill] sm:$0xff] }
 0xd71   :  { %v4804_v40 = vpop.eup %4803  ;;  %v3738_v13 = vadd.f32 1e-05, %v3722_v24  ;;  %v3733_v63 = vadd.f32 1e-05, %v3717_v8 }
 0xd72   :  { %v4806_v43 = vpop.eup %4805  ;;  %v3806_v3 = vadd.f32 %v6706_v11, %v3784_v32  ;;  %v3760_v26 = vmul.f32 %v4804_v40, %v6605_v16  ;;  %v3690_v18 = vpop.xlane.xlu1 %3689 }
 0xd73   :  { %v3699_v55 = vpop.xlane.xlu0 %3698  ;;  %v3763_v5 = vmul.f32 %v4806_v43, %v6610_v25  ;;  %4815 = vrsqrt.f32 %v3738_v13  ;;  %v3720_v20 = vmul.f32 0.03125, %v3690_v18 }
 0xd74   :  { %v3723_v59 = vmul.f32 0.03125, %v3699_v55  ;;  %v3822_v41 = vmul.f32 %v3806_v3, %v5822_v12  ;;  %v3782_v57 = vmul.f32 %v6700_v38, %v3760_v26  ;;  %4817 = vrsqrt.f32 %v3733_v63  ;;  %v6978_v3 = vld [vmem:[#allocation3_spill] sm:$0xff] }
 0xd75   :  { %v4808_v15 = vpop.eup %4807  ;;  %v3785_v39 = vmul.f32 %v6700_v38, %v3763_v5  ;;  %v3736_v62 = vadd.f32 1e-05, %v3720_v20 }
 0xd76   :  { %v3739_v36 = vadd.f32 1e-05, %v3723_v59  ;;  %v4810_v50 = vpop.eup %4809  ;;  %3838 = vst.msk [vmem:[%s6850_s15 + $0x10] sm:$0xff] %vm6972_vm12, %v3822_v41  ;;  %v3804_v16 = vadd.f32 %v6706_v11, %v3782_v57  ;;  %v3766_v25 = vmul.f32 %v4808_v15, %v6621_v10 }
 0xd77   :  { %v3693_v34 = vpop.xlane.xlu0 %3692  ;;  %v3807_v12 = vadd.f32 %v6706_v11, %v3785_v39  ;;  %v3761_v60 = vmul.f32 %v4810_v50, %v6618_v22  ;;  %4819 = vrsqrt.f32 %v3736_v62  ;;  %v3702_v42 = vpop.xlane.xlu1 %3701  ;;  %v6981_v62 = vld [vmem:[#allocation9_spill] sm:$0xff] }
 0xd78   :  { %v3721_v33 = vmul.f32 0.03125, %v3693_v34  ;;  %v3820_v30 = vmul.f32 %v3804_v16, %v5832_v21  ;;  %v3788_v27 = vmul.f32 %v6700_v38, %v3766_v25  ;;  %4821 = vrsqrt.f32 %v3739_v36  ;;  %v6982_v25 = vld [vmem:[#allocation4_spill] sm:$0xff] }
 0xd79   :  { %v3724_v2 = vmul.f32 0.03125, %v3702_v42  ;;  %v4812_v52 = vpop.eup %4811  ;;  %v3823_v56 = vmul.f32 %v3807_v12, %v5824_v54  ;;  %v3783_v9 = vmul.f32 %v6700_v38, %v3761_v60 }
 0xd7a   :  { %v3737_v10 = vadd.f32 1e-05, %v3721_v33  ;;  %v4814_v28 = vpop.eup %4813  ;;  %3836 = vst.msk [vmem:[%s6850_s15] sm:$0xff] %vm6973_vm5, %v3820_v30  ;;  %v3810_v22 = vadd.f32 %v6706_v11, %v3788_v27  ;;  %v3764_v21 = vmul.f32 %v4812_v52, %v6630_v14  ;;  %v6985_v30 = vld [vmem:[#allocation7_spill] sm:$0xff] }
 0xd7b   :  { %v3740_v53 = vadd.f32 1e-05, %v3724_v2  ;;  %v3705_v6 = vpop.xlane.xlu0 %3704  ;;  %3839 = vst.msk [vmem:[%s6850_s15 + $0x18] sm:$0xff] %vm6974_vm7, %v3823_v56  ;;  %v3805_v54 = vadd.f32 %v6706_v11, %v3783_v9  ;;  %v3767_v35 = vmul.f32 %v4814_v28, %v6633_v17  ;;  %v3708_v48 = vpop.xlane.xlu1 %3707  ;;  %v6986_v56 = vld [vmem:[#allocation8_spill] sm:$0xff] }
 0xd7c   :  { %4823 = vrsqrt.f32 %v3737_v10  ;;  %v3725_v19 = vmul.f32 0.03125, %v3705_v6  ;;  %v3826_v49 = vmul.f32 %v3810_v22, %v5830_v44  ;;  %v3786_v46 = vmul.f32 %v6700_v38, %v3764_v21 }
 0xd7d   :  { %4825 = vrsqrt.f32 %v3740_v53  ;;  %v3726_v14 = vmul.f32 0.03125, %v3708_v48  ;;  %v4816_v47 = vpop.eup %4815  ;;  %v3821_v4 = vmul.f32 %v3805_v54, %v6975_v31  ;;  %v3789_v0 = vmul.f32 %v6700_v38, %v3767_v35  ;;  %v6989_v53 = vld [vmem:[#allocation6_spill] sm:$0xff] }
 0xd7e   :  { %v3741_v24 = vadd.f32 1e-05, %v3725_v19  ;;  %v4818_v8 = vpop.eup %4817  ;;  %3842 = vst.msk [vmem:[%s6850_s15 + $0x30] sm:$0xff] %vm6976_vm14, %v3826_v49  ;;  %v3808_v17 = vadd.f32 %v6706_v11, %v3786_v46  ;;  %v3770_v44 = vmul.f32 %v4816_v47, %v6645_v7  ;;  %v6979_v7 = vld [vmem:[#allocation5_spill] sm:$0xff]  ;;  %v6990_v19 = vld [vmem:[#allocation11_spill] sm:$0xff] }
 0xd7f   :  { %v3742_v32 = vadd.f32 1e-05, %v3726_v14  ;;  %v3711_v40 = vpop.xlane.xlu0 %3710  ;;  %3837 = vst.msk [vmem:[%s6850_s15 + $0x8] sm:$0xff] %vm6977_vm2, %v3821_v4  ;;  %v3811_v13 = vadd.f32 %v6706_v11, %v3789_v0  ;;  %v3765_v63 = vmul.f32 %v4818_v8, %v6642_v37  ;;  %v6993_v14 = vld [vmem:[#allocation10_spill] sm:$0xff]  ;;  %v6994_v4 = vld [vmem:[#allocation13_spill] sm:$0xff] }
 0xd80   :  { %4827 = vrsqrt.f32 %v3741_v24  ;;  %v3727_v43 = vmul.f32 0.03125, %v3711_v40  ;;  %v3824_v26 = vmul.f32 %v3808_v17, %v6978_v3  ;;  %v3792_v18 = vmul.f32 %v6700_v38, %v3770_v44  ;;  %v6997_v24 = vld [vmem:[#allocation12_spill] sm:$0xff] }
 0xd81   :  { %4829 = vrsqrt.f32 %v3742_v32  ;;  %v4820_v55 = vpop.eup %4819  ;;  %v3827_v5 = vmul.f32 %v3811_v13, %v6979_v7  ;;  %v3787_v20 = vmul.f32 %v6700_v38, %v3765_v63 }
 0xd82   :  { %v3743_v59 = vadd.f32 1e-05, %v3727_v43  ;;  %v4822_v41 = vpop.eup %4821  ;;  %3840 = vst.msk [vmem:[%s6850_s15 + $0x20] sm:$0xff] %vm6867_vm0, %v3824_v26  ;;  %v3814_v37 = vadd.f32 %v6706_v11, %v3792_v18  ;;  %v3768_v57 = vmul.f32 %v4820_v55, %v6654_v23 }
 0xd83   :  { %3843 = vst.msk [vmem:[%s6850_s15 + $0x38] sm:$0xff] %vm6980_vm3, %v3827_v5  ;;  %v3809_v15 = vadd.f32 %v6706_v11, %v3787_v20  ;;  %v3771_v39 = vmul.f32 %v4822_v41, %v6657_v51 }
 0xd84   :  { %4831 = vrsqrt.f32 %v3743_v59  ;;  %v3830_v36 = vmul.f32 %v3814_v37, %v6981_v62  ;;  %v3790_v50 = vmul.f32 %v6700_v38, %v3768_v57 }
 0xd85   :  { %v3825_v34 = vmul.f32 %v3809_v15, %v6982_v25  ;;  %v3793_v12 = vmul.f32 %v6700_v38, %v3771_v39 }
 0xd86   :  { %v4824_v16 = vpop.eup %4823  ;;  %3846 = vst.msk [vmem:[%s6850_s15 + $0x50] sm:$0xff] %vm6983_vm4, %v3830_v36  ;;  %v3812_v60 = vadd.f32 %v6706_v11, %v3790_v50 }
 0xd87   :  { %v4826_v23 = vpop.eup %4825  ;;  %v3769_v51 = vmul.f32 %v4824_v16, %v6666_v58  ;;  %3841 = vst.msk [vmem:[%s6850_s15 + $0x28] sm:$0xff] %vm6984_vm6, %v3825_v34  ;;  %v3815_v33 = vadd.f32 %v6706_v11, %v3793_v12 }
 0xd88   :  { %v3772_v42 = vmul.f32 %v4826_v23, %v6671_v29  ;;  %v3828_v27 = vmul.f32 %v3812_v60, %v6985_v30 }
 0xd89   :  { %v3791_v2 = vmul.f32 %v6700_v38, %v3769_v51  ;;  %v3831_v9 = vmul.f32 %v3815_v33, %v6986_v56 }
 0xd8a   :  { %v4828_v52 = vpop.eup %4827  ;;  %v3794_v10 = vmul.f32 %v6700_v38, %v3772_v42  ;;  %3844 = vst.msk [vmem:[%s6850_s15 + $0x40] sm:$0xff] %vm6987_vm8, %v3828_v27 }
 0xd8b   :  { %v4830_v28 = vpop.eup %4829  ;;  %v3813_v58 = vadd.f32 %v6706_v11, %v3791_v2  ;;  %v3773_v22 = vmul.f32 %v4828_v52, %v6678_v61  ;;  %3847 = vst.msk [vmem:[%s6850_s15 + $0x58] sm:$0xff] %vm6988_vm9, %v3831_v9 }
 0xd8c   :  { %v3816_v29 = vadd.f32 %v6706_v11, %v3794_v10  ;;  %v3774_v21 = vmul.f32 %v4830_v28, %v6682_v1 }
 0xd8d   :  { %v3829_v6 = vmul.f32 %v3813_v58, %v6989_v53  ;;  %v3795_v54 = vmul.f32 %v6700_v38, %v3773_v22 }
 0xd8e   :  { %v4832_v35 = vpop.eup %4831  ;;  %v3832_v48 = vmul.f32 %v3816_v29, %v6990_v19  ;;  %v3796_v49 = vmul.f32 %v6700_v38, %v3774_v21 }
 0xd8f   :  { %3845 = vst.msk [vmem:[%s6850_s15 + $0x48] sm:$0xff] %vm6991_vm15, %v3829_v6  ;;  %v3817_v61 = vadd.f32 %v6706_v11, %v3795_v54  ;;  %v3775_v46 = vmul.f32 %v4832_v35, %v6690_v45 }
 0xd90   :  { %3848 = vst.msk [vmem:[%s6850_s15 + $0x60] sm:$0xff] %vm6992_vm1, %v3832_v48  ;;  %v3818_v1 = vadd.f32 %v6706_v11, %v3796_v49 }
 0xd91   :  { %v3833_v47 = vmul.f32 %v3817_v61, %v6993_v14  ;;  %v3797_v31 = vmul.f32 %v6700_v38, %v3775_v46 }
 0xd92   :  { %v3834_v0 = vmul.f32 %v3818_v1, %v6994_v4 }
 0xd93   :  { %3849 = vst.msk [vmem:[%s6850_s15 + $0x68] sm:$0xff] %vm6995_vm10, %v3833_v47  ;;  %v3819_v45 = vadd.f32 %v6706_v11, %v3797_v31 }
 0xd94   :  { %3850 = vst.msk [vmem:[%s6850_s15 + $0x70] sm:$0xff] %vm6996_vm11, %v3834_v0 }
 0xd95   :  { %v3835_v8 = vmul.f32 %v3819_v45, %v6997_v24 }
 0xd97   :  { %3851 = vst.msk [vmem:[%s6850_s15 + $0x78] sm:$0xff] %vm6998_vm13, %v3835_v8 }

// kernel: jets_forward.7
= control target key start
LH: loop header
LB: loop body
LE: loop exit
PB: predicated region body
PF: predicated region fallthrough
CT: control target
= control target key end

     0   :  { %v4689_v3 = vmov 0   ;;  %vm118_vm0 = vcmask 261120   ;;  %vm194_vm1 = vcmask 7168   ;;  %vm199_vm2 = vcmask 531456   ;;  %s5823_s27 = smov 127   ;;  %s5791_s0 = inlined_call_operand.vmem [shape: f32[2,32,64], index: 0, kind: input, shape index: {}]   ;;  %s5792_s1 = inlined_call_operand.vmem [shape: f32[32,2], index: 1, kind: input, shape index: {}]   ;;  %s5793_s6 = inlined_call_operand.vmem [shape: bf16[32,32], index: 6, kind: input, shape index: {}]   ;;  %s5794_s4 = inlined_call_operand.vmem [shape: bf16[3,32,32], index: 4, kind: input, shape index: {}]   ;;  %s5795_s7 = inlined_call_operand.vmem [shape: f32[32,1], index: 7, kind: input, shape index: {}]   ;;  %s5796_s5 = inlined_call_operand.vmem [shape: f32[32,1], index: 5, kind: input, shape index: {}]   ;;  %s5797_s2 = inlined_call_operand.vmem [shape: bf16[64,128], index: 2, kind: input, shape index: {}]   ;;  %s5798_s8 = inlined_call_operand.vmem [shape: bf16[3,16,32], index: 8, kind: input, shape index: {}]   ;;  %s5799_s9 = inlined_call_operand.vmem [shape: f32[16,1], index: 9, kind: input, shape index: {}]   ;;  %s5800_s10 = inlined_call_operand.vmem [shape: bf16[3,16,16], index: 10, kind: input, shape index: {}]   ;;  %s5801_s11 = inlined_call_operand.vmem [shape: f32[16,1], index: 11, kind: input, shape index: {}]   ;;  %s5802_s12 = inlined_call_operand.vmem [shape: bf16[3,16,16], index: 12, kind: input, shape index: {}]   ;;  %s5803_s13 = inlined_call_operand.vmem [shape: f32[16,1], index: 13, kind: input, shape index: {}]   ;;  %s5804_s3 = inlined_call_operand.vmem [shape: bf16[128,256], index: 3, kind: input, shape index: {}]   ;;  %s5805_s14 = inlined_call_operand.vmem [shape: bf16[3,8,16], index: 14, kind: input, shape index: {}]   ;;  %s5806_s15 = inlined_call_operand.vmem [shape: f32[8,1], index: 15, kind: input, shape index: {}]   ;;  %s5807_s16 = inlined_call_operand.vmem [shape: bf16[3,8,8], index: 16, kind: input, shape index: {}]   ;;  %s5808_s17 = inlined_call_operand.vmem [shape: f32[8,1], index: 17, kind: input, shape index: {}]   ;;  %s5809_s18 = inlined_call_operand.vmem [shape: bf16[3,8,8], index: 18, kind: input, shape index: {}]   ;;  %s5810_s19 = inlined_call_operand.vmem [shape: f32[8,1], index: 19, kind: input, shape index: {}]   ;;  %s5811_s20 = inlined_call_operand.vmem [shape: bf16[3,1,8], index: 20, kind: input, shape index: {}]   ;;  %s5812_s21 = inlined_call_operand.<no memory space> [shape: f32[1,1], index: 21, kind: input, shape index: {}]   ;;  %s5813_s22 = inlined_call_operand.vmem [shape: f32[2,256], index: 22, kind: output, shape index: {}]  }
   0x1   :  { %5825 = sst [smem:[#allocation3_spill]] %s5791_s0  ;;  %4487 = vset.pattern.permute.xlu0 %v4689_v3  ;;  %4488 = vset.pattern.permute.xlu1 %v4689_v3  ;;  %vm4855_vm3 = vmpackc.low %vm199_vm2, %vm199_vm2  ;;  %vm539_vm8 = vcmask 523264   ;;  %vm4694_vm9 = vmmov 0   ;;  %vm710_vm12 = vcmask 1039360   ;;  %vm777_vm13 = vcmask 1031168  }
   0x2   :  { %5826 = sst [smem:[#allocation4_spill]] %s5792_s1  ;;  %s5832_s29 = sld [smem:[#allocation3_spill]]  ;;  %vm3891_vm10 = vmneg %vm194_vm1 }
   0x3   :  { %5827 = sst [smem:[#allocation5_spill]] %s5793_s6  ;;  %s5833_s25 = sld [smem:[#allocation4_spill]]  ;;  %vm4968_vm11 = vmpackc.low %vm3891_vm10, %vm3891_vm10 }
   0x4   :  { %5828 = sst [smem:[#allocation6_spill]] %s5794_s4  ;;  %s5834_s1 = sld [smem:[#allocation5_spill]] }
   0x5   :  { %5829 = sst [smem:[#allocation7_spill]] %s5795_s7  ;;  %s4690_s7 = smov 1  }
   0x6   :  { %5830 = sst [smem:[#allocation8_spill]] %s5796_s5  ;;  %s5835_s26 = sld [smem:[#allocation6_spill]] }
   0x7   :  { %5831 = sst [smem:[#allocation9_spill]] %s5797_s2  ;;  %s5821_s6 = smov 126  }
   0x8   :  { %v174_v0 = vld [vmem:[%s5832_s29] sm:$0xff]  ;;  %v175_v1 = vld [vmem:[%s5832_s29 + $0x8] sm:$0xff]  ;;  %v176_v2 = vld [vmem:[%s5832_s29 + $0x10] sm:$0xff]  ;;  %s5838_s30 = sld [smem:[#allocation7_spill]]  ;;  %s5839_s28 = sld [smem:[#allocation8_spill]] }
   0x9   :  { %v4477_v4 = vpack.i.bf16 %v175_v1, %v174_v0  ;;  %v177_v5 = vld [vmem:[%s5832_s29 + $0x18] sm:$0xff]  ;;  %v78_v6 = vld [vmem:[%s5833_s25] sm:$0xff]  ;;  %v79_v7 = vld [vmem:[%s5833_s25 + $0x8] sm:$0xff]  ;;  %s5840_s24 = sld [smem:[#allocation9_spill]] }
   0xa   :  { %v82_v8 = vpack.c.bf16 %v79_v7, %v78_v6  ;;  %v80_v9 = vld [vmem:[%s5833_s25 + $0x10] sm:$0xff]  ;;  %v81_v10 = vld [vmem:[%s5833_s25 + $0x18] sm:$0xff]  ;;  %v4482_v11 = vpack.i.bf16 %v177_v5, %v176_v2  ;;  %v4592_v13 = vld [vmem:[%s5834_s1] sm:$0xff]  }
   0xb   :  { %4478 = vrot.lane.b32.xlu0 %v4477_v4, %s4690_s7  ;;  %v83_v12 = vpack.c.bf16 %v81_v10, %v80_v9  ;;  %4150 = vmatprep.mubr.msk.bf16.mxu1 %vm118_vm0, %v4592_v13  ;;  %v4593_v14 = vld [vmem:[%s5834_s1 + $0x8] sm:$0xff]   ;;  %s5844_s1 = smov 126  }
   0xc   :  { %4146 = vmatprep.subr.bf16.mxu1 %v82_v8  ;;  %v4594_v15 = vld [vmem:[%s5835_s26] sm:$0xff]   ;;  %v4595_v36 = vld [vmem:[%s5835_s26 + $0x8] sm:$0xff]   ;;  %v4596_v37 = vld [vmem:[%s5835_s26 + $0x10] sm:$0xff]  }
   0xd   :  { %4147 = vmatpush3.bf16.msra.mxu1 %v82_v8  ;;  %v4597_v51 = vld [vmem:[%s5835_s26 + $0x18] sm:$0xff]   ;;  %v4598_v53 = vld [vmem:[%s5835_s26 + $0x20] sm:$0xff]   ;;  %v4599_v57 = vld [vmem:[%s5835_s26 + $0x28] sm:$0xff]  }
   0xe   :  { %4148 = vmatprep.subr.bf16.mxu1 %v83_v12  ;;  %v84_v32 = vld [vmem:[%s5838_s30] sm:$0xff]  ;;  %v87_v38 = vld [vmem:[%s5838_s30 + $0x18] sm:$0xff]  ;;  %v207_v39 = vld [vmem:[%s5839_s28 + $0x8] sm:$0xff] }
   0xf   :  { %4483 = vrot.lane.b32.xlu0 %v4482_v11, %s4690_s7  ;;  %v85_v40 = vld [vmem:[%s5838_s30 + $0x8] sm:$0xff]  ;;  %v209_v41 = vld [vmem:[%s5839_s28 + $0x18] sm:$0xff]  ;;  %v86_v42 = vld [vmem:[%s5838_s30 + $0x10] sm:$0xff] }
  0x10   :  { %v206_v43 = vld [vmem:[%s5839_s28] sm:$0xff]  ;;  %v208_v44 = vld [vmem:[%s5839_s28 + $0x10] sm:$0xff]  ;;  %v4601_v1 = vld [vmem:[%s5840_s24 + $0x8] sm:$0xff]  }
  0x11   :  { %4149 = vmatpush3.bf16.msra.mxu1 %v83_v12  ;;  %v4600_v0 = vld [vmem:[%s5840_s24] sm:$0xff]   ;;  %v4602_v2 = vld [vmem:[%s5840_s24 + $0x10] sm:$0xff]   ;;  %v4603_v4 = vld [vmem:[%s5840_s24 + $0x18] sm:$0xff]  }
  0x12   :  { %4178 = vmatprep.subr.bf16.mxu0 %v4600_v0 }
  0x13   :  { %4179 = vmatpush3.bf16.msra.mxu0 %v4600_v0 }
  0x14   :  { %4151 = vmatmul.mubr.msk.bf16.vlgmr.msra.gmra.mrb[0].mxu1 %vm118_vm0, %v4593_v14  ;;  %4180 = vmatprep.subr.bf16.mxu0 %v4601_v1 }
  0x15   :  { %4158 = vmatprep.mubr.msk.bf16.mxu1 %vm118_vm0, %v4594_v15 }
  0x17   :  { %4181 = vmatpush3.bf16.msra.mxu0 %v4601_v1 }
  0x18   :  { %4182 = vmatprep.subr.bf16.mxu0 %v4602_v2 }
  0x1b   :  { %4183 = vmatpush3.bf16.msra.mxu0 %v4602_v2 }
  0x1c   :  { %4184 = vmatprep.subr.bf16.mxu0 %v4603_v4 }
  0x1f   :  { %4185 = vmatpush3.bf16.msra.mxu0 %v4603_v4  ;;  %v4604_v4 = vld [vmem:[%s5798_s8] sm:$0xff]  }
  0x7d   :  { %v4479_v16 = vpop.permute.xlu0 %4478 }
  0x7e   :  { %v4481_v17 = vunpack.i.h.bf16 %v4479_v16  ;;  %v4480_v18 = vunpack.i.l.bf16 %v4479_v16 }
  0x80   :  { %v196_v19 = vsel %vm194_vm1, 0.0, %v4481_v17  ;;  %v195_v20 = vsel %vm194_vm1, 0.0, %v4480_v18 }
  0x81   :  { %v3861_v22 = vpack.c.bf16 %v196_v19, %v195_v20  ;;  %v4484_v23 = vpop.permute.xlu0 %4483  ;;  %v200_v24 = vsel %vm199_vm2, %v195_v20, 0.0  ;;  %v201_v25 = vsel %vm199_vm2, %v196_v19, 0.0 }
  0x82   :  { %v4486_v26 = vunpack.i.h.bf16 %v4484_v23  ;;  %v4485_v27 = vunpack.i.l.bf16 %v4484_v23  ;;  %v204_v28 = vpack.c.bf16 %v201_v25, %v200_v24 }
  0x83   :  { %4154 = vmatprep.subr.msk.bf16.mxu1 %vm4855_vm3, %v3861_v22 }
  0x84   :  { %v198_v29 = vsel %vm194_vm1, 0.0, %v4486_v26  ;;  %v197_v30 = vsel %vm194_vm1, 0.0, %v4485_v27  ;;  %4155 = vmatpush3.bf16.msk.msra.mxu1 %vm4855_vm3, %v3861_v22  ;;  %404 = vrot.lane.b32.xlu0 %v204_v28, %s5821_s6 }
  0x85   :  { %v3864_v31 = vpack.c.bf16 %v198_v29, %v197_v30  ;;  %324 = vrot.lane.b32.xlu1 %v204_v28, %s5823_s27  ;;  %v202_v33 = vsel %vm199_vm2, %v197_v30, 0.0  ;;  %v203_v34 = vsel %vm199_vm2, %v198_v29, 0.0 }
  0x86   :  { %v205_v35 = vpack.c.bf16 %v203_v34, %v202_v33 }
  0x87   :  { %4156 = vmatprep.subr.msk.bf16.mxu1 %vm4855_vm3, %v3864_v31 }
  0x88   :  { %4157 = vmatpush3.bf16.msk.msra.mxu1 %vm4855_vm3, %v3864_v31  ;;  %90 = vperm.xlu0 %4487, %v84_v32  }
  0x89   :  { %326 = vrot.lane.b32.xlu1 %v205_v35, %s5823_s27  ;;  %s5843_s27 = smov 127  }
  0x8b   :  { %4159 = vmatmul.mubr.msk.bf16.vlgmr.msra.gmra.mrb[4].mxu1 %vm118_vm0, %v4595_v36  ;;  %v4693_v36 = vmov 0.0  }
  0x8c   :  { %105 = vperm.xlu0 %4487, %v87_v38   ;;  %4166 = vmatprep.mubr.msk.bf16.mxu1 %vm118_vm0, %v4596_v37 }
  0x8d   :  { %406 = vrot.lane.b32.xlu1 %v205_v35, %s5821_s6  ;;  %4190 = vmatprep.subr.bf16.mxu0 %v4693_v36 }
  0x90   :  { %217 = vperm.xlu0 %4487, %v207_v39  }
  0x91   :  { %95 = vperm.xlu1 %4488, %v85_v40  }
  0x94   :  { %227 = vperm.xlu0 %4487, %v209_v41  }
  0x95   :  { %100 = vperm.xlu1 %4488, %v86_v42  }
  0x99   :  { %212 = vperm.xlu1 %4488, %v206_v43  }
  0x9d   :  { %222 = vperm.xlu1 %4488, %v208_v44  }
  0xe7   :  { %v4152_v45 = vpop.f32.mrb[0].mxu1 }
  0xe8   :  { %v159_v46 = vpop.f32.mrb[1].mxu1 }
  0xe9   :  { %v4153_v47 = vpop.f32.mrb[2].mxu1 }
  0xea   :  { %v162_v48 = vpop.f32.mrb[3].mxu1 }
  0xf6   :  { %v405_v52 = vpop.permute.xlu0 %404 }
  0xf7   :  { %v325_v49 = vpop.permute.xlu1 %324 }
  0xf8   :  { %4162 = vmatprep.subr.bf16.mxu1 %v325_v49 }
  0xf9   :  { %4163 = vmatpush3.bf16.msra.mxu1 %v325_v49 }
  0xfb   :  { %v327_v50 = vpop.permute.xlu1 %326 }
  0xfc   :  { %4164 = vmatprep.subr.bf16.mxu1 %v327_v50 }
  0xfd   :  { %4165 = vmatpush3.bf16.msra.mxu1 %v327_v50 }
  0xfe   :  { %4170 = vmatprep.subr.bf16.mxu1 %v405_v52 }
  0xff   :  { %v407_v54 = vpop.permute.xlu1 %406 }
 0x100   :  { %4167 = vmatmul.mubr.msk.bf16.vlgmr.msra.gmra.mrb[4].mxu1 %vm118_vm0, %v4597_v51 }
 0x101   :  { %4171 = vmatpush3.bf16.msra.mxu1 %v405_v52  ;;  %4174 = vmatprep.mubr.msk.bf16.mxu1 %vm118_vm0, %v4598_v53 }
 0x102   :  { %4172 = vmatprep.subr.bf16.mxu1 %v407_v54 }
 0x105   :  { %4173 = vmatpush3.bf16.msra.mxu1 %v407_v54 }
 0x106   :  { %4214 = vmatprep.subr.bf16.mxu1 %v4693_v36 }
 0x107   :  { %v91_v55 = vpop.permute.xlu0 %90 }
 0x108   :  { %v4917_v56 = vadd.f32 %v159_v46, %v91_v55 }
 0x10a   :  { %471 = vperm.xlu1 %4488, %v4917_v56  }
 0x10b   :  { %v106_v59 = vpop.permute.xlu0 %105 }
 0x10c   :  { %4175 = vmatmul.mubr.msk.bf16.vlgmr.msra.gmra.mrb[4].mxu1 %vm118_vm0, %v4599_v57  ;;  %v4927_v61 = vadd.f32 %v4153_v47, %v106_v59 }
 0x10d   :  { %4216 = vmatprep.mubr.msk.bf16.mxu1 %vm4694_vm9, %v4693_v36 }
 0x10f   :  { %v4945_v5 = vpop.permute.xlu0 %217 }
 0x110   :  { %v96_v58 = vpop.permute.xlu1 %95 }
 0x111   :  { %v4924_v60 = vadd.f32 %v162_v48, %v96_v58 }
 0x113   :  { %476 = vperm.xlu0 %4487, %v4924_v60   ;;  %v4949_v7 = vpop.permute.xlu0 %227 }
 0x114   :  { %v101_v62 = vpop.permute.xlu1 %100 }
 0x115   :  { %v4929_v63 = vadd.f32 %v4152_v45, %v101_v62 }
 0x117   :  { %486 = vperm.xlu0 %4487, %v4927_v61   ;;  %481 = vperm.xlu1 %4488, %v4929_v63  }
 0x118   :  { %v4947_v6 = vpop.permute.xlu1 %212 }
 0x11c   :  { %v4951_v8 = vpop.permute.xlu1 %222 }
 0x189   :  { %v472_v9 = vpop.permute.xlu1 %471 }
 0x192   :  { %v477_v10 = vpop.permute.xlu0 %476 }
 0x196   :  { %v482_v14 = vpop.permute.xlu1 %481  ;;  %v487_v20 = vpop.permute.xlu0 %486 }
 0x1df   :  { %v4176_v11 = vpop.f32.mrb[4].mxu1 }
 0x1e0   :  { %v4346_v12 = vadd.f32 %v4176_v11, %v4951_v8  ;;  %v450_v13 = vpop.f32.mrb[5].mxu1  ;;  %v623_v11 = vld [vmem:[%s5799_s9] sm:$0xff] }
 0x1e1   :  { %v4347_v15 = vadd.f32 %v450_v13, %v4947_v6  ;;  %v4177_v16 = vpop.f32.mrb[6].mxu1 }
 0x1e2   :  { %v491_v17 = vadd.f32 %v4346_v12, %v482_v14  ;;  %v4348_v18 = vadd.f32 %v4177_v16, %v4949_v7  ;;  %v453_v19 = vpop.f32.mrb[7].mxu1 }
 0x1e3   :  { %v489_v22 = vadd.f32 %v4347_v15, %v472_v9  ;;  %v4349_v23 = vadd.f32 %v453_v19, %v4945_v5 }
 0x1e4   :  { %v499_v24 = vmul.f32 0.1, %v491_v17  ;;  %v492_v25 = vadd.f32 %v4348_v18, %v487_v20  ;;  %vm495_vm4 = vcmp.gt.f32.partialorder %v491_v17, 0.0  ;;  %v4605_v18 = vld [vmem:[%s5798_s8 + $0x8] sm:$0xff]  }
 0x1e5   :  { %v490_v26 = vadd.f32 %v4349_v23, %v477_v10  ;;  %v497_v27 = vmul.f32 0.1, %v489_v22  ;;  %vm493_vm6 = vcmp.gt.f32.partialorder %v489_v22, 0.0  ;;  %v624_v10 = vld [vmem:[%s5799_s9 + $0x8] sm:$0xff] }
 0x1e6   :  { %vm496_vm5 = vcmp.gt.f32.partialorder %v492_v25, 0.0  ;;  %v500_v28 = vmul.f32 0.1, %v492_v25  ;;  %v503_v30 = vsel %vm495_vm4, %v491_v17, %v499_v24  ;;  %vm869_vm4 = vcmask 130048  }
 0x1e7   :  { %vm494_vm7 = vcmp.gt.f32.partialorder %v490_v26, 0.0  ;;  %v498_v29 = vmul.f32 0.1, %v490_v26  ;;  %v501_v32 = vsel %vm493_vm6, %v489_v22, %v497_v27 }
 0x1e8   :  { %v504_v31 = vsel %vm496_vm5, %v492_v25, %v500_v28 }
 0x1e9   :  { %v502_v33 = vsel %vm494_vm7, %v490_v26, %v498_v29  ;;  %v506_v34 = vpack.c.bf16 %v504_v31, %v503_v30  ;;  %v4606_v26 = vld [vmem:[%s5798_s8 + $0x10] sm:$0xff]  }
 0x1ea   :  { %v505_v35 = vpack.c.bf16 %v502_v33, %v501_v32 }
 0x1ec   :  { %4186 = vmatprep.mubr.msk.bf16.mxu0 %vm539_vm8, %v505_v35 }
 0x1ed   :  { %4187 = vmatmul.mubr.msk.bf16.vlgmr.msra.gmra.mrb[0].mxu0 %vm539_vm8, %v506_v34 }
 0x1ee   :  { %4194 = vmatprep.mubr.msk.bf16.mxu0 %vm4694_vm9, %v4693_v36 }
 0x2c0   :  { %v4188_v37 = vpop.f32.mrb[0].mxu0 }
 0x2c1   :  { %v580_v38 = vpop.f32.mrb[1].mxu0 }
 0x2c2   :  { %v4189_v39 = vpop.f32.mrb[2].mxu0 }
 0x2c3   :  { %v4494_v40 = vpack.i.bf16 %v4189_v39, %v4188_v37  ;;  %v583_v41 = vpop.f32.mrb[3].mxu0 }
 0x2c4   :  { %v4489_v42 = vpack.i.bf16 %v583_v41, %v580_v38 }
 0x2c5   :  { %4495 = vrot.lane.b32.xlu0 %v4494_v40, %s4690_s7 }
 0x2c6   :  { %4490 = vrot.lane.b32.xlu1 %v4489_v42, %s4690_s7 }
 0x337   :  { %v4496_v43 = vpop.permute.xlu0 %4495 }
 0x338   :  { %v4491_v44 = vpop.permute.xlu1 %4490  ;;  %v4498_v45 = vunpack.i.h.bf16 %v4496_v43  ;;  %v4497_v46 = vunpack.i.l.bf16 %v4496_v43 }
 0x339   :  { %v4493_v47 = vunpack.i.h.bf16 %v4491_v44  ;;  %v4492_v48 = vunpack.i.l.bf16 %v4491_v44 }
 0x33a   :  { %v617_v58 = vsel %vm194_vm1, %v4497_v46, 0.0  ;;  %v618_v59 = vsel %vm194_vm1, %v4498_v45, 0.0  ;;  %v613_v62 = vsel %vm194_vm1, 0.0, %v4497_v46  ;;  %v614_v0 = vsel %vm194_vm1, 0.0, %v4498_v45 }
 0x33b   :  { %v3894_v50 = vpack.c.bf16 %v4493_v47, %v4492_v48  ;;  %v615_v51 = vsel %vm194_vm1, %v4492_v48, 0.0  ;;  %v616_v52 = vsel %vm194_vm1, %v4493_v47, 0.0  ;;  %v611_v53 = vsel %vm194_vm1, 0.0, %v4492_v48 }
 0x33c   :  { %v620_v54 = vpack.c.bf16 %v616_v52, %v615_v51  ;;  %v612_v55 = vsel %vm194_vm1, 0.0, %v4493_v47  ;;  %v3899_v1 = vpack.c.bf16 %v4498_v45, %v4497_v46  ;;  %v622_v2 = vpack.c.bf16 %v618_v59, %v617_v58  ;;  %v4607_v51 = vld [vmem:[%s5800_s10] sm:$0xff]   ;;  %v4608_v59 = vld [vmem:[%s5800_s10 + $0x8] sm:$0xff]  }
 0x33d   :  { %4191 = vmatpush3.bf16.msk.msra.mxu0 %vm4968_vm11, %v3894_v50  ;;  %v619_v57 = vpack.c.bf16 %v612_v55, %v611_v53  ;;  %v621_v9 = vpack.c.bf16 %v614_v0, %v613_v62  ;;  %v849_v53 = vld [vmem:[%s5801_s11 + $0x8] sm:$0xff] }
 0x33e   :  { %704 = vrot.lane.b32.xlu0 %v620_v54, %s5843_s27  ;;  %4192 = vmatprep.subr.bf16.mxu0 %v4693_v36 }
 0x33f   :  { %702 = vrot.lane.b32.xlu1 %v619_v57, %s5843_s27 }
 0x341   :  { %4193 = vmatpush3.bf16.msk.msra.mxu0 %vm4968_vm11, %v3899_v1 }
 0x342   :  { %708 = vrot.lane.b32.xlu0 %v622_v2, %s5843_s27  ;;  %4198 = vmatprep.subr.bf16.mxu0 %v4693_v36 }
 0x343   :  { %706 = vrot.lane.b32.xlu1 %v621_v9, %s5843_s27 }
 0x344   :  { %4195 = vmatmul.mubr.msk.bf16.vlgmr.msra.gmra.mrb[4].mxu0 %vm118_vm0, %v4604_v4 }
 0x345   :  { %4202 = vmatprep.mubr.msk.bf16.mxu0 %vm4694_vm9, %v4693_v36 }
 0x346   :  { %771 = vrot.lane.b32.xlu0 %v620_v54, %s5844_s1  ;;  %v848_v54 = vld [vmem:[%s5801_s11] sm:$0xff] }
 0x347   :  { %769 = vrot.lane.b32.xlu1 %v619_v57, %s5844_s1 }
 0x34a   :  { %775 = vrot.lane.b32.xlu0 %v622_v2, %s5844_s1  ;;  %v4609_v2 = vld [vmem:[%s5800_s10 + $0x10] sm:$0xff]  }
 0x34b   :  { %773 = vrot.lane.b32.xlu1 %v621_v9, %s5844_s1 }
 0x34e   :  { %632 = vperm.xlu0 %4487, %v624_v10  }
 0x34f   :  { %627 = vperm.xlu1 %4488, %v623_v11  }
 0x3b0   :  { %v705_v12 = vpop.permute.xlu0 %704 }
 0x3b1   :  { %v703_v13 = vpop.permute.xlu1 %702 }
 0x3b2   :  { %v711_v14 = vsel %vm710_vm12, %v703_v13, %v705_v12 }
 0x3b3   :  { %4199 = vmatpush3.bf16.msra.mxu0 %v711_v14 }
 0x3b4   :  { %v709_v15 = vpop.permute.xlu0 %708  ;;  %4200 = vmatprep.subr.bf16.mxu0 %v4693_v36 }
 0x3b5   :  { %v707_v16 = vpop.permute.xlu1 %706 }
 0x3b6   :  { %v712_v17 = vsel %vm710_vm12, %v707_v16, %v709_v15 }
 0x3b7   :  { %4201 = vmatpush3.bf16.msra.mxu0 %v712_v17 }
 0x3b8   :  { %v772_v19 = vpop.permute.xlu0 %771  ;;  %4206 = vmatprep.subr.bf16.mxu0 %v4693_v36 }
 0x3b9   :  { %v770_v20 = vpop.permute.xlu1 %769 }
 0x3ba   :  { %v778_v22 = vsel %vm777_vm13, %v770_v20, %v772_v19  ;;  %4203 = vmatmul.mubr.msk.bf16.vlgmr.msra.gmra.mrb[4].mxu0 %vm118_vm0, %v4605_v18 }
 0x3bb   :  { %4207 = vmatpush3.bf16.msra.mxu0 %v778_v22  ;;  %4210 = vmatprep.mubr.msk.bf16.mxu0 %vm4694_vm9, %v4693_v36 }
 0x3bc   :  { %v776_v23 = vpop.permute.xlu0 %775  ;;  %4208 = vmatprep.subr.bf16.mxu0 %v4693_v36 }
 0x3bd   :  { %v774_v24 = vpop.permute.xlu1 %773 }
 0x3be   :  { %v779_v25 = vsel %vm777_vm13, %v774_v24, %v776_v23 }
 0x3bf   :  { %4209 = vmatpush3.bf16.msra.mxu0 %v779_v25 }
 0x3c0   :  { %4232 = vmatprep.subr.bf16.mxu0 %v4693_v36 }
 0x3c6   :  { %4211 = vmatmul.mubr.msk.bf16.vlgmr.msra.gmra.mrb[4].mxu0 %vm118_vm0, %v4606_v26 }
 0x3c7   :  { %4234 = vmatprep.mubr.msk.bf16.mxu0 %vm4694_vm9, %v4693_v36 }
 0x3cd   :  { %v5031_v31 = vpop.permute.xlu0 %632 }
 0x3ce   :  { %v5026_v27 = vpop.permute.xlu1 %627 }
 0x499   :  { %v819_v28 = vpop.f32.mrb[4].mxu0 }
 0x49a   :  { %v5029_v29 = vadd.f32 %v819_v28, %v5026_v27  ;;  %v4212_v30 = vpop.f32.mrb[5].mxu0 }
 0x49b   :  { %v822_v32 = vpop.f32.mrb[6].mxu0 }
 0x49c   :  { %v830_v33 = vmul.f32 0.1, %v5029_v29  ;;  %v5035_v34 = vadd.f32 %v822_v32, %v5031_v31  ;;  %v4213_v35 = vpop.f32.mrb[7].mxu0  ;;  %vm828_vm14 = vcmp.gt.f32.partialorder %v5029_v29, 0.0 }
 0x49d   :  { %v4610_v35 = vld [vmem:[%s5802_s12] sm:$0xff]  }
 0x49e   :  { %v831_v37 = vmul.f32 0.1, %v5035_v34  ;;  %vm829_vm15 = vcmp.gt.f32.partialorder %v5035_v34, 0.0  ;;  %v832_v38 = vsel %vm828_vm14, %v5029_v29, %v830_v33 }
 0x4a0   :  { %v833_v39 = vsel %vm829_vm15, %v5035_v34, %v831_v37 }
 0x4a1   :  { %v4499_v40 = vpack.i.bf16 %v833_v39, %v832_v38  ;;  %v1059_v38 = vld [vmem:[%s5803_s13 + $0x8] sm:$0xff]  ;;  %v1058_v39 = vld [vmem:[%s5803_s13] sm:$0xff] }
 0x4a3   :  { %4500 = vrot.lane.b32.xlu1 %v4499_v40, %s4690_s7 }
 0x515   :  { %v4501_v41 = vpop.permute.xlu1 %4500 }
 0x516   :  { %v4503_v42 = vunpack.i.h.bf16 %v4501_v41  ;;  %v4502_v43 = vunpack.i.l.bf16 %v4501_v41  ;;  %v4615_v41 = vld [vmem:[%s5804_s3 + $0x4] ss:$8 sps:$4 sm:$0xff]  }
 0x518   :  { %v3914_v44 = vpack.c.bf16 %v4503_v42, %v4502_v43  ;;  %v844_v45 = vsel %vm194_vm1, %v4502_v43, 0.0  ;;  %v845_v46 = vsel %vm194_vm1, %v4503_v42, 0.0  ;;  %v842_v47 = vsel %vm194_vm1, 0.0, %v4502_v43 }
 0x519   :  { %v847_v48 = vpack.c.bf16 %v845_v46, %v844_v45  ;;  %v843_v50 = vsel %vm194_vm1, 0.0, %v4503_v42  ;;  %v4613_v45 = vld [vmem:[%s5804_s3] ss:$8 sps:$4 sm:$0xff]  }
 0x51a   :  { %4215 = vmatpush3.bf16.msk.msra.mxu1 %vm4968_vm11, %v3914_v44  ;;  %v846_v52 = vpack.c.bf16 %v843_v50, %v842_v47  ;;  %v4611_v44 = vld [vmem:[%s5802_s12 + $0x8] sm:$0xff]   ;;  %v4618_v47 = vld [vmem:[%s5804_s3 + $0x14] ss:$8 sps:$4 sm:$0xff]  }
 0x51b   :  { %928 = vrot.lane.b32.xlu1 %v847_v48, %s5843_s27  ;;  %4220 = vmatprep.subr.bf16.mxu1 %v4693_v36 }
 0x51c   :  { %926 = vrot.lane.b32.xlu0 %v846_v52, %s5843_s27 }
 0x51d   :  { %4217 = vmatmul.mubr.msk.bf16.vlgmr.msra.gmra.mrb[8].mxu1 %vm869_vm4, %v4607_v51  ;;  %v4612_v51 = vld [vmem:[%s5802_s12 + $0x10] sm:$0xff]  }
 0x51e   :  { %4222 = vmatprep.mubr.msk.bf16.mxu1 %vm4694_vm9, %v4693_v36 }
 0x51f   :  { %988 = vrot.lane.b32.xlu1 %v847_v48, %s5844_s1 }
 0x520   :  { %986 = vrot.lane.b32.xlu0 %v846_v52, %s5844_s1  ;;  %v4616_v52 = vld [vmem:[%s5804_s3 + $0x10] ss:$8 sps:$4 sm:$0xff]  }
 0x523   :  { %857 = vperm.xlu1 %4488, %v849_v53   ;;  %v4621_v53 = vld [vmem:[%s5804_s3 + $0x24] ss:$8 sps:$4 sm:$0xff]  }
 0x524   :  { %852 = vperm.xlu0 %4487, %v848_v54   ;;  %v4619_v54 = vld [vmem:[%s5804_s3 + $0x20] ss:$8 sps:$4 sm:$0xff]  }
 0x58d   :  { %v929_v55 = vpop.permute.xlu1 %928 }
 0x58e   :  { %v927_v57 = vpop.permute.xlu0 %926 }
 0x58f   :  { %v930_v58 = vsel %vm710_vm12, %v927_v57, %v929_v55  ;;  %v4624_v55 = vld [vmem:[%s5804_s3 + $0x34] ss:$8 sps:$4 sm:$0xff]   ;;  %v4622_v57 = vld [vmem:[%s5804_s3 + $0x30] ss:$8 sps:$4 sm:$0xff]  }
 0x590   :  { %4221 = vmatpush3.bf16.msra.mxu1 %v930_v58  ;;  %v4627_v58 = vld [vmem:[%s5804_s3 + $0x44] ss:$8 sps:$4 sm:$0xff]  }
 0x591   :  { %v989_v62 = vpop.permute.xlu1 %988  ;;  %4226 = vmatprep.subr.bf16.mxu1 %v4693_v36 }
 0x592   :  { %v987_v0 = vpop.permute.xlu0 %986 }
 0x593   :  { %v990_v1 = vsel %vm777_vm13, %v987_v0, %v989_v62  ;;  %4223 = vmatmul.mubr.msk.bf16.vlgmr.msra.gmra.mrb[8].mxu1 %vm869_vm4, %v4608_v59  ;;  %v4625_v59 = vld [vmem:[%s5804_s3 + $0x40] ss:$8 sps:$4 sm:$0xff]   ;;  %v4630_v62 = vld [vmem:[%s5804_s3 + $0x54] ss:$8 sps:$4 sm:$0xff]   ;;  %v4628_v0 = vld [vmem:[%s5804_s3 + $0x50] ss:$8 sps:$4 sm:$0xff]  }
 0x594   :  { %4227 = vmatpush3.bf16.msra.mxu1 %v990_v1  ;;  %4228 = vmatprep.mubr.msk.bf16.mxu1 %vm4694_vm9, %v4693_v36  ;;  %v4633_v1 = vld [vmem:[%s5804_s3 + $0x64] ss:$8 sps:$4 sm:$0xff]  }
 0x595   :  { %4238 = vmatprep.subr.bf16.mxu1 %v4693_v36 }
 0x59f   :  { %4229 = vmatmul.mubr.msk.bf16.vlgmr.msra.gmra.mrb[8].mxu1 %vm869_vm4, %v4609_v2  ;;  %v4631_v2 = vld [vmem:[%s5804_s3 + $0x60] ss:$8 sps:$4 sm:$0xff]  }
 0x5a0   :  { %4240 = vmatprep.mubr.msk.bf16.mxu1 %vm4694_vm9, %v4693_v36 }
 0x5a2   :  { %v5085_v12 = vpop.permute.xlu1 %857 }
 0x5a3   :  { %v5082_v4 = vpop.permute.xlu0 %852 }
 0x672   :  { %v1029_v9 = vpop.f32.mrb[8].mxu1 }
 0x673   :  { %v4352_v10 = vadd.f32 %v1029_v9, %v5082_v4  ;;  %v4230_v11 = vpop.f32.mrb[9].mxu1 }
 0x674   :  { %v1032_v13 = vpop.f32.mrb[10].mxu1 }
 0x675   :  { %v1040_v14 = vmul.f32 0.1, %v4352_v10  ;;  %v4353_v15 = vadd.f32 %v1032_v13, %v5085_v12  ;;  %v4231_v16 = vpop.f32.mrb[11].mxu1  ;;  %vm1038_vm5 = vcmp.gt.f32.partialorder %v4352_v10, 0.0  ;;  %v4634_v13 = vld [vmem:[%s5804_s3 + $0x70] ss:$8 sps:$4 sm:$0xff]  }
 0x677   :  { %vm1039_vm6 = vcmp.gt.f32.partialorder %v4353_v15, 0.0  ;;  %v1041_v17 = vmul.f32 0.1, %v4353_v15  ;;  %v1042_v18 = vsel %vm1038_vm5, %v4352_v10, %v1040_v14  ;;  %v4636_v10 = vld [vmem:[%s5804_s3 + $0x74] ss:$8 sps:$4 sm:$0xff]   ;;  %vm1628_vm5 = vcmask 1043456  }
 0x679   :  { %v1043_v19 = vsel %vm1039_vm6, %v4353_v15, %v1041_v17  ;;  %vm1624_vm6 = vcmask 64512  }
 0x67a   :  { %v4504_v20 = vpack.i.bf16 %v1043_v19, %v1042_v18 }
 0x67c   :  { %4505 = vrot.lane.b32.xlu0 %v4504_v20, %s4690_s7 }
 0x6ee   :  { %v4506_v22 = vpop.permute.xlu0 %4505 }
 0x6ef   :  { %v4508_v23 = vunpack.i.h.bf16 %v4506_v22  ;;  %v4507_v24 = vunpack.i.l.bf16 %v4506_v22 }
 0x6f1   :  { %v3929_v25 = vpack.c.bf16 %v4508_v23, %v4507_v24  ;;  %v1054_v26 = vsel %vm194_vm1, %v4507_v24, 0.0  ;;  %v1055_v28 = vsel %vm194_vm1, %v4508_v23, 0.0  ;;  %v1052_v30 = vsel %vm194_vm1, 0.0, %v4507_v24 }
 0x6f2   :  { %v1057_v32 = vpack.c.bf16 %v1055_v28, %v1054_v26  ;;  %v1053_v33 = vsel %vm194_vm1, 0.0, %v4508_v23 }
 0x6f3   :  { %4233 = vmatpush3.bf16.msk.msra.mxu0 %vm4968_vm11, %v3929_v25  ;;  %v1056_v37 = vpack.c.bf16 %v1053_v33, %v1052_v30 }
 0x6f4   :  { %1137 = vrot.lane.b32.xlu0 %v1057_v32, %s5843_s27  ;;  %4244 = vmatprep.subr.bf16.mxu0 %v4693_v36 }
 0x6f5   :  { %1135 = vrot.lane.b32.xlu1 %v1056_v37, %s5843_s27 }
 0x6f6   :  { %4235 = vmatmul.mubr.msk.bf16.vlgmr.msra.gmra.mrb[8].mxu0 %vm869_vm4, %v4610_v35 }
 0x6f7   :  { %4246 = vmatprep.mubr.msk.bf16.mxu0 %vm4694_vm9, %v4693_v36 }
 0x6f8   :  { %1197 = vrot.lane.b32.xlu0 %v1057_v32, %s5844_s1 }
 0x6f9   :  { %1195 = vrot.lane.b32.xlu1 %v1056_v37, %s5844_s1 }
 0x6fc   :  { %1067 = vperm.xlu0 %4487, %v1059_v38  }
 0x6fd   :  { %1062 = vperm.xlu1 %4488, %v1058_v39  }
 0x766   :  { %v1138_v40 = vpop.permute.xlu0 %1137 }
 0x767   :  { %v1136_v42 = vpop.permute.xlu1 %1135 }
 0x768   :  { %v1139_v43 = vsel %vm710_vm12, %v1136_v42, %v1138_v40 }
 0x769   :  { %4239 = vmatpush3.bf16.msra.mxu1 %v1139_v43 }
 0x76a   :  { %v1198_v46 = vpop.permute.xlu0 %1197  ;;  %1352 = vmatprep.subr.bf16.mxu1 %v4615_v41 }
 0x76b   :  { %v1196_v48 = vpop.permute.xlu1 %1195 }
 0x76c   :  { %v1199_v50 = vsel %vm777_vm13, %v1196_v48, %v1198_v46  ;;  %4241 = vmatmul.mubr.msk.bf16.vlgmr.msra.gmra.mrb[12].mxu1 %vm869_vm4, %v4611_v44 }
 0x76d   :  { %4245 = vmatpush3.bf16.msra.mxu0 %v1199_v50  ;;  %1353 = vmatpush1.bf16.msra.mxu1 %v4613_v45 }
 0x76e   :  { %1354 = vmatprep.subr.bf16.mxu1 %v4618_v47  ;;  %1384 = vmatprep.mubr.bf16.mxu1 %v4689_v3 }
 0x770   :  { %4247 = vmatmul.mubr.msk.bf16.vlgmr.msra.gmra.mrb[12].mxu0 %vm869_vm4, %v4612_v51 }
 0x771   :  { %1355 = vmatpush1.bf16.msra.mxu1 %v4616_v52  ;;  %1465 = vmatprep.mubr.bf16.mxu0 %v4689_v3 }
 0x772   :  { %1356 = vmatprep.subr.bf16.mxu1 %v4621_v53 }
 0x775   :  { %1357 = vmatpush1.bf16.msra.mxu1 %v4619_v54 }
 0x776   :  { %1358 = vmatprep.subr.bf16.mxu1 %v4624_v55 }
 0x779   :  { %1359 = vmatpush1.bf16.msra.mxu1 %v4622_v57 }
 0x77a   :  { %1360 = vmatprep.subr.bf16.mxu1 %v4627_v58 }
 0x77b   :  { %v5175_v18 = vpop.permute.xlu0 %1067 }
 0x77c   :  { %v5172_v16 = vpop.permute.xlu1 %1062 }
 0x77d   :  { %1361 = vmatpush1.bf16.msra.mxu1 %v4625_v59 }
 0x77e   :  { %1362 = vmatprep.subr.bf16.mxu1 %v4630_v62 }
 0x781   :  { %1363 = vmatpush1.bf16.msra.mxu1 %v4628_v0 }
 0x782   :  { %1364 = vmatprep.subr.bf16.mxu1 %v4633_v1 }
 0x785   :  { %1365 = vmatpush1.bf16.msra.mxu1 %v4631_v2 }
 0x786   :  { %1366 = vmatprep.subr.bf16.mxu1 %v4636_v10 }
 0x789   :  { %1367 = vmatpush1.bf16.msra.mxu1 %v4634_v13  ;;  %v1429_v13 = vld [vmem:[%s5805_s14] sm:$0xf] }
 0x7c9   :  { %v1116_v9 = vpop.f32.mrb[8].mxu0 }
 0x7ca   :  { %v4236_v11 = vpop.f32.mrb[9].mxu0  ;;  %v1123_v17 = vadd.f32 %v1116_v9, %v5172_v16 }
 0x7cb   :  { %v1119_v14 = vpop.f32.mrb[10].mxu0 }
 0x7cc   :  { %v4237_v15 = vpop.f32.mrb[11].mxu0  ;;  %v1124_v20 = vadd.f32 %v1119_v14, %v5175_v18  ;;  %v1422_v14 = vld [vmem:[%s5806_s15] sm:$0xff] }
 0x83f   :  { %v1178_v19 = vpop.f32.mrb[12].mxu1 }
 0x840   :  { %v1185_v22 = vadd.f32 %v1178_v19, %v1123_v17  ;;  %v4242_v23 = vpop.f32.mrb[13].mxu1 }
 0x841   :  { %v1181_v24 = vpop.f32.mrb[14].mxu1 }
 0x842   :  { %v1186_v25 = vadd.f32 %v1181_v24, %v1124_v20  ;;  %v4243_v26 = vpop.f32.mrb[15].mxu1  ;;  %v3962_v24 = vld [vmem:[%s5805_s14 + $0x4] sm:$0xf] }
 0x843   :  { %v1238_v28 = vpop.f32.mrb[12].mxu0 }
 0x844   :  { %v1245_v30 = vadd.f32 %v1238_v28, %v1185_v22  ;;  %v4248_v32 = vpop.f32.mrb[13].mxu0 }
 0x845   :  { %v1241_v33 = vpop.f32.mrb[14].mxu0  ;;  %v3964_v32 = vld [vmem:[%s5805_s14 + $0x8] sm:$0xf] }
 0x846   :  { %v1247_v35 = vadd.f32 %v5029_v29, %v1245_v30  ;;  %v1246_v37 = vadd.f32 %v1241_v33, %v1186_v25  ;;  %v4249_v38 = vpop.f32.mrb[15].mxu0 }
 0x848   :  { %v1251_v39 = vmul.f32 0.1, %v1247_v35  ;;  %v1248_v40 = vadd.f32 %v5035_v34, %v1246_v37  ;;  %vm1249_vm7 = vcmp.gt.f32.partialorder %v1247_v35, 0.0 }
 0x84a   :  { %vm1250_vm10 = vcmp.gt.f32.partialorder %v1248_v40, 0.0  ;;  %v1252_v41 = vmul.f32 0.1, %v1248_v40  ;;  %v1253_v42 = vsel %vm1249_vm7, %v1247_v35, %v1251_v39 }
 0x84c   :  { %v1254_v43 = vsel %vm1250_vm10, %v1248_v40, %v1252_v41 }
 0x84d   :  { %v1255_v44 = vpack.c.bf16 %v1254_v43, %v1253_v42 }
 0x84f   :  { %1385 = vmatmul.mubr.bf16.vlgmr.msra.gmra.mrb[16].mxu1 %v1255_v44 }
 0x850   :  { %1875 = vmatprep.mubr.bf16.mxu1 %v4689_v3 }
 0x922   :  { %v1386_v45 = vpop.f32.mrb[16].mxu1 }
 0x923   :  { %v1388_v46 = vpop.f32.mrb[17].mxu1 }
 0x924   :  { %v4509_v47 = vpack.i.bf16 %v1388_v46, %v1386_v45  ;;  %v1390_v48 = vpop.f32.mrb[18].mxu1 }
 0x925   :  { %v1392_v50 = vpop.f32.mrb[19].mxu1 }
 0x926   :  { %v4514_v29 = vpack.i.bf16 %v1392_v50, %v1390_v48  ;;  %4510 = vrot.lane.b32.xlu1 %v4509_v47, %s4690_s7 }
 0x928   :  { %4515 = vrot.lane.b32.xlu0 %v4514_v29, %s4690_s7 }
 0x998   :  { %v4511_v34 = vpop.permute.xlu1 %4510 }
 0x999   :  { %v4513_v51 = vunpack.i.h.bf16 %v4511_v34  ;;  %v4512_v52 = vunpack.i.l.bf16 %v4511_v34 }
 0x99a   :  { %v4516_v53 = vpop.permute.xlu0 %4515 }
 0x99b   :  { %v4518_v54 = vunpack.i.h.bf16 %v4516_v53  ;;  %v4517_v55 = vunpack.i.l.bf16 %v4516_v53  ;;  %v1417_v57 = vsel %vm194_vm1, %v4513_v51, 0.0  ;;  %v1407_v59 = vsel %vm194_vm1, %v4512_v52, %v4513_v51 }
 0x99c   :  { %v1415_v10 = vsel %vm194_vm1, 0.0, %v4512_v52 }
 0x99d   :  { %v1418_v58 = vsel %vm194_vm1, %v4518_v54, 0.0  ;;  %v1408_v62 = vsel %vm194_vm1, %v4517_v55, %v4518_v54  ;;  %v1416_v2 = vsel %vm194_vm1, 0.0, %v4517_v55  ;;  %v3959_v9 = vpack.c.bf16 %v4517_v55, %v4512_v52 }
 0x99e   :  { %v1421_v0 = vpack.c.bf16 %v1418_v58, %v1417_v57  ;;  %v1420_v1 = vpack.c.bf16 %v1408_v62, %v1407_v59  ;;  %v1419_v11 = vpack.c.bf16 %v1416_v2, %v1415_v10  ;;  %v1623_v57 = vld [vmem:[%s5807_s16] sm:$0xf] }
 0x99f   :  { %v1616_v58 = vld [vmem:[%s5808_s17] sm:$0xff] }
 0x9a0   :  { %1485 = vrot.lane.b32.xlu0 %v1421_v0, %s5843_s27  ;;  %1483 = vrot.lane.b32.xlu1 %v1420_v1, %s5843_s27 }
 0x9a1   :  { %1433 = vmatprep.subr.bf16.mxu0 %v1420_v1 }
 0x9a2   :  { %3960 = vmatpush1.bf16.msk.msra.mxu0 %vm4968_vm11, %v3959_v9 }
 0x9a4   :  { %1541 = vrot.lane.b32.xlu0 %v1420_v1, %s5844_s1  ;;  %1481 = vrot.lane.b32.xlu1 %v1419_v11, %s5843_s27 }
 0x9a5   :  { %3961 = vmatmul.mubr.msk.bf16.vlgmr.msra.gmra.mrb[16].mxu0 %vm869_vm4, %v1429_v13 }
 0x9a6   :  { %1526 = vmatprep.mubr.bf16.mxu0 %v4689_v3 }
 0x9a8   :  { %1539 = vrot.lane.b32.xlu0 %v1419_v11, %s5844_s1  ;;  %1543 = vrot.lane.b32.xlu1 %v1421_v0, %s5844_s1  ;;  %v3968_v11 = vld [vmem:[%s5807_s16 + $0x4] sm:$0xf] }
 0x9ac   :  { %1425 = vperm.xlu1 %4488, %v1422_v14  }
 0xa12   :  { %v1486_v15 = vpop.permute.xlu0 %1485  ;;  %v1484_v17 = vpop.permute.xlu1 %1483 }
 0xa13   :  { %v1488_v19 = vsel %vm710_vm12, %v1484_v17, %v1486_v15 }
 0xa14   :  { %1494 = vmatprep.subr.bf16.mxu0 %v1488_v19 }
 0xa16   :  { %v1542_v20 = vpop.permute.xlu0 %1541  ;;  %v1482_v22 = vpop.permute.xlu1 %1481 }
 0xa17   :  { %v1487_v23 = vsel %vm710_vm12, %v1482_v22, %v1484_v17 }
 0xa18   :  { %1495 = vmatpush1.bf16.msra.mxu0 %v1487_v23 }
 0xa1a   :  { %v1540_v25 = vpop.permute.xlu0 %1539  ;;  %v1544_v26 = vpop.permute.xlu1 %1543 }
 0xa1b   :  { %v1545_v28 = vsel %vm777_vm13, %v1540_v25, %v1542_v20  ;;  %3963 = vmatmul.mubr.msk.bf16.vlgmr.msra.gmra.mrb[16].mxu0 %vm869_vm4, %v3962_v24  ;;  %v1546_v30 = vsel %vm777_vm13, %v1542_v20, %v1544_v26  ;;  %v3971_v20 = vld [vmem:[%s5807_s16 + $0x8] sm:$0xf] }
 0xa1c   :  { %1552 = vmatprep.subr.bf16.mxu0 %v1546_v30  ;;  %1584 = vmatprep.mubr.bf16.mxu0 %v4689_v3 }
 0xa1d   :  { %1553 = vmatpush1.bf16.msra.mxu0 %v1545_v28 }
 0xa27   :  { %3965 = vmatmul.mubr.msk.bf16.vlgmr.msra.gmra.mrb[16].mxu0 %vm869_vm4, %v3964_v32 }
 0xa28   :  { %1667 = vmatprep.mubr.bf16.mxu0 %v4689_v3 }
 0xa2b   :  { %v5219_v33 = vpop.permute.xlu1 %1425 }
 0xafa   :  { %v1586_v35 = vpop.f32.mrb[16].mxu0 }
 0xafb   :  { %v5222_v37 = vadd.f32 %v1586_v35, %v5219_v33  ;;  %v1588_v38 = vpop.f32.mrb[17].mxu0 }
 0xafc   :  { %v5225_v39 = vadd.f32 %v1588_v38, %v5219_v33  ;;  %v1590_v40 = vpop.f32.mrb[18].mxu0 }
 0xafd   :  { %v1597_v41 = vmul.f32 0.1, %v5222_v37  ;;  %v1591_v42 = vpop.f32.mrb[19].mxu0  ;;  %vm1595_vm14 = vcmp.gt.f32.partialorder %v5222_v37, 0.0 }
 0xafe   :  { %v1598_v43 = vmul.f32 0.1, %v5225_v39  ;;  %vm1596_vm15 = vcmp.gt.f32.partialorder %v5225_v39, 0.0 }
 0xaff   :  { %v1599_v44 = vsel %vm1595_vm14, %v5222_v37, %v1597_v41 }
 0xb00   :  { %v1600_v45 = vsel %vm1596_vm15, %v5225_v39, %v1598_v43 }
 0xb01   :  { %v4519_v46 = vpack.i.bf16 %v1600_v45, %v1599_v44 }
 0xb03   :  { %4520 = vrot.lane.b32.xlu0 %v4519_v46, %s4690_s7 }
 0xb75   :  { %v4521_v47 = vpop.permute.xlu0 %4520 }
 0xb76   :  { %v4523_v48 = vunpack.i.h.bf16 %v4521_v47  ;;  %v4522_v50 = vunpack.i.l.bf16 %v4521_v47 }
 0xb78   :  { %v1611_v29 = vsel %vm194_vm1, 0.0, %v4522_v50  ;;  %v1607_v34 = vsel %vm194_vm1, %v4522_v50, %v4523_v48  ;;  %v1612_v53 = vsel %vm194_vm1, %v4523_v48, 0.0 }
 0xb79   :  { %v1613_v51 = vpack.c.bf16 %v1611_v29, %v1611_v29  ;;  %v1614_v52 = vpack.c.bf16 %v1607_v34, %v1607_v34  ;;  %v1615_v55 = vpack.c.bf16 %v1612_v53, %v1612_v53  ;;  %v3991_v53 = vld [vmem:[%s5832_s29 + $0x28] sm:$0xff] }
 0xb7b   :  { %1683 = vrot.lane.b32.xlu1 %v1613_v51, %s5843_s27  ;;  %1685 = vrot.lane.b32.xlu0 %v1614_v52, %s5843_s27  ;;  %v1630_v54 = vsel %vm1628_vm5, %v1613_v51, 0 }
 0xb7c   :  { %3966 = vmatprep.subr.msk.bf16.mxu0 %vm1628_vm5, %v1614_v52 }
 0xb7d   :  { %1636 = vmatpush1.bf16.msra.mxu0 %v1630_v54  ;;  %v3992_v54 = vld [vmem:[%s5832_s29 + $0x30] sm:$0xff] }
 0xb7f   :  { %1687 = vrot.lane.b32.xlu1 %v1615_v55, %s5843_s27  ;;  %1745 = vrot.lane.b32.xlu0 %v1613_v51, %s5844_s1  ;;  %v1833_v51 = vld [vmem:[%s5809_s18] sm:$0xf] }
 0xb80   :  { %3967 = vmatmul.mubr.msk.bf16.vlgmr.msra.gmra.mrb[20].mxu0 %vm1624_vm6, %v1623_v57 }
 0xb81   :  { %1732 = vmatprep.mubr.bf16.mxu0 %v4689_v3 }
 0xb83   :  { %1747 = vrot.lane.b32.xlu1 %v1614_v52, %s5844_s1  ;;  %1749 = vrot.lane.b32.xlu0 %v1615_v55, %s5844_s1  ;;  %v3990_v52 = vld [vmem:[%s5832_s29 + $0x20] sm:$0xff]  ;;  %v3993_v55 = vld [vmem:[%s5832_s29 + $0x38] sm:$0xff] }
 0xb84   :  { %v4529_v57 = vpack.i.bf16 %v3991_v53, %v3990_v52 }
 0xb87   :  { %1619 = vperm.xlu1 %4488, %v1616_v58   ;;  %v4534_v58 = vpack.i.bf16 %v3993_v55, %v3992_v54 }
 0xbed   :  { %v1684_v59 = vpop.permute.xlu1 %1683  ;;  %v1686_v62 = vpop.permute.xlu0 %1685 }
 0xbee   :  { %v1689_v0 = vsel %vm710_vm12, %v1684_v59, %v1686_v62 }
 0xbef   :  { %v1695_v10 = vsel %vm1628_vm5, %v1689_v0, 0 }
 0xbf1   :  { %v1688_v1 = vpop.permute.xlu1 %1687  ;;  %v1746_v2 = vpop.permute.xlu0 %1745 }
 0xbf2   :  { %v1690_v9 = vsel %vm710_vm12, %v1686_v62, %v1688_v1 }
 0xbf3   :  { %3969 = vmatprep.subr.msk.bf16.mxu0 %vm1628_vm5, %v1690_v9 }
 0xbf4   :  { %1701 = vmatpush1.bf16.msra.mxu0 %v1695_v10 }
 0xbf5   :  { %v1748_v13 = vpop.permute.xlu1 %1747  ;;  %v1750_v14 = vpop.permute.xlu0 %1749 }
 0xbf6   :  { %v1751_v15 = vsel %vm777_vm13, %v1746_v2, %v1748_v13  ;;  %v1752_v17 = vsel %vm777_vm13, %v1748_v13, %v1750_v14 }
 0xbf7   :  { %v1757_v19 = vsel %vm1628_vm5, %v1751_v15, 0  ;;  %3970 = vmatmul.mubr.msk.bf16.vlgmr.msra.gmra.mrb[20].mxu0 %vm1624_vm6, %v3968_v11  ;;  %3972 = vmatprep.subr.msk.bf16.mxu0 %vm1628_vm5, %v1752_v17  ;;  %v3976_v11 = vld [vmem:[%s5809_s18 + $0x4] sm:$0xf] }
 0xbf8   :  { %1763 = vmatpush1.bf16.msra.mxu0 %v1757_v19  ;;  %1794 = vmatprep.mubr.bf16.mxu0 %v4689_v3 }
 0xc03   :  { %3973 = vmatmul.mubr.msk.bf16.vlgmr.msra.gmra.mrb[20].mxu0 %vm1624_vm6, %v3971_v20 }
 0xc04   :  { %2089 = vmatprep.mubr.bf16.mxu0 %v4689_v3 }
 0xc06   :  { %v5271_v22 = vpop.permute.xlu1 %1619 }
 0xcd6   :  { %v1796_v23 = vpop.f32.mrb[20].mxu0 }
 0xcd7   :  { %v4356_v24 = vadd.f32 %v1796_v23, %v5271_v22  ;;  %v1798_v25 = vpop.f32.mrb[21].mxu0 }
 0xcd8   :  { %v4357_v26 = vadd.f32 %v1798_v25, %v5271_v22  ;;  %v1800_v28 = vpop.f32.mrb[22].mxu0 }
 0xcd9   :  { %vm1805_vm7 = vcmp.gt.f32.partialorder %v4356_v24, 0.0  ;;  %v1807_v30 = vmul.f32 0.1, %v4356_v24  ;;  %v1801_v32 = vpop.f32.mrb[23].mxu0 }
 0xcda   :  { %vm1806_vm10 = vcmp.gt.f32.partialorder %v4357_v26, 0.0  ;;  %v1808_v35 = vmul.f32 0.1, %v4357_v26 }
 0xcdb   :  { %v1809_v38 = vsel %vm1805_vm7, %v4356_v24, %v1807_v30 }
 0xcdc   :  { %v1810_v40 = vsel %vm1806_vm10, %v4357_v26, %v1808_v35 }
 0xcdd   :  { %v4524_v41 = vpack.i.bf16 %v1810_v40, %v1809_v38  ;;  %v3979_v40 = vld [vmem:[%s5809_s18 + $0x8] sm:$0xf] }
 0xcdf   :  { %4525 = vrot.lane.b32.xlu0 %v4524_v41, %s4690_s7 }
 0xd51   :  { %v4526_v42 = vpop.permute.xlu0 %4525 }
 0xd52   :  { %v4528_v43 = vunpack.i.h.bf16 %v4526_v42  ;;  %v4527_v44 = vunpack.i.l.bf16 %v4526_v42 }
 0xd54   :  { %v1821_v45 = vsel %vm194_vm1, 0.0, %v4527_v44  ;;  %v1817_v46 = vsel %vm194_vm1, %v4527_v44, %v4528_v43  ;;  %v1822_v50 = vsel %vm194_vm1, %v4528_v43, 0.0 }
 0xd55   :  { %v1823_v47 = vpack.c.bf16 %v1821_v45, %v1821_v45  ;;  %v1824_v48 = vpack.c.bf16 %v1817_v46, %v1817_v46  ;;  %v1825_v34 = vpack.c.bf16 %v1822_v50, %v1822_v50  ;;  %v4645_v50 = vld [vmem:[%s5835_s26] sm:$0xff]  }
 0xd57   :  { %1891 = vrot.lane.b32.xlu1 %v1823_v47, %s5843_s27  ;;  %1893 = vrot.lane.b32.xlu0 %v1824_v48, %s5843_s27  ;;  %v1838_v29 = vsel %vm1628_vm5, %v1823_v47, 0 }
 0xd58   :  { %3974 = vmatprep.subr.msk.bf16.mxu1 %vm1628_vm5, %v1824_v48 }
 0xd59   :  { %1844 = vmatpush1.bf16.msra.mxu1 %v1838_v29  ;;  %v1826_v29 = vld [vmem:[%s5810_s19] sm:$0xff] }
 0xd5b   :  { %1895 = vrot.lane.b32.xlu1 %v1825_v34, %s5843_s27  ;;  %1953 = vrot.lane.b32.xlu0 %v1823_v47, %s5844_s1 }
 0xd5c   :  { %3975 = vmatmul.mubr.msk.bf16.vlgmr.msra.gmra.mrb[20].mxu1 %vm1624_vm6, %v1833_v51  ;;  %v4647_v51 = vld [vmem:[%s5835_s26 + $0x10] sm:$0xff]  }
 0xd5d   :  { %1940 = vmatprep.mubr.bf16.mxu1 %v4689_v3 }
 0xd5f   :  { %1955 = vrot.lane.b32.xlu1 %v1824_v48, %s5844_s1  ;;  %1957 = vrot.lane.b32.xlu0 %v1825_v34, %s5844_s1  ;;  %v4646_v34 = vld [vmem:[%s5835_s26 + $0x8] sm:$0xff]  }
 0xd63   :  { %4530 = vrot.lane.b32.xlu1 %v4529_v57, %s4690_s7  ;;  %4535 = vrot.lane.b32.xlu0 %v4534_v58, %s4690_s7 }
 0xdc9   :  { %v1892_v59 = vpop.permute.xlu1 %1891  ;;  %v1894_v62 = vpop.permute.xlu0 %1893 }
 0xdca   :  { %v1897_v0 = vsel %vm710_vm12, %v1892_v59, %v1894_v62 }
 0xdcb   :  { %v1903_v10 = vsel %vm1628_vm5, %v1897_v0, 0  ;;  %v4649_v0 = vld [vmem:[%s5835_s26 + $0x20] sm:$0xff]  }
 0xdcd   :  { %v1896_v1 = vpop.permute.xlu1 %1895  ;;  %v1954_v2 = vpop.permute.xlu0 %1953 }
 0xdce   :  { %v1898_v9 = vsel %vm710_vm12, %v1894_v62, %v1896_v1  ;;  %v4648_v62 = vld [vmem:[%s5835_s26 + $0x18] sm:$0xff]   ;;  %v4650_v1 = vld [vmem:[%s5835_s26 + $0x28] sm:$0xff]  }
 0xdcf   :  { %3977 = vmatprep.subr.msk.bf16.mxu1 %vm1628_vm5, %v1898_v9 }
 0xdd0   :  { %1909 = vmatpush1.bf16.msra.mxu1 %v1903_v10 }
 0xdd1   :  { %v1956_v13 = vpop.permute.xlu1 %1955  ;;  %v1958_v14 = vpop.permute.xlu0 %1957 }
 0xdd2   :  { %v1959_v15 = vsel %vm777_vm13, %v1954_v2, %v1956_v13  ;;  %v1960_v17 = vsel %vm777_vm13, %v1956_v13, %v1958_v14 }
 0xdd3   :  { %v1965_v19 = vsel %vm1628_vm5, %v1959_v15, 0  ;;  %3978 = vmatmul.mubr.msk.bf16.vlgmr.msra.gmra.mrb[24].mxu1 %vm1624_vm6, %v3976_v11  ;;  %3980 = vmatprep.subr.msk.bf16.mxu1 %vm1628_vm5, %v1960_v17 }
 0xdd4   :  { %1971 = vmatpush1.bf16.msra.mxu1 %v1965_v19  ;;  %2002 = vmatprep.mubr.bf16.mxu1 %v4689_v3 }
 0xdd5   :  { %v4531_v20 = vpop.permute.xlu1 %4530  ;;  %v4536_v23 = vpop.permute.xlu0 %4535 }
 0xdd6   :  { %v4533_v24 = vunpack.i.h.bf16 %v4531_v20  ;;  %v4532_v25 = vunpack.i.l.bf16 %v4531_v20  ;;  %v4538_v26 = vunpack.i.h.bf16 %v4536_v23  ;;  %v4537_v28 = vunpack.i.l.bf16 %v4536_v23 }
 0xdd8   :  { %v2251_v30 = vsel %vm194_vm1, 0.0, %v4533_v24  ;;  %v2250_v32 = vsel %vm194_vm1, 0.0, %v4532_v25  ;;  %v2253_v35 = vsel %vm194_vm1, 0.0, %v4538_v26  ;;  %v2252_v38 = vsel %vm194_vm1, 0.0, %v4537_v28 }
 0xdd9   :  { %v2255_v41 = vsel %vm199_vm2, %v2251_v30, 0.0  ;;  %v2254_v42 = vsel %vm199_vm2, %v2250_v32, 0.0  ;;  %v3995_v43 = vpack.c.bf16 %v2251_v30, %v2250_v32  ;;  %v2257_v44 = vsel %vm199_vm2, %v2253_v35, 0.0 }
 0xdda   :  { %v2256_v45 = vsel %vm199_vm2, %v2252_v38, 0.0  ;;  %v3998_v46 = vpack.c.bf16 %v2253_v35, %v2252_v38  ;;  %v2258_v47 = vpack.c.bf16 %v2255_v41, %v2254_v42 }
 0xddb   :  { %3981 = vmatmul.mubr.msk.bf16.vlgmr.msra.gmra.mrb[28].mxu1 %vm1624_vm6, %v3979_v40  ;;  %v2259_v48 = vpack.c.bf16 %v2257_v44, %v2256_v45  ;;  %4250 = vmatprep.subr.msk.bf16.mxu1 %vm4855_vm3, %v3995_v43 }
 0xddc   :  { %2315 = vrot.lane.b32.xlu1 %v2258_v47, %s5843_s27  ;;  %4251 = vmatpush3.bf16.msk.msra.mxu1 %vm4855_vm3, %v3995_v43  ;;  %v4695_v43 = vmov 1  }
 0xddd   :  { %2317 = vrot.lane.b32.xlu0 %v2259_v48, %s5843_s27  ;;  %4252 = vmatprep.subr.msk.bf16.mxu1 %vm4855_vm3, %v3998_v46 }
 0xdde   :  { %4254 = vmatprep.mubr.msk.bf16.mxu1 %vm118_vm0, %v4645_v50  ;;  %4545 = vset.pattern.permute.xlu0 %v4695_v43 }
 0xde0   :  { %2374 = vrot.lane.b32.xlu1 %v2258_v47, %s5844_s1  ;;  %4253 = vmatpush3.bf16.msk.msra.mxu1 %vm4855_vm3, %v3998_v46 }
 0xde1   :  { %2376 = vrot.lane.b32.xlu0 %v2259_v48, %s5844_s1 }
 0xde3   :  { %4255 = vmatmul.mubr.msk.bf16.vlgmr.msra.gmra.mrb[32].mxu1 %vm118_vm0, %v4646_v34 }
 0xde4   :  { %1829 = vperm.xlu1 %4488, %v1826_v29   ;;  %4262 = vmatprep.mubr.msk.bf16.mxu1 %vm118_vm0, %v4647_v51  ;;  %v5390_v51 = vld [vmem:[%s5811_s20] sm:$0x1] }
 0xde8   :  { %4544 = vset.pattern.permute.xlu1 %v4695_v43 }
 0xe2f   :  { %v1877_v21 = vpop.f32.mrb[20].mxu1 }
 0xe30   :  { %v1879_v52 = vpop.f32.mrb[21].mxu1 }
 0xe31   :  { %v1881_v53 = vpop.f32.mrb[22].mxu1 }
 0xe32   :  { %v1882_v54 = vpop.f32.mrb[23].mxu1 }
 0xe4e   :  { %v2316_v55 = vpop.permute.xlu1 %2315 }
 0xe4f   :  { %4258 = vmatprep.subr.bf16.mxu1 %v2316_v55  ;;  %v2318_v57 = vpop.permute.xlu0 %2317 }
 0xe50   :  { %4259 = vmatpush3.bf16.msra.mxu1 %v2316_v55 }
 0xe51   :  { %4260 = vmatprep.subr.bf16.mxu1 %v2318_v57 }
 0xe52   :  { %v2375_v58 = vpop.permute.xlu1 %2374 }
 0xe53   :  { %v2377_v59 = vpop.permute.xlu0 %2376 }
 0xe54   :  { %4261 = vmatpush3.bf16.msra.mxu1 %v2318_v57 }
 0xe55   :  { %4266 = vmatprep.subr.bf16.mxu1 %v2375_v58 }
 0xe57   :  { %4263 = vmatmul.mubr.msk.bf16.vlgmr.msra.gmra.mrb[32].mxu1 %vm118_vm0, %v4648_v62 }
 0xe58   :  { %4267 = vmatpush3.bf16.msra.mxu1 %v2375_v58  ;;  %4270 = vmatprep.mubr.msk.bf16.mxu1 %vm118_vm0, %v4649_v0 }
 0xe59   :  { %4268 = vmatprep.subr.bf16.mxu1 %v2377_v59 }
 0xe5c   :  { %4269 = vmatpush3.bf16.msra.mxu1 %v2377_v59 }
 0xe5d   :  { %4286 = vmatprep.subr.bf16.mxu1 %v4693_v36 }
 0xe63   :  { %4271 = vmatmul.mubr.msk.bf16.vlgmr.msra.gmra.mrb[32].mxu1 %vm118_vm0, %v4650_v1  ;;  %v5373_v2 = vpop.permute.xlu1 %1829 }
 0xe64   :  { %4290 = vmatprep.mubr.msk.bf16.mxu1 %vm4694_vm9, %v4693_v36  ;;  %v1884_v9 = vadd.f32 %v1877_v21, %v5373_v2  ;;  %v1885_v10 = vadd.f32 %v1879_v52, %v5373_v2 }
 0xea6   :  { %v1942_v11 = vpop.f32.mrb[24].mxu1 }
 0xea7   :  { %v1949_v13 = vadd.f32 %v1942_v11, %v1884_v9  ;;  %v1944_v14 = vpop.f32.mrb[25].mxu1  ;;  %v4651_v11 = vld [vmem:[%s5840_s24] sm:$0xff]  }
 0xea8   :  { %v1950_v15 = vadd.f32 %v1944_v14, %v1885_v10  ;;  %v1946_v17 = vpop.f32.mrb[26].mxu1 }
 0xea9   :  { %v1947_v19 = vpop.f32.mrb[27].mxu1  ;;  %v4652_v17 = vld [vmem:[%s5840_s24 + $0x8] sm:$0xff]  }
 0xeae   :  { %v2004_v20 = vpop.f32.mrb[28].mxu1 }
 0xeaf   :  { %v2011_v23 = vadd.f32 %v2004_v20, %v1949_v13  ;;  %v2006_v24 = vpop.f32.mrb[29].mxu1  ;;  %v5426_v13 = vld [vmem:[%s5811_s20 + $0x2] sm:$0x1] }
 0xeb0   :  { %v2012_v25 = vadd.f32 %v2006_v24, %v1950_v15  ;;  %v2008_v26 = vpop.f32.mrb[30].mxu1 }
 0xeb1   :  { %v2013_v28 = vadd.f32 %v5222_v37, %v2011_v23  ;;  %v2009_v30 = vpop.f32.mrb[31].mxu1 }
 0xeb2   :  { %v2014_v32 = vadd.f32 %v5225_v39, %v2012_v25 }
 0xeb3   :  { %vm2015_vm2 = vcmp.gt.f32.partialorder %v2013_v28, 0.0  ;;  %v2017_v35 = vmul.f32 0.1, %v2013_v28 }
 0xeb4   :  { %vm2016_vm3 = vcmp.gt.f32.partialorder %v2014_v32, 0.0  ;;  %v2018_v38 = vmul.f32 0.1, %v2014_v32 }
 0xeb5   :  { %v2019_v40 = vsel %vm2015_vm2, %v2013_v28, %v2017_v35 }
 0xeb6   :  { %v2020_v41 = vsel %vm2016_vm3, %v2014_v32, %v2018_v38 }
 0xeb7   :  { %v4539_v42 = vpack.i.bf16 %v2020_v41, %v2019_v40 }
 0xeb9   :  { %4540 = vrot.lane.b32.xlu0 %v4539_v42, %s4690_s7 }
 0xf2b   :  { %v4541_v44 = vpop.permute.xlu0 %4540 }
 0xf2c   :  { %v4543_v45 = vunpack.i.h.bf16 %v4541_v44  ;;  %v4542_v46 = vunpack.i.l.bf16 %v4541_v44 }
 0xf2e   :  { %v2031_v37 = vsel %vm194_vm1, 0.0, %v4542_v46  ;;  %v2027_v47 = vsel %vm194_vm1, %v4542_v46, %v4543_v45  ;;  %v2032_v50 = vsel %vm194_vm1, %v4543_v45, 0.0 }
 0xf2f   :  { %v2033_v39 = vpack.c.bf16 %v2031_v37, %v2031_v37  ;;  %v2034_v48 = vpack.c.bf16 %v2027_v47, %v2027_v47  ;;  %v2035_v34 = vpack.c.bf16 %v2032_v50, %v2032_v50 }
 0xf31   :  { %2105 = vrot.lane.b32.xlu1 %v2033_v39, %s5843_s27  ;;  %2107 = vrot.lane.b32.xlu0 %v2034_v48, %s5843_s27  ;;  %v2052_v29 = vsel %vm1628_vm5, %v2033_v39, 0 }
 0xf32   :  { %3982 = vmatprep.subr.msk.bf16.mxu0 %vm1628_vm5, %v2034_v48 }
 0xf33   :  { %2058 = vmatpush1.bf16.msra.mxu0 %v2052_v29 }
 0xf35   :  { %2109 = vrot.lane.b32.xlu1 %v2035_v34, %s5843_s27  ;;  %2167 = vrot.lane.b32.xlu0 %v2033_v39, %s5844_s1 }
 0xf36   :  { %v4272_v21 = vpop.f32.mrb[32].mxu1  ;;  %3983 = vmatmul.mubr.msk.bf16.vlgmr.msra.gmra.mrb[24].mxu0 %vm1624_vm6, %v5390_v51 }
 0xf37   :  { %v2414_v52 = vpop.f32.mrb[33].mxu1  ;;  %2154 = vmatprep.mubr.bf16.mxu0 %v4689_v3  ;;  %v4360_v25 = vadd.f32 %v4272_v21, %v4951_v8  ;;  %v4654_v8 = vld [vmem:[%s5840_s24 + $0x18] sm:$0xff]  }
 0xf38   :  { %v4273_v53 = vpop.f32.mrb[34].mxu1  ;;  %v4361_v14 = vadd.f32 %v2414_v52, %v4947_v6 }
 0xf39   :  { %2169 = vrot.lane.b32.xlu1 %v2034_v48, %s5844_s1  ;;  %2171 = vrot.lane.b32.xlu0 %v2035_v34, %s5844_s1  ;;  %v2417_v54 = vpop.f32.mrb[35].mxu1  ;;  %v4362_v40 = vadd.f32 %v4273_v53, %v4949_v7 }
 0xf3a   :  { %v4363_v15 = vadd.f32 %v2417_v54, %v4945_v5  ;;  %v4653_v5 = vld [vmem:[%s5840_s24 + $0x10] sm:$0xff]  }
 0xf3d   :  { %2434 = vperm.xlu1 %4544, %v4917_v56   ;;  %2438 = vperm.xlu0 %4545, %v4924_v60   ;;  %v5411_v56 = vld [vmem:[%s5811_s20 + $0x1] sm:$0x1] }
 0xf41   :  { %2442 = vperm.xlu1 %4544, %v4929_v63  }
 0xf45   :  { %2446 = vperm.xlu1 %4544, %v4927_v61  }
 0xf49   :  { %4591 = vset.pattern.permute.xlu1 %v4689_v3 }
 0xfa3   :  { %v2106_v55 = vpop.permute.xlu1 %2105  ;;  %v2108_v57 = vpop.permute.xlu0 %2107 }
 0xfa4   :  { %v2111_v58 = vsel %vm710_vm12, %v2106_v55, %v2108_v57 }
 0xfa5   :  { %v2117_v1 = vsel %vm1628_vm5, %v2111_v58, 0 }
 0xfa7   :  { %v2110_v59 = vpop.permute.xlu1 %2109  ;;  %v2168_v62 = vpop.permute.xlu0 %2167 }
 0xfa8   :  { %v2112_v0 = vsel %vm710_vm12, %v2108_v57, %v2110_v59 }
 0xfa9   :  { %3985 = vmatprep.subr.msk.bf16.mxu0 %vm1628_vm5, %v2112_v0 }
 0xfaa   :  { %2123 = vmatpush1.bf16.msra.mxu0 %v2117_v1 }
 0xfab   :  { %v2170_v60 = vpop.permute.xlu1 %2169  ;;  %v2172_v61 = vpop.permute.xlu0 %2171 }
 0xfac   :  { %v2173_v63 = vsel %vm777_vm13, %v2168_v62, %v2170_v60  ;;  %v2174_v9 = vsel %vm777_vm13, %v2170_v60, %v2172_v61 }
 0xfad   :  { %v2179_v10 = vsel %vm1628_vm5, %v2173_v63, 0  ;;  %3986 = vmatmul.mubr.msk.bf16.vlgmr.msra.gmra.mrb[24].mxu0 %vm1624_vm6, %v5411_v56  ;;  %3988 = vmatprep.subr.msk.bf16.mxu0 %vm1628_vm5, %v2174_v9 }
 0xfae   :  { %2185 = vmatpush1.bf16.msra.mxu0 %v2179_v10  ;;  %2216 = vmatprep.mubr.bf16.mxu0 %v4689_v3 }
 0xfaf   :  { %4274 = vmatprep.subr.bf16.mxu0 %v4651_v11 }
 0xfb9   :  { %3989 = vmatmul.mubr.msk.bf16.vlgmr.msra.gmra.mrb[24].mxu0 %vm1624_vm6, %v5426_v13 }
 0xfba   :  { %4275 = vmatpush3.bf16.msra.mxu0 %v4651_v11 }
 0xfbb   :  { %4276 = vmatprep.subr.bf16.mxu0 %v4652_v17 }
 0xfbc   :  { %v2435_v19 = vpop.permute.xlu1 %2434  ;;  %v2439_v20 = vpop.permute.xlu0 %2438 }
 0xfbd   :  { %v2449_v23 = vadd.f32 %v4361_v14, %v2435_v19  ;;  %v2450_v24 = vadd.f32 %v4363_v15, %v2439_v20 }
 0xfbe   :  { %4277 = vmatpush3.bf16.msra.mxu0 %v4652_v17 }
 0xfbf   :  { %vm2453_vm14 = vcmp.gt.f32.partialorder %v2449_v23, 0.0  ;;  %v2457_v26 = vmul.f32 0.1, %v2449_v23  ;;  %vm2454_vm15 = vcmp.gt.f32.partialorder %v2450_v24, 0.0  ;;  %v2458_v28 = vmul.f32 0.1, %v2450_v24  ;;  %4278 = vmatprep.subr.bf16.mxu0 %v4653_v5 }
 0xfc0   :  { %v2443_v6 = vpop.permute.xlu1 %2442 }
 0xfc1   :  { %v2461_v30 = vsel %vm2453_vm14, %v2449_v23, %v2457_v26  ;;  %v2462_v32 = vsel %vm2454_vm15, %v2450_v24, %v2458_v28  ;;  %v2451_v35 = vadd.f32 %v4360_v25, %v2443_v6  ;;  %v4655_v24 = vld [vmem:[%s5798_s8] sm:$0xff]  }
 0xfc2   :  { %v2465_v38 = vpack.c.bf16 %v2462_v32, %v2461_v30  ;;  %4279 = vmatpush3.bf16.msra.mxu0 %v4653_v5 }
 0xfc3   :  { %4280 = vmatprep.subr.bf16.mxu0 %v4654_v8  ;;  %v2459_v42 = vmul.f32 0.1, %v2451_v35  ;;  %vm2455_vm7 = vcmp.gt.f32.partialorder %v2451_v35, 0.0 }
 0xfc4   :  { %v2447_v41 = vpop.permute.xlu1 %2446  ;;  %4282 = vmatprep.mubr.msk.bf16.mxu0 %vm539_vm8, %v2465_v38 }
 0xfc5   :  { %v2452_v43 = vadd.f32 %v4362_v40, %v2447_v41  ;;  %v2463_v45 = vsel %vm2455_vm7, %v2451_v35, %v2459_v42  ;;  %v4656_v40 = vld [vmem:[%s5798_s8 + $0x8] sm:$0xff]  }
 0xfc6   :  { %4281 = vmatpush3.bf16.msra.mxu0 %v4654_v8 }
 0xfc7   :  { %vm2456_vm10 = vcmp.gt.f32.partialorder %v2452_v43, 0.0  ;;  %v2460_v44 = vmul.f32 0.1, %v2452_v43  ;;  %4310 = vmatprep.subr.bf16.mxu0 %v4693_v36 }
 0xfc9   :  { %v2464_v46 = vsel %vm2456_vm10, %v2452_v43, %v2460_v44  ;;  %v4657_v43 = vld [vmem:[%s5798_s8 + $0x10] sm:$0xff]  }
 0xfca   :  { %v2466_v37 = vpack.c.bf16 %v2464_v46, %v2463_v45 }
 0xfcc   :  { %4283 = vmatmul.mubr.msk.bf16.vlgmr.msra.gmra.mrb[28].mxu0 %vm539_vm8, %v2466_v37 }
 0xfcd   :  { %4312 = vmatprep.mubr.msk.bf16.mxu0 %vm4694_vm9, %v4693_v36 }
0x108c   :  { %v5448_v7 = vpop.f32.mrb[24].mxu0 }
0x108d   :  { %v5450_v47 = vpop.f32.mrb[25].mxu0 }
0x108e   :  { %v2222_v39 = vpop.f32.mrb[26].mxu0 }
0x108f   :  { %v2223_v48 = vpop.f32.mrb[27].mxu0 }
0x109f   :  { %v4284_v50 = vpop.f32.mrb[28].mxu0 }
0x10a0   :  { %v2507_v29 = vpop.f32.mrb[29].mxu0 }
0x10a1   :  { %v4285_v34 = vpop.f32.mrb[30].mxu0 }
0x10a2   :  { %v4551_v21 = vpack.i.bf16 %v4285_v34, %v4284_v50  ;;  %v2510_v52 = vpop.f32.mrb[31].mxu0 }
0x10a3   :  { %v4546_v53 = vpack.i.bf16 %v2510_v52, %v2507_v29 }
0x10a4   :  { %4552 = vrot.lane.b32.xlu1 %v4551_v21, %s4690_s7 }
0x10a5   :  { %4547 = vrot.lane.b32.xlu0 %v4546_v53, %s4690_s7 }
0x1116   :  { %v4553_v54 = vpop.permute.xlu1 %4552 }
0x1117   :  { %v4548_v55 = vpop.permute.xlu0 %4547  ;;  %v4555_v57 = vunpack.i.h.bf16 %v4553_v54  ;;  %v4554_v58 = vunpack.i.l.bf16 %v4553_v54 }
0x1118   :  { %v4550_v59 = vunpack.i.h.bf16 %v4548_v55  ;;  %v4549_v62 = vunpack.i.l.bf16 %v4548_v55 }
0x1119   :  { %v2544_v11 = vsel %vm194_vm1, %v4554_v58, 0.0  ;;  %v2545_v14 = vsel %vm194_vm1, %v4555_v57, 0.0  ;;  %v2540_v15 = vsel %vm194_vm1, 0.0, %v4554_v58  ;;  %v2541_v17 = vsel %vm194_vm1, 0.0, %v4555_v57 }
0x111a   :  { %v4011_v0 = vpack.c.bf16 %v4550_v59, %v4549_v62  ;;  %v2542_v1 = vsel %vm194_vm1, %v4549_v62, 0.0  ;;  %v2543_v60 = vsel %vm194_vm1, %v4550_v59, 0.0  ;;  %v2538_v61 = vsel %vm194_vm1, 0.0, %v4549_v62 }
0x111b   :  { %v2547_v63 = vpack.c.bf16 %v2543_v60, %v2542_v1  ;;  %v2539_v9 = vsel %vm194_vm1, 0.0, %v4550_v59  ;;  %v4016_v19 = vpack.c.bf16 %v4555_v57, %v4554_v58  ;;  %v2549_v20 = vpack.c.bf16 %v2545_v14, %v2544_v11  ;;  %v4658_v1 = vld [vmem:[%s5800_s10] sm:$0xff]   ;;  %v4659_v14 = vld [vmem:[%s5800_s10 + $0x8] sm:$0xff]  }
0x111c   :  { %4287 = vmatpush3.bf16.msk.msra.mxu1 %vm4968_vm11, %v4011_v0  ;;  %v2546_v10 = vpack.c.bf16 %v2539_v9, %v2538_v61  ;;  %v2548_v23 = vpack.c.bf16 %v2541_v17, %v2540_v15  ;;  %v4660_v15 = vld [vmem:[%s5800_s10 + $0x10] sm:$0xff]  }
0x111d   :  { %2599 = vrot.lane.b32.xlu1 %v2547_v63, %s5843_s27  ;;  %4288 = vmatprep.subr.bf16.mxu1 %v4693_v36 }
0x111e   :  { %2597 = vrot.lane.b32.xlu0 %v2546_v10, %s5843_s27 }
0x1120   :  { %4289 = vmatpush3.bf16.msk.msra.mxu1 %vm4968_vm11, %v4016_v19 }
0x1121   :  { %2603 = vrot.lane.b32.xlu1 %v2549_v20, %s5843_s27  ;;  %4294 = vmatprep.subr.bf16.mxu1 %v4693_v36 }
0x1122   :  { %2601 = vrot.lane.b32.xlu0 %v2548_v23, %s5843_s27 }
0x1123   :  { %4291 = vmatmul.mubr.msk.bf16.vlgmr.msra.gmra.mrb[36].mxu1 %vm118_vm0, %v4655_v24 }
0x1124   :  { %4298 = vmatprep.mubr.msk.bf16.mxu1 %vm4694_vm9, %v4693_v36 }
0x1125   :  { %2654 = vrot.lane.b32.xlu1 %v2547_v63, %s5844_s1 }
0x1126   :  { %2652 = vrot.lane.b32.xlu0 %v2546_v10, %s5844_s1 }
0x1129   :  { %2658 = vrot.lane.b32.xlu1 %v2549_v20, %s5844_s1 }
0x112a   :  { %2656 = vrot.lane.b32.xlu0 %v2548_v23, %s5844_s1 }
0x118f   :  { %v2600_v25 = vpop.permute.xlu1 %2599 }
0x1190   :  { %v2598_v26 = vpop.permute.xlu0 %2597 }
0x1191   :  { %v2605_v28 = vsel %vm710_vm12, %v2598_v26, %v2600_v25 }
0x1192   :  { %4295 = vmatpush3.bf16.msra.mxu1 %v2605_v28 }
0x1193   :  { %v2604_v5 = vpop.permute.xlu1 %2603  ;;  %4296 = vmatprep.subr.bf16.mxu1 %v4693_v36 }
0x1194   :  { %v2602_v6 = vpop.permute.xlu0 %2601 }
0x1195   :  { %v2606_v30 = vsel %vm710_vm12, %v2602_v6, %v2604_v5 }
0x1196   :  { %4297 = vmatpush3.bf16.msra.mxu1 %v2606_v30 }
0x1197   :  { %v2655_v32 = vpop.permute.xlu1 %2654  ;;  %4302 = vmatprep.subr.bf16.mxu1 %v4693_v36 }
0x1198   :  { %v2653_v35 = vpop.permute.xlu0 %2652 }
0x1199   :  { %v2660_v38 = vsel %vm777_vm13, %v2653_v35, %v2655_v32  ;;  %4299 = vmatmul.mubr.msk.bf16.vlgmr.msra.gmra.mrb[36].mxu1 %vm118_vm0, %v4656_v40 }
0x119a   :  { %4303 = vmatpush3.bf16.msra.mxu1 %v2660_v38  ;;  %4306 = vmatprep.mubr.msk.bf16.mxu1 %vm4694_vm9, %v4693_v36 }
0x119b   :  { %v2659_v8 = vpop.permute.xlu1 %2658  ;;  %4304 = vmatprep.subr.bf16.mxu1 %v4693_v36 }
0x119c   :  { %v2657_v41 = vpop.permute.xlu0 %2656 }
0x119d   :  { %v2661_v42 = vsel %vm777_vm13, %v2657_v41, %v2659_v8 }
0x119e   :  { %4305 = vmatpush3.bf16.msra.mxu1 %v2661_v42 }
0x119f   :  { %4328 = vmatprep.subr.bf16.mxu1 %v4693_v36 }
0x11a5   :  { %4307 = vmatmul.mubr.msk.bf16.vlgmr.msra.gmra.mrb[36].mxu1 %vm118_vm0, %v4657_v43 }
0x11a6   :  { %4330 = vmatprep.mubr.msk.bf16.mxu1 %vm4694_vm9, %v4693_v36 }
0x1278   :  { %v2698_v44 = vpop.f32.mrb[36].mxu1 }
0x1279   :  { %v5503_v45 = vadd.f32 %v2698_v44, %v5026_v27  ;;  %v4308_v46 = vpop.f32.mrb[37].mxu1  ;;  %v4661_v44 = vld [vmem:[%s5802_s12] sm:$0xff]  }
0x127a   :  { %v2701_v37 = vpop.f32.mrb[38].mxu1 }
0x127b   :  { %v2709_v39 = vmul.f32 0.1, %v5503_v45  ;;  %v5507_v48 = vadd.f32 %v2701_v37, %v5031_v31  ;;  %v4309_v50 = vpop.f32.mrb[39].mxu1  ;;  %vm2707_vm8 = vcmp.gt.f32.partialorder %v5503_v45, 0.0 }
0x127d   :  { %v2710_v29 = vmul.f32 0.1, %v5507_v48  ;;  %vm2708_vm0 = vcmp.gt.f32.partialorder %v5507_v48, 0.0  ;;  %v2711_v34 = vsel %vm2707_vm8, %v5503_v45, %v2709_v39 }
0x127f   :  { %v2712_v21 = vsel %vm2708_vm0, %v5507_v48, %v2710_v29  ;;  %v4662_v29 = vld [vmem:[%s5804_s3 + $0x4] ss:$8 sps:$4 sm:$0xff]  }
0x1280   :  { %v4556_v27 = vpack.i.bf16 %v2712_v21, %v2711_v34 }
0x1282   :  { %4557 = vrot.lane.b32.xlu0 %v4556_v27, %s4690_s7  ;;  %v4664_v27 = vld [vmem:[%s5804_s3] ss:$8 sps:$4 sm:$0xff]  }
0x12f4   :  { %v4558_v52 = vpop.permute.xlu0 %4557 }
0x12f5   :  { %v4560_v53 = vunpack.i.h.bf16 %v4558_v52  ;;  %v4559_v54 = vunpack.i.l.bf16 %v4558_v52  ;;  %v4665_v52 = vld [vmem:[%s5804_s3 + $0x14] ss:$8 sps:$4 sm:$0xff]  }
0x12f7   :  { %v2722_v31 = vsel %vm194_vm1, 0.0, %v4560_v53  ;;  %v2721_v55 = vsel %vm194_vm1, 0.0, %v4559_v54  ;;  %v4024_v57 = vpack.c.bf16 %v4560_v53, %v4559_v54  ;;  %v2723_v58 = vsel %vm194_vm1, %v4559_v54, 0.0  ;;  %v4667_v54 = vld [vmem:[%s5804_s3 + $0x10] ss:$8 sps:$4 sm:$0xff]  }
0x12f8   :  { %v2725_v59 = vpack.c.bf16 %v2722_v31, %v2721_v55  ;;  %v2724_v62 = vsel %vm194_vm1, %v4560_v53, 0.0  ;;  %v4666_v53 = vld [vmem:[%s5802_s12 + $0x10] sm:$0xff]   ;;  %v4668_v31 = vld [vmem:[%s5804_s3 + $0x24] ss:$8 sps:$4 sm:$0xff]   ;;  %v4669_v55 = vld [vmem:[%s5804_s3 + $0x20] ss:$8 sps:$4 sm:$0xff]  }
0x12f9   :  { %4311 = vmatpush3.bf16.msk.msra.mxu0 %vm4968_vm11, %v4024_v57  ;;  %v2726_v0 = vpack.c.bf16 %v2724_v62, %v2723_v58  ;;  %v4670_v57 = vld [vmem:[%s5804_s3 + $0x34] ss:$8 sps:$4 sm:$0xff]   ;;  %v4671_v58 = vld [vmem:[%s5804_s3 + $0x30] ss:$8 sps:$4 sm:$0xff]   ;;  %v4673_v62 = vld [vmem:[%s5804_s3 + $0x40] ss:$8 sps:$4 sm:$0xff]  }
0x12fa   :  { %2772 = vrot.lane.b32.xlu1 %v2725_v59, %s5843_s27  ;;  %4316 = vmatprep.subr.bf16.mxu0 %v4693_v36 }
0x12fb   :  { %2774 = vrot.lane.b32.xlu0 %v2726_v0, %s5843_s27 }
0x12fc   :  { %4313 = vmatmul.mubr.msk.bf16.vlgmr.msra.gmra.mrb[32].mxu0 %vm869_vm4, %v4658_v1  ;;  %v4675_v1 = vld [vmem:[%s5804_s3 + $0x50] ss:$8 sps:$4 sm:$0xff]  }
0x12fd   :  { %4318 = vmatprep.mubr.msk.bf16.mxu0 %vm4694_vm9, %v4693_v36 }
0x12fe   :  { %2821 = vrot.lane.b32.xlu1 %v2725_v59, %s5844_s1  ;;  %v4672_v59 = vld [vmem:[%s5804_s3 + $0x44] ss:$8 sps:$4 sm:$0xff]  }
0x12ff   :  { %2823 = vrot.lane.b32.xlu0 %v2726_v0, %s5844_s1  ;;  %v4674_v0 = vld [vmem:[%s5804_s3 + $0x54] ss:$8 sps:$4 sm:$0xff]  }
0x136c   :  { %v2773_v60 = vpop.permute.xlu1 %2772 }
0x136d   :  { %v2775_v61 = vpop.permute.xlu0 %2774 }
0x136e   :  { %v2776_v63 = vsel %vm710_vm12, %v2773_v60, %v2775_v61  ;;  %v4676_v60 = vld [vmem:[%s5804_s3 + $0x64] ss:$8 sps:$4 sm:$0xff]   ;;  %v4677_v61 = vld [vmem:[%s5804_s3 + $0x60] ss:$8 sps:$4 sm:$0xff]  }
0x136f   :  { %4317 = vmatpush3.bf16.msra.mxu0 %v2776_v63  ;;  %v4678_v63 = vld [vmem:[%s5804_s3 + $0x74] ss:$8 sps:$4 sm:$0xff]  }
0x1370   :  { %v2822_v9 = vpop.permute.xlu1 %2821  ;;  %4322 = vmatprep.subr.bf16.mxu0 %v4693_v36 }
0x1371   :  { %v2824_v10 = vpop.permute.xlu0 %2823 }
0x1372   :  { %v2825_v11 = vsel %vm777_vm13, %v2822_v9, %v2824_v10  ;;  %4319 = vmatmul.mubr.msk.bf16.vlgmr.msra.gmra.mrb[32].mxu0 %vm869_vm4, %v4659_v14  ;;  %v4679_v9 = vld [vmem:[%s5804_s3 + $0x70] ss:$8 sps:$4 sm:$0xff]  }
0x1373   :  { %4323 = vmatpush3.bf16.msra.mxu0 %v2825_v11  ;;  %4324 = vmatprep.mubr.msk.bf16.mxu0 %vm4694_vm9, %v4693_v36 }
0x1374   :  { %4340 = vmatprep.subr.bf16.mxu0 %v4693_v36 }
0x137e   :  { %4325 = vmatmul.mubr.msk.bf16.vlgmr.msra.gmra.mrb[32].mxu0 %vm869_vm4, %v4660_v15 }
0x137f   :  { %4342 = vmatprep.mubr.msk.bf16.mxu0 %vm4694_vm9, %v4693_v36 }
0x1451   :  { %v2861_v17 = vpop.f32.mrb[32].mxu0 }
0x1452   :  { %v4366_v19 = vadd.f32 %v2861_v17, %v5082_v4  ;;  %v4326_v20 = vpop.f32.mrb[33].mxu0 }
0x1453   :  { %v2864_v23 = vpop.f32.mrb[34].mxu0 }
0x1454   :  { %v2872_v24 = vmul.f32 0.1, %v4366_v19  ;;  %v4367_v25 = vadd.f32 %v2864_v23, %v5085_v12  ;;  %v4327_v26 = vpop.f32.mrb[35].mxu0  ;;  %vm2870_vm2 = vcmp.gt.f32.partialorder %v4366_v19, 0.0 }
0x1456   :  { %vm2871_vm3 = vcmp.gt.f32.partialorder %v4367_v25, 0.0  ;;  %v2873_v28 = vmul.f32 0.1, %v4367_v25  ;;  %v2874_v5 = vsel %vm2870_vm2, %v4366_v19, %v2872_v24 }
0x1458   :  { %v2875_v6 = vsel %vm2871_vm3, %v4367_v25, %v2873_v28 }
0x1459   :  { %v4561_v30 = vpack.i.bf16 %v2875_v6, %v2874_v5 }
0x145b   :  { %4562 = vrot.lane.b32.xlu1 %v4561_v30, %s4690_s7 }
0x14cd   :  { %v4563_v32 = vpop.permute.xlu1 %4562 }
0x14ce   :  { %v4565_v35 = vunpack.i.h.bf16 %v4563_v32  ;;  %v4564_v38 = vunpack.i.l.bf16 %v4563_v32 }
0x14d0   :  { %v2885_v40 = vsel %vm194_vm1, 0.0, %v4565_v35  ;;  %v2887_v4 = vsel %vm194_vm1, %v4565_v35, 0.0  ;;  %v2884_v8 = vsel %vm194_vm1, 0.0, %v4564_v38  ;;  %v2886_v12 = vsel %vm194_vm1, %v4564_v38, 0.0 }
0x14d1   :  { %v2888_v41 = vpack.c.bf16 %v2885_v40, %v2884_v8  ;;  %v2889_v42 = vpack.c.bf16 %v2887_v4, %v2886_v12  ;;  %v4032_v43 = vpack.c.bf16 %v4565_v35, %v4564_v38 }
0x14d3   :  { %4329 = vmatpush3.bf16.msk.msra.mxu1 %vm4968_vm11, %v4032_v43  ;;  %2937 = vrot.lane.b32.xlu1 %v2889_v42, %s5843_s27 }
0x14d4   :  { %2935 = vrot.lane.b32.xlu0 %v2888_v41, %s5843_s27  ;;  %4334 = vmatprep.subr.bf16.mxu1 %v4693_v36 }
0x14d6   :  { %4331 = vmatmul.mubr.msk.bf16.vlgmr.msra.gmra.mrb[40].mxu1 %vm869_vm4, %v4661_v44 }
0x14d7   :  { %2986 = vrot.lane.b32.xlu1 %v2889_v42, %s5844_s1  ;;  %4336 = vmatprep.mubr.msk.bf16.mxu1 %vm4694_vm9, %v4693_v36  ;;  %v4663_v36 = vld [vmem:[%s5802_s12 + $0x8] sm:$0xff]  }
0x14d8   :  { %2984 = vrot.lane.b32.xlu0 %v2888_v41, %s5844_s1 }
0x1545   :  { %v2938_v46 = vpop.permute.xlu1 %2937 }
0x1546   :  { %v2936_v37 = vpop.permute.xlu0 %2935 }
0x1547   :  { %v2939_v39 = vsel %vm710_vm12, %v2936_v37, %v2938_v46 }
0x1548   :  { %4335 = vmatpush3.bf16.msra.mxu1 %v2939_v39 }
0x1549   :  { %v2987_v50 = vpop.permute.xlu1 %2986  ;;  %3042 = vmatprep.subr.bf16.mxu1 %v4662_v29 }
0x154a   :  { %v2985_v34 = vpop.permute.xlu0 %2984 }
0x154b   :  { %v2988_v21 = vsel %vm777_vm13, %v2985_v34, %v2987_v50  ;;  %4337 = vmatmul.mubr.msk.bf16.vlgmr.msra.gmra.mrb[44].mxu1 %vm869_vm4, %v4663_v36 }
0x154c   :  { %4341 = vmatpush3.bf16.msra.mxu0 %v2988_v21  ;;  %3043 = vmatpush1.bf16.msra.mxu1 %v4664_v27 }
0x154d   :  { %3044 = vmatprep.subr.bf16.mxu1 %v4665_v52  ;;  %3074 = vmatprep.mubr.bf16.mxu1 %v4689_v3 }
0x154f   :  { %4343 = vmatmul.mubr.msk.bf16.vlgmr.msra.gmra.mrb[36].mxu0 %vm869_vm4, %v4666_v53 }
0x1550   :  { %3045 = vmatpush1.bf16.msra.mxu1 %v4667_v54  ;;  %3144 = vmatprep.mubr.bf16.mxu0 %v4689_v3 }
0x1551   :  { %3046 = vmatprep.subr.bf16.mxu1 %v4668_v31 }
0x1554   :  { %3047 = vmatpush1.bf16.msra.mxu1 %v4669_v55 }
0x1555   :  { %3048 = vmatprep.subr.bf16.mxu1 %v4670_v57 }
0x1558   :  { %3049 = vmatpush1.bf16.msra.mxu1 %v4671_v58 }
0x1559   :  { %3050 = vmatprep.subr.bf16.mxu1 %v4672_v59 }
0x155c   :  { %3051 = vmatpush1.bf16.msra.mxu1 %v4673_v62  ;;  %v4680_v62 = vld [vmem:[%s5805_s14] sm:$0xf] }
0x155d   :  { %3052 = vmatprep.subr.bf16.mxu1 %v4674_v0 }
0x1560   :  { %3053 = vmatpush1.bf16.msra.mxu1 %v4675_v1 }
0x1561   :  { %3054 = vmatprep.subr.bf16.mxu1 %v4676_v60 }
0x1564   :  { %3055 = vmatpush1.bf16.msra.mxu1 %v4677_v61 }
0x1565   :  { %3056 = vmatprep.subr.bf16.mxu1 %v4678_v63 }
0x1568   :  { %3057 = vmatpush1.bf16.msra.mxu1 %v4679_v9 }
0x15a9   :  { %v2924_v10 = vpop.f32.mrb[40].mxu1 }
0x15aa   :  { %v4332_v11 = vpop.f32.mrb[41].mxu1  ;;  %v2931_v17 = vadd.f32 %v2924_v10, %v5172_v16 }
0x15ab   :  { %v2927_v14 = vpop.f32.mrb[42].mxu1 }
0x15ac   :  { %v4333_v15 = vpop.f32.mrb[43].mxu1  ;;  %v2932_v20 = vadd.f32 %v2927_v14, %v5175_v18  ;;  %v4681_v14 = vld [vmem:[%s5805_s14 + $0x4] sm:$0xf] }
0x161e   :  { %v2975_v19 = vpop.f32.mrb[44].mxu1 }
0x161f   :  { %v2982_v23 = vadd.f32 %v2975_v19, %v2931_v17  ;;  %v4338_v24 = vpop.f32.mrb[45].mxu1  ;;  %v4682_v17 = vld [vmem:[%s5805_s14 + $0x8] sm:$0xf] }
0x1620   :  { %v2978_v25 = vpop.f32.mrb[46].mxu1 }
0x1621   :  { %v2983_v26 = vadd.f32 %v2978_v25, %v2932_v20  ;;  %v4339_v28 = vpop.f32.mrb[47].mxu1 }
0x1622   :  { %v3024_v5 = vpop.f32.mrb[36].mxu0 }
0x1623   :  { %v3031_v6 = vadd.f32 %v3024_v5, %v2982_v23  ;;  %v4344_v30 = vpop.f32.mrb[37].mxu0 }
0x1624   :  { %v3027_v32 = vpop.f32.mrb[38].mxu0 }
0x1625   :  { %v3033_v35 = vadd.f32 %v5503_v45, %v3031_v6  ;;  %v3032_v38 = vadd.f32 %v3027_v32, %v2983_v26  ;;  %v4345_v40 = vpop.f32.mrb[39].mxu0 }
0x1627   :  { %v3037_v4 = vmul.f32 0.1, %v3033_v35  ;;  %v3034_v8 = vadd.f32 %v5507_v48, %v3032_v38  ;;  %vm3035_vm9 = vcmp.gt.f32.partialorder %v3033_v35, 0.0 }
0x1629   :  { %vm3036_vm14 = vcmp.gt.f32.partialorder %v3034_v8, 0.0  ;;  %v3038_v16 = vmul.f32 0.1, %v3034_v8  ;;  %v3039_v18 = vsel %vm3035_vm9, %v3033_v35, %v3037_v4 }
0x162b   :  { %v3040_v12 = vsel %vm3036_vm14, %v3034_v8, %v3038_v16 }
0x162c   :  { %v3041_v41 = vpack.c.bf16 %v3040_v12, %v3039_v18 }
0x162e   :  { %3075 = vmatmul.mubr.bf16.vlgmr.msra.gmra.mrb[48].mxu1 %v3041_v41 }
0x162f   :  { %3510 = vmatprep.mubr.bf16.mxu1 %v4689_v3 }
0x1701   :  { %v3076_v42 = vpop.f32.mrb[48].mxu1 }
0x1702   :  { %v3078_v43 = vpop.f32.mrb[49].mxu1 }
0x1703   :  { %v4566_v44 = vpack.i.bf16 %v3078_v43, %v3076_v42  ;;  %v3080_v46 = vpop.f32.mrb[50].mxu1  ;;  %v4683_v42 = vld [vmem:[%s5807_s16] sm:$0xf] }
0x1704   :  { %v3082_v37 = vpop.f32.mrb[51].mxu1 }
0x1705   :  { %v4571_v45 = vpack.i.bf16 %v3082_v37, %v3080_v46  ;;  %4567 = vrot.lane.b32.xlu0 %v4566_v44, %s4690_s7 }
0x1707   :  { %4572 = vrot.lane.b32.xlu1 %v4571_v45, %s4690_s7 }
0x1777   :  { %v4568_v48 = vpop.permute.xlu0 %4567 }
0x1778   :  { %v4570_v39 = vunpack.i.h.bf16 %v4568_v48  ;;  %v4569_v50 = vunpack.i.l.bf16 %v4568_v48 }
0x1779   :  { %v4573_v29 = vpop.permute.xlu1 %4572 }
0x177a   :  { %v4575_v34 = vunpack.i.h.bf16 %v4573_v29  ;;  %v4574_v21 = vunpack.i.l.bf16 %v4573_v29  ;;  %v3107_v36 = vsel %vm194_vm1, %v4570_v39, 0.0  ;;  %v3097_v52 = vsel %vm194_vm1, %v4569_v50, %v4570_v39 }
0x177b   :  { %v3105_v58 = vsel %vm194_vm1, 0.0, %v4569_v50 }
0x177c   :  { %v3108_v27 = vsel %vm194_vm1, %v4575_v34, 0.0  ;;  %v3098_v54 = vsel %vm194_vm1, %v4574_v21, %v4575_v34  ;;  %v3106_v55 = vsel %vm194_vm1, 0.0, %v4574_v21  ;;  %v4040_v57 = vpack.c.bf16 %v4574_v21, %v4569_v50 }
0x177d   :  { %v3111_v53 = vpack.c.bf16 %v3108_v27, %v3107_v36  ;;  %v3110_v31 = vpack.c.bf16 %v3098_v54, %v3097_v52  ;;  %v3109_v59 = vpack.c.bf16 %v3106_v55, %v3105_v58  ;;  %v4684_v27 = vld [vmem:[%s5807_s16 + $0x4] sm:$0xf]  ;;  %v4685_v52 = vld [vmem:[%s5807_s16 + $0x8] sm:$0xf] }
0x177f   :  { %3162 = vrot.lane.b32.xlu1 %v3111_v53, %s5843_s27  ;;  %3160 = vrot.lane.b32.xlu0 %v3110_v31, %s5843_s27 }
0x1780   :  { %3112 = vmatprep.subr.bf16.mxu0 %v3110_v31 }
0x1781   :  { %4041 = vmatpush1.bf16.msk.msra.mxu0 %vm4968_vm11, %v4040_v57 }
0x1783   :  { %3213 = vrot.lane.b32.xlu1 %v3110_v31, %s5844_s1  ;;  %3158 = vrot.lane.b32.xlu0 %v3109_v59, %s5843_s27 }
0x1784   :  { %4042 = vmatmul.mubr.msk.bf16.vlgmr.msra.gmra.mrb[40].mxu0 %vm869_vm4, %v4680_v62 }
0x1785   :  { %3200 = vmatprep.mubr.bf16.mxu0 %v4689_v3 }
0x1787   :  { %3211 = vrot.lane.b32.xlu1 %v3109_v59, %s5844_s1  ;;  %3215 = vrot.lane.b32.xlu0 %v3111_v53, %s5844_s1 }
0x17f1   :  { %v3163_v0 = vpop.permute.xlu1 %3162  ;;  %v3161_v49 = vpop.permute.xlu0 %3160 }
0x17f2   :  { %v3165_v1 = vsel %vm710_vm12, %v3161_v49, %v3163_v0 }
0x17f3   :  { %3168 = vmatprep.subr.bf16.mxu0 %v3165_v1 }
0x17f5   :  { %v3214_v60 = vpop.permute.xlu1 %3213  ;;  %v3159_v61 = vpop.permute.xlu0 %3158 }
0x17f6   :  { %v3164_v63 = vsel %vm710_vm12, %v3159_v61, %v3161_v49 }
0x17f7   :  { %3169 = vmatpush1.bf16.msra.mxu0 %v3164_v63 }
0x17f9   :  { %v3212_v9 = vpop.permute.xlu1 %3211  ;;  %v3216_v11 = vpop.permute.xlu0 %3215 }
0x17fa   :  { %v3217_v10 = vsel %vm777_vm13, %v3212_v9, %v3214_v60  ;;  %4043 = vmatmul.mubr.msk.bf16.vlgmr.msra.gmra.mrb[40].mxu0 %vm869_vm4, %v4681_v14  ;;  %v3218_v15 = vsel %vm777_vm13, %v3214_v60, %v3216_v11 }
0x17fb   :  { %3221 = vmatprep.subr.bf16.mxu0 %v3218_v15  ;;  %3253 = vmatprep.mubr.bf16.mxu0 %v4689_v3 }
0x17fc   :  { %3222 = vmatpush1.bf16.msra.mxu0 %v3217_v10 }
0x1806   :  { %4044 = vmatmul.mubr.msk.bf16.vlgmr.msra.gmra.mrb[40].mxu0 %vm869_vm4, %v4682_v17 }
0x1807   :  { %3323 = vmatprep.mubr.bf16.mxu0 %v4689_v3 }
0x18d9   :  { %v3255_v19 = vpop.f32.mrb[40].mxu0 }
0x18da   :  { %v5669_v20 = vadd.f32 %v3255_v19, %v5219_v33  ;;  %v3257_v23 = vpop.f32.mrb[41].mxu0  ;;  %v4686_v19 = vld [vmem:[%s5809_s18] sm:$0xf] }
0x18db   :  { %v5672_v24 = vadd.f32 %v3257_v23, %v5219_v33  ;;  %v3259_v25 = vpop.f32.mrb[42].mxu0 }
0x18dc   :  { %vm3264_vm11 = vcmp.gt.f32.partialorder %v5669_v20, 0.0  ;;  %v3266_v26 = vmul.f32 0.1, %v5669_v20  ;;  %v3260_v28 = vpop.f32.mrb[43].mxu0 }
0x18dd   :  { %vm3265_vm15 = vcmp.gt.f32.partialorder %v5672_v24, 0.0  ;;  %v3267_v5 = vmul.f32 0.1, %v5672_v24 }
0x18de   :  { %v3268_v6 = vsel %vm3264_vm11, %v5669_v20, %v3266_v26 }
0x18df   :  { %v3269_v30 = vsel %vm3265_vm15, %v5672_v24, %v3267_v5 }
0x18e0   :  { %v4576_v32 = vpack.i.bf16 %v3269_v30, %v3268_v6 }
0x18e2   :  { %4577 = vrot.lane.b32.xlu0 %v4576_v32, %s4690_s7 }
0x1954   :  { %v4578_v35 = vpop.permute.xlu0 %4577 }
0x1955   :  { %v4580_v33 = vunpack.i.h.bf16 %v4578_v35  ;;  %v4579_v38 = vunpack.i.l.bf16 %v4578_v35 }
0x1957   :  { %v3276_v40 = vsel %vm194_vm1, %v4579_v38, %v4580_v33  ;;  %v3280_v4 = vsel %vm194_vm1, 0.0, %v4579_v38  ;;  %v3281_v18 = vsel %vm194_vm1, %v4580_v33, 0.0 }
0x1958   :  { %v3282_v8 = vpack.c.bf16 %v3280_v4, %v3280_v4  ;;  %v3283_v16 = vpack.c.bf16 %v3276_v40, %v3276_v40  ;;  %v3284_v41 = vpack.c.bf16 %v3281_v18, %v3281_v18  ;;  %v4687_v4 = vld [vmem:[%s5809_s18 + $0x4] sm:$0xf] }
0x195a   :  { %3337 = vrot.lane.b32.xlu1 %v3282_v8, %s5843_s27  ;;  %3339 = vrot.lane.b32.xlu0 %v3283_v16, %s5843_s27  ;;  %v3286_v12 = vsel %vm1628_vm5, %v3282_v8, 0 }
0x195b   :  { %4045 = vmatprep.subr.msk.bf16.mxu0 %vm1628_vm5, %v3283_v16 }
0x195c   :  { %3292 = vmatpush1.bf16.msra.mxu0 %v3286_v12 }
0x195e   :  { %3341 = vrot.lane.b32.xlu1 %v3284_v41, %s5843_s27  ;;  %3394 = vrot.lane.b32.xlu0 %v3282_v8, %s5844_s1  ;;  %v4688_v8 = vld [vmem:[%s5809_s18 + $0x8] sm:$0xf] }
0x195f   :  { %4046 = vmatmul.mubr.msk.bf16.vlgmr.msra.gmra.mrb[44].mxu0 %vm1624_vm6, %v4683_v42 }
0x1960   :  { %3383 = vmatprep.mubr.bf16.mxu0 %v4689_v3 }
0x1962   :  { %3396 = vrot.lane.b32.xlu1 %v3283_v16, %s5844_s1  ;;  %3398 = vrot.lane.b32.xlu0 %v3284_v41, %s5844_s1 }
0x19cc   :  { %v3338_v43 = vpop.permute.xlu1 %3337  ;;  %v3340_v44 = vpop.permute.xlu0 %3339 }
0x19cd   :  { %v3343_v46 = vsel %vm710_vm12, %v3338_v43, %v3340_v44 }
0x19ce   :  { %v3346_v39 = vsel %vm1628_vm5, %v3343_v46, 0 }
0x19d0   :  { %v3342_v37 = vpop.permute.xlu1 %3341  ;;  %v3395_v45 = vpop.permute.xlu0 %3394 }
0x19d1   :  { %v3344_v48 = vsel %vm710_vm12, %v3340_v44, %v3342_v37 }
0x19d2   :  { %4047 = vmatprep.subr.msk.bf16.mxu0 %vm1628_vm5, %v3344_v48 }
0x19d3   :  { %3352 = vmatpush1.bf16.msra.mxu0 %v3346_v39 }
0x19d4   :  { %v3397_v50 = vpop.permute.xlu1 %3396  ;;  %v3399_v29 = vpop.permute.xlu0 %3398 }
0x19d5   :  { %v3400_v34 = vsel %vm777_vm13, %v3395_v45, %v3397_v50  ;;  %v3401_v21 = vsel %vm777_vm13, %v3397_v50, %v3399_v29 }
0x19d6   :  { %v3403_v36 = vsel %vm1628_vm5, %v3400_v34, 0  ;;  %4048 = vmatmul.mubr.msk.bf16.vlgmr.msra.gmra.mrb[44].mxu0 %vm1624_vm6, %v4684_v27  ;;  %4049 = vmatprep.subr.msk.bf16.mxu0 %vm1628_vm5, %v3401_v21 }
0x19d7   :  { %3409 = vmatpush1.bf16.msra.mxu0 %v3403_v36  ;;  %3440 = vmatprep.mubr.bf16.mxu0 %v4689_v3 }
0x19e2   :  { %4050 = vmatmul.mubr.msk.bf16.vlgmr.msra.gmra.mrb[44].mxu0 %vm1624_vm6, %v4685_v52 }
0x19e3   :  { %3699 = vmatprep.mubr.bf16.mxu0 %v4689_v3 }
0x1ab5   :  { %v3442_v53 = vpop.f32.mrb[44].mxu0 }
0x1ab6   :  { %v4370_v54 = vadd.f32 %v3442_v53, %v5271_v22  ;;  %v3444_v31 = vpop.f32.mrb[45].mxu0 }
0x1ab7   :  { %v4371_v55 = vadd.f32 %v3444_v31, %v5271_v22  ;;  %v3446_v57 = vpop.f32.mrb[46].mxu0 }
0x1ab8   :  { %vm3451_vm4 = vcmp.gt.f32.partialorder %v4370_v54, 0.0  ;;  %v3453_v58 = vmul.f32 0.1, %v4370_v54  ;;  %v3447_v59 = vpop.f32.mrb[47].mxu0 }
0x1ab9   :  { %vm3452_vm7 = vcmp.gt.f32.partialorder %v4371_v55, 0.0  ;;  %v3454_v62 = vmul.f32 0.1, %v4371_v55 }
0x1aba   :  { %v3455_v0 = vsel %vm3451_vm4, %v4370_v54, %v3453_v58 }
0x1abb   :  { %v3456_v49 = vsel %vm3452_vm7, %v4371_v55, %v3454_v62  ;;  %v27_v55 = vstv %s5812_s21 }
0x1abc   :  { %v4581_v1 = vpack.i.bf16 %v3456_v49, %v3455_v0  ;;  %28 = vst [vmem:[#allocation2] sm:$0x1] %v27_v55 }
0x1abe   :  { %4582 = vrot.lane.b32.xlu1 %v4581_v1, %s4690_s7 }
0x1b30   :  { %v4583_v60 = vpop.permute.xlu1 %4582 }
0x1b31   :  { %v4585_v61 = vunpack.i.h.bf16 %v4583_v60  ;;  %v4584_v63 = vunpack.i.l.bf16 %v4583_v60 }
0x1b33   :  { %v3463_v9 = vsel %vm194_vm1, %v4584_v63, %v4585_v61  ;;  %v3467_v10 = vsel %vm194_vm1, 0.0, %v4584_v63  ;;  %v3468_v14 = vsel %vm194_vm1, %v4585_v61, 0.0 }
0x1b34   :  { %v3469_v11 = vpack.c.bf16 %v3467_v10, %v3467_v10  ;;  %v3470_v22 = vpack.c.bf16 %v3463_v9, %v3463_v9  ;;  %v3471_v17 = vpack.c.bf16 %v3468_v14, %v3468_v14  ;;  %v2036_v9 = vld [vmem:[#allocation2] sm:$0x1] }
0x1b36   :  { %3524 = vrot.lane.b32.xlu0 %v3469_v11, %s5843_s27  ;;  %3526 = vrot.lane.b32.xlu1 %v3470_v22, %s5843_s27  ;;  %v3473_v15 = vsel %vm1628_vm5, %v3469_v11, 0 }
0x1b37   :  { %4051 = vmatprep.subr.msk.bf16.mxu1 %vm1628_vm5, %v3470_v22 }
0x1b38   :  { %3479 = vmatpush1.bf16.msra.mxu1 %v3473_v15 }
0x1b3a   :  { %3528 = vrot.lane.b32.xlu0 %v3471_v17, %s5843_s27  ;;  %3581 = vrot.lane.b32.xlu1 %v3469_v11, %s5844_s1 }
0x1b3b   :  { %4052 = vmatmul.mubr.msk.bf16.vlgmr.msra.gmra.mrb[52].mxu1 %vm1624_vm6, %v4686_v19 }
0x1b3c   :  { %3570 = vmatprep.mubr.bf16.mxu1 %v4689_v3 }
0x1b3e   :  { %3583 = vrot.lane.b32.xlu0 %v3470_v22, %s5844_s1  ;;  %3585 = vrot.lane.b32.xlu1 %v3471_v17, %s5844_s1 }
0x1ba8   :  { %v3525_v23 = vpop.permute.xlu0 %3524  ;;  %v3527_v25 = vpop.permute.xlu1 %3526 }
0x1ba9   :  { %v3530_v26 = vsel %vm710_vm12, %v3525_v23, %v3527_v25 }
0x1baa   :  { %v3533_v30 = vsel %vm1628_vm5, %v3530_v26, 0 }
0x1bac   :  { %v3529_v28 = vpop.permute.xlu0 %3528  ;;  %v3582_v5 = vpop.permute.xlu1 %3581 }
0x1bad   :  { %v3531_v6 = vsel %vm710_vm12, %v3527_v25, %v3529_v28 }
0x1bae   :  { %4053 = vmatprep.subr.msk.bf16.mxu1 %vm1628_vm5, %v3531_v6 }
0x1baf   :  { %3539 = vmatpush1.bf16.msra.mxu1 %v3533_v30 }
0x1bb0   :  { %v3584_v32 = vpop.permute.xlu0 %3583  ;;  %v3586_v35 = vpop.permute.xlu1 %3585 }
0x1bb1   :  { %v3587_v33 = vsel %vm777_vm13, %v3582_v5, %v3584_v32  ;;  %v3588_v38 = vsel %vm777_vm13, %v3584_v32, %v3586_v35  ;;  %v2042_v5 = vlaneseq }
0x1bb2   :  { %v3590_v40 = vsel %vm1628_vm5, %v3587_v33, 0  ;;  %4054 = vmatmul.mubr.msk.bf16.vlgmr.msra.gmra.mrb[56].mxu1 %vm1624_vm6, %v4687_v4  ;;  %4055 = vmatprep.subr.msk.bf16.mxu1 %vm1628_vm5, %v3588_v38 }
0x1bb3   :  { %3596 = vmatpush1.bf16.msra.mxu1 %v3590_v40  ;;  %3627 = vmatprep.mubr.bf16.mxu1 %v4689_v3  ;;  %v2043_v6 = vshrl.u32 %v2042_v5, 7 }
0x1bb5   :  { %v2044_v30 = vsub.s32 0, %v2043_v6 }
0x1bba   :  { %4056 = vmatmul.mubr.msk.bf16.vlgmr.msra.gmra.mrb[60].mxu1 %vm1624_vm6, %v4688_v8 }
0x1c0e   :  { %v3512_v16 = vpop.f32.mrb[52].mxu1 }
0x1c0f   :  { %v3514_v18 = vpop.f32.mrb[53].mxu1  ;;  %v3519_v42 = vadd.f32 %v3512_v16, %v5373_v2 }
0x1c10   :  { %v3516_v12 = vpop.f32.mrb[54].mxu1  ;;  %v3520_v43 = vadd.f32 %v3514_v18, %v5373_v2 }
0x1c11   :  { %v3517_v41 = vpop.f32.mrb[55].mxu1 }
0x1c85   :  { %v3572_v44 = vpop.f32.mrb[56].mxu1 }
0x1c86   :  { %v3579_v46 = vadd.f32 %v3572_v44, %v3519_v42  ;;  %v3574_v37 = vpop.f32.mrb[57].mxu1 }
0x1c87   :  { %v3580_v45 = vadd.f32 %v3574_v37, %v3520_v43  ;;  %v3576_v48 = vpop.f32.mrb[58].mxu1 }
0x1c88   :  { %v3577_v39 = vpop.f32.mrb[59].mxu1 }
0x1c8d   :  { %v3629_v50 = vpop.f32.mrb[60].mxu1 }
0x1c8e   :  { %v3636_v29 = vadd.f32 %v3629_v50, %v3579_v46  ;;  %v3631_v34 = vpop.f32.mrb[61].mxu1 }
0x1c8f   :  { %v3637_v21 = vadd.f32 %v3631_v34, %v3580_v45  ;;  %v3633_v36 = vpop.f32.mrb[62].mxu1 }
0x1c90   :  { %v3638_v27 = vadd.f32 %v5669_v20, %v3636_v29  ;;  %v3634_v52 = vpop.f32.mrb[63].mxu1 }
0x1c91   :  { %v3639_v53 = vadd.f32 %v5672_v24, %v3637_v21 }
0x1c92   :  { %vm3640_vm10 = vcmp.gt.f32.partialorder %v3638_v27, 0.0  ;;  %v3642_v54 = vmul.f32 0.1, %v3638_v27 }
0x1c93   :  { %vm3641_vm8 = vcmp.gt.f32.partialorder %v3639_v53, 0.0  ;;  %v3643_v2 = vmul.f32 0.1, %v3639_v53 }
0x1c94   :  { %v3644_v31 = vsel %vm3640_vm10, %v3638_v27, %v3642_v54 }
0x1c95   :  { %v3645_v57 = vsel %vm3641_vm8, %v3639_v53, %v3643_v2 }
0x1c96   :  { %v4586_v58 = vpack.i.bf16 %v3645_v57, %v3644_v31 }
0x1c98   :  { %4587 = vrot.lane.b32.xlu0 %v4586_v58, %s4690_s7 }
0x1d0a   :  { %v4588_v59 = vpop.permute.xlu0 %4587 }
0x1d0b   :  { %v4590_v62 = vunpack.i.h.bf16 %v4588_v59  ;;  %v4589_v20 = vunpack.i.l.bf16 %v4588_v59 }
0x1d0d   :  { %v3652_v0 = vsel %vm194_vm1, %v4589_v20, %v4590_v62  ;;  %v3656_v24 = vsel %vm194_vm1, 0.0, %v4589_v20  ;;  %v3657_v60 = vsel %vm194_vm1, %v4590_v62, 0.0  ;;  %vm3835_vm1 = vcmask 1040384  }
0x1d0e   :  { %v3658_v49 = vpack.c.bf16 %v3656_v24, %v3656_v24  ;;  %v3659_v1 = vpack.c.bf16 %v3652_v0, %v3652_v0  ;;  %v3660_v63 = vpack.c.bf16 %v3657_v60, %v3657_v60 }
0x1d10   :  { %3713 = vrot.lane.b32.xlu1 %v3658_v49, %s5843_s27  ;;  %3715 = vrot.lane.b32.xlu0 %v3659_v1, %s5843_s27  ;;  %v3662_v61 = vsel %vm1628_vm5, %v3658_v49, 0 }
0x1d11   :  { %4057 = vmatprep.subr.msk.bf16.mxu0 %vm1628_vm5, %v3659_v1 }
0x1d12   :  { %3668 = vmatpush1.bf16.msra.mxu0 %v3662_v61 }
0x1d14   :  { %3717 = vrot.lane.b32.xlu1 %v3660_v63, %s5843_s27  ;;  %3770 = vrot.lane.b32.xlu0 %v3658_v49, %s5844_s1 }
0x1d15   :  { %4058 = vmatmul.mubr.msk.bf16.vlgmr.msra.gmra.mrb[48].mxu0 %vm1624_vm6, %v5390_v51 }
0x1d16   :  { %3759 = vmatprep.mubr.bf16.mxu0 %v4689_v3 }
0x1d18   :  { %3772 = vrot.lane.b32.xlu1 %v3659_v1, %s5844_s1  ;;  %3774 = vrot.lane.b32.xlu0 %v3660_v63, %s5844_s1 }
0x1d1c   :  { %2039 = vperm.xlu1 %4591, %v2036_v9  }
0x1d82   :  { %v3714_v10 = vpop.permute.xlu1 %3713  ;;  %v3716_v11 = vpop.permute.xlu0 %3715 }
0x1d83   :  { %v3719_v22 = vsel %vm710_vm12, %v3714_v10, %v3716_v11 }
0x1d84   :  { %v3722_v19 = vsel %vm1628_vm5, %v3719_v22, 0 }
0x1d86   :  { %v3718_v14 = vpop.permute.xlu1 %3717  ;;  %v3771_v15 = vpop.permute.xlu0 %3770 }
0x1d87   :  { %v3720_v17 = vsel %vm710_vm12, %v3716_v11, %v3718_v14 }
0x1d88   :  { %4059 = vmatprep.subr.msk.bf16.mxu0 %vm1628_vm5, %v3720_v17 }
0x1d89   :  { %3728 = vmatpush1.bf16.msra.mxu0 %v3722_v19 }
0x1d8a   :  { %v3773_v51 = vpop.permute.xlu1 %3772  ;;  %v3775_v23 = vpop.permute.xlu0 %3774 }
0x1d8b   :  { %v3776_v25 = vsel %vm777_vm13, %v3771_v15, %v3773_v51  ;;  %v3777_v26 = vsel %vm777_vm13, %v3773_v51, %v3775_v23 }
0x1d8c   :  { %v3779_v28 = vsel %vm1628_vm5, %v3776_v25, 0  ;;  %4060 = vmatmul.mubr.msk.bf16.vlgmr.msra.gmra.mrb[48].mxu0 %vm1624_vm6, %v5411_v56  ;;  %4061 = vmatprep.subr.msk.bf16.mxu0 %vm1628_vm5, %v3777_v26 }
0x1d8d   :  { %3785 = vmatpush1.bf16.msra.mxu0 %v3779_v28  ;;  %3816 = vmatprep.mubr.bf16.mxu0 %v4689_v3 }
0x1d98   :  { %4062 = vmatmul.mubr.msk.bf16.vlgmr.msra.gmra.mrb[48].mxu0 %vm1624_vm6, %v5426_v13 }
0x1d9b   :  { %v2040_v32 = vpop.permute.xlu1 %2039 }
0x1d9c   :  { %v2045_v35 = vrot.slane %v2040_v32, %v2044_v30 }
0x1d9e   :  { %v4358_v38 = vadd.f32 %v5448_v7, %v2045_v35  ;;  %v4359_v56 = vadd.f32 %v5450_v47, %v2045_v35 }
0x1e6b   :  { %v3818_v33 = vpop.f32.mrb[48].mxu0 }
0x1e6c   :  { %v4372_v40 = vadd.f32 %v3818_v33, %v2045_v35  ;;  %v3820_v4 = vpop.f32.mrb[49].mxu0 }
0x1e6d   :  { %v4373_v8 = vadd.f32 %v3820_v4, %v2045_v35  ;;  %v3822_v16 = vpop.f32.mrb[50].mxu0 }
0x1e6e   :  { %4637 = vtanh.f32 %v4372_v40  ;;  %v3823_v18 = vpop.f32.mrb[51].mxu0 }
0x1e6f   :  { %4639 = vtanh.f32 %v4373_v8 }
0x1e70   :  { %4641 = vtanh.f32 %v4358_v38 }
0x1e71   :  { %4643 = vtanh.f32 %v4359_v56 }
0x1e78   :  { %v4638_v3 = vpop.eup %4637 }
0x1e79   :  { %v4640_v13 = vpop.eup %4639  ;;  %v3831_v12 = vrot.slane %v4638_v3, 7 }
0x1e7a   :  { %v4642_v41 = vpop.eup %4641  ;;  %v3832_v42 = vrot.slane %v4640_v13, 7 }
0x1e7b   :  { %v4644_v43 = vpop.eup %4643  ;;  %v3836_v44 = vsel %vm3835_vm1, %v4642_v41, %v3831_v12 }
0x1e7c   :  { %v3837_v7 = vsel %vm3835_vm1, %v4644_v43, %v3832_v42 }
0x1e7d   :  { %v3840_v46 = vcombine.low %v3836_v44, %v3837_v7 }
0x1e7f   :  { %4063 = vst.sshfl [vmem:[%s5813_s22] sm:$0x33 pattern:$0x76325410] %v3840_v46 }

</bundles_post_ra>
